<compile_context>
chip_gen: v6e
topology: v6e:2x2x1
jax: 0.10.0
libtpu: 0.0.40
codegen_flags: <defaults>
</compile_context>

<pallas_src>
import jax
import jax.numpy as jnp
from jax import lax
from jax.experimental import pallas as pl
from jax.experimental.pallas import tpu as pltpu


# Model hyper-parameters fixed by the PyTorch module.
N_EMBD = 384
N_HEADS = 6
HEAD_SIZE = N_EMBD // N_HEADS
N_LAYERS = 6
CONTEXT_WINDOW = 256
LN_EPS = 1e-5
NEG_MASK = -1e30          # finite "minus infinity" for the causal mask


def _bigram_forward_kernel(
    idx_ref, tok_ref, pos_ref,
    ln1_g_ref, ln1_b_ref, w_qkv_ref, w_proj_ref, b_proj_ref,
    ln2_g_ref, ln2_b_ref, w_ff1_ref, b_ff1_ref, w_ff2_ref, b_ff2_ref,
    w_lm_ref, b_lm_ref,
    logits_ref,
    x_scr,
):
    layer = pl.program_id(0)
    B, T, C = x_scr.shape
    V = tok_ref.shape[0]
    D = C // N_HEADS

    def mm(act_f32, w_bf16):
        # bf16 x bf16 MXU matmul with f32 accumulation (weights streamed bf16).
        return jnp.dot(act_f32.astype(jnp.bfloat16), w_bf16,
                       preferred_element_type=jnp.float32)

    # ---- grid step 0: token + positional embedding (one-hot gather on MXU) ----
    @pl.when(layer == 0)
    def _():
        ids = idx_ref[...]                                            # (B, T) int32
        iota_v = lax.broadcasted_iota(jnp.int32, (B, T, V), 2)
        onehot = (iota_v == ids[:, :, None]).astype(jnp.bfloat16)     # (B, T, V)
        tok = jnp.dot(onehot.reshape(B * T, V), tok_ref[...],
                      preferred_element_type=jnp.float32)             # (B*T, C)
        x_scr[...] = tok.reshape(B, T, C) + pos_ref[...][None, :, :]

    x2d = x_scr[...].reshape(B * T, C)                                # carried activations (f32)

    def layer_norm(h, gamma, beta):
        mu = jnp.mean(h, axis=-1, keepdims=True)
        var = jnp.mean(jnp.square(h - mu), axis=-1, keepdims=True)
        return (h - mu) * lax.rsqrt(var + LN_EPS) * gamma + beta

    # ---- multi-head attention (fused (C, 3C) QKV projection, head-batched) ----
    h1 = layer_norm(x2d, ln1_g_ref[...], ln1_b_ref[...])
    qkv = mm(h1, w_qkv_ref[...]).reshape(B, T, 3 * C)
    q3 = qkv[:, :, :C]
    k3 = qkv[:, :, C:2 * C]
    v3 = qkv[:, :, 2 * C:]

    def split_heads(z):
        # (B, T, C) -> (H*B, T, D); batch index = head * B + b.
        return jnp.concatenate(
            [z[:, :, hd * D:(hd + 1) * D] for hd in range(N_HEADS)], axis=0)

    qh = split_heads(q3)
    kh = split_heads(k3)
    vh = split_heads(v3)

    # NOTE: scale by n_embd**-0.5 (C = x.shape[-1] in the PyTorch Head), not head_size.
    scale = C ** -0.5
    row = lax.broadcasted_iota(jnp.int32, (T, T), 0)
    col = lax.broadcasted_iota(jnp.int32, (T, T), 1)
    causal = (col <= row)[None, :, :]                                 # (1, T, T)

    s = jnp.einsum("bqd,bkd->bqk", qh, kh,
                   preferred_element_type=jnp.float32) * scale        # (H*B, T, T)
    s = jnp.where(causal, s, NEG_MASK)
    s = s - jnp.max(s, axis=-1, keepdims=True)
    p = jnp.exp(s)
    p = p / jnp.sum(p, axis=-1, keepdims=True)                        # exact softmax
    o = jnp.einsum("bqk,bkd->bqd", p, vh,
                   preferred_element_type=jnp.float32)                # (H*B, T, D)

    # Reassemble head-major columns (matches torch.cat([...], dim=-1)).
    attn = jnp.concatenate([o[hd * B:(hd + 1) * B] for hd in range(N_HEADS)],
                           axis=-1).reshape(B * T, C)
    proj = mm(attn, w_proj_ref[...]) + b_proj_ref[...]
    x2d = x2d + proj                                                  # residual 1

    # ---- feedforward ----
    h2 = layer_norm(x2d, ln2_g_ref[...], ln2_b_ref[...])
    f = mm(h2, w_ff1_ref[...]) + b_ff1_ref[...]
    f = jnp.maximum(f, 0.0)
    f = mm(f, w_ff2_ref[...]) + b_ff2_ref[...]
    x2d = x2d + f                                                     # residual 2

    x_scr[...] = x2d.reshape(B, T, C)                                 # carry to next layer

    # ---- after the last block: lm_head ----
    @pl.when(layer == pl.num_programs(0) - 1)
    def _():
        logits = mm(x2d, w_lm_ref[...]) + b_lm_ref[...]
        logits_ref[...] = logits.reshape(logits_ref.shape).astype(logits_ref.dtype)


def bigram_forward(idx, tok_table, pos_table, params):
    """idx: (B, T) int32 token ids.  Weight matrices are bf16, biases/LN f32.
    Returns logits (B, T, vocab) float32."""
    (ln1_g, ln1_b, w_qkv, w_proj, b_proj,
     ln2_g, ln2_b, w_ff1, b_ff1, w_ff2, b_ff2, w_lm, b_lm) = params
    B, T = idx.shape
    L, C, _ = w_qkv.shape
    V = w_lm.shape[1]
    pos = pos_table[:T]                                               # rows 0..T-1

    grid_spec = pltpu.PrefetchScalarGridSpec(
        num_scalar_prefetch=0,
        grid=(L,),                                                    # one step per Block
        in_specs=[
            pl.BlockSpec((B, T), lambda l: (0, 0)),                   # idx (int32)
            pl.BlockSpec((V, C), lambda l: (0, 0)),                   # token table (bf16)
            pl.BlockSpec((T, C), lambda l: (0, 0)),                   # positional rows (f32)
            pl.BlockSpec((None, 1, C), lambda l: (l, 0, 0)),          # ln1 gamma
            pl.BlockSpec((None, 1, C), lambda l: (l, 0, 0)),          # ln1 beta
            pl.BlockSpec((None, C, 3 * C), lambda l: (l, 0, 0)),      # fused Wqkv (bf16)
            pl.BlockSpec((None, C, C), lambda l: (l, 0, 0)),          # attn out-proj W (bf16)
            pl.BlockSpec((None, 1, C), lambda l: (l, 0, 0)),          # attn out-proj b
            pl.BlockSpec((None, 1, C), lambda l: (l, 0, 0)),          # ln2 gamma
            pl.BlockSpec((None, 1, C), lambda l: (l, 0, 0)),          # ln2 beta
            pl.BlockSpec((None, C, 4 * C), lambda l: (l, 0, 0)),      # ffn W1 (bf16)
            pl.BlockSpec((None, 1, 4 * C), lambda l: (l, 0, 0)),      # ffn b1
            pl.BlockSpec((None, 4 * C, C), lambda l: (l, 0, 0)),      # ffn W2 (bf16)
            pl.BlockSpec((None, 1, C), lambda l: (l, 0, 0)),          # ffn b2
            pl.BlockSpec((C, V), lambda l: (0, 0)),                   # lm_head W (bf16)
            pl.BlockSpec((1, V), lambda l: (0, 0)),                   # lm_head b
        ],
        out_specs=pl.BlockSpec((B, T, V), lambda l: (0, 0, 0)),
        scratch_shapes=[pltpu.VMEM((B, T, C), jnp.float32)],          # activation carry
    )

    return pl.pallas_call(
        _bigram_forward_kernel,
        out_shape=jax.ShapeDtypeStruct((B, T, V), jnp.float32),
        grid_spec=grid_spec,
        compiler_params=pltpu.CompilerParams(
            dimension_semantics=("arbitrary",),     # sequential carry over layers
            vmem_limit_bytes=32 * 1024 * 1024,      # ~8 MB live (bf16 layer weights x2)
        ),
    )(idx, tok_table, pos, ln1_g, ln1_b, w_qkv, w_proj, b_proj,
      ln2_g, ln2_b, w_ff1, b_ff1, w_ff2, b_ff2, w_lm, b_lm)


def bigram_reference(idx, tok_table, pos_table, params):
    """Pure-JAX reference mirroring the kernel numerics (bf16 matmul feeds,
    f32 accumulation, exact softmax)."""
    (ln1_g, ln1_b, w_qkv, w_proj, b_proj,
     ln2_g, ln2_b, w_ff1, b_ff1, w_ff2, b_ff2, w_lm, b_lm) = params
    B, T = idx.shape
    C = tok_table.shape[1]
    D = C // N_HEADS

    def mm(a, w):
        return jnp.dot(a.astype(jnp.bfloat16), w, preferred_element_type=jnp.float32)

    def layer_norm(h, gamma, beta):
        mu = jnp.mean(h, axis=-1, keepdims=True)
        var = jnp.mean(jnp.square(h - mu), axis=-1, keepdims=True)
        return (h - mu) * lax.rsqrt(var + LN_EPS) * gamma + beta

    x = tok_table[idx].astype(jnp.float32) + pos_table[:T][None, :, :]
    scale = C ** -0.5
    tril = jnp.tril(jnp.ones((T, T), dtype=bool))
    for l in range(w_qkv.shape[0]):
        h = layer_norm(x, ln1_g[l], ln1_b[l])
        qkv = mm(h, w_qkv[l])
        q, k, v = jnp.split(qkv, 3, axis=-1)
        outs = []
        for hd in range(N_HEADS):
            sl = slice(hd * D, (hd + 1) * D)
            s = jnp.einsum("btd,bsd->bts", q[..., sl], k[..., sl],
                           preferred_element_type=jnp.float32) * scale
            s = jnp.where(tril[None, :, :], s, NEG_MASK)
            s = s - jnp.max(s, axis=-1, keepdims=True)
            p = jnp.exp(s)
            p = p / jnp.sum(p, axis=-1, keepdims=True)
            outs.append(jnp.einsum("bts,bsd->btd", p, v[..., sl],
                                   preferred_element_type=jnp.float32))
        attn = jnp.concatenate(outs, axis=-1)
        x = x + (mm(attn, w_proj[l]) + b_proj[l])
        h2 = layer_norm(x, ln2_g[l], ln2_b[l])
        f = jnp.maximum(mm(h2, w_ff1[l]) + b_ff1[l], 0.0)
        x = x + (mm(f, w_ff2[l]) + b_ff2[l])
    return mm(x, w_lm) + b_lm


if __name__ == "__main__":
    B, T = 2, 8
    VOCAB = 128          # stand-in for len(char_set); multiple of 128 keeps logits lane-dense
    C, L = N_EMBD, N_LAYERS

    root = jax.random.PRNGKey(0)
    k_idx, k_tok, k_pos, k_layers, k_lm = jax.random.split(root, 5)

    idx = jax.random.randint(k_idx, (B, T), 0, VOCAB, dtype=jnp.int32)
    tok_table = jax.random.normal(k_tok, (VOCAB, C), jnp.float32).astype(jnp.bfloat16)
    pos_table = jax.random.normal(k_pos, (CONTEXT_WINDOW, C), jnp.float32)

    def uniform(k, shape, fan_in):
        bound = 1.0 / (fan_in ** 0.5)
        return jax.random.uniform(k, shape, jnp.float32, -bound, bound)

    ln1_g, ln1_b, w_qkv, w_proj, b_proj = [], [], [], [], []
    ln2_g, ln2_b, w_ff1, b_ff1, w_ff2, b_ff2 = [], [], [], [], [], []
    for lk in jax.random.split(k_layers, L):
        ks = jax.random.split(lk, 11)
        ln1_g.append(1.0 + 0.1 * jax.random.normal(ks[0], (1, C), jnp.float32))
        ln1_b.append(0.1 * jax.random.normal(ks[1], (1, C), jnp.float32))
        # [Wq_all | Wk_all | Wv_all], head-major columns inside each block.
        w_qkv.append(uniform(ks[2], (C, 3 * C), C).astype(jnp.bfloat16))
        w_proj.append(uniform(ks[3], (C, C), C).astype(jnp.bfloat16))
        b_proj.append(uniform(ks[4], (1, C), C))
        ln2_g.append(1.0 + 0.1 * jax.random.normal(ks[5], (1, C), jnp.float32))
        ln2_b.append(0.1 * jax.random.normal(ks[6], (1, C), jnp.float32))
        w_ff1.append(uniform(ks[7], (C, 4 * C), C).astype(jnp.bfloat16))
        b_ff1.append(uniform(ks[8], (1, 4 * C), C))
        w_ff2.append(uniform(ks[9], (4 * C, C), 4 * C).astype(jnp.bfloat16))
        b_ff2.append(uniform(ks[10], (1, C), 4 * C))

    k_lm_w, k_lm_b = jax.random.split(k_lm, 2)
    params = (
        jnp.stack(ln1_g), jnp.stack(ln1_b), jnp.stack(w_qkv), jnp.stack(w_proj),
        jnp.stack(b_proj), jnp.stack(ln2_g), jnp.stack(ln2_b),
        jnp.stack(w_ff1), jnp.stack(b_ff1), jnp.stack(w_ff2), jnp.stack(b_ff2),
        uniform(k_lm_w, (C, VOCAB), C).astype(jnp.bfloat16),
        uniform(k_lm_b, (1, VOCAB), C),
    )

    logits = jax.block_until_ready(bigram_forward(idx, tok_table, pos_table, params))

    ref = bigram_reference(idx, tok_table, pos_table, params)
    assert logits.shape == (B, T, VOCAB)
    # Kernel and reference use identical bf16 matmul feeds + exact softmax; the
    # tolerance only has to cover Mosaic-vs-XLA transcendental / accumulation
    # ordering differences across 6 layers.
    assert jnp.allclose(logits, ref, atol=1e-2, rtol=1e-2), "mismatch vs pure-JAX reference"

    print("KERNEL_OK")
</pallas_src>

<mosaic_0001>
module attributes {stable_mosaic.version = 11 : i64} {
  func.func @_bigram_forward_kernel(%arg0: i32, %arg1: memref<2x8xi32, #tpu.memory_space<vmem>>, %arg2: memref<128x384xbf16, #tpu.memory_space<vmem>>, %arg3: memref<8x384xf32, #tpu.memory_space<vmem>>, %arg4: memref<1x1x384xf32, #tpu.memory_space<vmem>>, %arg5: memref<1x1x384xf32, #tpu.memory_space<vmem>>, %arg6: memref<1x384x1152xbf16, #tpu.memory_space<vmem>>, %arg7: memref<1x384x384xbf16, #tpu.memory_space<vmem>>, %arg8: memref<1x1x384xf32, #tpu.memory_space<vmem>>, %arg9: memref<1x1x384xf32, #tpu.memory_space<vmem>>, %arg10: memref<1x1x384xf32, #tpu.memory_space<vmem>>, %arg11: memref<1x384x1536xbf16, #tpu.memory_space<vmem>>, %arg12: memref<1x1x1536xf32, #tpu.memory_space<vmem>>, %arg13: memref<1x1536x384xbf16, #tpu.memory_space<vmem>>, %arg14: memref<1x1x384xf32, #tpu.memory_space<vmem>>, %arg15: memref<384x128xbf16, #tpu.memory_space<vmem>>, %arg16: memref<1x128xf32, #tpu.memory_space<vmem>>, %arg17: memref<2x8x128xf32, #tpu.memory_space<vmem>>, %arg18: memref<2x8x384xf32, #tpu.memory_space<vmem>>) attributes {dimension_semantics = [#tpu.dimension_semantics<arbitrary>], iteration_bounds = array<i64: 6>, scalar_prefetch = 0 : i64, scratch_operands = 1 : i64, tpu.core_type = #tpu.core_type<tc>, window_params = [{pipeline_mode = #tpu.pipeline_mode<synchronous>, transform_indices = @transform_0, window_bounds = array<i64: 2, 8>}, {pipeline_mode = #tpu.pipeline_mode<synchronous>, transform_indices = @transform_1, window_bounds = array<i64: 128, 384>}, {pipeline_mode = #tpu.pipeline_mode<synchronous>, transform_indices = @transform_2, window_bounds = array<i64: 8, 384>}, {transform_indices = @transform_3, window_bounds = array<i64: 1, 1, 384>}, {transform_indices = @transform_4, window_bounds = array<i64: 1, 1, 384>}, {transform_indices = @transform_5, window_bounds = array<i64: 1, 384, 1152>}, {transform_indices = @transform_6, window_bounds = array<i64: 1, 384, 384>}, {transform_indices = @transform_7, window_bounds = array<i64: 1, 1, 384>}, {transform_indices = @transform_8, window_bounds = array<i64: 1, 1, 384>}, {transform_indices = @transform_9, window_bounds = array<i64: 1, 1, 384>}, {transform_indices = @transform_10, window_bounds = array<i64: 1, 384, 1536>}, {transform_indices = @transform_11, window_bounds = array<i64: 1, 1, 1536>}, {transform_indices = @transform_12, window_bounds = array<i64: 1, 1536, 384>}, {transform_indices = @transform_13, window_bounds = array<i64: 1, 1, 384>}, {pipeline_mode = #tpu.pipeline_mode<synchronous>, transform_indices = @transform_14, window_bounds = array<i64: 384, 128>}, {pipeline_mode = #tpu.pipeline_mode<synchronous>, transform_indices = @transform_15, window_bounds = array<i64: 1, 128>}, {pipeline_mode = #tpu.pipeline_mode<synchronous>, transform_indices = @transform_16, window_bounds = array<i64: 2, 8, 128>}]} {
    %c0_i32 = arith.constant 0 : i32
    %0 = arith.cmpi eq, %arg0, %c0_i32 : i32
    %1 = arith.extui %0 : i1 to i32
    %c0_i32_0 = arith.constant 0 : i32
    %2 = arith.cmpi ne, %1, %c0_i32_0 : i32
    scf.if %2 {
      %c0_60 = arith.constant 0 : index
      %c0_61 = arith.constant 0 : index
      %148 = vector.load %arg1[%c0_60, %c0_61] : memref<2x8xi32, #tpu.memory_space<vmem>>, vector<2x8xi32>
      %149 = tpu.iota {dimensions = array<i32: 2>} : vector<2x8x128xi32>
      %150 = vector.shape_cast %148 : vector<2x8xi32> to vector<2x8x1xi32>
      %151 = vector.broadcast %150 : vector<2x8x1xi32> to vector<2x8x128xi32>
      %152 = arith.cmpi eq, %149, %151 : vector<2x8x128xi32>
      %153 = arith.extui %152 : vector<2x8x128xi1> to vector<2x8x128xi32>
      %154 = arith.sitofp %153 : vector<2x8x128xi32> to vector<2x8x128xf32>
      %155 = arith.truncf %154 : vector<2x8x128xf32> to vector<2x8x128xbf16>
      %156 = vector.shape_cast %155 : vector<2x8x128xbf16> to vector<16x128xbf16>
      %c0_62 = arith.constant 0 : index
      %c0_63 = arith.constant 0 : index
      %157 = vector.load %arg2[%c0_62, %c0_63] : memref<128x384xbf16, #tpu.memory_space<vmem>>, vector<128x384xbf16>
      %cst_64 = arith.constant dense<0.000000e+00> : vector<16x384xf32>
      %158 = tpu.matmul %156, %157, %cst_64 {dimension_numbers = #tpu.dot_dimension_numbers<[1], [0], [0], [1], [0, 0, 1, 1], [], []>} : vector<16x128xbf16>, vector<128x384xbf16>, vector<16x384xf32> -> vector<16x384xf32>
      %159 = vector.shape_cast %158 : vector<16x384xf32> to vector<2x8x384xf32>
      %c0_65 = arith.constant 0 : index
      %c0_66 = arith.constant 0 : index
      %160 = vector.load %arg3[%c0_65, %c0_66] : memref<8x384xf32, #tpu.memory_space<vmem>>, vector<8x384xf32>
      %161 = vector.shape_cast %160 : vector<8x384xf32> to vector<1x8x384xf32>
      %162 = vector.broadcast %161 : vector<1x8x384xf32> to vector<2x8x384xf32>
      %163 = arith.addf %159, %162 : vector<2x8x384xf32>
      %c0_67 = arith.constant 0 : index
      %c0_68 = arith.constant 0 : index
      %c0_69 = arith.constant 0 : index
      %164 = vector.load %arg18[%c0_67, %c0_68, %c0_69] : memref<2x8x384xf32, #tpu.memory_space<vmem>>, vector<2x8x384xf32>
      tpu.vector_store %arg18[%c0_67, %c0_68, %c0_69], %163 {strides = array<i32>} : memref<2x8x384xf32, #tpu.memory_space<vmem>>, vector<2x8x384xf32>,
    } else {
    }
    %c0 = arith.constant 0 : index
    %c0_1 = arith.constant 0 : index
    %c0_2 = arith.constant 0 : index
    %3 = vector.load %arg18[%c0, %c0_1, %c0_2] : memref<2x8x384xf32, #tpu.memory_space<vmem>>, vector<2x8x384xf32>
    %4 = vector.shape_cast %3 : vector<2x8x384xf32> to vector<16x384xf32>
    %c0_3 = arith.constant 0 : index
    %c0_4 = arith.constant 0 : index
    %c0_5 = arith.constant 0 : index
    %5 = vector.load %arg4[%c0_3, %c0_4, %c0_5] : memref<1x1x384xf32, #tpu.memory_space<vmem>>, vector<1x1x384xf32>
    %6 = vector.shape_cast %5 : vector<1x1x384xf32> to vector<1x384xf32>
    %c0_6 = arith.constant 0 : index
    %c0_7 = arith.constant 0 : index
    %c0_8 = arith.constant 0 : index
    %7 = vector.load %arg5[%c0_6, %c0_7, %c0_8] : memref<1x1x384xf32, #tpu.memory_space<vmem>>, vector<1x1x384xf32>
    %8 = vector.shape_cast %7 : vector<1x1x384xf32> to vector<1x384xf32>
    %cst = arith.constant dense<0.000000e+00> : vector<16xf32>
    %9 = vector.multi_reduction <add>, %4, %cst [1] : vector<16x384xf32> to vector<16xf32>
    %10 = vector.shape_cast %9 : vector<16xf32> to vector<16x1xf32>
    %cst_9 = arith.constant 3.840000e+02 : f32
    %11 = vector.broadcast %cst_9 : f32 to vector<16x1xf32>
    %12 = arith.divf %10, %11 : vector<16x1xf32>
    %13 = vector.broadcast %12 : vector<16x1xf32> to vector<16x384xf32>
    %14 = arith.subf %4, %13 : vector<16x384xf32>
    %15 = arith.mulf %14, %14 : vector<16x384xf32>
    %cst_10 = arith.constant dense<0.000000e+00> : vector<16xf32>
    %16 = vector.multi_reduction <add>, %15, %cst_10 [1] : vector<16x384xf32> to vector<16xf32>
    %17 = vector.shape_cast %16 : vector<16xf32> to vector<16x1xf32>
    %cst_11 = arith.constant 3.840000e+02 : f32
    %18 = vector.broadcast %cst_11 : f32 to vector<16x1xf32>
    %19 = arith.divf %17, %18 : vector<16x1xf32>
    %20 = vector.broadcast %12 : vector<16x1xf32> to vector<16x384xf32>
    %21 = arith.subf %4, %20 : vector<16x384xf32>
    %cst_12 = arith.constant 9.99999974E-6 : f32
    %22 = vector.broadcast %cst_12 : f32 to vector<16x1xf32>
    %23 = arith.addf %19, %22 : vector<16x1xf32>
    %24 = math.rsqrt %23 : vector<16x1xf32>
    %25 = vector.broadcast %24 : vector<16x1xf32> to vector<16x384xf32>
    %26 = arith.mulf %21, %25 : vector<16x384xf32>
    %27 = vector.broadcast %6 : vector<1x384xf32> to vector<16x384xf32>
    %28 = arith.mulf %26, %27 : vector<16x384xf32>
    %29 = vector.broadcast %8 : vector<1x384xf32> to vector<16x384xf32>
    %30 = arith.addf %28, %29 : vector<16x384xf32>
    %c0_13 = arith.constant 0 : index
    %c0_14 = arith.constant 0 : index
    %c0_15 = arith.constant 0 : index
    %31 = vector.load %arg6[%c0_13, %c0_14, %c0_15] : memref<1x384x1152xbf16, #tpu.memory_space<vmem>>, vector<1x384x1152xbf16>
    %32 = vector.shape_cast %31 : vector<1x384x1152xbf16> to vector<384x1152xbf16>
    %33 = arith.truncf %30 : vector<16x384xf32> to vector<16x384xbf16>
    %cst_16 = arith.constant dense<0.000000e+00> : vector<16x1152xf32>
    %34 = tpu.matmul %33, %32, %cst_16 {dimension_numbers = #tpu.dot_dimension_numbers<[1], [0], [0], [1], [0, 0, 1, 1], [], []>} : vector<16x384xbf16>, vector<384x1152xbf16>, vector<16x1152xf32> -> vector<16x1152xf32>
    %35 = vector.shape_cast %34 : vector<16x1152xf32> to vector<2x8x1152xf32>
    %36 = vector.extract_strided_slice %35 {offsets = [0, 0, 0], sizes = [2, 8, 384], strides = [1, 1, 1]} : vector<2x8x1152xf32> to vector<2x8x384xf32>
    %37 = vector.extract_strided_slice %35 {offsets = [0, 0, 384], sizes = [2, 8, 384], strides = [1, 1, 1]} : vector<2x8x1152xf32> to vector<2x8x384xf32>
    %38 = vector.extract_strided_slice %35 {offsets = [0, 0, 768], sizes = [2, 8, 384], strides = [1, 1, 1]} : vector<2x8x1152xf32> to vector<2x8x384xf32>
    %39 = vector.extract_strided_slice %36 {offsets = [0, 0, 0], sizes = [2, 8, 64], strides = [1, 1, 1]} : vector<2x8x384xf32> to vector<2x8x64xf32>
    %40 = vector.extract_strided_slice %36 {offsets = [0, 0, 64], sizes = [2, 8, 64], strides = [1, 1, 1]} : vector<2x8x384xf32> to vector<2x8x64xf32>
    %41 = vector.extract_strided_slice %36 {offsets = [0, 0, 128], sizes = [2, 8, 64], strides = [1, 1, 1]} : vector<2x8x384xf32> to vector<2x8x64xf32>
    %42 = vector.extract_strided_slice %36 {offsets = [0, 0, 192], sizes = [2, 8, 64], strides = [1, 1, 1]} : vector<2x8x384xf32> to vector<2x8x64xf32>
    %43 = vector.extract_strided_slice %36 {offsets = [0, 0, 256], sizes = [2, 8, 64], strides = [1, 1, 1]} : vector<2x8x384xf32> to vector<2x8x64xf32>
    %44 = vector.extract_strided_slice %36 {offsets = [0, 0, 320], sizes = [2, 8, 64], strides = [1, 1, 1]} : vector<2x8x384xf32> to vector<2x8x64xf32>
    %45 = tpu.concatenate %39, %40, %41, %42, %43, %44 in 0 : vector<2x8x64xf32>, vector<2x8x64xf32>, vector<2x8x64xf32>, vector<2x8x64xf32>, vector<2x8x64xf32>, vector<2x8x64xf32> -> vector<12x8x64xf32>
    %46 = vector.extract_strided_slice %37 {offsets = [0, 0, 0], sizes = [2, 8, 64], strides = [1, 1, 1]} : vector<2x8x384xf32> to vector<2x8x64xf32>
    %47 = vector.extract_strided_slice %37 {offsets = [0, 0, 64], sizes = [2, 8, 64], strides = [1, 1, 1]} : vector<2x8x384xf32> to vector<2x8x64xf32>
    %48 = vector.extract_strided_slice %37 {offsets = [0, 0, 128], sizes = [2, 8, 64], strides = [1, 1, 1]} : vector<2x8x384xf32> to vector<2x8x64xf32>
    %49 = vector.extract_strided_slice %37 {offsets = [0, 0, 192], sizes = [2, 8, 64], strides = [1, 1, 1]} : vector<2x8x384xf32> to vector<2x8x64xf32>
    %50 = vector.extract_strided_slice %37 {offsets = [0, 0, 256], sizes = [2, 8, 64], strides = [1, 1, 1]} : vector<2x8x384xf32> to vector<2x8x64xf32>
    %51 = vector.extract_strided_slice %37 {offsets = [0, 0, 320], sizes = [2, 8, 64], strides = [1, 1, 1]} : vector<2x8x384xf32> to vector<2x8x64xf32>
    %52 = tpu.concatenate %46, %47, %48, %49, %50, %51 in 0 : vector<2x8x64xf32>, vector<2x8x64xf32>, vector<2x8x64xf32>, vector<2x8x64xf32>, vector<2x8x64xf32>, vector<2x8x64xf32> -> vector<12x8x64xf32>
    %53 = vector.extract_strided_slice %38 {offsets = [0, 0, 0], sizes = [2, 8, 64], strides = [1, 1, 1]} : vector<2x8x384xf32> to vector<2x8x64xf32>
    %54 = vector.extract_strided_slice %38 {offsets = [0, 0, 64], sizes = [2, 8, 64], strides = [1, 1, 1]} : vector<2x8x384xf32> to vector<2x8x64xf32>
    %55 = vector.extract_strided_slice %38 {offsets = [0, 0, 128], sizes = [2, 8, 64], strides = [1, 1, 1]} : vector<2x8x384xf32> to vector<2x8x64xf32>
    %56 = vector.extract_strided_slice %38 {offsets = [0, 0, 192], sizes = [2, 8, 64], strides = [1, 1, 1]} : vector<2x8x384xf32> to vector<2x8x64xf32>
    %57 = vector.extract_strided_slice %38 {offsets = [0, 0, 256], sizes = [2, 8, 64], strides = [1, 1, 1]} : vector<2x8x384xf32> to vector<2x8x64xf32>
    %58 = vector.extract_strided_slice %38 {offsets = [0, 0, 320], sizes = [2, 8, 64], strides = [1, 1, 1]} : vector<2x8x384xf32> to vector<2x8x64xf32>
    %59 = tpu.concatenate %53, %54, %55, %56, %57, %58 in 0 : vector<2x8x64xf32>, vector<2x8x64xf32>, vector<2x8x64xf32>, vector<2x8x64xf32>, vector<2x8x64xf32>, vector<2x8x64xf32> -> vector<12x8x64xf32>
    %60 = tpu.iota {dimensions = array<i32: 0>} : vector<8x8xi32>
    %61 = tpu.iota {dimensions = array<i32: 1>} : vector<8x8xi32>
    %62 = arith.cmpi sle, %61, %60 : vector<8x8xi32>
    %63 = vector.shape_cast %62 : vector<8x8xi1> to vector<1x8x8xi1>
    "tpu.trace_start"() <{level = 10 : i32, message = "bqd,bkd->bqk"}> : () -> ()
    %cst_17 = arith.constant dense<0.000000e+00> : vector<12x8x8xf32>
    %64 = tpu.matmul %45, %52, %cst_17 {dimension_numbers = #tpu.dot_dimension_numbers<[2], [2], [1], [1], [0, 0, 0, 1, 1, 1], [0], [0]>} : vector<12x8x64xf32>, vector<12x8x64xf32>, vector<12x8x8xf32> -> vector<12x8x8xf32>
    "tpu.trace_stop"() : () -> ()
    %cst_18 = arith.constant 0.0510310382 : f32
    %65 = vector.broadcast %cst_18 : f32 to vector<12x8x8xf32>
    %66 = arith.mulf %64, %65 : vector<12x8x8xf32>
    %cst_19 = arith.constant -1.000000e+30 : f32
    %67 = vector.shape_cast %63 : vector<1x8x8xi1> to vector<1x8x8xi1>
    %68 = vector.broadcast %67 : vector<1x8x8xi1> to vector<12x8x8xi1>
    %69 = vector.broadcast %cst_19 : f32 to vector<12x8x8xf32>
    %70 = arith.select %68, %66, %69 : vector<12x8x8xi1>, vector<12x8x8xf32>
    %cst_20 = arith.constant dense<0xFF800000> : vector<12x8xf32>
    %71 = vector.multi_reduction <maximumf>, %70, %cst_20 [2] : vector<12x8x8xf32> to vector<12x8xf32>
    %72 = vector.shape_cast %71 : vector<12x8xf32> to vector<12x8x1xf32>
    %73 = vector.broadcast %72 : vector<12x8x1xf32> to vector<12x8x8xf32>
    %74 = arith.subf %70, %73 : vector<12x8x8xf32>
    %75 = math.exp %74 : vector<12x8x8xf32>
    %cst_21 = arith.constant dense<0.000000e+00> : vector<12x8xf32>
    %76 = vector.multi_reduction <add>, %75, %cst_21 [2] : vector<12x8x8xf32> to vector<12x8xf32>
    %77 = vector.shape_cast %76 : vector<12x8xf32> to vector<12x8x1xf32>
    %78 = vector.broadcast %77 : vector<12x8x1xf32> to vector<12x8x8xf32>
    %79 = arith.divf %75, %78 : vector<12x8x8xf32>
    "tpu.trace_start"() <{level = 10 : i32, message = "bqk,bkd->bqd"}> : () -> ()
    %cst_22 = arith.constant dense<0.000000e+00> : vector<12x8x64xf32>
    %80 = tpu.matmul %79, %59, %cst_22 {dimension_numbers = #tpu.dot_dimension_numbers<[2], [1], [1], [2], [0, 0, 0, 1, 1, 2], [0], [0]>} : vector<12x8x8xf32>, vector<12x8x64xf32>, vector<12x8x64xf32> -> vector<12x8x64xf32>
    "tpu.trace_stop"() : () -> ()
    %81 = vector.extract_strided_slice %80 {offsets = [0, 0, 0], sizes = [2, 8, 64], strides = [1, 1, 1]} : vector<12x8x64xf32> to vector<2x8x64xf32>
    %82 = vector.extract_strided_slice %80 {offsets = [2, 0, 0], sizes = [2, 8, 64], strides = [1, 1, 1]} : vector<12x8x64xf32> to vector<2x8x64xf32>
    %83 = vector.extract_strided_slice %80 {offsets = [4, 0, 0], sizes = [2, 8, 64], strides = [1, 1, 1]} : vector<12x8x64xf32> to vector<2x8x64xf32>
    %84 = vector.extract_strided_slice %80 {offsets = [6, 0, 0], sizes = [2, 8, 64], strides = [1, 1, 1]} : vector<12x8x64xf32> to vector<2x8x64xf32>
    %85 = vector.extract_strided_slice %80 {offsets = [8, 0, 0], sizes = [2, 8, 64], strides = [1, 1, 1]} : vector<12x8x64xf32> to vector<2x8x64xf32>
    %86 = vector.extract_strided_slice %80 {offsets = [10, 0, 0], sizes = [2, 8, 64], strides = [1, 1, 1]} : vector<12x8x64xf32> to vector<2x8x64xf32>
    %87 = tpu.concatenate %81, %82, %83, %84, %85, %86 in 2 : vector<2x8x64xf32>, vector<2x8x64xf32>, vector<2x8x64xf32>, vector<2x8x64xf32>, vector<2x8x64xf32>, vector<2x8x64xf32> -> vector<2x8x384xf32>
    %88 = vector.shape_cast %87 : vector<2x8x384xf32> to vector<16x384xf32>
    %c0_23 = arith.constant 0 : index
    %c0_24 = arith.constant 0 : index
    %c0_25 = arith.constant 0 : index
    %89 = vector.load %arg7[%c0_23, %c0_24, %c0_25] : memref<1x384x384xbf16, #tpu.memory_space<vmem>>, vector<1x384x384xbf16>
    %90 = vector.shape_cast %89 : vector<1x384x384xbf16> to vector<384x384xbf16>
    %91 = arith.truncf %88 : vector<16x384xf32> to vector<16x384xbf16>
    %cst_26 = arith.constant dense<0.000000e+00> : vector<16x384xf32>
    %92 = tpu.matmul %91, %90, %cst_26 {dimension_numbers = #tpu.dot_dimension_numbers<[1], [0], [0], [1], [0, 0, 1, 1], [], []>} : vector<16x384xbf16>, vector<384x384xbf16>, vector<16x384xf32> -> vector<16x384xf32>
    %c0_27 = arith.constant 0 : index
    %c0_28 = arith.constant 0 : index
    %c0_29 = arith.constant 0 : index
    %93 = vector.load %arg8[%c0_27, %c0_28, %c0_29] : memref<1x1x384xf32, #tpu.memory_space<vmem>>, vector<1x1x384xf32>
    %94 = vector.shape_cast %93 : vector<1x1x384xf32> to vector<1x384xf32>
    %95 = vector.broadcast %94 : vector<1x384xf32> to vector<16x384xf32>
    %96 = arith.addf %92, %95 : vector<16x384xf32>
    %97 = arith.addf %4, %96 : vector<16x384xf32>
    %c0_30 = arith.constant 0 : index
    %c0_31 = arith.constant 0 : index
    %c0_32 = arith.constant 0 : index
    %98 = vector.load %arg9[%c0_30, %c0_31, %c0_32] : memref<1x1x384xf32, #tpu.memory_space<vmem>>, vector<1x1x384xf32>
    %99 = vector.shape_cast %98 : vector<1x1x384xf32> to vector<1x384xf32>
    %c0_33 = arith.constant 0 : index
    %c0_34 = arith.constant 0 : index
    %c0_35 = arith.constant 0 : index
    %100 = vector.load %arg10[%c0_33, %c0_34, %c0_35] : memref<1x1x384xf32, #tpu.memory_space<vmem>>, vector<1x1x384xf32>
    %101 = vector.shape_cast %100 : vector<1x1x384xf32> to vector<1x384xf32>
    %cst_36 = arith.constant dense<0.000000e+00> : vector<16xf32>
    %102 = vector.multi_reduction <add>, %97, %cst_36 [1] : vector<16x384xf32> to vector<16xf32>
    %103 = vector.shape_cast %102 : vector<16xf32> to vector<16x1xf32>
    %cst_37 = arith.constant 3.840000e+02 : f32
    %104 = vector.broadcast %cst_37 : f32 to vector<16x1xf32>
    %105 = arith.divf %103, %104 : vector<16x1xf32>
    %106 = vector.broadcast %105 : vector<16x1xf32> to vector<16x384xf32>
    %107 = arith.subf %97, %106 : vector<16x384xf32>
    %108 = arith.mulf %107, %107 : vector<16x384xf32>
    %cst_38 = arith.constant dense<0.000000e+00> : vector<16xf32>
    %109 = vector.multi_reduction <add>, %108, %cst_38 [1] : vector<16x384xf32> to vector<16xf32>
    %110 = vector.shape_cast %109 : vector<16xf32> to vector<16x1xf32>
    %cst_39 = arith.constant 3.840000e+02 : f32
    %111 = vector.broadcast %cst_39 : f32 to vector<16x1xf32>
    %112 = arith.divf %110, %111 : vector<16x1xf32>
    %113 = vector.broadcast %105 : vector<16x1xf32> to vector<16x384xf32>
    %114 = arith.subf %97, %113 : vector<16x384xf32>
    %cst_40 = arith.constant 9.99999974E-6 : f32
    %115 = vector.broadcast %cst_40 : f32 to vector<16x1xf32>
    %116 = arith.addf %112, %115 : vector<16x1xf32>
    %117 = math.rsqrt %116 : vector<16x1xf32>
    %118 = vector.broadcast %117 : vector<16x1xf32> to vector<16x384xf32>
    %119 = arith.mulf %114, %118 : vector<16x384xf32>
    %120 = vector.broadcast %99 : vector<1x384xf32> to vector<16x384xf32>
    %121 = arith.mulf %119, %120 : vector<16x384xf32>
    %122 = vector.broadcast %101 : vector<1x384xf32> to vector<16x384xf32>
    %123 = arith.addf %121, %122 : vector<16x384xf32>
    %c0_41 = arith.constant 0 : index
    %c0_42 = arith.constant 0 : index
    %c0_43 = arith.constant 0 : index
    %124 = vector.load %arg11[%c0_41, %c0_42, %c0_43] : memref<1x384x1536xbf16, #tpu.memory_space<vmem>>, vector<1x384x1536xbf16>
    %125 = vector.shape_cast %124 : vector<1x384x1536xbf16> to vector<384x1536xbf16>
    %126 = arith.truncf %123 : vector<16x384xf32> to vector<16x384xbf16>
    %cst_44 = arith.constant dense<0.000000e+00> : vector<16x1536xf32>
    %127 = tpu.matmul %126, %125, %cst_44 {dimension_numbers = #tpu.dot_dimension_numbers<[1], [0], [0], [1], [0, 0, 1, 1], [], []>} : vector<16x384xbf16>, vector<384x1536xbf16>, vector<16x1536xf32> -> vector<16x1536xf32>
    %c0_45 = arith.constant 0 : index
    %c0_46 = arith.constant 0 : index
    %c0_47 = arith.constant 0 : index
    %128 = vector.load %arg12[%c0_45, %c0_46, %c0_47] : memref<1x1x1536xf32, #tpu.memory_space<vmem>>, vector<1x1x1536xf32>
    %129 = vector.shape_cast %128 : vector<1x1x1536xf32> to vector<1x1536xf32>
    %130 = vector.broadcast %129 : vector<1x1536xf32> to vector<16x1536xf32>
    %131 = arith.addf %127, %130 : vector<16x1536xf32>
    %cst_48 = arith.constant 0.000000e+00 : f32
    %132 = vector.broadcast %cst_48 : f32 to vector<16x1536xf32>
    %133 = arith.maximumf %131, %132 : vector<16x1536xf32>
    %c0_49 = arith.constant 0 : index
    %c0_50 = arith.constant 0 : index
    %c0_51 = arith.constant 0 : index
    %134 = vector.load %arg13[%c0_49, %c0_50, %c0_51] : memref<1x1536x384xbf16, #tpu.memory_space<vmem>>, vector<1x1536x384xbf16>
    %135 = vector.shape_cast %134 : vector<1x1536x384xbf16> to vector<1536x384xbf16>
    %136 = arith.truncf %133 : vector<16x1536xf32> to vector<16x1536xbf16>
    %cst_52 = arith.constant dense<0.000000e+00> : vector<16x384xf32>
    %137 = tpu.matmul %136, %135, %cst_52 {dimension_numbers = #tpu.dot_dimension_numbers<[1], [0], [0], [1], [0, 0, 1, 1], [], []>} : vector<16x1536xbf16>, vector<1536x384xbf16>, vector<16x384xf32> -> vector<16x384xf32>
    %c0_53 = arith.constant 0 : index
    %c0_54 = arith.constant 0 : index
    %c0_55 = arith.constant 0 : index
    %138 = vector.load %arg14[%c0_53, %c0_54, %c0_55] : memref<1x1x384xf32, #tpu.memory_space<vmem>>, vector<1x1x384xf32>
    %139 = vector.shape_cast %138 : vector<1x1x384xf32> to vector<1x384xf32>
    %140 = vector.broadcast %139 : vector<1x384xf32> to vector<16x384xf32>
    %141 = arith.addf %137, %140 : vector<16x384xf32>
    %142 = arith.addf %97, %141 : vector<16x384xf32>
    %143 = vector.shape_cast %142 : vector<16x384xf32> to vector<2x8x384xf32>
    %c0_56 = arith.constant 0 : index
    %c0_57 = arith.constant 0 : index
    %c0_58 = arith.constant 0 : index
    %144 = vector.load %arg18[%c0_56, %c0_57, %c0_58] : memref<2x8x384xf32, #tpu.memory_space<vmem>>, vector<2x8x384xf32>
    tpu.vector_store %arg18[%c0_56, %c0_57, %c0_58], %143 {strides = array<i32>} : memref<2x8x384xf32, #tpu.memory_space<vmem>>, vector<2x8x384xf32>,
    %c5_i32 = arith.constant 5 : i32
    %145 = arith.cmpi eq, %arg0, %c5_i32 : i32
    %146 = arith.extui %145 : i1 to i32
    %c0_i32_59 = arith.constant 0 : i32
    %147 = arith.cmpi ne, %146, %c0_i32_59 : i32
    scf.if %147 {
      %c0_60 = arith.constant 0 : index
      %c0_61 = arith.constant 0 : index
      %148 = vector.load %arg15[%c0_60, %c0_61] : memref<384x128xbf16, #tpu.memory_space<vmem>>, vector<384x128xbf16>
      %149 = arith.truncf %142 : vector<16x384xf32> to vector<16x384xbf16>
      %cst_62 = arith.constant dense<0.000000e+00> : vector<16x128xf32>
      %150 = tpu.matmul %149, %148, %cst_62 {dimension_numbers = #tpu.dot_dimension_numbers<[1], [0], [0], [1], [0, 0, 1, 1], [], []>} : vector<16x384xbf16>, vector<384x128xbf16>, vector<16x128xf32> -> vector<16x128xf32>
      %c0_63 = arith.constant 0 : index
      %c0_64 = arith.constant 0 : index
      %151 = vector.load %arg16[%c0_63, %c0_64] : memref<1x128xf32, #tpu.memory_space<vmem>>, vector<1x128xf32>
      %152 = vector.broadcast %151 : vector<1x128xf32> to vector<16x128xf32>
      %153 = arith.addf %150, %152 : vector<16x128xf32>
      %154 = vector.shape_cast %153 : vector<16x128xf32> to vector<2x8x128xf32>
      %c0_65 = arith.constant 0 : index
      %c0_66 = arith.constant 0 : index
      %c0_67 = arith.constant 0 : index
      %155 = vector.load %arg17[%c0_65, %c0_66, %c0_67] : memref<2x8x128xf32, #tpu.memory_space<vmem>>, vector<2x8x128xf32>
      tpu.vector_store %arg17[%c0_65, %c0_66, %c0_67], %154 {strides = array<i32>} : memref<2x8x128xf32, #tpu.memory_space<vmem>>, vector<2x8x128xf32>,
    } else {
    }
    return
  }
  func.func @transform_0(%arg0: i32) -> (i32, i32) {
    %c0_i32 = arith.constant 0 : i32
    %c0_i32_0 = arith.constant 0 : i32
    %c0_i32_1 = arith.constant 0 : i32
    return %c0_i32, %c0_i32_0 : i32, i32
  }
  func.func @transform_1(%arg0: i32) -> (i32, i32) {
    %c0_i32 = arith.constant 0 : i32
    %c0_i32_0 = arith.constant 0 : i32
    %c0_i32_1 = arith.constant 0 : i32
    return %c0_i32, %c0_i32_0 : i32, i32
  }
  func.func @transform_2(%arg0: i32) -> (i32, i32) {
    %c0_i32 = arith.constant 0 : i32
    %c0_i32_0 = arith.constant 0 : i32
    %c0_i32_1 = arith.constant 0 : i32
    return %c0_i32, %c0_i32_0 : i32, i32
  }
  func.func @transform_3(%arg0: i32) -> (i32, i32, i32) {
    %c0_i32 = arith.constant 0 : i32
    %c0_i32_0 = arith.constant 0 : i32
    %c0_i32_1 = arith.constant 0 : i32
    return %arg0, %c0_i32, %c0_i32_0 : i32, i32, i32
  }
  func.func @transform_4(%arg0: i32) -> (i32, i32, i32) {
    %c0_i32 = arith.constant 0 : i32
    %c0_i32_0 = arith.constant 0 : i32
    %c0_i32_1 = arith.constant 0 : i32
    return %arg0, %c0_i32, %c0_i32_0 : i32, i32, i32
  }
  func.func @transform_5(%arg0: i32) -> (i32, i32, i32) {
    %c0_i32 = arith.constant 0 : i32
    %c0_i32_0 = arith.constant 0 : i32
    %c0_i32_1 = arith.constant 0 : i32
    return %arg0, %c0_i32, %c0_i32_0 : i32, i32, i32
  }
  func.func @transform_6(%arg0: i32) -> (i32, i32, i32) {
    %c0_i32 = arith.constant 0 : i32
    %c0_i32_0 = arith.constant 0 : i32
    %c0_i32_1 = arith.constant 0 : i32
    return %arg0, %c0_i32, %c0_i32_0 : i32, i32, i32
  }
  func.func @transform_7(%arg0: i32) -> (i32, i32, i32) {
    %c0_i32 = arith.constant 0 : i32
    %c0_i32_0 = arith.constant 0 : i32
    %c0_i32_1 = arith.constant 0 : i32
    return %arg0, %c0_i32, %c0_i32_0 : i32, i32, i32
  }
  func.func @transform_8(%arg0: i32) -> (i32, i32, i32) {
    %c0_i32 = arith.constant 0 : i32
    %c0_i32_0 = arith.constant 0 : i32
    %c0_i32_1 = arith.constant 0 : i32
    return %arg0, %c0_i32, %c0_i32_0 : i32, i32, i32
  }
  func.func @transform_9(%arg0: i32) -> (i32, i32, i32) {
    %c0_i32 = arith.constant 0 : i32
    %c0_i32_0 = arith.constant 0 : i32
    %c0_i32_1 = arith.constant 0 : i32
    return %arg0, %c0_i32, %c0_i32_0 : i32, i32, i32
  }
  func.func @transform_10(%arg0: i32) -> (i32, i32, i32) {
    %c0_i32 = arith.constant 0 : i32
    %c0_i32_0 = arith.constant 0 : i32
    %c0_i32_1 = arith.constant 0 : i32
    return %arg0, %c0_i32, %c0_i32_0 : i32, i32, i32
  }
  func.func @transform_11(%arg0: i32) -> (i32, i32, i32) {
    %c0_i32 = arith.constant 0 : i32
    %c0_i32_0 = arith.constant 0 : i32
    %c0_i32_1 = arith.constant 0 : i32
    return %arg0, %c0_i32, %c0_i32_0 : i32, i32, i32
  }
  func.func @transform_12(%arg0: i32) -> (i32, i32, i32) {
    %c0_i32 = arith.constant 0 : i32
    %c0_i32_0 = arith.constant 0 : i32
    %c0_i32_1 = arith.constant 0 : i32
    return %arg0, %c0_i32, %c0_i32_0 : i32, i32, i32
  }
  func.func @transform_13(%arg0: i32) -> (i32, i32, i32) {
    %c0_i32 = arith.constant 0 : i32
    %c0_i32_0 = arith.constant 0 : i32
    %c0_i32_1 = arith.constant 0 : i32
    return %arg0, %c0_i32, %c0_i32_0 : i32, i32, i32
  }
  func.func @transform_14(%arg0: i32) -> (i32, i32) {
    %c0_i32 = arith.constant 0 : i32
    %c0_i32_0 = arith.constant 0 : i32
    %c0_i32_1 = arith.constant 0 : i32
    return %c0_i32, %c0_i32_0 : i32, i32
  }
  func.func @transform_15(%arg0: i32) -> (i32, i32) {
    %c0_i32 = arith.constant 0 : i32
    %c0_i32_0 = arith.constant 0 : i32
    %c0_i32_1 = arith.constant 0 : i32
    return %c0_i32, %c0_i32_0 : i32, i32
  }
  func.func @transform_16(%arg0: i32) -> (i32, i32, i32) {
    %c0_i32 = arith.constant 0 : i32
    %c0_i32_0 = arith.constant 0 : i32
    %c0_i32_1 = arith.constant 0 : i32
    %c0_i32_2 = arith.constant 0 : i32
    return %c0_i32, %c0_i32_0, %c0_i32_1 : i32, i32, i32
  }
}

</mosaic_0001>

<bundles_post_ra>
// kernel: tpu_custom_call.1
= control target key start
LH: loop header
LB: loop body
LE: loop exit
PB: predicated region body
PF: predicated region fallthrough
CT: control target
= control target key end

     0   :  { %s17091_s0 = inlined_call_operand.hbm [shape: s32[2,8], index: 0, kind: input, shape index: {}]   ;;  %s17092_s1 = inlined_call_operand.hbm [shape: bf16[128,384], index: 1, kind: input, shape index: {}]   ;;  %s17093_s2 = inlined_call_operand.hbm [shape: f32[8,384], index: 2, kind: input, shape index: {}]   ;;  %s17094_s3 = inlined_call_operand.hbm [shape: f32[6,1,384], index: 3, kind: input, shape index: {}]   ;;  %s17095_s4 = inlined_call_operand.hbm [shape: f32[6,1,384], index: 4, kind: input, shape index: {}]   ;;  %s17096_s5 = inlined_call_operand.hbm [shape: bf16[6,384,1152], index: 5, kind: input, shape index: {}]   ;;  %s17097_s6 = inlined_call_operand.hbm [shape: bf16[6,384,384], index: 6, kind: input, shape index: {}]   ;;  %s17098_s7 = inlined_call_operand.hbm [shape: f32[6,1,384], index: 7, kind: input, shape index: {}]   ;;  %s17099_s8 = inlined_call_operand.hbm [shape: f32[6,1,384], index: 8, kind: input, shape index: {}]   ;;  %s17100_s9 = inlined_call_operand.hbm [shape: f32[6,1,384], index: 9, kind: input, shape index: {}]   ;;  %s17101_s10 = inlined_call_operand.hbm [shape: bf16[6,384,1536], index: 10, kind: input, shape index: {}]   ;;  %s17102_s11 = inlined_call_operand.hbm [shape: f32[6,1,1536], index: 11, kind: input, shape index: {}]   ;;  %s17103_s12 = inlined_call_operand.hbm [shape: bf16[6,1536,384], index: 12, kind: input, shape index: {}]   ;;  %s17104_s13 = inlined_call_operand.hbm [shape: f32[6,1,384], index: 13, kind: input, shape index: {}]   ;;  %s17105_s14 = inlined_call_operand.hbm [shape: bf16[384,128], index: 14, kind: input, shape index: {}]   ;;  %s17106_s15 = inlined_call_operand.hbm [shape: f32[1,128], index: 15, kind: input, shape index: {}]   ;;  %s17107_s16 = inlined_call_operand.hbm [shape: f32[2,8,128], index: 16, kind: output, shape index: {}]  }
   0x1   :  { %17139 = sst [smem:[#allocation48_spill]] %s17091_s0 }
   0x2   :  { %17140 = sst [smem:[#allocation49_spill]] %s17092_s1 }
   0x3   :  { %17141 = sst [smem:[#allocation50_spill]] %s17094_s3 }
   0x4   :  { %17142 = sst [smem:[#allocation51_spill]] %s17096_s5 }
   0x5   :  { %17143 = sst [smem:[#allocation52_spill]] %s17098_s7 }
   0x6   :  { %17144 = sst [smem:[#allocation53_spill]] %s17100_s9 }
   0x7   :  { %17145 = sst [smem:[#allocation54_spill]] %s17101_s10 }
   0x8   :  { %17146 = sst [smem:[#allocation55_spill]] %s17103_s12 }
   0x9   :  { %17147 = sst [smem:[#allocation56_spill]] %s17104_s13 }
   0xa   :  { %17148 = sst [smem:[#allocation57_spill]] %s17105_s14 }
   0xb   :  { %17149 = sst [smem:[#allocation58_spill]] %s17107_s16 }
   0xc   :  { %21 = vsyncpa [#allocation4], 0 }
   0xd   :  { %22 = vsyncpa [#allocation7], 0 }
   0xe   :  { %23 = vsyncpa [#allocation10], 0 }
   0xf   :  { %25 = vsyncpa [#allocation10 + $0x1], 0 }
  0x10   :  { %26 = vsyncpa [#allocation13], 0 }
  0x11   :  { %28 = vsyncpa [#allocation13 + $0x1], 0 }
  0x12   :  { %29 = vsyncpa [#allocation16], 0 }
  0x13   :  { %31 = vsyncpa [#allocation16 + $0x1], 0 }
  0x14   :  { %32 = vsyncpa [#allocation19], 0 }
  0x15   :  { %34 = vsyncpa [#allocation19 + $0x1], 0 }
  0x16   :  { %35 = vsyncpa [#allocation22], 0 }
  0x17   :  { %37 = vsyncpa [#allocation22 + $0x1], 0 }
  0x18   :  { %38 = vsyncpa [#allocation25], 0 }
  0x19   :  { %40 = vsyncpa [#allocation25 + $0x1], 0 }
  0x1a   :  { %41 = vsyncpa [#allocation28], 0 }
  0x1b   :  { %42 = vsyncpa [#allocation5], 0  ;;  %s15005_s21 = smov 0   ;;  %s15007_s22 = smov 0  }
  0x1c   :  { %s15009_s23 = smov 0   ;;  %s15011_s24 = smov 0  }
  0x1d LB: > { %17150 = sst [smem:[#allocation41_spill]] %s14873_s22  ;;  %s15024_s25 = sadd.s32 4294967295, %s14881_s24   ;;  %s14881_s24 = sphi %s15011_s24, %s17206_s24   ;;  %s14877_s23 = sphi %s15009_s23, %s17209_s23   ;;  %s14873_s22 = sphi %s15007_s22, %s17208_s22   ;;  %s14869_s21 = sphi %s15005_s21, %s17207_s21  }
  0x1e   : > { %17151 = sst [smem:[#allocation42_spill]] %s14877_s23  ;;  %s15027_s26 = sadd.s32 1, %s14881_s24  }
  0x1f   : > { %17152 = sst [smem:[#allocation43_spill]] %s15024_s25  ;;  %s115_s27 = ssub.s32 %s14881_s24, %s15027_s26 }
  0x20   : > { %17153 = sst [smem:[#allocation44_spill]] %s15027_s26  ;;  %s118_s28 = sadd.s32 1, %s14877_s23 }
  0x21   : > { %p116_p0 = scmp.eq.s32.totalorder %s115_s27, 0  ;;  %p125_p1 = scmp.ne.s32.totalorder %s14877_s23, %s14873_s22 }
  0x22   : > { %p126_p2 = scmp.eq.s32.totalorder %s14881_s24, 0  ;;  %p131_p3 = scmp.ne.s32.totalorder %s14873_s22, %s14869_s21 }
  0x23   : > { %s15037_s29 = scalar_select %p116_p0, %s14877_s23, %s118_s28  }
  0x24   : > { %p15039_p4 = por %p126_p2, %p125_p1  ;;  %p17108_p5 = scmp.eq.s32.totalorder %s15024_s25, 0 }
  0x25   : > { %17154 = sst [smem:[#allocation45_spill]] %s15037_s29  ;;  %p11325_p6 = scmp.ge.s32.totalorder %s14881_s24, 1 }
  0x26   : > { %p465_p7 = scmp.lt.s32.totalorder %s14881_s24, 7  ;;  %p15048_p8 = por %p17108_p5, %p131_p3 }
  0x27   : > { %s14883_s18 = smov [#allocation6]   ;;  %p12922_p13 = scmp.lt.s32.totalorder %s14881_s24, 6 }
  0x28   : > { %s17156_s0 = scalar_select %p15048_p8, 1, 0 }
  0x29   : > { %p15053_p10 = pnand %p11325_p6, %p465_p7  ;;  %s488_s19 = sshll.u32 %s14883_s18, 4  ;;  %s489_s19 = int_to_ptr.vmem [resolvable:$true] %s488_s19 }
  0x2a   : > { %17157 = sst [smem:[#allocation46_spill]] %s17156_s0  ;;  %p15068_p0 = pnand %p12922_p13, %p15039_p4 }
  0x2b   : > { %s17158_s17 = scalar_select %p15053_p10, 1, 0 }
  0x2c   : > { %p12867_p11 = pneg %p15053_p10  ;;  %s14356_s28 = scalar_lea.vmem %s489_s19, 3072 }
  0x2d   : > { %17159 = sst [smem:[#allocation47_spill]] %s17158_s17  ;;  %p14357_p2 = scmp.ne.s32.totalorder %s489_s19, %s14356_s28 }
  0x2e   : > { %p15061_p12 = pnand %p12867_p11, %p17108_p5  ;;  %p14364_p7 = scmp.lt.s32.totalorder %s489_s19, %s489_s19 }
  0x2f   : > { %s17161_s21 = scalar_select %p15068_p0, 1, 0 }
  0x30   : > { %s17160_s20 = scalar_select %p15061_p12, 1, 0 }
  0x31   : > { %p15074_p1 = pneg %p15061_p12  ;;  %p14365_p11 = scmp.lt.s32.totalorder %s14356_s28, %s14356_s28 }
  0x33   : > { %s17162_s27 = scalar_select %p15074_p1, 1, 0 }
  0x34   : > { %p14359_p3 = pnand %p14357_p2, %p15074_p1  ;;  %p14366_p9 = por %p14365_p11, %p14364_p7 }
  0x36   : > { %p14360_p6 = pneg %p14359_p3 }
  0x38   : > { %p14367_p5 = pnand %p14366_p9, %p14360_p6 }
  0x3a   : > { %14370 = shalt.err (!%p14367_p5)
}
  0x3b   : > { %s17114_s30 = smov 192   ;;  %s17116_s18 = smov 12  }
  0x3c   : > { %s17163_s1 = sld [smem:[#allocation49_spill]]  ;;  %s14886_s16 = smov [#allocation26]  }
  0x3d   : > { %s512_s0 = sshll.u32 %s14886_s16, 4  ;;  %s513_s0 = int_to_ptr.vmem [resolvable:$true] %s512_s0 }
  0x3e   : > { %s14382_s22 = scalar_lea.vmem %s513_s0, 3072  ;;  %p14390_p13 = scmp.lt.s32.totalorder %s513_s0, %s513_s0 }
  0x3f   : > { %p14383_p4 = scmp.ne.s32.totalorder %s513_s0, %s14382_s22  ;;  %p14391_p2 = scmp.lt.s32.totalorder %s14382_s22, %s14382_s22 }
  0x41   : > { %p14385_p9 = pnand %p14383_p4, %p15074_p1  ;;  %p14392_p3 = por %p14391_p2, %p14390_p13 }
  0x42   : > { %12873 = dma.hbm_to_vmem [thread:$0]  (!%p15061_p12), %s17163_s1, 3072, %s489_s19, [#allocation7], %s17114_s30, %s17114_s30, %s17116_s18  }
  0x43   : > { %p14386_p5 = pneg %p14385_p9 }
  0x45   : > { %p14393_p6 = pnand %p14392_p3, %p14386_p5 }
  0x47   : > { %14396 = shalt.err (!%p14393_p6)
}
  0x48   : > { %s14887_s28 = smov 64   ;;  %s14888_s26 = smov 4  }
  0x49   : > { %s17164_s14 = sld [smem:[#allocation57_spill]]  ;;  %s15096_s19 = sand.u32 1, %s14881_s24  }
  0x4a   : > { %s15099_s30 = sand.u32 1, %s14877_s23   ;;  %s15105_s18 = smul.u32 48, %s14881_s24 }
  0x4b   : > { %s15102_s22 = smul.u32 3, %s15099_s30  ;;  %s17165_s3 = sld [smem:[#allocation50_spill]] }
  0x4c   : > { %p15120_p11 = pneg %p15068_p0 }
  0x4e   : > { %s17166_s29 = scalar_select %p15120_p11, 1, 0 }
  0x4f   : > { %12879 = dma.hbm_to_vmem [thread:$0]  (!%p15061_p12), %s17164_s14, 3072, %s513_s0, [#allocation25], %s14887_s28, %s14887_s28, %s14888_s26  }
  0x50   : > { %s541_s0 = scalar_lea.vmem [#allocation9], %s15102_s22 }
  0x51   : > { %s15112_s13 = scalar_lea.hbm %s17165_s3, %s15105_s18  ;;  %s549_s28 = sshll.u32 %s541_s0, 4  ;;  %s550_s28 = int_to_ptr.vmem [resolvable:$true] %s549_s28 }
  0x52   : > { %s14397_s16 = scalar_lea.hbm %s15112_s13, 48  ;;  %s14402_s1 = scalar_lea.hbm %s17165_s3, 288 }
  0x53   : > { %p14398_p7 = scmp.ne.s32.totalorder %s15112_s13, %s14397_s16  ;;  %p14403_p5 = scmp.lt.s32.totalorder %s15112_s13, %s17165_s3 }
  0x54   : > { %p14404_p13 = scmp.lt.s32.totalorder %s14402_s1, %s14397_s16 }
  0x55   : > { %p14400_p4 = pnand %p15120_p11, %p14398_p7 }
  0x56   : > { %p14405_p2 = por %p14404_p13, %p14403_p5 }
  0x57   : > { %p14401_p9 = pneg %p14400_p4 }
  0x59   : > { %p14406_p3 = pnand %p14405_p2, %p14401_p9 }
  0x5b   : > { %14409 = shalt.err (!%p14406_p3)
}
  0x5c   : > { %s14410_s0 = scalar_lea.vmem %s550_s28, 48  ;;  %s14889_s26 = smov [#allocation9]  }
  0x5d   : > { %p14411_p6 = scmp.ne.s32.totalorder %s550_s28, %s14410_s0  ;;  %s14415_s12 = sshll.u32 %s14889_s26, 4  ;;  %s14416_s12 = int_to_ptr.vmem [resolvable:$false] %s14415_s12 }
  0x5e   : > { %s14417_s10 = scalar_lea.vmem %s14416_s12, 96  ;;  %p14418_p7 = scmp.lt.s32.totalorder %s550_s28, %s14416_s12 }
  0x5f   : > { %p14413_p8 = pnand %p14411_p6, %p15120_p11  ;;  %p14419_p4 = scmp.lt.s32.totalorder %s14417_s10, %s14410_s0 }
  0x61   : > { %p14414_p10 = pneg %p14413_p8  ;;  %p14420_p12 = por %p14419_p4, %p14418_p7 }
  0x63   : > { %p14421_p1 = pnand %p14420_p12, %p14414_p10 }
  0x65   : > { %14424 = shalt.err (!%p14421_p1)
}
  0x66   : > { %s17167_s1 = scalar_lea.sflag [#allocation10], %s15096_s19  ;;  %s12799_s14 = smul.u32 27648, %s14881_s24 }
  0x67   : > { %12886 = dma.hbm_to_vmem [thread:$0]  (!%p15068_p0), %s15112_s13, 48, %s550_s28, %s17167_s1  }
  0x68   : > { %s17168_s23 = smul.u32 1728, %s15099_s30  ;;  %s17169_s5 = sld [smem:[#allocation51_spill]] }
  0x69   : > { %s17133_s17 = scalar_lea.sflag [#allocation13], %s15096_s19 }
  0x6a   : > { %s579_s26 = scalar_lea.vmem [#allocation12], %s17168_s23 }
  0x6b   : > { %s586_s16 = sshll.u32 %s579_s26, 4  ;;  %s15143_s16 = int_to_ptr.vmem [resolvable:$true] %s586_s16 }
  0x6e   : > { %s15148_s25 = scalar_lea.hbm %s17169_s5, %s12799_s14  ;;  %s14430_s1 = scalar_lea.hbm %s17169_s5, 165888 }
  0x6f   : > { %s14425_s0 = scalar_lea.hbm %s15148_s25, 27648  ;;  %p14431_p1 = scmp.lt.s32.totalorder %s15148_s25, %s17169_s5 }
  0x70   : > { %p14426_p8 = scmp.ne.s32.totalorder %s15148_s25, %s14425_s0  ;;  %p14432_p9 = scmp.lt.s32.totalorder %s14430_s1, %s14425_s0 }
  0x72   : > { %p14428_p10 = pnand %p14426_p8, %p15120_p11  ;;  %p14433_p5 = por %p14432_p9, %p14431_p1 }
  0x74   : > { %p14429_p12 = pneg %p14428_p10 }
  0x76   : > { %p14434_p13 = pnand %p14433_p5, %p14429_p12 }
  0x78   : > { %14437 = shalt.err (!%p14434_p13)
}
  0x79   : > { %s14438_s14 = scalar_lea.vmem %s15143_s16, 27648  ;;  %s14890_s10 = smov [#allocation12]  }
  0x7a   : > { %p14439_p2 = scmp.ne.s32.totalorder %s15143_s16, %s14438_s14  ;;  %s14443_s12 = sshll.u32 %s14890_s10, 4  ;;  %s14444_s12 = int_to_ptr.vmem [resolvable:$false] %s14443_s12 }
  0x7b   : > { %s14445_s13 = scalar_lea.vmem %s14444_s12, 55296  ;;  %p14446_p7 = scmp.lt.s32.totalorder %s15143_s16, %s14444_s12 }
  0x7c   : > { %p14441_p3 = pnand %p14439_p2, %p15120_p11  ;;  %p14447_p4 = scmp.lt.s32.totalorder %s14445_s13, %s14438_s14 }
  0x7e   : > { %p14442_p6 = pneg %p14441_p3  ;;  %p14448_p8 = por %p14447_p4, %p14446_p7 }
  0x80   : > { %p14449_p10 = pnand %p14448_p8, %p14442_p6 }
  0x82   : > { %14452 = shalt.err (!%p14449_p10)
}
  0x83   : > { %s14891_s0 = smov 576   ;;  %s14892_s28 = smov 36  }
  0x84   : > { %12892 = dma.hbm_to_vmem [thread:$0]  (!%p15068_p0), %s15148_s25, 27648, %s15143_s16, %s17133_s17, %s14891_s0, %s14891_s0, %s14892_s28  }
  0x85   : > { %s17170_s7 = sld [smem:[#allocation52_spill]]  ;;  %s621_s14 = scalar_lea.vmem [#allocation15], %s15102_s22 }
  0x86   : > { %s629_s10 = sshll.u32 %s621_s14, 4  ;;  %s17132_s12 = scalar_lea.sflag [#allocation16], %s15096_s19  ;;  %s630_s10 = int_to_ptr.vmem [resolvable:$true] %s629_s10 }
  0x8b   : > { %s15177_s26 = scalar_lea.hbm %s17170_s7, %s15105_s18  ;;  %s14458_s16 = scalar_lea.hbm %s17170_s7, 288 }
  0x8c   : > { %s14453_s13 = scalar_lea.hbm %s15177_s26, 48  ;;  %p14459_p5 = scmp.lt.s32.totalorder %s15177_s26, %s17170_s7 }
  0x8d   : > { %p14454_p12 = scmp.ne.s32.totalorder %s15177_s26, %s14453_s13  ;;  %p14460_p13 = scmp.lt.s32.totalorder %s14458_s16, %s14453_s13 }
  0x8f   : > { %p14456_p1 = pnand %p14454_p12, %p15120_p11  ;;  %p14461_p2 = por %p14460_p13, %p14459_p5 }
  0x91   : > { %p14457_p9 = pneg %p14456_p1 }
  0x93   : > { %p14462_p3 = pnand %p14461_p2, %p14457_p9 }
  0x95   : > { %14465 = shalt.err (!%p14462_p3)
}
  0x96   : > { %s14466_s28 = scalar_lea.vmem %s630_s10, 48  ;;  %s14893_s1 = smov [#allocation15]  }
  0x97   : > { %p14467_p6 = scmp.ne.s32.totalorder %s630_s10, %s14466_s28  ;;  %s14471_s23 = sshll.u32 %s14893_s1, 4  ;;  %s14472_s23 = int_to_ptr.vmem [resolvable:$false] %s14471_s23 }
  0x98   : > { %s14473_s14 = scalar_lea.vmem %s14472_s23, 96  ;;  %p14474_p8 = scmp.lt.s32.totalorder %s630_s10, %s14472_s23 }
  0x99   : > { %p14469_p7 = pnand %p14467_p6, %p15120_p11  ;;  %p14475_p10 = scmp.lt.s32.totalorder %s14473_s14, %s14466_s28 }
  0x9b   : > { %p14470_p4 = pneg %p14469_p7  ;;  %p14476_p12 = por %p14475_p10, %p14474_p8 }
  0x9d   : > { %p14477_p1 = pnand %p14476_p12, %p14470_p4 }
  0x9f   : > { %14480 = shalt.err (!%p14477_p1)
}
  0xa0   : > { %12898 = dma.hbm_to_vmem [thread:$0]  (!%p15068_p0), %s15177_s26, 48, %s630_s10, %s17132_s12  }
  0xa1   : > { %s17171_s9 = sld [smem:[#allocation53_spill]]  ;;  %s659_s16 = scalar_lea.vmem [#allocation18], %s15102_s22 }
  0xa2   : > { %s667_s25 = sshll.u32 %s659_s16, 4  ;;  %s12810_s0 = smul.u32 12, %s15099_s30  ;;  %s668_s25 = int_to_ptr.vmem [resolvable:$true] %s667_s25 }
  0xa3   : > { %s656_s28 = scalar_lea.sflag [#allocation19], %s15096_s19 }
  0xa7   : > { %s15203_s13 = scalar_lea.hbm %s17171_s9, %s15105_s18  ;;  %s14486_s10 = scalar_lea.hbm %s17171_s9, 288 }
  0xa8   : > { %s14481_s1 = scalar_lea.hbm %s15203_s13, 48  ;;  %p14487_p2 = scmp.lt.s32.totalorder %s15203_s13, %s17171_s9 }
  0xa9   : > { %p14482_p9 = scmp.ne.s32.totalorder %s15203_s13, %s14481_s1  ;;  %p14488_p3 = scmp.lt.s32.totalorder %s14486_s10, %s14481_s1 }
  0xab   : > { %p14484_p5 = pnand %p14482_p9, %p15120_p11  ;;  %p14489_p6 = por %p14488_p3, %p14487_p2 }
  0xad   : > { %p14485_p13 = pneg %p14484_p5 }
  0xaf   : > { %p14490_p7 = pnand %p14489_p6, %p14485_p13 }
  0xb1   : > { %14493 = shalt.err (!%p14490_p7)
}
  0xb2   : > { %s14494_s5 = scalar_lea.vmem %s668_s25, 48  ;;  %s14894_s16 = smov [#allocation18]  }
  0xb3   : > { %p14495_p4 = scmp.ne.s32.totalorder %s668_s25, %s14494_s5  ;;  %s14499_s12 = sshll.u32 %s14894_s16, 4  ;;  %s14500_s12 = int_to_ptr.vmem [resolvable:$false] %s14499_s12 }
  0xb4   : > { %s14501_s17 = scalar_lea.vmem %s14500_s12, 96  ;;  %p14502_p12 = scmp.lt.s32.totalorder %s668_s25, %s14500_s12 }
  0xb5   : > { %p14497_p8 = pnand %p14495_p4, %p15120_p11  ;;  %p14503_p1 = scmp.lt.s32.totalorder %s14501_s17, %s14494_s5 }
  0xb7   : > { %p14498_p10 = pneg %p14497_p8  ;;  %p14504_p9 = por %p14503_p1, %p14502_p12 }
  0xb9   : > { %p14505_p5 = pnand %p14504_p9, %p14498_p10 }
  0xbb   : > { %14508 = shalt.err (!%p14505_p5)
}
  0xbc   : > { %12904 = dma.hbm_to_vmem [thread:$0]  (!%p15068_p0), %s15203_s13, 48, %s668_s25, %s656_s28  }
  0xbd   : > { %s12811_s1 = smul.u32 192, %s14881_s24  ;;  %s699_s23 = scalar_lea.vmem [#allocation21], %s12810_s0 }
  0xbe   : > { %s707_s26 = sshll.u32 %s699_s23, 4  ;;  %s17138_s17 = scalar_lea.sflag [#allocation22], %s15096_s19  ;;  %s708_s26 = int_to_ptr.vmem [resolvable:$true] %s707_s26 }
  0xbf   : > { %s705_s12 = scalar_lea.hbm %s17102_s11, %s12811_s1  ;;  %s14514_s7 = scalar_lea.hbm %s17102_s11, 1152 }
  0xc0   : > { %s14509_s3 = scalar_lea.hbm %s705_s12, 192  ;;  %p14515_p6 = scmp.lt.s32.totalorder %s705_s12, %s17102_s11 }
  0xc1   : > { %p14510_p13 = scmp.ne.s32.totalorder %s705_s12, %s14509_s3  ;;  %p14516_p7 = scmp.lt.s32.totalorder %s14514_s7, %s14509_s3 }
  0xc3   : > { %p14512_p2 = pnand %p14510_p13, %p15120_p11  ;;  %p14517_p4 = por %p14516_p7, %p14515_p6 }
  0xc5   : > { %p14513_p3 = pneg %p14512_p2 }
  0xc7   : > { %p14518_p8 = pnand %p14517_p4, %p14513_p3 }
  0xc9   : > { %14521 = shalt.err (!%p14518_p8)
}
  0xca   : > { %s14522_s25 = scalar_lea.vmem %s708_s26, 192  ;;  %s14895_s0 = smov [#allocation21]  }
  0xcb   : > { %p14523_p10 = scmp.ne.s32.totalorder %s708_s26, %s14522_s25  ;;  %s14527_s1 = sshll.u32 %s14895_s0, 4  ;;  %s14528_s1 = int_to_ptr.vmem [resolvable:$false] %s14527_s1 }
  0xcc   : > { %s14529_s23 = scalar_lea.vmem %s14528_s1, 384  ;;  %p14530_p9 = scmp.lt.s32.totalorder %s708_s26, %s14528_s1 }
  0xcd   : > { %p14525_p12 = pnand %p14523_p10, %p15120_p11  ;;  %p14531_p5 = scmp.lt.s32.totalorder %s14529_s23, %s14522_s25 }
  0xcf   : > { %p14526_p1 = pneg %p14525_p12  ;;  %p14532_p13 = por %p14531_p5, %p14530_p9 }
  0xd1   : > { %p14533_p2 = pnand %p14532_p13, %p14526_p1 }
  0xd3   : > { %14536 = shalt.err (!%p14533_p2)
}
  0xd4   : > { %12910 = dma.hbm_to_vmem [thread:$0]  (!%p15068_p0), %s705_s12, 192, %s708_s26, %s17138_s17  }
  0xd5   : > { %s14896_s7 = smov [#allocation3]   ;;  %s14897_s10 = smov [#allocation8]  }
  0xd6   : > { %s478_s9 = sshll.u32 %s14896_s7, 4  ;;  %s502_s14 = sshll.u32 %s14897_s10, 4  ;;  %s479_s9 = int_to_ptr.vmem [resolvable:$true] %s478_s9  ;;  %s503_s14 = int_to_ptr.vmem [resolvable:$true] %s502_s14 }
  0xd7   : > { %s14548_s3 = scalar_lea.vmem %s479_s9, 32  ;;  %p17172_p6 = scmp.ne.s32.totalorder %s17162_s27, 0 }
  0xd8   : > { %p14549_p3 = scmp.ne.s32.totalorder %s479_s9, %s14548_s3  ;;  %p14556_p8 = scmp.lt.s32.totalorder %s479_s9, %s479_s9 }
  0xd9   : > { %p14557_p10 = scmp.lt.s32.totalorder %s14548_s3, %s14548_s3 }
  0xda   : > { %p14551_p7 = pnand %p14549_p3, %p17172_p6 }
  0xdb   : > { %p14558_p12 = por %p14557_p10, %p14556_p8 }
  0xdc   : > { %p14552_p4 = pneg %p14551_p7 }
  0xde   : > { %p14559_p1 = pnand %p14558_p12, %p14552_p4 }
  0xe0   : > { %14562 = shalt.err (!%p14559_p1)
}
  0xe1   : > { %p17173_p9 = scmp.ne.s32.totalorder %s17160_s20, 0  ;;  %s17174_s26 = sld [smem:[#allocation48_spill]] }
  0xe2   : > { %s14574_s12 = scalar_lea.vmem %s503_s14, 384  ;;  %p14582_p3 = scmp.lt.s32.totalorder %s503_s14, %s503_s14 }
  0xe3   : > { %p14575_p5 = scmp.ne.s32.totalorder %s503_s14, %s14574_s12  ;;  %p14583_p7 = scmp.lt.s32.totalorder %s14574_s12, %s14574_s12 }
  0xe5   : > { %p14577_p13 = pnand %p14575_p5, %p17172_p6  ;;  %p14584_p0 = por %p14583_p7, %p14582_p3 }
  0xe7   : > { %12870 = dma.hbm_to_vmem [thread:$0]  (!%p17173_p9), %s17174_s26, 32, %s479_s9, [#allocation4]  }
  0xe8   : > { %p14578_p2 = pneg %p14577_p13 }
  0xea   : > { %p14585_p11 = pnand %p14584_p0, %p14578_p2 }
  0xec   : > { %14588 = shalt.err (!%p14585_p11)
}
  0xed   : > { %12876 = dma.hbm_to_vmem [thread:$0]  (!%p17173_p9), %s17093_s2, 384, %s503_s14, [#allocation7]  }
  0xee   : > { %s14898_s0 = smov [#allocation27]   ;;  %s15263_s9 = scalar_lea.hbm %s17095_s4, %s15105_s18 }
  0xef   : > { %s526_s1 = sshll.u32 %s14898_s0, 4  ;;  %s527_s1 = int_to_ptr.vmem [resolvable:$true] %s526_s1 }
  0xf0   : > { %s14600_s10 = scalar_lea.vmem %s527_s1, 16  ;;  %s14607_s3 = scalar_lea.vmem %s527_s1, 32 }
  0xf1   : > { %p14601_p4 = scmp.ne.s32.totalorder %s527_s1, %s14600_s10  ;;  %p14608_p8 = scmp.lt.s32.totalorder %s527_s1, %s527_s1 }
  0xf2   : > { %p14609_p10 = scmp.lt.s32.totalorder %s14607_s3, %s14600_s10 }
  0xf3   : > { %p14603_p0 = pnand %p14601_p4, %p17172_p6 }
  0xf4   : > { %p14610_p12 = por %p14609_p10, %p14608_p8 }
  0xf5   : > { %p14604_p11 = pneg %p14603_p0 }
  0xf7   : > { %p14611_p1 = pnand %p14610_p12, %p14604_p11 }
  0xf9   : > { %14614 = shalt.err (!%p14611_p1)
}
  0xfa   : > { %12882 = dma.hbm_to_vmem [thread:$0]  (!%p17173_p9), %s17106_s15, 16, %s527_s1, [#allocation28]  }
  0xfb   : > { %s560_s27 = scalar_lea.vmem [#allocation11], %s15102_s22  ;;  %s12800_s26 = smul.u32 576, %s15099_s30 }
  0xfc   : > { %s568_s16 = sshll.u32 %s560_s27, 4  ;;  %s12801_s12 = smul.u32 9216, %s14881_s24  ;;  %s569_s16 = int_to_ptr.vmem [resolvable:$true] %s568_s16 }
  0xfd   : > { %s14615_s13 = scalar_lea.hbm %s15263_s9, 48  ;;  %p17175_p5 = scmp.ne.s32.totalorder %s17166_s29, 0 }
  0xfe   : > { %p14616_p6 = scmp.ne.s32.totalorder %s15263_s9, %s14615_s13  ;;  %s14620_s0 = scalar_lea.hbm %s17095_s4, 288 }
  0xff   : > { %p14621_p3 = scmp.lt.s32.totalorder %s15263_s9, %s17095_s4  ;;  %p14622_p7 = scmp.lt.s32.totalorder %s14620_s0, %s14615_s13 }
 0x100   : > { %p14618_p13 = pnand %p14616_p6, %p17175_p5 }
 0x101   : > { %p14623_p9 = por %p14622_p7, %p14621_p3 }
 0x102   : > { %p14619_p2 = pneg %p14618_p13 }
 0x104   : > { %p14624_p4 = pnand %p14623_p9, %p14619_p2 }
 0x106   : > { %14627 = shalt.err (!%p14624_p4)
}
 0x107   : > { %s14628_s1 = scalar_lea.vmem %s569_s16, 48  ;;  %s14899_s10 = smov [#allocation11]  }
 0x108   : > { %p14629_p0 = scmp.ne.s32.totalorder %s569_s16, %s14628_s1  ;;  %s14633_s3 = sshll.u32 %s14899_s10, 4  ;;  %s14634_s3 = int_to_ptr.vmem [resolvable:$false] %s14633_s3 }
 0x109   : > { %s14635_s14 = scalar_lea.vmem %s14634_s3, 96  ;;  %p14636_p10 = scmp.lt.s32.totalorder %s569_s16, %s14634_s3 }
 0x10a   : > { %p14631_p11 = pnand %p14629_p0, %p17175_p5  ;;  %p14637_p12 = scmp.lt.s32.totalorder %s14635_s14, %s14628_s1 }
 0x10c   : > { %p14632_p8 = pneg %p14631_p11  ;;  %p14638_p1 = por %p14637_p12, %p14636_p10 }
 0x10e   : > { %p14639_p6 = pnand %p14638_p1, %p14632_p8 }
 0x110   : > { %14642 = shalt.err (!%p14639_p6)
}
 0x111   : > { %p17176_p13 = scmp.ne.s32.totalorder %s17161_s21, 0  ;;  %s17177_s5 = scalar_lea.sflag [#allocation10], %s15096_s19 }
 0x112   : > { %s15296_s20 = scalar_lea.hbm %s17097_s6, %s12801_s12  ;;  %s600_s25 = scalar_lea.vmem [#allocation14], %s12800_s26 }
 0x113   : > { %12889 = dma.hbm_to_vmem [thread:$0]  (!%p17176_p13), %s15263_s9, 48, %s569_s16, %s17177_s5  }
 0x114   : > { %s607_s0 = sshll.u32 %s600_s25, 4  ;;  %s15304_s1 = scalar_lea.hbm %s17099_s8, %s15105_s18  ;;  %s15298_s0 = int_to_ptr.vmem [resolvable:$true] %s607_s0 }
 0x115   : > { %s14643_s10 = scalar_lea.hbm %s15296_s20, 9216  ;;  %s14648_s12 = scalar_lea.hbm %s17097_s6, 55296 }
 0x116   : > { %p14644_p2 = scmp.ne.s32.totalorder %s15296_s20, %s14643_s10  ;;  %p14649_p9 = scmp.lt.s32.totalorder %s15296_s20, %s17097_s6 }
 0x117   : > { %p14650_p4 = scmp.lt.s32.totalorder %s14648_s12, %s14643_s10 }
 0x118   : > { %p14646_p3 = pnand %p14644_p2, %p17175_p5 }
 0x119   : > { %p14651_p0 = por %p14650_p4, %p14649_p9 }
 0x11a   : > { %p14647_p7 = pneg %p14646_p3 }
 0x11c   : > { %p14652_p11 = pnand %p14651_p0, %p14647_p7 }
 0x11e   : > { %14655 = shalt.err (!%p14652_p11)
}
 0x11f   : > { %s14656_s26 = scalar_lea.vmem %s15298_s0, 9216  ;;  %s14900_s5 = smov [#allocation14]  }
 0x120   : > { %p14657_p8 = scmp.ne.s32.totalorder %s15298_s0, %s14656_s26  ;;  %s14661_s27 = sshll.u32 %s14900_s5, 4  ;;  %s14662_s27 = int_to_ptr.vmem [resolvable:$false] %s14661_s27 }
 0x121   : > { %s14663_s13 = scalar_lea.vmem %s14662_s27, 18432  ;;  %p14664_p1 = scmp.lt.s32.totalorder %s15298_s0, %s14662_s27 }
 0x122   : > { %p14659_p10 = pnand %p14657_p8, %p17175_p5  ;;  %p14665_p6 = scmp.lt.s32.totalorder %s14663_s13, %s14656_s26 }
 0x124   : > { %p14660_p12 = pneg %p14659_p10  ;;  %p14666_p2 = por %p14665_p6, %p14664_p1 }
 0x126   : > { %p14667_p3 = pnand %p14666_p2, %p14660_p12 }
 0x128   : > { %14670 = shalt.err (!%p14667_p3)
}
 0x129   : > { %s17178_s25 = smov 12   ;;  %s17179_s23 = smov 192  }
 0x12a   : > { %s17180_s7 = scalar_lea.sflag [#allocation13], %s15096_s19  ;;  %s640_s10 = scalar_lea.vmem [#allocation17], %s15102_s22 }
 0x12b   : > { %12895 = dma.hbm_to_vmem [thread:$0]  (!%p17176_p13), %s15296_s20, 9216, %s15298_s0, %s17180_s7, %s17179_s23, %s17179_s23, %s17178_s25  }
 0x12c   : > { %s648_s9 = sshll.u32 %s640_s10, 4  ;;  %s12808_s16 = smul.u32 2304, %s15099_s30  ;;  %s649_s9 = int_to_ptr.vmem [resolvable:$true] %s648_s9 }
 0x12d   : > { %s12809_s12 = smul.u32 36864, %s14881_s24  ;;  %s14671_s3 = scalar_lea.hbm %s15304_s1, 48 }
 0x12e   : > { %p14672_p7 = scmp.ne.s32.totalorder %s15304_s1, %s14671_s3  ;;  %s14676_s5 = scalar_lea.hbm %s17099_s8, 288 }
 0x12f   : > { %p14677_p0 = scmp.lt.s32.totalorder %s15304_s1, %s17099_s8  ;;  %p14678_p11 = scmp.lt.s32.totalorder %s14676_s5, %s14671_s3 }
 0x130   : > { %p14674_p9 = pnand %p14672_p7, %p17175_p5 }
 0x131   : > { %p14679_p8 = por %p14678_p11, %p14677_p0 }
 0x132   : > { %p14675_p4 = pneg %p14674_p9 }
 0x134   : > { %p14680_p10 = pnand %p14679_p8, %p14675_p4 }
 0x136   : > { %14683 = shalt.err (!%p14680_p10)
}
 0x137   : > { %s14684_s20 = scalar_lea.vmem %s649_s9, 48  ;;  %s14901_s0 = smov [#allocation17]  }
 0x138   : > { %p14685_p12 = scmp.ne.s32.totalorder %s649_s9, %s14684_s20  ;;  %s14689_s7 = sshll.u32 %s14901_s0, 4  ;;  %s14690_s7 = int_to_ptr.vmem [resolvable:$false] %s14689_s7 }
 0x139   : > { %s14691_s10 = scalar_lea.vmem %s14690_s7, 96  ;;  %p14692_p2 = scmp.lt.s32.totalorder %s649_s9, %s14690_s7 }
 0x13a   : > { %p14687_p1 = pnand %p14685_p12, %p17175_p5  ;;  %p14693_p3 = scmp.lt.s32.totalorder %s14691_s10, %s14684_s20 }
 0x13c   : > { %p14688_p6 = pneg %p14687_p1  ;;  %p14694_p7 = por %p14693_p3, %p14692_p2 }
 0x13e   : > { %p14695_p9 = pnand %p14694_p7, %p14688_p6 }
 0x140   : > { %14698 = shalt.err (!%p14695_p9)
}
 0x141   : > { %s17181_s3 = scalar_lea.sflag [#allocation16], %s15096_s19  ;;  %s17182_s5 = sld [smem:[#allocation54_spill]] }
 0x142   : > { %12901 = dma.hbm_to_vmem [thread:$0]  (!%p17176_p13), %s15304_s1, 48, %s649_s9, %s17181_s3  }
 0x143   : > { %s678_s13 = scalar_lea.vmem [#allocation20], %s12808_s16 }
 0x144   : > { %s685_s20 = sshll.u32 %s678_s13, 4  ;;  %s15361_s20 = int_to_ptr.vmem [resolvable:$true] %s685_s20 }
 0x147   : > { %s15357_s27 = scalar_lea.hbm %s17182_s5, %s12809_s12  ;;  %s14704_s7 = scalar_lea.hbm %s17182_s5, 221184 }
 0x148   : > { %s14699_s0 = scalar_lea.hbm %s15357_s27, 36864  ;;  %p14705_p8 = scmp.lt.s32.totalorder %s15357_s27, %s17182_s5 }
 0x149   : > { %p14700_p4 = scmp.ne.s32.totalorder %s15357_s27, %s14699_s0  ;;  %p14706_p10 = scmp.lt.s32.totalorder %s14704_s7, %s14699_s0 }
 0x14b   : > { %p14702_p0 = pnand %p14700_p4, %p17175_p5  ;;  %p14707_p12 = por %p14706_p10, %p14705_p8 }
 0x14d   : > { %p14703_p11 = pneg %p14702_p0 }
 0x14f   : > { %p14708_p1 = pnand %p14707_p12, %p14703_p11 }
 0x151   : > { %14711 = shalt.err (!%p14708_p1)
}
 0x152   : > { %s14712_s14 = scalar_lea.vmem %s15361_s20, 36864  ;;  %s14902_s26 = smov [#allocation20]  }
 0x153   : > { %p14713_p6 = scmp.ne.s32.totalorder %s15361_s20, %s14712_s14  ;;  %s14717_s13 = sshll.u32 %s14902_s26, 4  ;;  %s14718_s13 = int_to_ptr.vmem [resolvable:$false] %s14717_s13 }
 0x154   : > { %s14719_s1 = scalar_lea.vmem %s14718_s13, 73728  ;;  %p14720_p7 = scmp.lt.s32.totalorder %s15361_s20, %s14718_s13 }
 0x155   : > { %p14715_p2 = pnand %p14713_p6, %p17175_p5  ;;  %p14721_p9 = scmp.lt.s32.totalorder %s14719_s1, %s14712_s14 }
 0x157   : > { %p14716_p3 = pneg %p14715_p2  ;;  %p14722_p4 = por %p14721_p9, %p14720_p7 }
 0x159   : > { %p14723_p0 = pnand %p14722_p4, %p14716_p3 }
 0x15b   : > { %14726 = shalt.err (!%p14723_p0)
}
 0x15c   : > { %s14903_s0 = smov 768   ;;  %s14904_s9 = smov 48  }
 0x15d   : > { %12907 = dma.hbm_to_vmem [thread:$0]  (!%p17176_p13), %s15357_s27, 36864, %s15361_s20, %s656_s28, %s14903_s0, %s14903_s0, %s14904_s9  }
 0x15e   : > { %s17183_s3 = sld [smem:[#allocation55_spill]]  ;;  %s718_s26 = scalar_lea.vmem [#allocation23], %s12808_s16 }
 0x15f   : > { %s725_s13 = sshll.u32 %s718_s26, 4  ;;  %s726_s13 = int_to_ptr.vmem [resolvable:$true] %s725_s13 }
 0x164   : > { %s15390_s14 = scalar_lea.hbm %s17183_s3, %s12809_s12  ;;  %s14732_s24 = scalar_lea.hbm %s17183_s3, 221184 }
 0x165   : > { %s14727_s1 = scalar_lea.hbm %s15390_s14, 36864  ;;  %p14733_p12 = scmp.lt.s32.totalorder %s15390_s14, %s17183_s3 }
 0x166   : > { %p14728_p11 = scmp.ne.s32.totalorder %s15390_s14, %s14727_s1  ;;  %p14734_p1 = scmp.lt.s32.totalorder %s14732_s24, %s14727_s1 }
 0x168   : > { %p14730_p8 = pnand %p14728_p11, %p17175_p5  ;;  %p14735_p6 = por %p14734_p1, %p14733_p12 }
 0x16a   : > { %p14731_p10 = pneg %p14730_p8 }
 0x16c   : > { %p14736_p2 = pnand %p14735_p6, %p14731_p10 }
 0x16e   : > { %14739 = shalt.err (!%p14736_p2)
}
 0x16f   : > { %s14740_s30 = scalar_lea.vmem %s726_s13, 36864  ;;  %s14905_s16 = smov [#allocation23]  }
 0x170   : > { %p14741_p3 = scmp.ne.s32.totalorder %s726_s13, %s14740_s30  ;;  %s14745_s12 = sshll.u32 %s14905_s16, 4  ;;  %s14746_s12 = int_to_ptr.vmem [resolvable:$false] %s14745_s12 }
 0x171   : > { %s14747_s0 = scalar_lea.vmem %s14746_s12, 73728  ;;  %p14748_p4 = scmp.lt.s32.totalorder %s726_s13, %s14746_s12 }
 0x172   : > { %p14743_p7 = pnand %p14741_p3, %p17175_p5  ;;  %p14749_p0 = scmp.lt.s32.totalorder %s14747_s0, %s14740_s30 }
 0x174   : > { %p14744_p9 = pneg %p14743_p7  ;;  %p14750_p11 = por %p14749_p0, %p14748_p4 }
 0x176   : > { %p14751_p8 = pnand %p14750_p11, %p14744_p9 }
 0x178   : > { %14754 = shalt.err (!%p14751_p8)
}
 0x179   : > { %s17184_s17 = scalar_lea.sflag [#allocation22], %s15096_s19  ;;  %s17185_s10 = sld [smem:[#allocation56_spill]] }
 0x17a   : > { %12913 = dma.hbm_to_vmem [thread:$0]  (!%p17176_p13), %s15390_s14, 36864, %s726_s13, %s17184_s17, %s17179_s23, %s17179_s23, %s17178_s25  }
 0x17b   : > { %s739_s1 = scalar_lea.vmem [#allocation24], %s15102_s22  ;;  %s736_s24 = scalar_lea.sflag [#allocation25], %s15096_s19 }
 0x17c   : > { %s747_s28 = sshll.u32 %s739_s1, 4  ;;  %s748_s28 = int_to_ptr.vmem [resolvable:$true] %s747_s28 }
 0x17f   : > { %s15419_s26 = scalar_lea.hbm %s17185_s10, %s15105_s18  ;;  %s14760_s25 = scalar_lea.hbm %s17185_s10, 288 }
 0x180   : > { %s14755_s27 = scalar_lea.hbm %s15419_s26, 48  ;;  %p14761_p6 = scmp.lt.s32.totalorder %s15419_s26, %s17185_s10 }
 0x181   : > { %p14756_p10 = scmp.ne.s32.totalorder %s15419_s26, %s14755_s27  ;;  %p14762_p2 = scmp.lt.s32.totalorder %s14760_s25, %s14755_s27 }
 0x183   : > { %p14758_p12 = pnand %p14756_p10, %p17175_p5  ;;  %p14763_p3 = por %p14762_p2, %p14761_p6 }
 0x185   : > { %p14759_p1 = pneg %p14758_p12 }
 0x187   : > { %p14764_p7 = pnand %p14763_p3, %p14759_p1 }
 0x189   : > { %14767 = shalt.err (!%p14764_p7)
}
 0x18a   : > { %s14768_s18 = scalar_lea.vmem %s748_s28, 48  ;;  %s14906_s19 = smov [#allocation24]  }
 0x18b   : > { %p14769_p9 = scmp.ne.s32.totalorder %s748_s28, %s14768_s18  ;;  %s14773_s22 = sshll.u32 %s14906_s19, 4  ;;  %s14774_s22 = int_to_ptr.vmem [resolvable:$false] %s14773_s22 }
 0x18c   : > { %s14775_s13 = scalar_lea.vmem %s14774_s22, 96  ;;  %p14776_p11 = scmp.lt.s32.totalorder %s748_s28, %s14774_s22 }
 0x18d   : > { %p14771_p4 = pnand %p14769_p9, %p17175_p5  ;;  %p14777_p8 = scmp.lt.s32.totalorder %s14775_s13, %s14768_s18 }
 0x18f   : > { %p14772_p0 = pneg %p14771_p4  ;;  %p14778_p10 = por %p14777_p8, %p14776_p11 }
 0x191   : > { %p14779_p12 = pnand %p14778_p10, %p14772_p0 }
 0x193   : > { %14782 = shalt.err (!%p14779_p12)
}
 0x194   : > { %12916 = dma.hbm_to_vmem [thread:$0]  (!%p17176_p13), %s15419_s26, 48, %s748_s28, %s736_s24  }
 0x195   : > { %s17186_s16 = sld [smem:[#allocation47_spill]] }
 0x19b   : > { %p17187_p1 = scmp.ne.s32.totalorder %s17186_s16, 0 }
 0x19c   : > { %s17188_s12 = sld [smem:[#allocation43_spill]] (!%p17187_p1) }
 0x19d   : > { %756 = sbr.rel (%p17187_p1) target bundleno = 3962 (0xf7a), region = 84 }
 0x1a2   : > { %p17189_p6 = scmp.eq.s32.totalorder %s17188_s12, 0 }
 0x1a4   : > { %14824 = dma.done.wait (%p17189_p6), [#allocation4], 32   ;;  %p17190_p5 = pmov %p17189_p6 }
 0x1a6   : > { %14826 = vsyncadd (%p17190_p5), [#allocation4], 4294967264  ;;  %p17191_p2 = pmov %p17190_p5 }
 0x1a8   : > { %14828 = dma.done.wait (%p17191_p2), [#allocation7], 3456   ;;  %p17192_p3 = pmov %p17191_p2 }
 0x1a9   : > { %s17193_s29 = sld [smem:[#allocation41_spill]]  ;;  %s15450_s0 = sand.u32 1, %s17188_s12  }
 0x1aa   : > { %14830 = vsyncadd (%p17192_p3), [#allocation7], 4294963840  ;;  %s17194_s21 = sld [smem:[#allocation46_spill]]  ;;  %s771_s7 = scalar_lea.sflag [#allocation10], %s15450_s0 }
 0x1af   : > { %s15453_s17 = sand.u32 1, %s17193_s29  }
 0x1b0   : > { %s15456_s9 = smul.u32 3, %s15453_s17  ;;  %p17195_p13 = scmp.ne.s32.totalorder %s17194_s21, 0 }
 0x1b2   : > { %s774_s26 = scalar_lea.vmem [#allocation9], %s15456_s9 }
 0x1b3   : > { %14832 = dma.done.wait (%p17195_p13), %s771_s7, 96  }
 0x1b4   : > { %14834 = vsyncadd (%p17195_p13), %s771_s7, 4294967200  ;;  %s12817_s1 = smul.u32 1728, %s15453_s17  ;;  %s783_s28 = scalar_lea.vmem [#allocation11], %s15456_s9 }
 0x1b5   : > { %s789_s24 = scalar_lea.sflag [#allocation13], %s15450_s0 }
 0x1b6   : > { %s15467_s27 = scalar_lea.vmem [#allocation12], %s12817_s1 }
 0x1b7   : > { %14836 = dma.done.wait (%p17195_p13), %s789_s24, 36864  }
 0x1b8   : > { %14838 = vsyncadd (%p17195_p13), %s789_s24, 4294930432  ;;  %s12818_s20 = smul.u32 576, %s15453_s17  ;;  %s807_s25 = scalar_lea.sflag [#allocation16], %s15450_s0 }
 0x1b9   : > { %s810_s23 = scalar_lea.vmem [#allocation15], %s15456_s9 }
 0x1ba   : > { %s15474_s30 = scalar_lea.vmem [#allocation14], %s12818_s20 }
 0x1bb   : > { %14840 = dma.done.wait (%p17195_p13), %s807_s25, 96  }
 0x1bc   : > { %14842 = vsyncadd (%p17195_p13), %s807_s25, 4294967200  ;;  %s819_s14 = scalar_lea.vmem [#allocation17], %s15456_s9  ;;  %s825_s18 = scalar_lea.sflag [#allocation19], %s15450_s0 }
 0x1bd   : > { %s828_s19 = scalar_lea.vmem [#allocation18], %s15456_s9 }
 0x1be   : > { %14844 = dma.done.wait (%p17195_p13), %s825_s18, 36912  }
 0x1bf   : > { %14846 = vsyncadd (%p17195_p13), %s825_s18, 4294930384  ;;  %s12819_s22 = smul.u32 2304, %s15453_s17  ;;  %s843_s29 = scalar_lea.sflag [#allocation22], %s15450_s0 }
 0x1c0   : > { %s12820_s13 = smul.u32 12, %s15453_s17 }
 0x1c1   : > { %s15491_s16 = scalar_lea.vmem [#allocation20], %s12819_s22 }
 0x1c2   : > { %s15494_s7 = scalar_lea.vmem [#allocation21], %s12820_s13 }
 0x1c3   : > { %14848 = dma.done.wait (%p17195_p13), %s843_s29, 37056  }
 0x1c4   : > { %14850 = vsyncadd (%p17195_p13), %s843_s29, 4294930240  ;;  %s15500_s1 = scalar_lea.vmem [#allocation23], %s12819_s22  ;;  %s861_s24 = scalar_lea.sflag [#allocation25], %s15450_s0 }
 0x1c5   : > { %s864_s20 = scalar_lea.vmem [#allocation24], %s15456_s9 }
 0x1c6   : > { %14852 = dma.done.wait (%p17195_p13), %s861_s24, 48  }
 0x1c7   : > { %14854 = vsyncadd (%p17195_p13), %s861_s24, 4294967248  ;;  %p17196_p7 = pmov %p17191_p2 }
 0x1c8   : > { %p17197_p9 = pmov %p17191_p2 }
 0x1c9   : > { %14856 = dma.done.wait (%p17196_p7), [#allocation25], 3072  }
 0x1ca   : > { %14858 = vsyncadd (%p17197_p9), [#allocation25], 4294964224  ;;  %p17198_p4 = pmov %p17191_p2 }
 0x1cb   : > { %p17199_p0 = pmov %p17191_p2 }
 0x1cc   : > { %14860 = dma.done.wait (%p17198_p4), [#allocation28], 16  }
 0x1cd   : > { %14862 = vsyncadd (%p17199_p0), [#allocation28], 4294967280  ;;  %p17200_p11 = scmp.ne.s32.totalorder %s17188_s12, 0 }
 0x1cf   : > { %970 = sbr.rel (%p17200_p11) target bundleno = 799 (0x31f), region = 152 }
 0x1d4   : > { %v972_v0 = vlaneseq  ;;  %v971_v1 = vld [vmem:[#allocation3] sm:$0x3]  ;;  %v12988_v2 = vld [vmem:[#allocation6 + $0xac] ss:$12 sps:$4 sm:$0xff]   ;;  %v14907_v3 = vmov 0.0   ;;  %v14908_v5 = vmov 0  }
 0x1d5   : > { %12594 = vmatprep.subr.bf16.mxu1 %v14907_v3  ;;  %v12990_v4 = vld [vmem:[#allocation6 + $0xa8] ss:$12 sps:$4 sm:$0xff]   ;;  %1194 = vmatprep.mubr.bf16.mxu0 %v14908_v5  ;;  %v12991_v7 = vld [vmem:[#allocation6 + $0xb0] ss:$12 sps:$4 sm:$0xff]   ;;  %v12995_v12 = vld [vmem:[#allocation6 + $0x98] ss:$12 sps:$4 sm:$0xff]  }
 0x1d6   : > { %v975_v6 = vshrl.u32 %v972_v0, 7  ;;  %1162 = vmatprep.subr.bf16.mxu0 %v12988_v2  ;;  %v12992_v8 = vld [vmem:[#allocation6 + $0x94] ss:$12 sps:$4 sm:$0xff]   ;;  %v12994_v9 = vld [vmem:[#allocation6 + $0x90] ss:$12 sps:$4 sm:$0xff]   ;;  %12595 = vmatpush3.bf16.msra.mxu1 %v12991_v7  ;;  %vm14909_vm0 = vmmov 0  }
 0x1d7   : > { %1163 = vmatpush1.bf16.msra.mxu0 %v12990_v4  ;;  %12596 = vmatprep.subr.bf16.mxu1 %v14907_v3  ;;  %v12996_v14 = vld [vmem:[#allocation6 + $0x7c] ss:$12 sps:$4 sm:$0xff]   ;;  %v12998_v16 = vld [vmem:[#allocation6 + $0x78] ss:$12 sps:$4 sm:$0xff]   ;;  %v12999_v17 = vld [vmem:[#allocation6 + $0x80] ss:$12 sps:$4 sm:$0xff]  }
 0x1d8   : > { %v976_v10 = vsub.s32 0, %v975_v6  ;;  %v983_v11 = vsub.s32 1, %v975_v6  ;;  %1164 = vmatprep.subr.bf16.mxu0 %v12992_v8  ;;  %12610 = vmatprep.mubr.msk.bf16.mxu1 %vm14909_vm0, %v14907_v3  ;;  %v13000_v18 = vld [vmem:[#allocation6 + $0x64] ss:$12 sps:$4 sm:$0xff]   ;;  %v13002_v19 = vld [vmem:[#allocation6 + $0x60] ss:$12 sps:$4 sm:$0xff]  }
 0x1d9   : > { %v13003_v20 = vld [vmem:[#allocation6 + $0x68] ss:$12 sps:$4 sm:$0xff]   ;;  %v13004_v21 = vld [vmem:[#allocation6 + $0x4c] ss:$12 sps:$4 sm:$0xff]   ;;  %v13007_v23 = vld [vmem:[#allocation6 + $0x50] ss:$12 sps:$4 sm:$0xff]  }
 0x1da   : > { %v977_v13 = vrot.slane %v971_v1, %v976_v10  ;;  %v984_v15 = vrot.slane %v971_v1, %v983_v11  ;;  %12597 = vmatpush3.bf16.msra.mxu1 %v12995_v12  ;;  %v13006_v22 = vld [vmem:[#allocation6 + $0x48] ss:$12 sps:$4 sm:$0xff]   ;;  %v13010_v25 = vld [vmem:[#allocation6 + $0x30] ss:$12 sps:$4 sm:$0xff]   ;;  %v13011_v26 = vld [vmem:[#allocation6 + $0x38] ss:$12 sps:$4 sm:$0xff]  }
 0x1db   : > { %1165 = vmatpush1.bf16.msra.mxu0 %v12994_v9  ;;  %12598 = vmatprep.subr.bf16.mxu1 %v14907_v3  ;;  %v13008_v24 = vld [vmem:[#allocation6 + $0x34] ss:$12 sps:$4 sm:$0xff]   ;;  %v13012_v27 = vld [vmem:[#allocation6 + $0x1c] ss:$12 sps:$4 sm:$0xff]   ;;  %v13014_v28 = vld [vmem:[#allocation6 + $0x18] ss:$12 sps:$4 sm:$0xff]  }
 0x1dc   : > { %979 = vbcast.lane.b32.xlu0 %v977_v13, 256  ;;  %1166 = vmatprep.subr.bf16.mxu0 %v12996_v14  ;;  %v13015_v29 = vld [vmem:[#allocation6 + $0x20] ss:$12 sps:$4 sm:$0xff]   ;;  %v13016_v30 = vld [vmem:[#allocation6 + $0x4] ss:$12 sps:$4 sm:$0xff]   ;;  %v973_v34 = vand.u32 127, %v972_v0 }
 0x1dd   : > { %v13018_v31 = vld [vmem:[#allocation6] ss:$12 sps:$4 sm:$0xff]   ;;  %v13019_v32 = vld [vmem:[#allocation6 + $0x8] ss:$12 sps:$4 sm:$0xff]   ;;  %v14910_v36 = vmov 1.0|1.0  }
 0x1de   : > { %12599 = vmatpush3.bf16.msra.mxu1 %v12999_v17  ;;  %v1246_v37 = vld [vmem:[#allocation8] sm:$0xff]  ;;  %v1248_v38 = vld [vmem:[#allocation8 + $0x10] sm:$0xff]  ;;  %v1247_v41 = vld [vmem:[#allocation8 + $0x8] sm:$0xff] }
 0x1df   : > { %1167 = vmatpush1.bf16.msra.mxu0 %v12998_v16  ;;  %12600 = vmatprep.subr.bf16.mxu1 %v14907_v3 }
 0x1e0   : > { %986 = vbcast.lane.b32.xlu0 %v984_v15, 256  ;;  %1168 = vmatprep.subr.bf16.mxu0 %v13000_v18 }
 0x1e2   : > { %12601 = vmatpush3.bf16.msra.mxu1 %v13003_v20 }
 0x1e3   : > { %1169 = vmatpush1.bf16.msra.mxu0 %v13002_v19  ;;  %12602 = vmatprep.subr.bf16.mxu1 %v14907_v3 }
 0x1e4   : > { %1170 = vmatprep.subr.bf16.mxu0 %v13004_v21 }
 0x1e6   : > { %12603 = vmatpush3.bf16.msra.mxu1 %v13007_v23 }
 0x1e7   : > { %1171 = vmatpush1.bf16.msra.mxu0 %v13006_v22  ;;  %12604 = vmatprep.subr.bf16.mxu1 %v14907_v3 }
 0x1e8   : > { %1172 = vmatprep.subr.bf16.mxu0 %v13008_v24 }
 0x1ea   : > { %12605 = vmatpush3.bf16.msra.mxu1 %v13011_v26 }
 0x1eb   : > { %1173 = vmatpush1.bf16.msra.mxu0 %v13010_v25  ;;  %12606 = vmatprep.subr.bf16.mxu1 %v14907_v3 }
 0x1ec   : > { %1174 = vmatprep.subr.bf16.mxu0 %v13012_v27 }
 0x1ee   : > { %12607 = vmatpush3.bf16.msra.mxu1 %v13015_v29 }
 0x1ef   : > { %1175 = vmatpush1.bf16.msra.mxu0 %v13014_v28  ;;  %12608 = vmatprep.subr.bf16.mxu1 %v14907_v3 }
 0x1f0   : > { %1176 = vmatprep.subr.bf16.mxu0 %v13016_v30 }
 0x1f2   : > { %12609 = vmatpush3.bf16.msra.mxu1 %v13019_v32 }
 0x1f3   : > { %1177 = vmatpush1.bf16.msra.mxu0 %v13018_v31 }
 0x24e   : > { %v980_v33 = vpop.permute.xlu0 %979 }
 0x24f   : > { %vm988_vm1 = vcmp.eq.s32.totalorder %v973_v34, %v980_v33 }
 0x252   : > { %v987_v35 = vpop.permute.xlu0 %986 }
 0x253   : > { %vm989_vm2 = vcmp.eq.s32.totalorder %v973_v34, %v987_v35 }
 0x254   : > { %vm12308_vm3 = vmpackc.low %vm989_vm2, %vm988_vm1 }
 0x255   : > { %12309 = vmatmul.mubr.msk.bf16.vlgmr.msra.gmra.mxu0 %vm12308_vm3, %v14910_v36  ;;  %12611 = vmatmul.mubr.msk.bf16.vlgmr.msra.gmra.mxu1 %vm12308_vm3, %v14910_v36 }
 0x315   : > { %v1196_v39 = vpop.f32.mrf.mxu0  ;;  %v1239_v40 = vpop.f32.mrf.mxu1 }
 0x316   : > { %v1249_v42 = vadd.f32 %v1246_v37, %v1196_v39  ;;  %v1251_v43 = vadd.f32 %v1248_v38, %v1239_v40 }
 0x317   : > { %v1198_v44 = vpop.f32.mrf.mxu0  ;;  %v12612_v45 = vpop.f32.mrf.mxu1 }
 0x318   : > { %1255 = vst [vmem:[#allocation2 + $0x28] sm:$0xff] %v1249_v42  ;;  %1257 = vst [vmem:[#allocation2 + $0x8] sm:$0xff] %v1251_v43  ;;  %v1250_v46 = vadd.f32 %v1247_v41, %v1198_v44 }
 0x319   : > { %v1200_v47 = vpop.f32.mrf.mxu0  ;;  %v1242_v48 = vpop.f32.mrf.mxu1 }
 0x31a   : > { %1256 = vst [vmem:[#allocation2 + $0x10] sm:$0xff] %v1250_v46  ;;  %v1252_v49 = vadd.f32 %v1246_v37, %v1200_v47  ;;  %v1254_v50 = vadd.f32 %v1248_v38, %v1242_v48 }
 0x31b   : > { %v1202_v51 = vpop.f32.mrf.mxu0  ;;  %v12613_v52 = vpop.f32.mrf.mxu1 }
 0x31c   : > { %1258 = vst [vmem:[#allocation2] sm:$0xff] %v1252_v49  ;;  %1260 = vst [vmem:[#allocation2 + $0x20] sm:$0xff] %v1254_v50  ;;  %v1253_v53 = vadd.f32 %v1247_v41, %v1202_v51 }
 0x31e   : > { %1259 = vst [vmem:[#allocation2 + $0x18] sm:$0xff] %v1253_v53 }
 0x31f PF: > { %v1261_v54 = vld [vmem:[#allocation2 + $0x28] sm:$0xff]  ;;  %v13035_v0 = vld [vmem:[%s15467_s27 + $0x1fc] ss:$36 sps:$4 sm:$0xff]   ;;  %v13043_v5 = vld [vmem:[%s15467_s27 + $0x168] ss:$36 sps:$4 sm:$0xff]   ;;  %vm14913_vm4 = vmmov 0  }
 0x320   : > { %v1263_v56 = vld [vmem:[#allocation2 + $0x8] sm:$0xff]  ;;  %2703 = vmatprep.subr.bf16.mxu0 %v13035_v0  ;;  %v13059_v6 = vld [vmem:[%s15467_s27 + $0x67c] ss:$36 sps:$4 sm:$0xff]   ;;  %v13044_v7 = vld [vmem:[%s15467_s27 + $0x124] ss:$36 sps:$4 sm:$0xff]   ;;  %s14914_s12 = smov 64  }
 0x321   : > { %v1262_v55 = vld [vmem:[#allocation2 + $0x10] sm:$0xff]  ;;  %v13040_v3 = vld [vmem:[%s15467_s27 + $0x1b0] ss:$36 sps:$4 sm:$0xff]   ;;  %2746 = vmatprep.subr.bf16.mxu1 %v13059_v6  ;;  %v13055_v15 = vld [vmem:[%s15467_s27 + $0x48] ss:$36 sps:$4 sm:$0xff]   ;;  %vm3194_vm5 = vcmask 523264  }
 0x322   : > { %v1269_v57 = vadd.f32 %v1262_v55, %v1261_v54  ;;  %v13037_v1 = vld [vmem:[%s15467_s27 + $0x1f8] ss:$36 sps:$4 sm:$0xff]   ;;  %v13041_v4 = vld [vmem:[%s15467_s27 + $0x16c] ss:$36 sps:$4 sm:$0xff]   ;;  %v13046_v9 = vld [vmem:[%s15467_s27 + $0x120] ss:$36 sps:$4 sm:$0xff]  }
 0x323   : > { %v1264_v58 = vld [vmem:[#allocation2] sm:$0xff]  ;;  %v13038_v2 = vld [vmem:[%s15467_s27 + $0x1b4] ss:$36 sps:$4 sm:$0xff]   ;;  %2704 = vmatpush1.bf16.msra.mxu0 %v13037_v1  ;;  %v13047_v10 = vld [vmem:[%s15467_s27 + $0xdc] ss:$36 sps:$4 sm:$0xff]   ;;  %vm4109_vm7 = vcmask 64512  }
 0x324   : > { %v1266_v60 = vld [vmem:[#allocation2 + $0x20] sm:$0xff]  ;;  %v1270_v62 = vadd.f32 %v1269_v57, %v1263_v56  ;;  %2705 = vmatprep.subr.bf16.mxu0 %v13038_v2  ;;  %v13063_v8 = vld [vmem:[%s15467_s27 + $0x678] ss:$36 sps:$4 sm:$0xff]   ;;  %v13058_v17 = vld [vmem:[%s15467_s27] ss:$36 sps:$4 sm:$0xff]   ;;  %s17203_s21 = sld [smem:[#allocation43_spill]] }
 0x325   : > { %v1265_v59 = vld [vmem:[#allocation2 + $0x18] sm:$0xff]  ;;  %2747 = vmatpush1.bf16.msra.mxu1 %v13063_v8  ;;  %v13049_v11 = vld [vmem:[%s15467_s27 + $0xd8] ss:$36 sps:$4 sm:$0xff]   ;;  %v13052_v13 = vld [vmem:[%s15467_s27 + $0x90] ss:$36 sps:$4 sm:$0xff]  }
 0x326   : > { %v1273_v61 = vadd.f32 %v1265_v59, %v1264_v58  ;;  %1271 = vadd.xlane.f32.xlu0 %v1270_v62  ;;  %v13050_v12 = vld [vmem:[%s15467_s27 + $0x94] ss:$36 sps:$4 sm:$0xff]   ;;  %v13053_v14 = vld [vmem:[%s15467_s27 + $0x4c] ss:$36 sps:$4 sm:$0xff]   ;;  %v13056_v16 = vld [vmem:[%s15467_s27 + $0x4] ss:$36 sps:$4 sm:$0xff]  }
 0x327   : > { %2706 = vmatpush1.bf16.msra.mxu0 %v13040_v3  ;;  %v13061_v18 = vld [vmem:[%s15467_s27 + $0x43c] ss:$36 sps:$4 sm:$0xff]   ;;  %v13065_v40 = vld [vmem:[%s15467_s27 + $0x634] ss:$36 sps:$4 sm:$0xff]   ;;  %v13071_v44 = vld [vmem:[%s15467_s27 + $0x5ec] ss:$36 sps:$4 sm:$0xff]  }
 0x328   : > { %v1274_v63 = vadd.f32 %v1273_v61, %v1266_v60  ;;  %2707 = vmatprep.subr.bf16.mxu0 %v13041_v4  ;;  %v13064_v19 = vld [vmem:[%s15467_s27 + $0x438] ss:$36 sps:$4 sm:$0xff]   ;;  %v13069_v42 = vld [vmem:[%s15467_s27 + $0x630] ss:$36 sps:$4 sm:$0xff]   ;;  %2748 = vmatprep.subr.bf16.mxu1 %v13065_v40  ;;  %v13075_v46 = vld [vmem:[%s15467_s27 + $0x5e8] ss:$36 sps:$4 sm:$0xff]  }
 0x329   : > { %v13067_v41 = vld [vmem:[%s15467_s27 + $0x3f4] ss:$36 sps:$4 sm:$0xff]   ;;  %2749 = vmatpush1.bf16.msra.mxu1 %v13069_v42  ;;  %v13073_v45 = vld [vmem:[%s15467_s27 + $0x3ac] ss:$36 sps:$4 sm:$0xff]   ;;  %v13077_v48 = vld [vmem:[%s15467_s27 + $0x5a4] ss:$36 sps:$4 sm:$0xff]  }
 0x32a   : > { %1275 = vadd.xlane.f32.xlu0 %v1274_v63  ;;  %v13070_v43 = vld [vmem:[%s15467_s27 + $0x3f0] ss:$36 sps:$4 sm:$0xff]   ;;  %2750 = vmatprep.subr.bf16.mxu1 %v13071_v44  ;;  %v13076_v47 = vld [vmem:[%s15467_s27 + $0x3a8] ss:$36 sps:$4 sm:$0xff]   ;;  %v13081_v50 = vld [vmem:[%s15467_s27 + $0x5a0] ss:$36 sps:$4 sm:$0xff]  }
 0x32b   : > { %2708 = vmatpush1.bf16.msra.mxu0 %v13043_v5  ;;  %v13079_v49 = vld [vmem:[%s15467_s27 + $0x364] ss:$36 sps:$4 sm:$0xff]   ;;  %v13083_v52 = vld [vmem:[%s15467_s27 + $0x55c] ss:$36 sps:$4 sm:$0xff]   ;;  %v13091_v57 = vld [vmem:[%s15467_s27 + $0x2d4] ss:$36 sps:$4 sm:$0xff]  }
 0x32c   : > { %2709 = vmatprep.subr.bf16.mxu0 %v13044_v7  ;;  %v13082_v51 = vld [vmem:[%s15467_s27 + $0x360] ss:$36 sps:$4 sm:$0xff]   ;;  %v13097_v61 = vld [vmem:[%s15467_s27 + $0x28c] ss:$36 sps:$4 sm:$0xff]   ;;  %v14911_v63 = vmov 0   ;;  %p12277_p8 = scmp.ne.s32.totalorder %s17203_s21, 5 }
 0x32d   : > { %2751 = vmatpush1.bf16.msra.mxu1 %v13075_v46  ;;  %v13085_v53 = vld [vmem:[%s15467_s27 + $0x31c] ss:$36 sps:$4 sm:$0xff]   ;;  %v13099_v62 = vld [vmem:[%s15467_s27 + $0x4c8] ss:$36 sps:$4 sm:$0xff]   ;;  %2778 = vmatprep.mubr.bf16.mxu1 %v14911_v63 }
 0x32e   : > { %2752 = vmatprep.subr.bf16.mxu1 %v13077_v48  ;;  %v13100_v0 = vld [vmem:[%s15467_s27 + $0x288] ss:$36 sps:$4 sm:$0xff]   ;;  %v13105_v3 = vld [vmem:[%s15467_s27 + $0x480] ss:$36 sps:$4 sm:$0xff]  }
 0x32f   : > { %2710 = vmatpush1.bf16.msra.mxu0 %v13046_v9  ;;  %v13101_v1 = vld [vmem:[%s15467_s27 + $0x484] ss:$36 sps:$4 sm:$0xff]  }
 0x330   : > { %2711 = vmatprep.subr.bf16.mxu0 %v13047_v10  ;;  %v13103_v2 = vld [vmem:[%s15467_s27 + $0x244] ss:$36 sps:$4 sm:$0xff]  }
 0x331   : > { %2753 = vmatpush1.bf16.msra.mxu1 %v13081_v50  ;;  %v13106_v4 = vld [vmem:[%s15467_s27 + $0x240] ss:$36 sps:$4 sm:$0xff]  }
 0x332   : > { %2754 = vmatprep.subr.bf16.mxu1 %v13083_v52  ;;  %v13109_v5 = vld [vmem:[%s15467_s27 + $0x204] ss:$36 sps:$4 sm:$0xff]   ;;  %v13115_v50 = vld [vmem:[%s15467_s27 + $0x1bc] ss:$36 sps:$4 sm:$0xff]  }
 0x333   : > { %2712 = vmatpush1.bf16.msra.mxu0 %v13049_v11  ;;  %v13112_v6 = vld [vmem:[%s15467_s27 + $0x684] ss:$36 sps:$4 sm:$0xff]  }
 0x334   : > { %2713 = vmatprep.subr.bf16.mxu0 %v13050_v12 }
 0x337   : > { %2714 = vmatpush1.bf16.msra.mxu0 %v13052_v13  ;;  %v1313_v13 = vlaneseq }
 0x338   : > { %2715 = vmatprep.subr.bf16.mxu0 %v13053_v14 }
 0x339   : > { %v15605_v14 = vshrl.u32 %v1313_v13, 7 }
 0x33b   : > { %2716 = vmatpush1.bf16.msra.mxu0 %v13055_v15  ;;  %v15608_v15 = vsub.s32 1, %v15605_v14 }
 0x33c   : > { %2717 = vmatprep.subr.bf16.mxu0 %v13056_v16  ;;  %v15611_v16 = vsub.s32 2, %v15605_v14 }
 0x33f   : > { %2718 = vmatpush1.bf16.msra.mxu0 %v13058_v17  ;;  %v1267_v17 = vld [vmem:[%s774_s26] sm:$0x7] }
 0x340   : > { %2719 = vmatprep.subr.bf16.mxu0 %v13061_v18  ;;  %v15616_v18 = vsub.s32 0, %v15605_v14 }
 0x343   : > { %2720 = vmatpush2.bf16.msra.mxu0 %v13064_v19 }
 0x344   : > { %2721 = vmatprep.subr.bf16.mxu0 %v13067_v41 }
 0x347   : > { %2722 = vmatpush2.bf16.msra.mxu0 %v13070_v43  ;;  %v13107_v43 = vld [vmem:[%s15467_s27 + $0x200] ss:$36 sps:$4 sm:$0xff]  }
 0x348   : > { %2723 = vmatprep.subr.bf16.mxu0 %v13073_v45 }
 0x34b   : > { %2724 = vmatpush2.bf16.msra.mxu0 %v13076_v47  ;;  %v13110_v47 = vld [vmem:[%s15467_s27 + $0x680] ss:$36 sps:$4 sm:$0xff]  }
 0x34c   : > { %2725 = vmatprep.subr.bf16.mxu0 %v13079_v49 }
 0x34f   : > { %2726 = vmatpush2.bf16.msra.mxu0 %v13082_v51  ;;  %v13118_v51 = vld [vmem:[%s15467_s27 + $0x63c] ss:$36 sps:$4 sm:$0xff]  }
 0x350   : > { %2727 = vmatprep.subr.bf16.mxu0 %v13085_v53  ;;  %v13113_v53 = vld [vmem:[%s15467_s27 + $0x1b8] ss:$36 sps:$4 sm:$0xff]  }
 0x3af   : > { %v1272_v20 = vpop.xlane.xlu0 %1271 }
 0x3b0   : > { %v1278_v21 = vmul.f32 0.0026041667, %v1272_v20  ;;  %v1268_v20 = vld [vmem:[%s783_s28] sm:$0x7] }
 0x3b2   : > { %v15549_v22 = vsub.f32 %v1261_v54, %v1278_v21  ;;  %v15551_v23 = vsub.f32 %v1262_v55, %v1278_v21  ;;  %v15553_v24 = vsub.f32 %v1263_v56, %v1278_v21  ;;  %v13087_v54 = vld [vmem:[%s15467_s27 + $0x558] ss:$36 sps:$4 sm:$0xff]  }
 0x3b3   : > { %v1276_v25 = vpop.xlane.xlu0 %1275  ;;  %v13088_v55 = vld [vmem:[%s15467_s27 + $0x318] ss:$36 sps:$4 sm:$0xff]   ;;  %2755 = vmatpush1.bf16.msra.mxu1 %v13087_v54 }
 0x3b4   : > { %v1279_v26 = vmul.f32 0.0026041667, %v1276_v25  ;;  %v1286_v27 = vmul.f32 %v15549_v22, %v15549_v22  ;;  %v1287_v28 = vmul.f32 %v15551_v23, %v15551_v23  ;;  %v1288_v29 = vmul.f32 %v15553_v24, %v15553_v24  ;;  %v13089_v56 = vld [vmem:[%s15467_s27 + $0x514] ss:$36 sps:$4 sm:$0xff]   ;;  %2728 = vmatpush2.bf16.msra.mxu0 %v13088_v55 }
 0x3b5   : > { %2756 = vmatprep.subr.bf16.mxu1 %v13089_v56  ;;  %2729 = vmatprep.subr.bf16.mxu0 %v13091_v57  ;;  %v1320_v25 = vrot.slane %v1267_v17, %v15608_v15  ;;  %v13116_v54 = vld [vmem:[%s15467_s27 + $0x638] ss:$36 sps:$4 sm:$0xff]   ;;  %v13119_v57 = vld [vmem:[%s15467_s27 + $0x170] ss:$36 sps:$4 sm:$0xff]  }
 0x3b6   : > { %v15561_v30 = vsub.f32 %v1264_v58, %v1279_v26  ;;  %v15563_v31 = vsub.f32 %v1265_v59, %v1279_v26  ;;  %v15565_v32 = vsub.f32 %v1266_v60, %v1279_v26  ;;  %v1292_v33 = vadd.f32 %v1287_v28, %v1286_v27  ;;  %v13093_v58 = vld [vmem:[%s15467_s27 + $0x510] ss:$36 sps:$4 sm:$0xff]  }
 0x3b7   : > { %v13094_v59 = vld [vmem:[%s15467_s27 + $0x2d0] ss:$36 sps:$4 sm:$0xff]   ;;  %2757 = vmatpush1.bf16.msra.mxu1 %v13093_v58  ;;  %v1324_v27 = vrot.slane %v1267_v17, %v15611_v16 }
 0x3b8   : > { %v1293_v34 = vadd.f32 %v1292_v33, %v1288_v29  ;;  %v1289_v35 = vmul.f32 %v15561_v30, %v15561_v30  ;;  %v1290_v36 = vmul.f32 %v15563_v31, %v15563_v31  ;;  %v1291_v37 = vmul.f32 %v15565_v32, %v15565_v32  ;;  %v13095_v60 = vld [vmem:[%s15467_s27 + $0x4cc] ss:$36 sps:$4 sm:$0xff]   ;;  %2730 = vmatpush2.bf16.msra.mxu0 %v13094_v59  ;;  %v13121_v55 = vld [vmem:[%s15467_s27 + $0x174] ss:$36 sps:$4 sm:$0xff]  }
 0x3b9   : > { %2758 = vmatprep.subr.bf16.mxu1 %v13095_v60  ;;  %2731 = vmatprep.subr.bf16.mxu0 %v13097_v61  ;;  %v1316_v29 = vrot.slane %v1267_v17, %v15616_v18  ;;  %v13124_v56 = vld [vmem:[%s15467_s27 + $0x5f4] ss:$36 sps:$4 sm:$0xff]   ;;  %v13127_v59 = vld [vmem:[%s15467_s27 + $0x12c] ss:$36 sps:$4 sm:$0xff]  }
 0x3ba   : > { %1294 = vadd.xlane.f32.xlu1 %v1293_v34  ;;  %v1296_v38 = vadd.f32 %v1290_v36, %v1289_v35  ;;  %v1342_v34 = vrot.slane %v1268_v20, %v15608_v15  ;;  %v1346_v35 = vrot.slane %v1268_v20, %v15611_v16  ;;  %v13122_v58 = vld [vmem:[%s15467_s27 + $0x5f0] ss:$36 sps:$4 sm:$0xff]   ;;  %v13125_v61 = vld [vmem:[%s15467_s27 + $0x128] ss:$36 sps:$4 sm:$0xff]  }
 0x3bb   : > { %2759 = vmatpush1.bf16.msra.mxu1 %v13099_v62  ;;  %v13130_v60 = vld [vmem:[%s15467_s27 + $0x5ac] ss:$36 sps:$4 sm:$0xff]  }
 0x3bc   : > { %v1297_v39 = vadd.f32 %v1296_v38, %v1291_v37  ;;  %2732 = vmatpush2.bf16.msra.mxu0 %v13100_v0  ;;  %2760 = vmatprep.subr.bf16.mxu1 %v13101_v1  ;;  %v13128_v62 = vld [vmem:[%s15467_s27 + $0x5a8] ss:$36 sps:$4 sm:$0xff]  }
 0x3bd   : > { %2733 = vmatprep.subr.bf16.mxu0 %v13103_v2  ;;  %v13133_v0 = vld [vmem:[%s15467_s27 + $0xe4] ss:$36 sps:$4 sm:$0xff]   ;;  %v13154_v17 = vld [vmem:[%s15467_s27 + $0x48c] ss:$36 sps:$4 sm:$0xff]  }
 0x3be   : > { %1298 = vadd.xlane.f32.xlu1 %v1297_v39  ;;  %v13136_v1 = vld [vmem:[%s15467_s27 + $0x564] ss:$36 sps:$4 sm:$0xff]  }
 0x3bf   : > { %2761 = vmatpush1.bf16.msra.mxu1 %v13105_v3  ;;  %v13131_v2 = vld [vmem:[%s15467_s27 + $0xe0] ss:$36 sps:$4 sm:$0xff]  }
 0x3c0   : > { %2734 = vmatpush2.bf16.msra.mxu0 %v13106_v4  ;;  %2789 = vmatprep.subr.bf16.mxu1 %v13109_v5  ;;  %v13134_v3 = vld [vmem:[%s15467_s27 + $0x560] ss:$36 sps:$4 sm:$0xff]  }
 0x3c1   : > { %2832 = vmatprep.subr.bf16.mxu0 %v13112_v6  ;;  %v13139_v4 = vld [vmem:[%s15467_s27 + $0x9c] ss:$36 sps:$4 sm:$0xff]  }
 0x3c2   : > { %v13142_v5 = vld [vmem:[%s15467_s27 + $0x51c] ss:$36 sps:$4 sm:$0xff]  }
 0x3c3   : > { %v13137_v6 = vld [vmem:[%s15467_s27 + $0x98] ss:$36 sps:$4 sm:$0xff]  }
 0x443   : > { %v1295_v7 = vpop.xlane.xlu1 %1294 }
 0x444   : > { %v1300_v8 = vmul.f32 0.0026041667, %v1295_v7  ;;  %v13140_v7 = vld [vmem:[%s15467_s27 + $0x518] ss:$36 sps:$4 sm:$0xff]  }
 0x446   : > { %v1302_v9 = vadd.f32 1e-05, %v1300_v8  ;;  %v13145_v8 = vld [vmem:[%s15467_s27 + $0x54] ss:$36 sps:$4 sm:$0xff]  }
 0x447   : > { %v1299_v10 = vpop.xlane.xlu1 %1298 }
 0x448   : > { %14259 = vrsqrt.f32 %v1302_v9  ;;  %v1301_v11 = vmul.f32 0.0026041667, %v1299_v10  ;;  %v13148_v9 = vld [vmem:[%s15467_s27 + $0x4d4] ss:$36 sps:$4 sm:$0xff]  }
 0x449   : > { %v13143_v10 = vld [vmem:[%s15467_s27 + $0x50] ss:$36 sps:$4 sm:$0xff]  }
 0x44a   : > { %v1303_v12 = vadd.f32 1e-05, %v1301_v11  ;;  %v13146_v11 = vld [vmem:[%s15467_s27 + $0x4d0] ss:$36 sps:$4 sm:$0xff]  }
 0x44c   : > { %14261 = vrsqrt.f32 %v1303_v12  ;;  %v13151_v12 = vld [vmem:[%s15467_s27 + $0xc] ss:$36 sps:$4 sm:$0xff]  }
 0x455   : > { %v14260_v19 = vpop.eup %14259 }
 0x456   : > { %v1307_v21 = vmul.f32 %v14260_v19, %v15551_v23  ;;  %v1308_v26 = vmul.f32 %v14260_v19, %v15553_v24  ;;  %v1306_v28 = vmul.f32 %v14260_v19, %v15549_v22  ;;  %v1338_v22 = vrot.slane %v1268_v20, %v15616_v18  ;;  %v13149_v19 = vld [vmem:[%s15467_s27 + $0x8] ss:$36 sps:$4 sm:$0xff]  }
 0x457   : > { %v13152_v20 = vld [vmem:[%s15467_s27 + $0x488] ss:$36 sps:$4 sm:$0xff]  }
 0x458   : > { %v1329_v23 = vmul.f32 %v1320_v25, %v1307_v21  ;;  %v1330_v38 = vmul.f32 %v1324_v27, %v1308_v26  ;;  %v1328_v39 = vmul.f32 %v1316_v29, %v1306_v28  ;;  %v13157_v21 = vld [vmem:[%s15467_s27 + $0x444] ss:$36 sps:$4 sm:$0xff]   ;;  %v13163_v28 = vld [vmem:[%s15467_s27 + $0x3fc] ss:$36 sps:$4 sm:$0xff]  }
 0x459   : > { %v14262_v33 = vpop.eup %14261  ;;  %v13155_v26 = vld [vmem:[%s15467_s27 + $0x440] ss:$36 sps:$4 sm:$0xff]  }
 0x45a   : > { %v1310_v36 = vmul.f32 %v14262_v33, %v15563_v31  ;;  %v1311_v37 = vmul.f32 %v14262_v33, %v15565_v32  ;;  %v1309_v24 = vmul.f32 %v14262_v33, %v15561_v30  ;;  %v1351_v44 = vadd.f32 %v1342_v34, %v1329_v23  ;;  %v13161_v33 = vld [vmem:[%s15467_s27 + $0x3f8] ss:$36 sps:$4 sm:$0xff]   ;;  %v13167_v23 = vld [vmem:[%s15467_s27 + $0x3b0] ss:$36 sps:$4 sm:$0xff]  }
 0x45b   : > { %v1352_v31 = vadd.f32 %v1346_v35, %v1330_v38  ;;  %v1350_v32 = vadd.f32 %v1338_v22, %v1328_v39  ;;  %v13175_v38 = vld [vmem:[%s15467_s27 + $0x36c] ss:$36 sps:$4 sm:$0xff]  }
 0x45c   : > { %v1332_v40 = vmul.f32 %v1320_v25, %v1310_v36  ;;  %v1333_v41 = vmul.f32 %v1324_v27, %v1311_v37  ;;  %v1331_v42 = vmul.f32 %v1316_v29, %v1309_v24  ;;  %v13160_v25 = vld [vmem:[%s15467_s27 + $0x20c] ss:$36 sps:$4 sm:$0xff]   ;;  %v13166_v29 = vld [vmem:[%s15467_s27 + $0x1c4] ss:$36 sps:$4 sm:$0xff]   ;;  %v13172_v36 = vld [vmem:[%s15467_s27 + $0x17c] ss:$36 sps:$4 sm:$0xff]  }
 0x45d   : > { %v13158_v27 = vld [vmem:[%s15467_s27 + $0x208] ss:$36 sps:$4 sm:$0xff]   ;;  %v13170_v37 = vld [vmem:[%s15467_s27 + $0x178] ss:$36 sps:$4 sm:$0xff]  }
 0x45e   : > { %v1354_v45 = vadd.f32 %v1342_v34, %v1332_v40  ;;  %v1355_v46 = vadd.f32 %v1346_v35, %v1333_v41  ;;  %v1353_v30 = vadd.f32 %v1338_v22, %v1331_v42  ;;  %v13164_v34 = vld [vmem:[%s15467_s27 + $0x1c0] ss:$36 sps:$4 sm:$0xff]   ;;  %v13169_v35 = vld [vmem:[%s15467_s27 + $0x3b4] ss:$36 sps:$4 sm:$0xff]   ;;  %v13173_v39 = vld [vmem:[%s15467_s27 + $0x368] ss:$36 sps:$4 sm:$0xff]  }
 0x45f   : > { %v13178_v24 = vld [vmem:[%s15467_s27 + $0x134] ss:$36 sps:$4 sm:$0xff]   ;;  %v13181_v40 = vld [vmem:[%s15467_s27 + $0x324] ss:$36 sps:$4 sm:$0xff]   ;;  %v13184_v41 = vld [vmem:[%s15467_s27 + $0xec] ss:$36 sps:$4 sm:$0xff]  }
 0x460   : > { %v15634_v48 = vpack.c.bf16 %v1354_v45, %v1351_v44  ;;  %v15636_v49 = vpack.c.bf16 %v1355_v46, %v1352_v31  ;;  %v15640_v52 = vpack.c.bf16 %v1353_v30, %v1350_v32  ;;  %v13176_v22 = vld [vmem:[%s15467_s27 + $0x130] ss:$36 sps:$4 sm:$0xff]   ;;  %v13179_v42 = vld [vmem:[%s15467_s27 + $0x320] ss:$36 sps:$4 sm:$0xff]   ;;  %v13185_v31 = vld [vmem:[%s15467_s27 + $0x2d8] ss:$36 sps:$4 sm:$0xff]  }
 0x461   : > { %v13187_v44 = vld [vmem:[%s15467_s27 + $0x2dc] ss:$36 sps:$4 sm:$0xff]   ;;  %v13190_v45 = vld [vmem:[%s15467_s27 + $0xa4] ss:$36 sps:$4 sm:$0xff]   ;;  %v13191_v30 = vld [vmem:[%s15467_s27 + $0x290] ss:$36 sps:$4 sm:$0xff]  }
 0x462   : > { %2735 = vmatprep.mubr.bf16.mxu0 %v15634_v48  ;;  %2779 = vmatmul.mubr.bf16.vlgmr.msra.gmra.mxu1 %v15636_v49  ;;  %v13188_v46 = vld [vmem:[%s15467_s27 + $0xa0] ss:$36 sps:$4 sm:$0xff]  }
 0x463   : > { %2790 = vmatpush1.bf16.msra.mxu1 %v13107_v43  ;;  %2736 = vmatmul.mubr.bf16.vlgmr.msra.gmra.mxu0 %v15640_v52  ;;  %v13182_v43 = vld [vmem:[%s15467_s27 + $0xe8] ss:$36 sps:$4 sm:$0xff]   ;;  %v13196_v32 = vld [vmem:[%s15467_s27 + $0x5c] ss:$36 sps:$4 sm:$0xff]  }
 0x464   : > { %2821 = vmatprep.mubr.bf16.mxu1 %v15634_v48  ;;  %2833 = vmatpush1.bf16.msra.mxu0 %v13110_v47  ;;  %v13193_v47 = vld [vmem:[%s15467_s27 + $0x294] ss:$36 sps:$4 sm:$0xff]  }
 0x465   : > { %2791 = vmatprep.subr.bf16.mxu1 %v13115_v50  ;;  %2834 = vmatprep.subr.bf16.mxu0 %v13118_v51  ;;  %v13194_v50 = vld [vmem:[%s15467_s27 + $0x58] ss:$36 sps:$4 sm:$0xff]   ;;  %v13199_v51 = vld [vmem:[%s15467_s27 + $0x24c] ss:$36 sps:$4 sm:$0xff]  }
 0x466   : > { %2864 = vmatprep.mubr.bf16.mxu0 %v14911_v63 }
 0x467   : > { %2792 = vmatpush1.bf16.msra.mxu1 %v13113_v53  ;;  %v13202_v53 = vld [vmem:[%s15467_s27 + $0x14] ss:$36 sps:$4 sm:$0xff]  }
 0x468   : > { %2835 = vmatpush1.bf16.msra.mxu0 %v13116_v54  ;;  %2793 = vmatprep.subr.bf16.mxu1 %v13121_v55  ;;  %v13197_v54 = vld [vmem:[%s15467_s27 + $0x248] ss:$36 sps:$4 sm:$0xff]   ;;  %v13200_v55 = vld [vmem:[%s15467_s27 + $0x10] ss:$36 sps:$4 sm:$0xff]  }
 0x469   : > { %2836 = vmatprep.subr.bf16.mxu0 %v13124_v56  ;;  %v13205_v56 = vld [vmem:[%s15467_s27 + $0x68c] ss:$36 sps:$4 sm:$0xff]  }
 0x46b   : > { %2794 = vmatpush1.bf16.msra.mxu1 %v13119_v57  ;;  %v13208_v57 = vld [vmem:[%s15467_s27 + $0x44c] ss:$36 sps:$4 sm:$0xff]  }
 0x46c   : > { %2837 = vmatpush1.bf16.msra.mxu0 %v13122_v58  ;;  %2795 = vmatprep.subr.bf16.mxu1 %v13127_v59  ;;  %v13203_v58 = vld [vmem:[%s15467_s27 + $0x688] ss:$36 sps:$4 sm:$0xff]  }
 0x46d   : > { %2838 = vmatprep.subr.bf16.mxu0 %v13130_v60  ;;  %v13206_v59 = vld [vmem:[%s15467_s27 + $0x448] ss:$36 sps:$4 sm:$0xff]  }
 0x46e   : > { %v13211_v60 = vld [vmem:[%s15467_s27 + $0x644] ss:$36 sps:$4 sm:$0xff]  }
 0x46f   : > { %2796 = vmatpush1.bf16.msra.mxu1 %v13125_v61  ;;  %v13214_v61 = vld [vmem:[%s15467_s27 + $0x404] ss:$36 sps:$4 sm:$0xff]  }
 0x470   : > { %2839 = vmatpush1.bf16.msra.mxu0 %v13128_v62  ;;  %2797 = vmatprep.subr.bf16.mxu1 %v13133_v0  ;;  %v13209_v62 = vld [vmem:[%s15467_s27 + $0x640] ss:$36 sps:$4 sm:$0xff]  }
 0x471   : > { %2840 = vmatprep.subr.bf16.mxu0 %v13136_v1  ;;  %v13212_v0 = vld [vmem:[%s15467_s27 + $0x400] ss:$36 sps:$4 sm:$0xff]  }
 0x472   : > { %v13217_v1 = vld [vmem:[%s15467_s27 + $0x5fc] ss:$36 sps:$4 sm:$0xff]  }
 0x473   : > { %2798 = vmatpush1.bf16.msra.mxu1 %v13131_v2  ;;  %v13220_v2 = vld [vmem:[%s15467_s27 + $0x3bc] ss:$36 sps:$4 sm:$0xff]  }
 0x474   : > { %2841 = vmatpush1.bf16.msra.mxu0 %v13134_v3  ;;  %2799 = vmatprep.subr.bf16.mxu1 %v13139_v4  ;;  %v13215_v3 = vld [vmem:[%s15467_s27 + $0x5f8] ss:$36 sps:$4 sm:$0xff]  }
 0x475   : > { %2842 = vmatprep.subr.bf16.mxu0 %v13142_v5  ;;  %v13218_v4 = vld [vmem:[%s15467_s27 + $0x3b8] ss:$36 sps:$4 sm:$0xff]  }
 0x476   : > { %v13223_v5 = vld [vmem:[%s15467_s27 + $0x5b4] ss:$36 sps:$4 sm:$0xff]  }
 0x477   : > { %2800 = vmatpush1.bf16.msra.mxu1 %v13137_v6  ;;  %v13226_v6 = vld [vmem:[%s15467_s27 + $0x374] ss:$36 sps:$4 sm:$0xff]  }
 0x478   : > { %2843 = vmatpush1.bf16.msra.mxu0 %v13140_v7  ;;  %2801 = vmatprep.subr.bf16.mxu1 %v13145_v8  ;;  %v13221_v7 = vld [vmem:[%s15467_s27 + $0x5b0] ss:$36 sps:$4 sm:$0xff]  }
 0x479   : > { %2844 = vmatprep.subr.bf16.mxu0 %v13148_v9  ;;  %v13224_v8 = vld [vmem:[%s15467_s27 + $0x370] ss:$36 sps:$4 sm:$0xff]  }
 0x47a   : > { %v13229_v9 = vld [vmem:[%s15467_s27 + $0x56c] ss:$36 sps:$4 sm:$0xff]  }
 0x47b   : > { %2802 = vmatpush1.bf16.msra.mxu1 %v13143_v10  ;;  %v13232_v10 = vld [vmem:[%s15467_s27 + $0x32c] ss:$36 sps:$4 sm:$0xff]  }
 0x47c   : > { %2845 = vmatpush1.bf16.msra.mxu0 %v13146_v11  ;;  %2803 = vmatprep.subr.bf16.mxu1 %v13151_v12  ;;  %v13227_v11 = vld [vmem:[%s15467_s27 + $0x568] ss:$36 sps:$4 sm:$0xff]  }
 0x47d   : > { %2846 = vmatprep.subr.bf16.mxu0 %v13154_v17  ;;  %v13230_v12 = vld [vmem:[%s15467_s27 + $0x328] ss:$36 sps:$4 sm:$0xff]  }
 0x47e   : > { %v13235_v17 = vld [vmem:[%s15467_s27 + $0x524] ss:$36 sps:$4 sm:$0xff]  }
 0x47f   : > { %2804 = vmatpush1.bf16.msra.mxu1 %v13149_v19  ;;  %v13238_v19 = vld [vmem:[%s15467_s27 + $0x2e4] ss:$36 sps:$4 sm:$0xff]  }
 0x480   : > { %2847 = vmatpush1.bf16.msra.mxu0 %v13152_v20  ;;  %2805 = vmatprep.subr.bf16.mxu1 %v13157_v21  ;;  %v13233_v20 = vld [vmem:[%s15467_s27 + $0x520] ss:$36 sps:$4 sm:$0xff]  }
 0x481   : > { %2875 = vmatprep.subr.bf16.mxu0 %v13160_v25  ;;  %v13236_v21 = vld [vmem:[%s15467_s27 + $0x2e0] ss:$36 sps:$4 sm:$0xff]  }
 0x482   : > { %v13241_v25 = vld [vmem:[%s15467_s27 + $0x4dc] ss:$36 sps:$4 sm:$0xff]  }
 0x483   : > { %2806 = vmatpush2.bf16.msra.mxu1 %v13155_v26  ;;  %2865 = vmatmul.mubr.bf16.vlgmr.msra.gmra.mxu0 %v15636_v49  ;;  %v13244_v26 = vld [vmem:[%s15467_s27 + $0x29c] ss:$36 sps:$4 sm:$0xff]  }
 0x484   : > { %2876 = vmatpush1.bf16.msra.mxu0 %v13158_v27  ;;  %2907 = vmatprep.mubr.bf16.mxu0 %v15634_v48  ;;  %v13239_v27 = vld [vmem:[%s15467_s27 + $0x4d8] ss:$36 sps:$4 sm:$0xff]  }
 0x485   : > { %2807 = vmatprep.subr.bf16.mxu1 %v13163_v28  ;;  %2877 = vmatprep.subr.bf16.mxu0 %v13166_v29  ;;  %v13242_v28 = vld [vmem:[%s15467_s27 + $0x298] ss:$36 sps:$4 sm:$0xff]  }
 0x486   : > { %v13247_v29 = vld [vmem:[%s15467_s27 + $0x494] ss:$36 sps:$4 sm:$0xff]  }
 0x487   : > { %2808 = vmatpush2.bf16.msra.mxu1 %v13161_v33  ;;  %v13250_v33 = vld [vmem:[%s15467_s27 + $0x254] ss:$36 sps:$4 sm:$0xff]  }
 0x488   : > { %2878 = vmatpush1.bf16.msra.mxu0 %v13164_v34  ;;  %2809 = vmatprep.subr.bf16.mxu1 %v13169_v35  ;;  %v13245_v34 = vld [vmem:[%s15467_s27 + $0x490] ss:$36 sps:$4 sm:$0xff]  }
 0x489   : > { %2879 = vmatprep.subr.bf16.mxu0 %v13172_v36  ;;  %v13248_v35 = vld [vmem:[%s15467_s27 + $0x250] ss:$36 sps:$4 sm:$0xff]  }
 0x48a   : > { %v13253_v36 = vld [vmem:[%s15467_s27 + $0x214] ss:$36 sps:$4 sm:$0xff]  }
 0x48b   : > { %2810 = vmatpush2.bf16.msra.mxu1 %v13167_v23  ;;  %v13256_v23 = vld [vmem:[%s15467_s27 + $0x694] ss:$36 sps:$4 sm:$0xff]  }
 0x48c   : > { %2880 = vmatpush1.bf16.msra.mxu0 %v13170_v37  ;;  %2811 = vmatprep.subr.bf16.mxu1 %v13175_v38  ;;  %v13251_v37 = vld [vmem:[%s15467_s27 + $0x210] ss:$36 sps:$4 sm:$0xff]  }
 0x48d   : > { %2881 = vmatprep.subr.bf16.mxu0 %v13178_v24  ;;  %v13254_v38 = vld [vmem:[%s15467_s27 + $0x690] ss:$36 sps:$4 sm:$0xff]  }
 0x48e   : > { %v13259_v24 = vld [vmem:[%s15467_s27 + $0x1cc] ss:$36 sps:$4 sm:$0xff]  }
 0x48f   : > { %2812 = vmatpush2.bf16.msra.mxu1 %v13173_v39  ;;  %v13262_v39 = vld [vmem:[%s15467_s27 + $0x64c] ss:$36 sps:$4 sm:$0xff]  }
 0x490   : > { %2882 = vmatpush1.bf16.msra.mxu0 %v13176_v22  ;;  %2813 = vmatprep.subr.bf16.mxu1 %v13181_v40  ;;  %v13257_v22 = vld [vmem:[%s15467_s27 + $0x1c8] ss:$36 sps:$4 sm:$0xff]  }
 0x491   : > { %2883 = vmatprep.subr.bf16.mxu0 %v13184_v41  ;;  %v13260_v40 = vld [vmem:[%s15467_s27 + $0x648] ss:$36 sps:$4 sm:$0xff]  }
 0x492   : > { %v13265_v41 = vld [vmem:[%s15467_s27 + $0x184] ss:$36 sps:$4 sm:$0xff]  }
 0x493   : > { %2814 = vmatpush2.bf16.msra.mxu1 %v13179_v42  ;;  %v13268_v42 = vld [vmem:[%s15467_s27 + $0x604] ss:$36 sps:$4 sm:$0xff]  }
 0x494   : > { %2884 = vmatpush1.bf16.msra.mxu0 %v13182_v43  ;;  %2815 = vmatprep.subr.bf16.mxu1 %v13187_v44  ;;  %v13263_v43 = vld [vmem:[%s15467_s27 + $0x180] ss:$36 sps:$4 sm:$0xff]  }
 0x495   : > { %2885 = vmatprep.subr.bf16.mxu0 %v13190_v45  ;;  %v13266_v44 = vld [vmem:[%s15467_s27 + $0x600] ss:$36 sps:$4 sm:$0xff]  }
 0x496   : > { %v13271_v45 = vld [vmem:[%s15467_s27 + $0x13c] ss:$36 sps:$4 sm:$0xff]  }
 0x497   : > { %2816 = vmatpush2.bf16.msra.mxu1 %v13185_v31  ;;  %v13274_v31 = vld [vmem:[%s15467_s27 + $0x5bc] ss:$36 sps:$4 sm:$0xff]  }
 0x498   : > { %2886 = vmatpush1.bf16.msra.mxu0 %v13188_v46  ;;  %2817 = vmatprep.subr.bf16.mxu1 %v13193_v47  ;;  %v13269_v46 = vld [vmem:[%s15467_s27 + $0x138] ss:$36 sps:$4 sm:$0xff]  }
 0x499   : > { %2887 = vmatprep.subr.bf16.mxu0 %v13196_v32  ;;  %v13272_v47 = vld [vmem:[%s15467_s27 + $0x5b8] ss:$36 sps:$4 sm:$0xff]  }
 0x49a   : > { %v13277_v32 = vld [vmem:[%s15467_s27 + $0xf4] ss:$36 sps:$4 sm:$0xff]  }
 0x49b   : > { %2818 = vmatpush2.bf16.msra.mxu1 %v13191_v30  ;;  %v13280_v30 = vld [vmem:[%s15467_s27 + $0x574] ss:$36 sps:$4 sm:$0xff]  }
 0x49c   : > { %2888 = vmatpush1.bf16.msra.mxu0 %v13194_v50  ;;  %2819 = vmatprep.subr.bf16.mxu1 %v13199_v51  ;;  %v13275_v50 = vld [vmem:[%s15467_s27 + $0xf0] ss:$36 sps:$4 sm:$0xff]  }
 0x49d   : > { %2889 = vmatprep.subr.bf16.mxu0 %v13202_v53  ;;  %v13278_v51 = vld [vmem:[%s15467_s27 + $0x570] ss:$36 sps:$4 sm:$0xff]  }
 0x49e   : > { %v13283_v53 = vld [vmem:[%s15467_s27 + $0xac] ss:$36 sps:$4 sm:$0xff]  }
 0x49f   : > { %2820 = vmatpush2.bf16.msra.mxu1 %v13197_v54  ;;  %v13286_v54 = vld [vmem:[%s15467_s27 + $0x52c] ss:$36 sps:$4 sm:$0xff]  }
 0x4a0   : > { %2890 = vmatpush1.bf16.msra.mxu0 %v13200_v55  ;;  %2918 = vmatprep.subr.bf16.mxu1 %v13205_v56  ;;  %v13281_v55 = vld [vmem:[%s15467_s27 + $0xa8] ss:$36 sps:$4 sm:$0xff]  }
 0x4a1   : > { %2891 = vmatprep.subr.bf16.mxu0 %v13208_v57  ;;  %v13284_v56 = vld [vmem:[%s15467_s27 + $0x528] ss:$36 sps:$4 sm:$0xff]  }
 0x4a2   : > { %2822 = vmatmul.mubr.bf16.vlgmr.msra.gmra.mxu1 %v15640_v52  ;;  %v13289_v57 = vld [vmem:[%s15467_s27 + $0x64] ss:$36 sps:$4 sm:$0xff]  }
 0x4a3   : > { %2919 = vmatpush1.bf16.msra.mxu1 %v13203_v58  ;;  %2950 = vmatprep.mubr.bf16.mxu1 %v14911_v63  ;;  %v13292_v58 = vld [vmem:[%s15467_s27 + $0x4e4] ss:$36 sps:$4 sm:$0xff]  }
 0x4a4   : > { %2892 = vmatpush2.bf16.msra.mxu0 %v13206_v59  ;;  %2920 = vmatprep.subr.bf16.mxu1 %v13211_v60  ;;  %v13287_v59 = vld [vmem:[%s15467_s27 + $0x60] ss:$36 sps:$4 sm:$0xff]  }
 0x4a5   : > { %2893 = vmatprep.subr.bf16.mxu0 %v13214_v61  ;;  %v13290_v60 = vld [vmem:[%s15467_s27 + $0x4e0] ss:$36 sps:$4 sm:$0xff]  }
 0x4a6   : > { %v13295_v61 = vld [vmem:[%s15467_s27 + $0x1c] ss:$36 sps:$4 sm:$0xff]  }
 0x4a7   : > { %2921 = vmatpush1.bf16.msra.mxu1 %v13209_v62  ;;  %v13298_v62 = vld [vmem:[%s15467_s27 + $0x49c] ss:$36 sps:$4 sm:$0xff]  }
 0x4a8   : > { %2894 = vmatpush2.bf16.msra.mxu0 %v13212_v0  ;;  %2922 = vmatprep.subr.bf16.mxu1 %v13217_v1  ;;  %v13293_v0 = vld [vmem:[%s15467_s27 + $0x18] ss:$36 sps:$4 sm:$0xff]  }
 0x4a9   : > { %2895 = vmatprep.subr.bf16.mxu0 %v13220_v2  ;;  %v13296_v1 = vld [vmem:[%s15467_s27 + $0x498] ss:$36 sps:$4 sm:$0xff]  }
 0x4aa   : > { %v13301_v2 = vld [vmem:[%s15467_s27 + $0x454] ss:$36 sps:$4 sm:$0xff]  }
 0x4ab   : > { %2923 = vmatpush1.bf16.msra.mxu1 %v13215_v3  ;;  %v13302_v3 = vld [vmem:[%s15467_s27 + $0x458] ss:$36 sps:$4 sm:$0xff]  }
 0x4ac   : > { %2896 = vmatpush2.bf16.msra.mxu0 %v13218_v4  ;;  %2924 = vmatprep.subr.bf16.mxu1 %v13223_v5  ;;  %v13299_v4 = vld [vmem:[%s15467_s27 + $0x450] ss:$36 sps:$4 sm:$0xff]   ;;  %v13303_v5 = vld [vmem:[%s15467_s27 + $0x218] ss:$36 sps:$4 sm:$0xff]  }
 0x4ad   : > { %2897 = vmatprep.subr.bf16.mxu0 %v13226_v6  ;;  %v13306_v6 = vld [vmem:[%s15467_s27 + $0x40c] ss:$36 sps:$4 sm:$0xff]  }
 0x4af   : > { %2925 = vmatpush1.bf16.msra.mxu1 %v13221_v7  ;;  %v13307_v7 = vld [vmem:[%s15467_s27 + $0x410] ss:$36 sps:$4 sm:$0xff]  }
 0x4b0   : > { %2898 = vmatpush2.bf16.msra.mxu0 %v13224_v8  ;;  %2926 = vmatprep.subr.bf16.mxu1 %v13229_v9  ;;  %v13304_v8 = vld [vmem:[%s15467_s27 + $0x408] ss:$36 sps:$4 sm:$0xff]   ;;  %v13308_v9 = vld [vmem:[%s15467_s27 + $0x1d0] ss:$36 sps:$4 sm:$0xff]  }
 0x4b1   : > { %2899 = vmatprep.subr.bf16.mxu0 %v13232_v10  ;;  %v13311_v10 = vld [vmem:[%s15467_s27 + $0x3c4] ss:$36 sps:$4 sm:$0xff]  }
 0x4b3   : > { %2927 = vmatpush1.bf16.msra.mxu1 %v13227_v11  ;;  %v13312_v11 = vld [vmem:[%s15467_s27 + $0x3c8] ss:$36 sps:$4 sm:$0xff]  }
 0x4b4   : > { %2900 = vmatpush2.bf16.msra.mxu0 %v13230_v12  ;;  %2928 = vmatprep.subr.bf16.mxu1 %v13235_v17  ;;  %v13309_v12 = vld [vmem:[%s15467_s27 + $0x3c0] ss:$36 sps:$4 sm:$0xff]   ;;  %v13313_v17 = vld [vmem:[%s15467_s27 + $0x188] ss:$36 sps:$4 sm:$0xff]  }
 0x4b5   : > { %2901 = vmatprep.subr.bf16.mxu0 %v13238_v19  ;;  %v13316_v19 = vld [vmem:[%s15467_s27 + $0x37c] ss:$36 sps:$4 sm:$0xff]  }
 0x4b7   : > { %2929 = vmatpush1.bf16.msra.mxu1 %v13233_v20  ;;  %v13317_v20 = vld [vmem:[%s15467_s27 + $0x380] ss:$36 sps:$4 sm:$0xff]  }
 0x4b8   : > { %2902 = vmatpush2.bf16.msra.mxu0 %v13236_v21  ;;  %2930 = vmatprep.subr.bf16.mxu1 %v13241_v25  ;;  %v13318_v21 = vld [vmem:[%s15467_s27 + $0x140] ss:$36 sps:$4 sm:$0xff]   ;;  %v13321_v25 = vld [vmem:[%s15467_s27 + $0x334] ss:$36 sps:$4 sm:$0xff]  }
 0x4b9   : > { %2903 = vmatprep.subr.bf16.mxu0 %v13244_v26  ;;  %v13322_v26 = vld [vmem:[%s15467_s27 + $0x338] ss:$36 sps:$4 sm:$0xff]  }
 0x4bb   : > { %2931 = vmatpush1.bf16.msra.mxu1 %v13239_v27  ;;  %v13319_v27 = vld [vmem:[%s15467_s27 + $0x330] ss:$36 sps:$4 sm:$0xff]  }
 0x4bc   : > { %2904 = vmatpush2.bf16.msra.mxu0 %v13242_v28  ;;  %2932 = vmatprep.subr.bf16.mxu1 %v13247_v29  ;;  %v13323_v28 = vld [vmem:[%s15467_s27 + $0xf8] ss:$36 sps:$4 sm:$0xff]   ;;  %v13326_v29 = vld [vmem:[%s15467_s27 + $0x2ec] ss:$36 sps:$4 sm:$0xff]  }
 0x4bd   : > { %2905 = vmatprep.subr.bf16.mxu0 %v13250_v33  ;;  %v13327_v33 = vld [vmem:[%s15467_s27 + $0x2f0] ss:$36 sps:$4 sm:$0xff]  }
 0x4bf   : > { %2933 = vmatpush1.bf16.msra.mxu1 %v13245_v34  ;;  %v13324_v34 = vld [vmem:[%s15467_s27 + $0x2e8] ss:$36 sps:$4 sm:$0xff]  }
 0x4c0   : > { %2906 = vmatpush2.bf16.msra.mxu0 %v13248_v35  ;;  %2961 = vmatprep.subr.bf16.mxu1 %v13253_v36  ;;  %v13328_v35 = vld [vmem:[%s15467_s27 + $0xb0] ss:$36 sps:$4 sm:$0xff]   ;;  %v13331_v36 = vld [vmem:[%s15467_s27 + $0x2a4] ss:$36 sps:$4 sm:$0xff]  }
 0x4c1   : > { %3004 = vmatprep.subr.bf16.mxu0 %v13256_v23  ;;  %v13332_v23 = vld [vmem:[%s15467_s27 + $0x2a8] ss:$36 sps:$4 sm:$0xff]  }
 0x4c2   : > { %2951 = vmatmul.mubr.bf16.vlgmr.msra.gmra.mxu1 %v15636_v49 }
 0x4c3   : > { %2908 = vmatmul.mubr.bf16.vlgmr.msra.gmra.mxu0 %v15640_v52  ;;  %2962 = vmatpush1.bf16.msra.mxu1 %v13251_v37  ;;  %v13329_v37 = vld [vmem:[%s15467_s27 + $0x2a0] ss:$36 sps:$4 sm:$0xff]  }
 0x4c4   : > { %2993 = vmatprep.mubr.bf16.mxu1 %v15634_v48  ;;  %3005 = vmatpush1.bf16.msra.mxu0 %v13254_v38  ;;  %v13333_v38 = vld [vmem:[%s15467_s27 + $0x68] ss:$36 sps:$4 sm:$0xff]  }
 0x4c5   : > { %2963 = vmatprep.subr.bf16.mxu1 %v13259_v24  ;;  %3006 = vmatprep.subr.bf16.mxu0 %v13262_v39  ;;  %v13336_v24 = vld [vmem:[%s15467_s27 + $0x25c] ss:$36 sps:$4 sm:$0xff]  }
 0x4c6   : > { %3036 = vmatprep.mubr.bf16.mxu0 %v14911_v63  ;;  %v13337_v39 = vld [vmem:[%s15467_s27 + $0x260] ss:$36 sps:$4 sm:$0xff]  }
 0x4c7   : > { %2964 = vmatpush1.bf16.msra.mxu1 %v13257_v22  ;;  %v13334_v22 = vld [vmem:[%s15467_s27 + $0x258] ss:$36 sps:$4 sm:$0xff]  }
 0x4c8   : > { %3007 = vmatpush1.bf16.msra.mxu0 %v13260_v40  ;;  %2965 = vmatprep.subr.bf16.mxu1 %v13265_v41  ;;  %v13338_v40 = vld [vmem:[%s15467_s27 + $0x20] ss:$36 sps:$4 sm:$0xff]   ;;  %v13339_v41 = vld [vmem:[%s15467_s27 + $0x698] ss:$36 sps:$4 sm:$0xff]  }
 0x4c9   : > { %3008 = vmatprep.subr.bf16.mxu0 %v13268_v42  ;;  %v14912_v42 = vmov 0.0  }
 0x4cb   : > { %2966 = vmatpush1.bf16.msra.mxu1 %v13263_v43  ;;  %v13340_v43 = vld [vmem:[%s15467_s27 + $0x650] ss:$36 sps:$4 sm:$0xff]  }
 0x4cc   : > { %3009 = vmatpush1.bf16.msra.mxu0 %v13266_v44  ;;  %2967 = vmatprep.subr.bf16.mxu1 %v13271_v45  ;;  %v13341_v44 = vld [vmem:[%s15467_s27 + $0x608] ss:$36 sps:$4 sm:$0xff]   ;;  %v13343_v45 = vld [vmem:[%s15467_s27 + $0x578] ss:$36 sps:$4 sm:$0xff]  }
 0x4cd   : > { %3010 = vmatprep.subr.bf16.mxu0 %v13274_v31  ;;  %v13344_v31 = vld [vmem:[%s15467_s27 + $0x530] ss:$36 sps:$4 sm:$0xff]  }
 0x4cf   : > { %2968 = vmatpush1.bf16.msra.mxu1 %v13269_v46  ;;  %v13345_v46 = vld [vmem:[%s15467_s27 + $0x4e8] ss:$36 sps:$4 sm:$0xff]  }
 0x4d0   : > { %3011 = vmatpush1.bf16.msra.mxu0 %v13272_v47  ;;  %2969 = vmatprep.subr.bf16.mxu1 %v13277_v32  ;;  %v13346_v47 = vld [vmem:[%s15467_s27 + $0x4a0] ss:$36 sps:$4 sm:$0xff]  }
 0x4d1   : > { %3012 = vmatprep.subr.bf16.mxu0 %v13280_v30 }
 0x4d3   : > { %2970 = vmatpush1.bf16.msra.mxu1 %v13275_v50 }
 0x4d4   : > { %3013 = vmatpush1.bf16.msra.mxu0 %v13278_v51  ;;  %2971 = vmatprep.subr.bf16.mxu1 %v13283_v53 }
 0x4d5   : > { %3014 = vmatprep.subr.bf16.mxu0 %v13286_v54 }
 0x4d7   : > { %2972 = vmatpush1.bf16.msra.mxu1 %v13281_v55 }
 0x4d8   : > { %3015 = vmatpush1.bf16.msra.mxu0 %v13284_v56  ;;  %2973 = vmatprep.subr.bf16.mxu1 %v13289_v57 }
 0x4d9   : > { %3016 = vmatprep.subr.bf16.mxu0 %v13292_v58 }
 0x4db   : > { %2974 = vmatpush1.bf16.msra.mxu1 %v13287_v59 }
 0x4dc   : > { %3017 = vmatpush1.bf16.msra.mxu0 %v13290_v60  ;;  %2975 = vmatprep.subr.bf16.mxu1 %v13295_v61 }
 0x4dd   : > { %3018 = vmatprep.subr.bf16.mxu0 %v13298_v62 }
 0x4df   : > { %2976 = vmatpush1.bf16.msra.mxu1 %v13293_v0 }
 0x4e0   : > { %3019 = vmatpush1.bf16.msra.mxu0 %v13296_v1  ;;  %2977 = vmatprep.subr.bf16.mxu1 %v13301_v2 }
 0x4e1   : > { %12321 = vmatprep.subr.bf16.mxu0 %v13302_v3 }
 0x4e3   : > { %2978 = vmatpush2.bf16.msra.mxu1 %v13299_v4  ;;  %3037 = vmatmul.mubr.bf16.vlgmr.msra.gmra.mxu0 %v15636_v49 }
 0x4e4   : > { %12322 = vmatpush3.bf16.msra.mxu0 %v13303_v5  ;;  %3079 = vmatprep.mubr.bf16.mxu0 %v15634_v48  ;;  %v13314_v48 = vld [vmem:[%s15467_s27 + $0x378] ss:$36 sps:$4 sm:$0xff]  }
 0x4e5   : > { %2979 = vmatprep.subr.bf16.mxu1 %v13306_v6  ;;  %12323 = vmatprep.subr.bf16.mxu0 %v13307_v7 }
 0x4e7   : > { %2980 = vmatpush2.bf16.msra.mxu1 %v13304_v8 }
 0x4e8   : > { %12324 = vmatpush3.bf16.msra.mxu0 %v13308_v9  ;;  %2981 = vmatprep.subr.bf16.mxu1 %v13311_v10 }
 0x4e9   : > { %12325 = vmatprep.subr.bf16.mxu0 %v13312_v11 }
 0x4eb   : > { %2982 = vmatpush2.bf16.msra.mxu1 %v13309_v12 }
 0x4ec   : > { %12326 = vmatpush3.bf16.msra.mxu0 %v13313_v17  ;;  %2983 = vmatprep.subr.bf16.mxu1 %v13316_v19 }
 0x4ed   : > { %12327 = vmatprep.subr.bf16.mxu0 %v13317_v20 }
 0x4ef   : > { %2984 = vmatpush2.bf16.msra.mxu1 %v13314_v48 }
 0x4f0   : > { %12328 = vmatpush3.bf16.msra.mxu0 %v13318_v21  ;;  %2985 = vmatprep.subr.bf16.mxu1 %v13321_v25 }
 0x4f1   : > { %12329 = vmatprep.subr.bf16.mxu0 %v13322_v26 }
 0x4f3   : > { %2986 = vmatpush2.bf16.msra.mxu1 %v13319_v27 }
 0x4f4   : > { %12330 = vmatpush3.bf16.msra.mxu0 %v13323_v28  ;;  %2987 = vmatprep.subr.bf16.mxu1 %v13326_v29 }
 0x4f5   : > { %12331 = vmatprep.subr.bf16.mxu0 %v13327_v33 }
 0x4f7   : > { %2988 = vmatpush2.bf16.msra.mxu1 %v13324_v34 }
 0x4f8   : > { %12332 = vmatpush3.bf16.msra.mxu0 %v13328_v35  ;;  %2989 = vmatprep.subr.bf16.mxu1 %v13331_v36 }
 0x4f9   : > { %12333 = vmatprep.subr.bf16.mxu0 %v13332_v23 }
 0x4fb   : > { %2990 = vmatpush2.bf16.msra.mxu1 %v13329_v37 }
 0x4fc   : > { %12334 = vmatpush3.bf16.msra.mxu0 %v13333_v38  ;;  %2991 = vmatprep.subr.bf16.mxu1 %v13336_v24 }
 0x4fd   : > { %12335 = vmatprep.subr.bf16.mxu0 %v13337_v39 }
 0x4ff   : > { %2992 = vmatpush2.bf16.msra.mxu1 %v13334_v22 }
 0x500   : > { %12336 = vmatpush3.bf16.msra.mxu0 %v13338_v40  ;;  %12614 = vmatprep.subr.bf16.mxu1 %v14912_v42 }
 0x501   : > { %12674 = vmatprep.subr.mxu0 %v14912_v42 }
 0x502   : > { %2994 = vmatmul.mubr.bf16.vlgmr.msra.gmra.mxu1 %v15640_v52 }
 0x503   : > { %3080 = vmatmul.mubr.bf16.vlgmr.msra.gmra.mxu0 %v15640_v52  ;;  %12615 = vmatpush3.bf16.msra.mxu1 %v13339_v41  ;;  %v13342_v52 = vld [vmem:[%s15467_s27 + $0x5c0] ss:$36 sps:$4 sm:$0xff]  }
 0x504   : > { %12616 = vmatprep.subr.bf16.mxu1 %v14912_v42  ;;  %12630 = vmatprep.mubr.msk.bf16.mxu1 %vm14913_vm4, %v14912_v42 }
 0x505   : > { %12676 = vmatprep.mubr.msk.f32.mxu0 %vm14913_vm4, %v14912_v42 }
 0x507   : > { %12617 = vmatpush3.bf16.msra.mxu1 %v13340_v43 }
 0x508   : > { %12618 = vmatprep.subr.bf16.mxu1 %v14912_v42 }
 0x50b   : > { %12619 = vmatpush3.bf16.msra.mxu1 %v13341_v44 }
 0x50c   : > { %12620 = vmatprep.subr.bf16.mxu1 %v14912_v42 }
 0x50f   : > { %12621 = vmatpush3.bf16.msra.mxu1 %v13342_v52 }
 0x510   : > { %12622 = vmatprep.subr.bf16.mxu1 %v14912_v42 }
 0x513   : > { %12623 = vmatpush3.bf16.msra.mxu1 %v13343_v45 }
 0x514   : > { %12624 = vmatprep.subr.bf16.mxu1 %v14912_v42 }
 0x517   : > { %12625 = vmatpush3.bf16.msra.mxu1 %v13344_v31 }
 0x518   : > { %12626 = vmatprep.subr.bf16.mxu1 %v14912_v42 }
 0x51b   : > { %12627 = vmatpush3.bf16.msra.mxu1 %v13345_v46 }
 0x51c   : > { %12628 = vmatprep.subr.bf16.mxu1 %v14912_v42 }
 0x51f   : > { %12629 = vmatpush3.bf16.msra.mxu1 %v13346_v47 }
 0x520   : > { %12634 = vmatprep.subr.mxu1 %v14912_v42 }
 0x522   : > { %12631 = vmatmul.mubr.bf16.vlgmr.msra.gmra.mxu1 %v15636_v49  ;;  %v2780_v32 = vpop.f32.mrf.mxu1 }
 0x523   : > { %v2737_v30 = vpop.f32.mrf.mxu0  ;;  %12636 = vmatprep.mubr.msk.f32.mxu1 %vm14913_vm4, %v14912_v42 }
 0x524   : > { %v2781_v50 = vadd.f32 %v2780_v32, %v2737_v30  ;;  %v2782_v54 = vpop.f32.mrf.mxu1 }
 0x525   : > { %v2739_v51 = vpop.f32.mrf.mxu0 }
 0x526   : > { %3131 = vrot.lane.b32.xlu1 %v2781_v50, %s14914_s12  ;;  %v2784_v56 = vpop.f32.mrf.mxu1  ;;  %v2783_v5 = vadd.f32 %v2782_v54, %v2739_v51 }
 0x527   : > { %v2741_v53 = vpop.f32.mrf.mxu0 }
 0x528   : > { %v2786_v58 = vpop.f32.mrf.mxu1  ;;  %v2785_v4 = vadd.f32 %v2784_v56, %v2741_v53 }
 0x529   : > { %v2743_v55 = vpop.f32.mrf.mxu0 }
 0x52a   : > { %v15853_v6 = vadd.f32 %v2786_v58, %v2743_v55 }
 0x543   : > { %v2866_v57 = vpop.f32.mrf.mxu0 }
 0x545   : > { %v2868_v59 = vpop.f32.mrf.mxu0 }
 0x547   : > { %v2870_v61 = vpop.f32.mrf.mxu0 }
 0x549   : > { %v2872_v1 = vpop.f32.mrf.mxu0 }
 0x562   : > { %v2823_v60 = vpop.f32.mrf.mxu1 }
 0x563   : > { %v2867_v21 = vadd.f32 %v2866_v57, %v2823_v60 }
 0x564   : > { %v2825_v49 = vpop.f32.mrf.mxu1 }
 0x565   : > { %v2869_v62 = vadd.f32 %v2868_v59, %v2825_v49 }
 0x566   : > { %v2827_v0 = vpop.f32.mrf.mxu1 }
 0x567   : > { %3149 = vrot.lane.b32.xlu0 %v2869_v62, %s14914_s12  ;;  %12635 = vmatpush3.xpose.msk.msra.mxu1 %vm3194_vm5, %v2869_v62  ;;  %v15868_v27 = vadd.f32 %v2870_v61, %v2827_v0  ;;  %v3192_v0 = vand.u32 127, %v1313_v13 }
 0x568   : > { %v2829_v2 = vpop.f32.mrf.mxu1  ;;  %12639 = vmatprep.subr.mxu1 %v14912_v42 }
 0x569   : > { %v2873_v3 = vadd.f32 %v2872_v1, %v2829_v2  ;;  %vm15943_vm6 = vcmp.le.s32.totalorder %v3192_v0, %v15605_v14 }
 0x56a   : > { %12637 = vmatmul.mubr.msk.f32.vlgmr.msra.gmra.mxu1 %vm3194_vm5, %v2781_v50 }
 0x56b   : > { %3151 = vrot.lane.b32.xlu1 %v2873_v3, %s14914_s12  ;;  %12640 = vmatpush3.xpose.msk.msra.mxu1 %vm3194_vm5, %v2873_v3 }
 0x56c   : > { %12641 = vmatprep.mubr.msk.f32.mxu1 %vm14913_vm4, %v14912_v42  ;;  %12644 = vmatprep.subr.mxu1 %v14912_v42 }
 0x56e   : > { %12642 = vmatmul.mubr.msk.f32.vlgmr.msra.gmra.mxu1 %vm3194_vm5, %v2785_v4 }
 0x56f   : > { %3133 = vrot.lane.b32.xlu1 %v2785_v4, %s14914_s12  ;;  %12646 = vmatprep.mubr.msk.f32.mxu1 %vm14913_vm4, %v14912_v42 }
 0x573   : > { %3137 = vrot.lane.b32.xlu1 %v2783_v5, %s14914_s12 }
 0x577   : > { %3139 = vrot.lane.b32.xlu1 %v15853_v6, %s14914_s12 }
 0x582   : > { %v2952_v7 = vpop.f32.mrf.mxu1 }
 0x583   : > { %v2909_v8 = vpop.f32.mrf.mxu0 }
 0x584   : > { %v2953_v9 = vadd.f32 %v2952_v7, %v2909_v8  ;;  %v2954_v10 = vpop.f32.mrf.mxu1 }
 0x585   : > { %v2911_v11 = vpop.f32.mrf.mxu0 }
 0x586   : > { %v2955_v12 = vadd.f32 %v2954_v10, %v2911_v11  ;;  %v2956_v17 = vpop.f32.mrf.mxu1  ;;  %3155 = vrot.lane.b32.xlu0 %v2953_v9, %s14914_s12 }
 0x587   : > { %v2913_v19 = vpop.f32.mrf.mxu0 }
 0x588   : > { %v2957_v20 = vadd.f32 %v2956_v17, %v2913_v19  ;;  %v2958_v48 = vpop.f32.mrf.mxu1  ;;  %12675 = vmatpush3.xpose.msk.msra.mxu0 %vm3194_vm5, %v2955_v12 }
 0x589   : > { %v2915_v25 = vpop.f32.mrf.mxu0  ;;  %12684 = vmatprep.subr.mxu0 %v14912_v42 }
 0x58a   : > { %v15860_v26 = vadd.f32 %v2958_v48, %v2915_v25  ;;  %3157 = vrot.lane.b32.xlu0 %v2957_v20, %s14914_s12 }
 0x58b   : > { %12677 = vmatmul.mubr.msk.f32.vlgmr.msra.gmra.mxu0 %vm3194_vm5, %v2867_v21 }
 0x58c   : > { %3163 = vrot.lane.b32.xlu1 %v15860_v26, %s14914_s12  ;;  %12686 = vmatprep.mubr.msk.f32.mxu0 %vm14913_vm4, %v14912_v42 }
 0x58e   : > { %3161 = vrot.lane.b32.xlu0 %v2955_v12, %s14914_s12 }
 0x590   : > { %3145 = vrot.lane.b32.xlu1 %v15868_v27, %s14914_s12 }
 0x592   : > { %3143 = vrot.lane.b32.xlu0 %v2867_v21, %s14914_s12 }
 0x598   : > { %v3132_v41 = vpop.permute.xlu1 %3131 }
 0x5a3   : > { %v3038_v28 = vpop.f32.mrf.mxu0 }
 0x5a5   : > { %v3040_v29 = vpop.f32.mrf.mxu0 }
 0x5a7   : > { %v15874_v33 = vpop.f32.mrf.mxu0 }
 0x5a9   : > { %v3044_v34 = vpop.f32.mrf.mxu0 }
 0x5c2   : > { %v2995_v35 = vpop.f32.mrf.mxu1 }
 0x5c3   : > { %v12337_v36 = vpop.f32.mrf.mxu0  ;;  %v15920_v60 = vadd.f32 %v3038_v28, %v2995_v35 }
 0x5c4   : > { %v2997_v23 = vpop.f32.mrf.mxu1 }
 0x5c5   : > { %v15876_v37 = vadd.f32 %v3040_v29, %v2997_v23  ;;  %v12338_v38 = vpop.f32.mrf.mxu0 }
 0x5c6   : > { %v12339_v24 = vadd.f32 %v12338_v38, %v12337_v36  ;;  %v2999_v39 = vpop.f32.mrf.mxu1 }
 0x5c7   : > { %v12340_v52 = vpop.f32.mrf.mxu0  ;;  %v15930_v49 = vadd.f32 %v15874_v33, %v2999_v39 }
 0x5c8   : > { %v3001_v22 = vpop.f32.mrf.mxu1 }
 0x5c9   : > { %v15878_v40 = vadd.f32 %v3044_v34, %v3001_v22  ;;  %v12341_v31 = vpop.f32.mrf.mxu0 }
 0x5ca   : > { %v12342_v30 = vadd.f32 %v12341_v31, %v12340_v52 }
 0x5d9   : > { %v3150_v43 = vpop.permute.xlu0 %3149 }
 0x5da   : > { %12645 = vmatpush3.xpose.msk.msra.mxu1 %vm3194_vm5, %v3150_v43 }
 0x5db   : > { %12649 = vmatprep.subr.mxu1 %v14912_v42 }
 0x5dd   : > { %v3152_v44 = vpop.permute.xlu1 %3151  ;;  %12647 = vmatmul.mubr.msk.f32.vlgmr.msra.gmra.mxu1 %vm3194_vm5, %v3132_v41 }
 0x5de   : > { %12650 = vmatpush3.xpose.msk.msra.mxu1 %vm3194_vm5, %v3152_v44  ;;  %12651 = vmatprep.mubr.msk.f32.mxu1 %vm14913_vm4, %v14912_v42 }
 0x5df   : > { %12654 = vmatprep.subr.mxu1 %v14912_v42 }
 0x5e1   : > { %v3134_v45 = vpop.permute.xlu1 %3133 }
 0x5e2   : > { %v3122_v46 = vpop.f32.mrf.mxu1  ;;  %12652 = vmatmul.mubr.msk.f32.vlgmr.msra.gmra.mxu1 %vm3194_vm5, %v3134_v45 }
 0x5e3   : > { %v15888_v47 = vadd.f32 %v12339_v24, %v3122_v46  ;;  %12655 = vmatpush3.xpose.msk.msra.mxu1 %vm3194_vm5, %v2953_v9  ;;  %12656 = vmatprep.mubr.msk.f32.mxu1 %vm14913_vm4, %v14912_v42 }
 0x5e4   : > { %v12632_v32 = vpop.f32.mrf.mxu1  ;;  %12659 = vmatprep.subr.mxu1 %v14912_v42 }
 0x5e5   : > { %v3138_v54 = vpop.permute.xlu1 %3137 }
 0x5e6   : > { %v3125_v50 = vpop.f32.mrf.mxu1  ;;  %12657 = vmatmul.mubr.msk.f32.vlgmr.msra.gmra.mxu1 %vm3194_vm5, %v2783_v5 }
 0x5e7   : > { %v15895_v51 = vadd.f32 %v12342_v30, %v3125_v50  ;;  %12660 = vmatpush3.xpose.msk.msra.mxu1 %vm3194_vm5, %v2957_v20  ;;  %12661 = vmatprep.mubr.msk.f32.mxu1 %vm14913_vm4, %v14912_v42 }
 0x5e8   : > { %v12633_v53 = vpop.f32.mrf.mxu1  ;;  %12664 = vmatprep.subr.mxu1 %v14912_v42 }
 0x5e9   : > { %v3140_v57 = vpop.permute.xlu1 %3139 }
 0x5ea   : > { %12662 = vmatmul.mubr.msk.f32.vlgmr.msra.gmra.mxu1 %vm3194_vm5, %v15853_v6 }
 0x5eb   : > { %12666 = vmatprep.mubr.msk.f32.mxu1 %vm14913_vm4, %v14912_v42 }
 0x5f8   : > { %v3156_v55 = vpop.permute.xlu0 %3155 }
 0x5f9   : > { %12665 = vmatpush3.xpose.msk.msra.mxu1 %vm3194_vm5, %v3156_v55 }
 0x5fa   : > { %12669 = vmatprep.subr.mxu1 %v14912_v42 }
 0x5fc   : > { %v3158_v56 = vpop.permute.xlu0 %3157  ;;  %12667 = vmatmul.mubr.msk.f32.vlgmr.msra.gmra.mxu1 %vm3194_vm5, %v3138_v54 }
 0x5fd   : > { %12670 = vmatpush3.xpose.msk.msra.mxu1 %vm3194_vm5, %v3158_v56  ;;  %12671 = vmatprep.mubr.msk.f32.mxu1 %vm14913_vm4, %v14912_v42 }
 0x5fe   : > { %12679 = vmatprep.subr.mxu1 %v14912_v42  ;;  %v3164_v59 = vpop.permute.xlu1 %3163 }
 0x600   : > { %v3162_v58 = vpop.permute.xlu0 %3161  ;;  %12672 = vmatmul.mubr.msk.f32.vlgmr.msra.gmra.mxu1 %vm3194_vm5, %v3140_v57 }
 0x601   : > { %12680 = vmatpush3.xpose.msk.msra.mxu1 %vm3194_vm5, %v15860_v26  ;;  %12685 = vmatpush3.xpose.msk.msra.mxu0 %vm3194_vm5, %v3162_v58 }
 0x602   : > { %12681 = vmatprep.mubr.msk.f32.mxu1 %vm14913_vm4, %v14912_v42  ;;  %12689 = vmatprep.subr.mxu1 %v14912_v42  ;;  %v3146_v62 = vpop.permute.xlu1 %3145 }
 0x603   : > { %12694 = vmatprep.subr.mxu0 %v14912_v42 }
 0x604   : > { %v3144_v61 = vpop.permute.xlu0 %3143  ;;  %12682 = vmatmul.mubr.msk.f32.vlgmr.msra.gmra.mxu1 %vm3194_vm5, %v15868_v27 }
 0x605   : > { %12687 = vmatmul.mubr.msk.f32.vlgmr.msra.gmra.mxu0 %vm3194_vm5, %v3144_v61  ;;  %12690 = vmatpush3.xpose.msk.msra.mxu1 %vm3194_vm5, %v3164_v59 }
 0x606   : > { %12695 = vmatpush3.msra.mxu0 %v15920_v60  ;;  %12691 = vmatprep.mubr.msk.f32.mxu1 %vm14913_vm4, %v14912_v42 }
 0x607   : > { %12699 = vmatprep.subr.mxu1 %v14912_v42  ;;  %12696 = vmatprep.mubr.msk.f32.mxu0 %vm14913_vm4, %v14912_v42 }
 0x608   : > { %12692 = vmatmul.mubr.msk.f32.vlgmr.msra.gmra.mxu1 %vm3194_vm5, %v3146_v62  ;;  %12704 = vmatprep.subr.mxu0 %v14912_v42 }
 0x609   : > { %12700 = vmatpush3.msra.mxu1 %v15930_v49  ;;  %12701 = vmatprep.mubr.msk.f32.mxu1 %vm14913_vm4, %v14912_v42 }
 0x60a   : > { %12709 = vmatprep.subr.mxu1 %v14912_v42 }
 0x62a   : > { %v3265_v1 = vpop.f32.mrf.mxu1 }
 0x62b   : > { %v4083_v3 = vmul.f32 0.05103104, %v3265_v1 }
 0x62c   : > { %v12638_v4 = vpop.f32.mrf.mxu1 }
 0x62d   : > { %v15949_v5 = vsel %vm15943_vm6, %v4083_v3, -1e+30 }
 0x62e   : > { %v3339_v6 = vpop.f32.mrf.mxu1  ;;  %v4110_v7 = vsel %vm4109_vm7, %v15949_v5, -inf }
 0x62f   : > { %v4084_v8 = vmul.f32 0.05103104, %v3339_v6  ;;  %4111 = vmax.xlane.f32.xlu0 %v4110_v7 }
 0x630   : > { %v12643_v13 = vpop.f32.mrf.mxu1 }
 0x631   : > { %v15955_v9 = vsel %vm15943_vm6, %v4084_v8, -1e+30 }
 0x632   : > { %v4113_v10 = vsel %vm4109_vm7, %v15955_v9, -inf }
 0x633   : > { %4114 = vmax.xlane.f32.xlu1 %v4113_v10 }
 0x64b   : > { %v3857_v11 = vpop.f32.mrf.mxu0 }
 0x64c   : > { %v4091_v44 = vmul.f32 0.05103104, %v3857_v11 }
 0x64d   : > { %v12678_v12 = vpop.f32.mrf.mxu0 }
 0x64e   : > { %v15988_v50 = vsel %vm15943_vm6, %v4091_v44, -1e+30 }
 0x64f   : > { %v4134_v56 = vsel %vm4109_vm7, %v15988_v50, -inf }
 0x69d   : > { %v3413_v17 = vpop.f32.mrf.mxu1 }
 0x69e   : > { %v4085_v19 = vmul.f32 0.05103104, %v3413_v17 }
 0x69f   : > { %v12648_v20 = vpop.f32.mrf.mxu1 }
 0x6a0   : > { %v15961_v48 = vsel %vm15943_vm6, %v4085_v19, -1e+30 }
 0x6a1   : > { %v4116_v21 = vsel %vm4109_vm7, %v15961_v48, -inf }
 0x6a2   : > { %v3487_v25 = vpop.f32.mrf.mxu1  ;;  %4117 = vmax.xlane.f32.xlu0 %v4116_v21 }
 0x6a3   : > { %v4086_v26 = vmul.f32 0.05103104, %v3487_v25 }
 0x6a4   : > { %v12653_v27 = vpop.f32.mrf.mxu1 }
 0x6a5   : > { %v15967_v28 = vsel %vm15943_vm6, %v4086_v26, -1e+30 }
 0x6a6   : > { %v3561_v29 = vpop.f32.mrf.mxu1  ;;  %v4119_v33 = vsel %vm4109_vm7, %v15967_v28, -inf }
 0x6a7   : > { %v4087_v34 = vmul.f32 0.05103104, %v3561_v29  ;;  %4120 = vmax.xlane.f32.xlu0 %v4119_v33 }
 0x6a8   : > { %v12658_v35 = vpop.f32.mrf.mxu1 }
 0x6a9   : > { %v15973_v36 = vsel %vm15943_vm6, %v4087_v34, -1e+30 }
 0x6aa   : > { %v3635_v23 = vpop.f32.mrf.mxu1  ;;  %v4122_v38 = vsel %vm4109_vm7, %v15973_v36, -inf }
 0x6ab   : > { %v4088_v24 = vmul.f32 0.05103104, %v3635_v23  ;;  %4123 = vmax.xlane.f32.xlu0 %v4122_v38 }
 0x6ac   : > { %v12663_v39 = vpop.f32.mrf.mxu1 }
 0x6ad   : > { %v4102_v22 = vsel %vm15943_vm6, %v4088_v24, -1e+30 }
 0x6ae   : > { %v4125_v41 = vsel %vm4109_vm7, %v4102_v22, -inf }
 0x6af   : > { %4126 = vmax.xlane.f32.xlu1 %v4125_v41 }
 0x6b8   : > { %v4112_v12 = vpop.xlane.xlu0 %4111 }
 0x6b9   : > { %v4146_v17 = vsub.f32 %v15949_v5, %v4112_v12 }
 0x6bb   : > { %v4158_v2 = vmul.f32 1.442695, %v4146_v17 }
 0x6bc   : > { %v3709_v43 = vpop.f32.mrf.mxu1  ;;  %v4115_v19 = vpop.xlane.xlu1 %4114 }
 0x6bd   : > { %v4089_v52 = vmul.f32 0.05103104, %v3709_v43  ;;  %14263 = vpow2.f32 %v4158_v2  ;;  %v4147_v20 = vsub.f32 %v15955_v9, %v4115_v19 }
 0x6be   : > { %v12668_v45 = vpop.f32.mrf.mxu1 }
 0x6bf   : > { %v15982_v31 = vsel %vm15943_vm6, %v4089_v52, -1e+30  ;;  %v4160_v21 = vmul.f32 1.442695, %v4147_v20 }
 0x6c0   : > { %v3783_v46 = vpop.f32.mrf.mxu1  ;;  %v4128_v32 = vsel %vm4109_vm7, %v15982_v31, -inf }
 0x6c1   : > { %v4090_v30 = vmul.f32 0.05103104, %v3783_v46  ;;  %4129 = vmax.xlane.f32.xlu0 %v4128_v32  ;;  %14265 = vpow2.f32 %v4160_v21 }
 0x6c2   : > { %v12673_v53 = vpop.f32.mrf.mxu1 }
 0x6c3   : > { %v15992_v54 = vsel %vm15943_vm6, %v4090_v30, -1e+30 }
 0x6c4   : > { %v3931_v55 = vpop.f32.mrf.mxu1  ;;  %v4131_v57 = vsel %vm4109_vm7, %v15992_v54, -inf }
 0x6c5   : > { %v4092_v58 = vmul.f32 0.05103104, %v3931_v55  ;;  %v4005_v59 = vpop.f32.mrf.mxu0  ;;  %4135 = vmax.xlane.f32.xlu0 %v4134_v56  ;;  %4132 = vmax.xlane.f32.xlu1 %v4131_v57 }
 0x6c6   : > { %v4093_v61 = vmul.f32 0.05103104, %v4005_v59  ;;  %v12683_v62 = vpop.f32.mrf.mxu1 }
 0x6c7   : > { %v12688_v0 = vpop.f32.mrf.mxu0  ;;  %v16000_v1 = vsel %vm15943_vm6, %v4092_v58, -1e+30 }
 0x6c8   : > { %v4079_v3 = vpop.f32.mrf.mxu1  ;;  %v4137_v4 = vsel %vm4109_vm7, %v16000_v1, -inf  ;;  %v16006_v6 = vsel %vm15943_vm6, %v4093_v61, -1e+30 }
 0x6c9   : > { %v4094_v7 = vmul.f32 0.05103104, %v4079_v3  ;;  %4138 = vmax.xlane.f32.xlu1 %v4137_v4  ;;  %v4140_v8 = vsel %vm4109_vm7, %v16006_v6, -inf }
 0x6ca   : > { %4141 = vmax.xlane.f32.xlu0 %v4140_v8  ;;  %v12693_v13 = vpop.f32.mrf.mxu1 }
 0x6cb   : > { %v4108_v10 = vsel %vm15943_vm6, %v4094_v7, -1e+30 }
 0x6cc   : > { %v4143_v11 = vsel %vm4109_vm7, %v4108_v10, -inf }
 0x6cd   : > { %4144 = vmax.xlane.f32.xlu1 %v4143_v11 }
 0x6de   : > { %3169 = vrot.lane.b32.xlu1 %v15930_v49, %s14914_s12  ;;  %v16023_v49 = vpop.eup %14263 }
 0x6df   : > { %v16027_v25 = vpop.eup %14265 }
 0x6e0   : > { %3167 = vrot.lane.b32.xlu0 %v15920_v60, %s14914_s12  ;;  %v4182_v60 = vsel %vm4109_vm7, %v16023_v49, 0.0  ;;  %v4185_v5 = vsel %vm4109_vm7, %v16027_v25, 0.0 }
 0x6e2   : > { %3175 = vrot.lane.b32.xlu1 %v15876_v37, %s14914_s12 }
 0x6e6   : > { %3177 = vrot.lane.b32.xlu1 %v15878_v40, %s14914_s12 }
 0x6ff   : > { %4183 = vadd.xlane.f32.xlu0 %v4182_v60 }
 0x70a   : > { %4186 = vadd.xlane.f32.xlu1 %v4185_v5 }
 0x72b   : > { %v4118_v26 = vpop.xlane.xlu0 %4117 }
 0x730   : > { %v4121_v27 = vpop.xlane.xlu0 %4120 }
 0x731   : > { %v4149_v29 = vsub.f32 %v15967_v28, %v4121_v27  ;;  %v4148_v28 = vsub.f32 %v15961_v48, %v4118_v26 }
 0x733   : > { %v4164_v33 = vmul.f32 1.442695, %v4149_v29  ;;  %v4162_v46 = vmul.f32 1.442695, %v4148_v28 }
 0x734   : > { %v4124_v24 = vpop.xlane.xlu0 %4123 }
 0x735   : > { %14267 = vpow2.f32 %v4164_v33  ;;  %v4150_v32 = vsub.f32 %v15973_v36, %v4124_v24 }
 0x737   : > { %v4166_v57 = vmul.f32 1.442695, %v4150_v32 }
 0x738   : > { %v4127_v9 = vpop.xlane.xlu1 %4126 }
 0x739   : > { %v4151_v34 = vsub.f32 %v4102_v22, %v4127_v9 }
 0x73b   : > { %v4168_v35 = vmul.f32 1.442695, %v4151_v34 }
 0x73d   : > { %14269 = vpow2.f32 %v4168_v35 }
 0x742   : > { %v16032_v23 = vpop.eup %14267 }
 0x743   : > { %v4191_v38 = vsel %vm4109_vm7, %v16032_v23, 0.0 }
 0x744   : > { %4192 = vadd.xlane.f32.xlu1 %v4191_v38 }
 0x74a   : > { %v16036_v39 = vpop.eup %14269  ;;  %v4130_v41 = vpop.xlane.xlu0 %4129 }
 0x74b   : > { %v4197_v43 = vsel %vm4109_vm7, %v16036_v39, 0.0  ;;  %v4152_v48 = vsub.f32 %v15982_v31, %v4130_v41 }
 0x74c   : > { %4198 = vadd.xlane.f32.xlu1 %v4197_v43 }
 0x74e   : > { %v4136_v44 = vpop.xlane.xlu0 %4135  ;;  %v4133_v22 = vpop.xlane.xlu1 %4132 }
 0x74f   : > { %v4154_v52 = vsub.f32 %v15988_v50, %v4136_v44  ;;  %v4153_v45 = vsub.f32 %v15992_v54, %v4133_v22  ;;  %v4170_v54 = vmul.f32 1.442695, %v4152_v48 }
 0x751   : > { %v4174_v30 = vmul.f32 1.442695, %v4154_v52  ;;  %v4172_v53 = vmul.f32 1.442695, %v4153_v45 }
 0x752   : > { %v4139_v55 = vpop.xlane.xlu1 %4138 }
 0x753   : > { %14271 = vpow2.f32 %v4174_v30  ;;  %v4155_v56 = vsub.f32 %v16000_v1, %v4139_v55  ;;  %v4142_v59 = vpop.xlane.xlu0 %4141 }
 0x754   : > { %14273 = vpow2.f32 %v4172_v53  ;;  %v4156_v36 = vsub.f32 %v16006_v6, %v4142_v59 }
 0x755   : > { %14275 = vpow2.f32 %v4162_v46  ;;  %v4176_v58 = vmul.f32 1.442695, %v4155_v56 }
 0x756   : > { %v4145_v61 = vpop.xlane.xlu1 %4144  ;;  %v4178_v0 = vmul.f32 1.442695, %v4156_v36 }
 0x757   : > { %14277 = vpow2.f32 %v4176_v58  ;;  %v4157_v50 = vsub.f32 %v4108_v10, %v4145_v61  ;;  %v3168_v5 = vpop.permute.xlu0 %3167 }
 0x758   : > { %14279 = vpow2.f32 %v4166_v57 }
 0x759   : > { %v4180_v62 = vmul.f32 1.442695, %v4157_v50 }
 0x75a   : > { %v3170_v60 = vpop.permute.xlu1 %3169 }
 0x75b   : > { %14281 = vpow2.f32 %v4180_v62 }
 0x75c   : > { %14283 = vpow2.f32 %v4170_v54 }
 0x75d   : > { %14285 = vpow2.f32 %v4178_v0 }
 0x75e   : > { %v16083_v27 = vpop.permute.xlu1 %3175 }
 0x760   : > { %v16047_v3 = vpop.eup %14271 }
 0x761   : > { %v16049_v1 = vpop.eup %14273  ;;  %v4206_v31 = vsel %vm4109_vm7, %v16047_v3, 0.0 }
 0x762   : > { %v16053_v4 = vpop.eup %14275  ;;  %4207 = vadd.xlane.f32.xlu0 %v4206_v31  ;;  %v4203_v7 = vsel %vm4109_vm7, %v16049_v1, 0.0  ;;  %v3178_v29 = vpop.permute.xlu1 %3177  ;;  %v13349_v31 = vld [vmem:[%s15474_s30 + $0xac] ss:$12 sps:$4 sm:$0xff]  }
 0x763   : > { %4204 = vadd.xlane.f32.xlu1 %v4203_v7  ;;  %v4188_v8 = vsel %vm4109_vm7, %v16053_v4, 0.0  ;;  %v13350_v7 = vld [vmem:[%s15474_s30 + $0x90] ss:$12 sps:$4 sm:$0xff]  }
 0x764   : > { %v16057_v6 = vpop.eup %14277 }
 0x765   : > { %v4209_v13 = vsel %vm4109_vm7, %v16057_v6, 0.0  ;;  %v16063_v10 = vpop.eup %14279 }
 0x766   : > { %4189 = vadd.xlane.f32.xlu0 %v4188_v8  ;;  %v4194_v12 = vsel %vm4109_vm7, %v16063_v10, 0.0  ;;  %v13355_v8 = vld [vmem:[%s15474_s30 + $0x7c] ss:$12 sps:$4 sm:$0xff]  }
 0x767   : > { %4210 = vadd.xlane.f32.xlu1 %v4209_v13  ;;  %v13371_v13 = vld [vmem:[%s15474_s30 + $0x228] ss:$12 sps:$4 sm:$0xff]  }
 0x768   : > { %v16065_v11 = vpop.eup %14281 }
 0x769   : > { %v4215_v17 = vsel %vm4109_vm7, %v16065_v11, 0.0  ;;  %v16071_v2 = vpop.eup %14283 }
 0x76a   : > { %4195 = vadd.xlane.f32.xlu0 %v4194_v12  ;;  %v4200_v19 = vsel %vm4109_vm7, %v16071_v2, 0.0  ;;  %v16075_v20 = vpop.eup %14285  ;;  %v13379_v12 = vld [vmem:[%s15474_s30 + $0x214] ss:$12 sps:$4 sm:$0xff]  }
 0x76b   : > { %4216 = vadd.xlane.f32.xlu1 %v4215_v17  ;;  %v4212_v21 = vsel %vm4109_vm7, %v16075_v20, 0.0  ;;  %v13358_v17 = vld [vmem:[%s15474_s30 + $0x64] ss:$12 sps:$4 sm:$0xff]  }
 0x76e   : > { %4201 = vadd.xlane.f32.xlu0 %v4200_v19  ;;  %v13385_v19 = vld [vmem:[%s15474_s30 + $0x1fc] ss:$12 sps:$4 sm:$0xff]  }
 0x772   : > { %4213 = vadd.xlane.f32.xlu0 %v4212_v21  ;;  %v13361_v21 = vld [vmem:[%s15474_s30 + $0x4c] ss:$12 sps:$4 sm:$0xff]  }
 0x77c   : > { %3185 = vrot.lane.b32.xlu1 %v15895_v51, %s14914_s12 }
 0x788   : > { %3183 = vrot.lane.b32.xlu0 %v15888_v47, %s14914_s12  ;;  %v4184_v26 = vpop.xlane.xlu0 %4183 }
 0x789   : > { %14287 = vrcp.f32 %v4184_v26  ;;  %v13391_v26 = vld [vmem:[%s15474_s30 + $0x1e4] ss:$12 sps:$4 sm:$0xff]  }
 0x793   : > { %v4187_v33 = vpop.xlane.xlu1 %4186 }
 0x794   : > { %14289 = vrcp.f32 %v4187_v33  ;;  %v13364_v33 = vld [vmem:[%s15474_s30 + $0x34] ss:$12 sps:$4 sm:$0xff]  }
 0x796   : > { %v14288_v9 = vpop.eup %14287 }
 0x797   : > { %v4219_v34 = vmul.f32 %v14288_v9, %v16023_v49  ;;  %v13389_v9 = vld [vmem:[%s15474_s30 + $0x1e0] ss:$12 sps:$4 sm:$0xff]  }
 0x799   : > { %12697 = vmatmul.mubr.msk.f32.vlgmr.msra.gmra.mxu0 %vm4109_vm7, %v4219_v34  ;;  %v13397_v34 = vld [vmem:[%s15474_s30 + $0x1cc] ss:$12 sps:$4 sm:$0xff]  }
 0x79a   : > { %12705 = vmatpush3.msra.mxu0 %v3168_v5  ;;  %12706 = vmatprep.mubr.msk.f32.mxu0 %vm14913_vm4, %v14912_v42 }
 0x79b   : > { %12714 = vmatprep.subr.mxu0 %v14912_v42 }
 0x7a1   : > { %v14290_v35 = vpop.eup %14289 }
 0x7a2   : > { %v4221_v38 = vmul.f32 %v14290_v35, %v16027_v25  ;;  %v13362_v35 = vld [vmem:[%s15474_s30 + $0x30] ss:$12 sps:$4 sm:$0xff]  }
 0x7a4   : > { %12702 = vmatmul.mubr.msk.f32.vlgmr.msra.gmra.mxu1 %vm4109_vm7, %v4221_v38  ;;  %v13367_v38 = vld [vmem:[%s15474_s30 + $0x1c] ss:$12 sps:$4 sm:$0xff]  }
 0x7a5   : > { %12710 = vmatpush3.msra.mxu1 %v3170_v60  ;;  %12711 = vmatprep.mubr.msk.f32.mxu1 %vm14913_vm4, %v14912_v42  ;;  %v13383_v60 = vld [vmem:[%s15474_s30 + $0x1f8] ss:$12 sps:$4 sm:$0xff]  }
 0x7a6   : > { %12719 = vmatprep.subr.mxu1 %v14912_v42 }
 0x7cd   : > { %v4193_v49 = vpop.xlane.xlu1 %4192 }
 0x7ce   : > { %14291 = vrcp.f32 %v4193_v49  ;;  %v13395_v49 = vld [vmem:[%s15474_s30 + $0x1c8] ss:$12 sps:$4 sm:$0xff]  }
 0x7d5   : > { %v4199_v24 = vpop.xlane.xlu1 %4198 }
 0x7d6   : > { %14293 = vrcp.f32 %v4199_v24  ;;  %v13365_v24 = vld [vmem:[%s15474_s30 + $0x18] ss:$12 sps:$4 sm:$0xff]  }
 0x7db   : > { %v14292_v41 = vpop.eup %14291 }
 0x7dc   : > { %v4225_v43 = vmul.f32 %v14292_v41, %v16032_v23  ;;  %v13370_v41 = vld [vmem:[%s15474_s30 + $0x4] ss:$12 sps:$4 sm:$0xff]  }
 0x7de   : > { %12712 = vmatmul.mubr.msk.f32.vlgmr.msra.gmra.mxu1 %vm4109_vm7, %v4225_v43  ;;  %v13368_v43 = vld [vmem:[%s15474_s30] ss:$12 sps:$4 sm:$0xff]  }
 0x7df   : > { %12720 = vmatpush3.msra.mxu1 %v15878_v40  ;;  %12721 = vmatprep.mubr.msk.f32.mxu1 %vm14913_vm4, %v14912_v42 }
 0x7e0   : > { %12729 = vmatprep.subr.mxu1 %v14912_v42 }
 0x7e3   : > { %v14294_v25 = vpop.eup %14293 }
 0x7e4   : > { %v4229_v28 = vmul.f32 %v14294_v25, %v16036_v39  ;;  %v13376_v25 = vld [vmem:[%s15474_s30 + $0x16c] ss:$12 sps:$4 sm:$0xff]  }
 0x7e6   : > { %12722 = vmatmul.mubr.msk.f32.vlgmr.msra.gmra.mxu1 %vm4109_vm7, %v4229_v28  ;;  %v13374_v28 = vld [vmem:[%s15474_s30 + $0x168] ss:$12 sps:$4 sm:$0xff]  }
 0x7e7   : > { %12730 = vmatpush3.msra.mxu1 %v3178_v29  ;;  %12731 = vmatprep.mubr.msk.f32.mxu1 %vm14913_vm4, %v14912_v42  ;;  %v13359_v29 = vld [vmem:[%s15474_s30 + $0x48] ss:$12 sps:$4 sm:$0xff]  }
 0x7e8   : > { %12739 = vmatprep.subr.mxu1 %v14912_v42 }
 0x7eb   : > { %v4208_v23 = vpop.xlane.xlu0 %4207 }
 0x7ec   : > { %v4205_v44 = vpop.xlane.xlu1 %4204 }
 0x7ed   : > { %14295 = vrcp.f32 %v4205_v44  ;;  %v13380_v44 = vld [vmem:[%s15474_s30 + $0x150] ss:$12 sps:$4 sm:$0xff]  }
 0x7ef   : > { %v4190_v40 = vpop.xlane.xlu0 %4189 }
 0x7f0   : > { %14297 = vrcp.f32 %v4190_v40  ;;  %v4211_v22 = vpop.xlane.xlu1 %4210  ;;  %v13388_v40 = vld [vmem:[%s15474_s30 + $0x13c] ss:$12 sps:$4 sm:$0xff]  }
 0x7f1   : > { %14299 = vrcp.f32 %v4211_v22  ;;  %v13386_v22 = vld [vmem:[%s15474_s30 + $0x138] ss:$12 sps:$4 sm:$0xff]  }
 0x7f3   : > { %v4196_v52 = vpop.xlane.xlu0 %4195 }
 0x7f4   : > { %14301 = vrcp.f32 %v4196_v52  ;;  %v4217_v45 = vpop.xlane.xlu1 %4216  ;;  %v13394_v52 = vld [vmem:[%s15474_s30 + $0x124] ss:$12 sps:$4 sm:$0xff]  }
 0x7f5   : > { %14303 = vrcp.f32 %v4217_v45  ;;  %v13392_v45 = vld [vmem:[%s15474_s30 + $0x120] ss:$12 sps:$4 sm:$0xff]  }
 0x7f7   : > { %v4202_v39 = vpop.xlane.xlu0 %4201 }
 0x7f8   : > { %14305 = vrcp.f32 %v4202_v39  ;;  %v3186_v58 = vpop.permute.xlu1 %3185 }
 0x7f9   : > { %14307 = vrcp.f32 %v4208_v23  ;;  %v13382_v23 = vld [vmem:[%s15474_s30 + $0x154] ss:$12 sps:$4 sm:$0xff]  }
 0x7fa   : > { %v14296_v46 = vpop.eup %14295 }
 0x7fb   : > { %v4214_v32 = vpop.xlane.xlu0 %4213  ;;  %v4233_v30 = vmul.f32 %v14296_v46, %v16049_v1  ;;  %v13347_v1 = vld [vmem:[%s15474_s30 + $0xa8] ss:$12 sps:$4 sm:$0xff]  }
 0x7fc   : > { %14309 = vrcp.f32 %v4214_v32 }
 0x7fd   : > { %v14298_v53 = vpop.eup %14297  ;;  %12732 = vmatmul.mubr.msk.f32.vlgmr.msra.gmra.mxu1 %vm4109_vm7, %v4233_v30 }
 0x7fe   : > { %v14300_v55 = vpop.eup %14299  ;;  %12740 = vmatpush3.msra.mxu1 %v15895_v51  ;;  %12741 = vmatprep.mubr.msk.f32.mxu1 %vm14913_vm4, %v14912_v42  ;;  %v4223_v56 = vmul.f32 %v14298_v53, %v16053_v4 }
 0x7ff   : > { %12749 = vmatprep.subr.mxu1 %v14912_v42  ;;  %v4237_v57 = vmul.f32 %v14300_v55, %v16057_v6  ;;  %v3184_v0 = vpop.permute.xlu0 %3183  ;;  %v13398_v55 = vld [vmem:[%s15474_s30 + $0x108] ss:$12 sps:$4 sm:$0xff]  }
 0x800   : > { %12707 = vmatmul.mubr.msk.f32.vlgmr.msra.gmra.mxu0 %vm4109_vm7, %v4223_v56  ;;  %v13400_v56 = vld [vmem:[%s15474_s30 + $0x10c] ss:$12 sps:$4 sm:$0xff]  }
 0x801   : > { %v14302_v48 = vpop.eup %14301  ;;  %12715 = vmatpush3.msra.mxu0 %v15876_v37  ;;  %12742 = vmatmul.mubr.msk.f32.vlgmr.msra.gmra.mxu1 %vm4109_vm7, %v4237_v57  ;;  %v13401_v57 = vld [vmem:[%s15474_s30 + $0x1b0] ss:$12 sps:$4 sm:$0xff]  }
 0x802   : > { %v14304_v59 = vpop.eup %14303  ;;  %12750 = vmatpush3.msra.mxu1 %v3186_v58  ;;  %12716 = vmatprep.mubr.msk.f32.mxu0 %vm14913_vm4, %v14912_v42  ;;  %v4227_v51 = vmul.f32 %v14302_v48, %v16063_v10  ;;  %v13373_v10 = vld [vmem:[%s15474_s30 + $0x22c] ss:$12 sps:$4 sm:$0xff]   ;;  %v13403_v58 = vld [vmem:[%s15474_s30 + $0x1b4] ss:$12 sps:$4 sm:$0xff]  }
 0x803   : > { %12724 = vmatprep.subr.mxu0 %v14912_v42  ;;  %12751 = vmatprep.mubr.msk.f32.mxu1 %vm14913_vm4, %v14912_v42  ;;  %v4241_v61 = vmul.f32 %v14304_v59, %v16065_v11  ;;  %v13353_v11 = vld [vmem:[%s15474_s30 + $0x78] ss:$12 sps:$4 sm:$0xff]   ;;  %v13406_v59 = vld [vmem:[%s15474_s30 + $0xf4] ss:$12 sps:$4 sm:$0xff]  }
 0x804   : > { %12717 = vmatmul.mubr.msk.f32.vlgmr.msra.gmra.mxu0 %vm4109_vm7, %v4227_v51  ;;  %5691 = vmatprep.subr.bf16.mxu1 %v13373_v10 }
 0x805   : > { %v14306_v50 = vpop.eup %14305  ;;  %12725 = vmatpush3.msra.mxu0 %v16083_v27  ;;  %12752 = vmatmul.mubr.msk.f32.vlgmr.msra.gmra.mxu1 %vm4109_vm7, %v4241_v61  ;;  %v13409_v61 = vld [vmem:[%s15474_s30 + $0x19c] ss:$12 sps:$4 sm:$0xff]  }
 0x806   : > { %12726 = vmatprep.mubr.msk.f32.mxu0 %vm14913_vm4, %v14912_v42  ;;  %12734 = vmatprep.subr.mxu0 %v14912_v42  ;;  %v4231_v37 = vmul.f32 %v14306_v50, %v16071_v2  ;;  %v14308_v54 = vpop.eup %14307  ;;  %v13377_v2 = vld [vmem:[%s15474_s30 + $0x210] ss:$12 sps:$4 sm:$0xff]  }
 0x807   : > { %5723 = vmatprep.mubr.bf16.mxu1 %v14911_v63  ;;  %v4235_v36 = vmul.f32 %v14308_v54, %v16047_v3  ;;  %v13352_v3 = vld [vmem:[%s15474_s30 + $0x94] ss:$12 sps:$4 sm:$0xff]   ;;  %5692 = vmatpush1.bf16.msra.mxu1 %v13371_v13 }
 0x808   : > { %12727 = vmatmul.mubr.msk.f32.vlgmr.msra.gmra.mxu0 %vm4109_vm7, %v4231_v37  ;;  %5693 = vmatprep.subr.bf16.mxu1 %v13379_v12  ;;  %v13404_v37 = vld [vmem:[%s15474_s30 + $0xf0] ss:$12 sps:$4 sm:$0xff]  }
 0x809   : > { %12735 = vmatpush3.msra.mxu0 %v15888_v47  ;;  %12736 = vmatprep.mubr.msk.f32.mxu0 %vm14913_vm4, %v14912_v42  ;;  %v14310_v62 = vpop.eup %14309  ;;  %v13418_v12 = vld [vmem:[%s15474_s30 + $0xc4] ss:$12 sps:$4 sm:$0xff]  }
 0x80a   : > { %12744 = vmatprep.subr.mxu0 %v14912_v42  ;;  %v4239_v47 = vmul.f32 %v14310_v62, %v16075_v20  ;;  %v13356_v20 = vld [vmem:[%s15474_s30 + $0x60] ss:$12 sps:$4 sm:$0xff]  }
 0x80b   : > { %5694 = vmatpush1.bf16.msra.mxu1 %v13377_v2  ;;  %v13416_v2 = vld [vmem:[%s15474_s30 + $0xc0] ss:$12 sps:$4 sm:$0xff]  }
 0x80c   : > { %12737 = vmatmul.mubr.msk.f32.vlgmr.msra.gmra.mxu0 %vm4109_vm7, %v4235_v36  ;;  %5695 = vmatprep.subr.bf16.mxu1 %v13385_v19  ;;  %v13407_v36 = vld [vmem:[%s15474_s30 + $0x198] ss:$12 sps:$4 sm:$0xff]  }
 0x80d   : > { %12745 = vmatpush3.msra.mxu0 %v3184_v0  ;;  %12746 = vmatprep.mubr.msk.f32.mxu0 %vm14913_vm4, %v14912_v42 }
 0x80e   : > { %5648 = vmatprep.subr.bf16.mxu0 %v13349_v31  ;;  %v13412_v31 = vld [vmem:[%s15474_s30 + $0xdc] ss:$12 sps:$4 sm:$0xff]  }
 0x80f   : > { %5696 = vmatpush1.bf16.msra.mxu1 %v13383_v60 }
 0x810   : > { %12747 = vmatmul.mubr.msk.f32.vlgmr.msra.gmra.mxu0 %vm4109_vm7, %v4239_v47  ;;  %5697 = vmatprep.subr.bf16.mxu1 %v13391_v26 }
 0x811   : > { %5649 = vmatpush1.bf16.msra.mxu0 %v13347_v1 }
 0x812   : > { %5650 = vmatprep.subr.bf16.mxu0 %v13352_v3  ;;  %v13415_v3 = vld [vmem:[%s15474_s30 + $0x184] ss:$12 sps:$4 sm:$0xff]  }
 0x813   : > { %5698 = vmatpush1.bf16.msra.mxu1 %v13389_v9 }
 0x814   : > { %5699 = vmatprep.subr.bf16.mxu1 %v13397_v34 }
 0x815   : > { %5651 = vmatpush1.bf16.msra.mxu0 %v13350_v7 }
 0x816   : > { %5652 = vmatprep.subr.bf16.mxu0 %v13355_v8  ;;  %v13413_v8 = vld [vmem:[%s15474_s30 + $0x180] ss:$12 sps:$4 sm:$0xff]  }
 0x817   : > { %5700 = vmatpush1.bf16.msra.mxu1 %v13395_v49 }
 0x818   : > { %5701 = vmatprep.subr.bf16.mxu1 %v13403_v58  ;;  %v13431_v58 = vld [vmem:[%s15474_s30 + $0x50] ss:$12 sps:$4 sm:$0xff]  }
 0x819   : > { %5653 = vmatpush1.bf16.msra.mxu0 %v13353_v11 }
 0x81a   : > { %5654 = vmatprep.subr.bf16.mxu0 %v13358_v17  ;;  %v13419_v17 = vld [vmem:[%s15474_s30 + $0x170] ss:$12 sps:$4 sm:$0xff]  }
 0x81b   : > { %5702 = vmatpush1.bf16.msra.mxu1 %v13401_v57  ;;  %v13429_v57 = vld [vmem:[%s15474_s30 + $0x200] ss:$12 sps:$4 sm:$0xff]  }
 0x81c   : > { %5703 = vmatprep.subr.bf16.mxu1 %v13409_v61  ;;  %v13434_v61 = vld [vmem:[%s15474_s30 + $0x38] ss:$12 sps:$4 sm:$0xff]  }
 0x81d   : > { %5655 = vmatpush1.bf16.msra.mxu0 %v13356_v20 }
 0x81e   : > { %5656 = vmatprep.subr.bf16.mxu0 %v13361_v21 }
 0x81f   : > { %5704 = vmatpush1.bf16.msra.mxu1 %v13407_v36  ;;  %v13438_v36 = vld [vmem:[%s15474_s30 + $0x1b8] ss:$12 sps:$4 sm:$0xff]  }
 0x820   : > { %5705 = vmatprep.subr.bf16.mxu1 %v13415_v3 }
 0x821   : > { %5657 = vmatpush1.bf16.msra.mxu0 %v13359_v29 }
 0x822   : > { %5658 = vmatprep.subr.bf16.mxu0 %v13364_v33 }
 0x823   : > { %5706 = vmatpush1.bf16.msra.mxu1 %v13413_v8  ;;  %v5247_v8 = vld [vmem:[%s810_s23] sm:$0x7] }
 0x824   : > { %12400 = vmatprep.subr.bf16.mxu1 %v13419_v17 }
 0x825   : > { %5659 = vmatpush1.bf16.msra.mxu0 %v13362_v35 }
 0x826   : > { %5660 = vmatprep.subr.bf16.mxu0 %v13367_v38 }
 0x829   : > { %5661 = vmatpush1.bf16.msra.mxu0 %v13365_v24 }
 0x82a   : > { %5662 = vmatprep.subr.bf16.mxu0 %v13370_v41 }
 0x82d   : > { %5663 = vmatpush1.bf16.msra.mxu0 %v13368_v43 }
 0x82e   : > { %5664 = vmatprep.subr.bf16.mxu0 %v13376_v25 }
 0x831   : > { %5665 = vmatpush2.bf16.msra.mxu0 %v13374_v28  ;;  %v13420_v28 = vld [vmem:[%s15474_s30 + $0xb0] ss:$12 sps:$4 sm:$0xff]  }
 0x832   : > { %5666 = vmatprep.subr.bf16.mxu0 %v13382_v23 }
 0x835   : > { %5667 = vmatpush2.bf16.msra.mxu0 %v13380_v44 }
 0x836   : > { %5668 = vmatprep.subr.bf16.mxu0 %v13388_v40  ;;  %v13421_v40 = vld [vmem:[%s15474_s30 + $0x158] ss:$12 sps:$4 sm:$0xff]  }
 0x839   : > { %5669 = vmatpush2.bf16.msra.mxu0 %v13386_v22 }
 0x83a   : > { %5670 = vmatprep.subr.bf16.mxu0 %v13394_v52 }
 0x83d   : > { %5671 = vmatpush2.bf16.msra.mxu0 %v13392_v45 }
 0x83e   : > { %5672 = vmatprep.subr.bf16.mxu0 %v13400_v56  ;;  %v13428_v56 = vld [vmem:[%s15474_s30 + $0x68] ss:$12 sps:$4 sm:$0xff]  }
 0x841   : > { %5673 = vmatpush2.bf16.msra.mxu0 %v13398_v55  ;;  %v13425_v55 = vld [vmem:[%s15474_s30 + $0x80] ss:$12 sps:$4 sm:$0xff]  }
 0x842   : > { %5674 = vmatprep.subr.bf16.mxu0 %v13406_v59  ;;  %v13432_v59 = vld [vmem:[%s15474_s30 + $0x1e8] ss:$12 sps:$4 sm:$0xff]  }
 0x845   : > { %5675 = vmatpush2.bf16.msra.mxu0 %v13404_v37  ;;  %v13436_v37 = vld [vmem:[%s15474_s30 + $0xe0] ss:$12 sps:$4 sm:$0xff]  }
 0x846   : > { %5676 = vmatprep.subr.bf16.mxu0 %v13412_v31 }
 0x859   : > { %v16146_v4 = vpop.f32.mrf.mxu0 }
 0x85b   : > { %v12698_v6 = vpop.f32.mrf.mxu0 }
 0x85c   : > { %v13410_v6 = vld [vmem:[%s15474_s30 + $0xd8] ss:$12 sps:$4 sm:$0xff]  }
 0x85d   : > { %5677 = vmatpush2.bf16.msra.mxu0 %v13410_v6 }
 0x85e   : > { %5678 = vmatprep.subr.bf16.mxu0 %v13418_v12  ;;  %v5252_v12 = vrot.slane %v5247_v8, %v15616_v18 }
 0x861   : > { %5679 = vmatpush2.bf16.msra.mxu0 %v13416_v2 }
 0x862   : > { %12754 = vmatprep.subr.bf16.mxu0 %v14912_v42 }
 0x864   : > { %v16160_v5 = vpop.f32.mrf.mxu1 }
 0x866   : > { %v12703_v27 = vpop.f32.mrf.mxu1 }
 0x89e   : > { %v4530_v39 = vpop.f32.mrf.mxu1 }
 0x8a0   : > { %v12713_v46 = vpop.f32.mrf.mxu1 }
 0x8a1   : > { %v13422_v46 = vld [vmem:[%s15474_s30 + $0x98] ss:$12 sps:$4 sm:$0xff]  }
 0x8a6   : > { %v4676_v32 = vpop.f32.mrf.mxu1 }
 0x8a8   : > { %v12723_v30 = vpop.f32.mrf.mxu1 }
 0x8bd   : > { %v4822_v53 = vpop.f32.mrf.mxu1 }
 0x8bf   : > { %v12733_v48 = vpop.f32.mrf.mxu1 }
 0x8c0   : > { %v4457_v51 = vpop.f32.mrf.mxu0  ;;  %v13430_v48 = vld [vmem:[%s15474_s30 + $0x110] ss:$12 sps:$4 sm:$0xff]  }
 0x8c1   : > { %v4968_v50 = vpop.f32.mrf.mxu1  ;;  %v13030_v27 = vpack.i.bf16 %v4530_v39, %v4457_v51  ;;  %v13433_v51 = vld [vmem:[%s15474_s30 + $0xf8] ss:$12 sps:$4 sm:$0xff]  }
 0x8c2   : > { %v12708_v54 = vpop.f32.mrf.mxu0 }
 0x8c3   : > { %v12743_v62 = vpop.f32.mrf.mxu1  ;;  %v13437_v54 = vld [vmem:[%s15474_s30 + $0x20] ss:$12 sps:$4 sm:$0xff]  }
 0x8c4   : > { %v4603_v0 = vpop.f32.mrf.mxu0  ;;  %v13439_v62 = vld [vmem:[%s15474_s30 + $0xc8] ss:$12 sps:$4 sm:$0xff]  }
 0x8c5   : > { %v5114_v47 = vpop.f32.mrf.mxu1 }
 0x8c6   : > { %v12718_v1 = vpop.f32.mrf.mxu0 }
 0x8c7   : > { %v12753_v7 = vpop.f32.mrf.mxu1  ;;  %v13442_v1 = vld [vmem:[%s15474_s30 + $0x188] ss:$12 sps:$4 sm:$0xff]  }
 0x8c8   : > { %v4749_v13 = vpop.f32.mrf.mxu0 }
 0x8c9   : > { %v13025_v10 = vpack.i.bf16 %v4822_v53, %v4749_v13  ;;  %v13424_v53 = vld [vmem:[%s15474_s30 + $0x140] ss:$12 sps:$4 sm:$0xff]   ;;  %v5256_v13 = vrot.slane %v5247_v8, %v15608_v15 }
 0x8ca   : > { %v12728_v11 = vpop.f32.mrf.mxu0 }
 0x8cb   : > { %13026 = vrot.lane.b32.xlu1 %v13025_v10, %s14914_s12 }
 0x8cc   : > { %v4895_v19 = vpop.f32.mrf.mxu0 }
 0x8ce   : > { %v12738_v20 = vpop.f32.mrf.mxu0 }
 0x8d0   : > { %v5041_v21 = vpop.f32.mrf.mxu0 }
 0x8d1   : > { %v13020_v60 = vpack.i.bf16 %v5114_v47, %v5041_v21  ;;  %v13441_v47 = vld [vmem:[%s15474_s30 + $0x1a0] ss:$12 sps:$4 sm:$0xff]  }
 0x8d2   : > { %v12748_v26 = vpop.f32.mrf.mxu0 }
 0x8d3   : > { %13021 = vrot.lane.b32.xlu0 %v13020_v60, %s14914_s12  ;;  %v5260_v26 = vrot.slane %v5247_v8, %v15611_v16  ;;  %v13458_v8 = vld [vmem:[%s15491_s16 + $0xc0] ss:$48 sps:$4 sm:$0xff]  }
 0x8d7   : > { %13031 = vrot.lane.b32.xlu0 %v13030_v27, %s14914_s12 }
 0x93d   : > { %v13027_v29 = vpop.permute.xlu1 %13026 }
 0x93e   : > { %v13029_v33 = vunpack.i.h.bf16 %v13027_v29  ;;  %v13028_v9 = vunpack.i.l.bf16 %v13027_v29 }
 0x940   : > { %v5144_v34 = vsel %vm3194_vm5, %v4603_v0, %v13028_v9  ;;  %v5145_v35 = vsel %vm3194_vm5, %v4676_v32, %v13029_v33  ;;  %v13423_v32 = vld [vmem:[%s15474_s30 + $0x230] ss:$12 sps:$4 sm:$0xff]   ;;  %v13440_v0 = vld [vmem:[%s15474_s30 + $0x8] ss:$12 sps:$4 sm:$0xff]  }
 0x941   : > { %v5245_v38 = vpack.c.bf16 %v5145_v35, %v5144_v34 }
 0x943   : > { %5680 = vmatprep.mubr.bf16.mxu0 %v5245_v38 }
 0x945   : > { %v13022_v49 = vpop.permute.xlu0 %13021 }
 0x946   : > { %v13024_v24 = vunpack.i.h.bf16 %v13022_v49  ;;  %v13023_v41 = vunpack.i.l.bf16 %v13022_v49 }
 0x948   : > { %v5147_v43 = vsel %vm3194_vm5, %v4968_v50, %v13024_v24  ;;  %v5146_v25 = vsel %vm3194_vm5, %v4895_v19, %v13023_v41  ;;  %v13435_v50 = vld [vmem:[%s15474_s30 + $0x1d0] ss:$12 sps:$4 sm:$0xff]  }
 0x949   : > { %v16205_v23 = vpack.c.bf16 %v5147_v43, %v5146_v25  ;;  %v13032_v44 = vpop.permute.xlu0 %13031 }
 0x94a   : > { %v13034_v22 = vunpack.i.h.bf16 %v13032_v44  ;;  %v13033_v52 = vunpack.i.l.bf16 %v13032_v44 }
 0x94b   : > { %5724 = vmatmul.mubr.bf16.vlgmr.msra.gmra.mxu1 %v16205_v23 }
 0x94c   : > { %v5143_v45 = vsel %vm3194_vm5, %v16160_v5, %v13034_v22  ;;  %v5142_v39 = vsel %vm3194_vm5, %v16146_v4, %v13033_v52  ;;  %12401 = vmatpush3.bf16.msra.mxu1 %v13420_v28  ;;  %5766 = vmatprep.mubr.bf16.mxu1 %v5245_v38  ;;  %v13426_v5 = vld [vmem:[%s15474_s30 + $0x218] ss:$12 sps:$4 sm:$0xff]   ;;  %v13427_v4 = vld [vmem:[%s15474_s30 + $0x128] ss:$12 sps:$4 sm:$0xff]  }
 0x94d   : > { %v5244_v30 = vpack.c.bf16 %v5143_v45, %v5142_v39  ;;  %12402 = vmatprep.subr.bf16.mxu1 %v13421_v40  ;;  %v14315_v38 = vld [vmem:[#allocation2 + $0x10] sm:$0xff]  ;;  %v14316_v28 = vld [vmem:[#allocation2 + $0x28] sm:$0xff]  ;;  %v14317_v45 = vld [vmem:[#allocation2 + $0x18] sm:$0xff] }
 0x94f   : > { %5681 = vmatmul.mubr.bf16.vlgmr.msra.gmra.mxu0 %v5244_v30 }
 0x950   : > { %12403 = vmatpush3.bf16.msra.mxu1 %v13422_v46  ;;  %12755 = vmatpush3.bf16.msra.mxu0 %v13423_v32  ;;  %v14318_v46 = vld [vmem:[#allocation2 + $0x8] sm:$0xff] }
 0x951   : > { %12404 = vmatprep.subr.bf16.mxu1 %v13424_v53  ;;  %12756 = vmatprep.subr.bf16.mxu0 %v14912_v42 }
 0x952   : > { %12770 = vmatprep.mubr.msk.bf16.mxu0 %vm14913_vm4, %v14912_v42 }
 0x954   : > { %12405 = vmatpush3.bf16.msra.mxu1 %v13425_v55  ;;  %12757 = vmatpush3.bf16.msra.mxu0 %v13426_v5  ;;  %v14319_v5 = vld [vmem:[#allocation2] sm:$0xff] }
 0x955   : > { %12406 = vmatprep.subr.bf16.mxu1 %v13427_v4  ;;  %12758 = vmatprep.subr.bf16.mxu0 %v14912_v42 }
 0x958   : > { %12407 = vmatpush3.bf16.msra.mxu1 %v13428_v56  ;;  %12759 = vmatpush3.bf16.msra.mxu0 %v13429_v57 }
 0x959   : > { %12408 = vmatprep.subr.bf16.mxu1 %v13430_v48  ;;  %12760 = vmatprep.subr.bf16.mxu0 %v14912_v42  ;;  %v14320_v48 = vld [vmem:[#allocation2 + $0x20] sm:$0xff] }
 0x95c   : > { %12409 = vmatpush3.bf16.msra.mxu1 %v13431_v58  ;;  %12761 = vmatpush3.bf16.msra.mxu0 %v13432_v59 }
 0x95d   : > { %12410 = vmatprep.subr.bf16.mxu1 %v13433_v51  ;;  %12762 = vmatprep.subr.bf16.mxu0 %v14912_v42 }
 0x960   : > { %12411 = vmatpush3.bf16.msra.mxu1 %v13434_v61  ;;  %12763 = vmatpush3.bf16.msra.mxu0 %v13435_v50  ;;  %v13443_v61 = vld [vmem:[%s15491_s16 + $0x2a0] ss:$48 sps:$4 sm:$0xff]   ;;  %v13445_v50 = vld [vmem:[%s15491_s16 + $0x2a4] ss:$48 sps:$4 sm:$0xff]  }
 0x961   : > { %12412 = vmatprep.subr.bf16.mxu1 %v13436_v37  ;;  %12764 = vmatprep.subr.bf16.mxu0 %v14912_v42  ;;  %v13448_v37 = vld [vmem:[%s15491_s16 + $0x244] ss:$48 sps:$4 sm:$0xff]  }
 0x964   : > { %12413 = vmatpush3.bf16.msra.mxu1 %v13437_v54  ;;  %12765 = vmatpush3.bf16.msra.mxu0 %v13438_v36  ;;  %v13446_v54 = vld [vmem:[%s15491_s16 + $0x240] ss:$48 sps:$4 sm:$0xff]   ;;  %v13451_v36 = vld [vmem:[%s15491_s16 + $0x1e4] ss:$48 sps:$4 sm:$0xff]  }
 0x965   : > { %12414 = vmatprep.subr.bf16.mxu1 %v13439_v62  ;;  %12766 = vmatprep.subr.bf16.mxu0 %v14912_v42  ;;  %v13467_v62 = vld [vmem:[%s15491_s16 + $0x8a0] ss:$48 sps:$4 sm:$0xff]  }
 0x968   : > { %12415 = vmatpush3.bf16.msra.mxu1 %v13440_v0  ;;  %12767 = vmatpush3.bf16.msra.mxu0 %v13441_v47  ;;  %v13469_v0 = vld [vmem:[%s15491_s16 + $0x8a4] ss:$48 sps:$4 sm:$0xff]   ;;  %v13449_v47 = vld [vmem:[%s15491_s16 + $0x1e0] ss:$48 sps:$4 sm:$0xff]  }
 0x969   : > { %12768 = vmatprep.subr.bf16.mxu0 %v14912_v42  ;;  %7705 = vmatprep.subr.bf16.mxu1 %v13445_v50  ;;  %v13491_v50 = vld [vmem:[%s15491_s16 + $0x720] ss:$48 sps:$4 sm:$0xff]  }
 0x96b   : > { %5767 = vmatmul.mubr.bf16.vlgmr.msra.gmra.mxu1 %v5244_v30 }
 0x96c   : > { %12769 = vmatpush3.bf16.msra.mxu0 %v13442_v1  ;;  %7706 = vmatpush1.bf16.msra.mxu1 %v13443_v61  ;;  %v13454_v1 = vld [vmem:[%s15491_s16 + $0x184] ss:$48 sps:$4 sm:$0xff]  }
 0x96d   : > { %7707 = vmatprep.subr.bf16.mxu1 %v13448_v37  ;;  %7748 = vmatprep.subr.bf16.mxu0 %v13469_v0  ;;  %v13496_v61 = vld [vmem:[%s15491_s16 + $0x424] ss:$48 sps:$4 sm:$0xff]   ;;  %v13494_v37 = vld [vmem:[%s15491_s16 + $0x420] ss:$48 sps:$4 sm:$0xff]  }
 0x96e   : > { %v13500_v0 = vld [vmem:[%s15491_s16 + $0x3c0] ss:$48 sps:$4 sm:$0xff]  }
 0x96f   : > { %12771 = vmatmul.mubr.bf16.vlgmr.msra.gmra.mxu0 %v16205_v23 }
 0x970   : > { %7780 = vmatprep.mubr.bf16.mxu0 %v14911_v63  ;;  %7708 = vmatpush1.bf16.msra.mxu1 %v13446_v54  ;;  %v13499_v54 = vld [vmem:[%s15491_s16 + $0x6c4] ss:$48 sps:$4 sm:$0xff]  }
 0x971   : > { %7709 = vmatprep.subr.bf16.mxu1 %v13451_v36  ;;  %7749 = vmatpush1.bf16.msra.mxu0 %v13467_v62  ;;  %v13502_v36 = vld [vmem:[%s15491_s16 + $0x3c4] ss:$48 sps:$4 sm:$0xff]   ;;  %v13497_v62 = vld [vmem:[%s15491_s16 + $0x6c0] ss:$48 sps:$4 sm:$0xff]  }
 0x974   : > { %7710 = vmatpush1.bf16.msra.mxu1 %v13449_v47  ;;  %v13505_v47 = vld [vmem:[%s15491_s16 + $0x664] ss:$48 sps:$4 sm:$0xff]  }
 0x975   : > { %7711 = vmatprep.subr.bf16.mxu1 %v13454_v1  ;;  %v13508_v1 = vld [vmem:[%s15491_s16 + $0x364] ss:$48 sps:$4 sm:$0xff]  }
 0xa0b   : > { %v5725_v31 = vpop.f32.mrf.mxu1 }
 0xa0d   : > { %v5727_v7 = vpop.f32.mrf.mxu1 }
 0xa0f   : > { %v5682_v3 = vpop.f32.mrf.mxu0  ;;  %v5729_v10 = vpop.f32.mrf.mxu1 }
 0xa10   : > { %v5683_v19 = vadd.f32 %v5682_v3, %v5252_v12  ;;  %v13457_v3 = vld [vmem:[%s15491_s16 + $0x124] ss:$48 sps:$4 sm:$0xff]  }
 0xa11   : > { %v5684_v6 = vpop.f32.mrf.mxu0  ;;  %v5731_v42 = vpop.f32.mrf.mxu1 }
 0xa12   : > { %v5685_v17 = vadd.f32 %v5684_v6, %v5256_v13  ;;  %v5726_v29 = vadd.f32 %v5725_v31, %v5683_v19  ;;  %v13452_v31 = vld [vmem:[%s15491_s16 + $0x180] ss:$48 sps:$4 sm:$0xff]   ;;  %v13460_v6 = vld [vmem:[%s15491_s16 + $0xc4] ss:$48 sps:$4 sm:$0xff]  }
 0xa13   : > { %v5686_v11 = vpop.f32.mrf.mxu0  ;;  %7712 = vmatpush1.bf16.msra.mxu1 %v13452_v31  ;;  %v13503_v31 = vld [vmem:[%s15491_s16 + $0x660] ss:$48 sps:$4 sm:$0xff]  }
 0xa14   : > { %v5728_v21 = vadd.f32 %v5727_v7, %v5685_v17  ;;  %v5687_v33 = vadd.f32 %v5686_v11, %v5252_v12  ;;  %v16252_v23 = vadd.f32 %v14316_v28, %v5726_v29  ;;  %v13455_v7 = vld [vmem:[%s15491_s16 + $0x120] ss:$48 sps:$4 sm:$0xff]   ;;  %7713 = vmatprep.subr.bf16.mxu1 %v13457_v3  ;;  %v13466_v11 = vld [vmem:[%s15491_s16 + $0x4] ss:$48 sps:$4 sm:$0xff]  }
 0xa15   : > { %v5688_v2 = vpop.f32.mrf.mxu0  ;;  %v13464_v12 = vld [vmem:[%s15491_s16] ss:$48 sps:$4 sm:$0xff]   ;;  %v13472_v17 = vld [vmem:[%s15491_s16 + $0x5a4] ss:$48 sps:$4 sm:$0xff]  }
 0xa16   : > { %v5689_v60 = vadd.f32 %v5688_v2, %v5256_v13  ;;  %v16250_v49 = vadd.f32 %v14315_v38, %v5728_v21  ;;  %v5730_v44 = vadd.f32 %v5729_v10, %v5687_v33  ;;  %v13463_v13 = vld [vmem:[%s15491_s16 + $0x64] ss:$48 sps:$4 sm:$0xff]   ;;  %v13461_v10 = vld [vmem:[%s15491_s16 + $0x60] ss:$48 sps:$4 sm:$0xff]  }
 0xa17   : > { %7714 = vmatpush1.bf16.msra.mxu1 %v13455_v7  ;;  %v13506_v3 = vld [vmem:[%s15491_s16 + $0x360] ss:$48 sps:$4 sm:$0xff]   ;;  %v13511_v7 = vld [vmem:[%s15491_s16 + $0x604] ss:$48 sps:$4 sm:$0xff]  }
 0xa18   : > { %v5732_v24 = vadd.f32 %v5731_v42, %v5689_v60  ;;  %v5824_v53 = vadd.f32 %v16250_v49, %v16252_v23  ;;  %v16260_v4 = vadd.f32 %v14319_v5, %v5730_v44  ;;  %7715 = vmatprep.subr.bf16.mxu1 %v13460_v6  ;;  %v13470_v42 = vld [vmem:[%s15491_s16 + $0x5a0] ss:$48 sps:$4 sm:$0xff]   ;;  %v13514_v6 = vld [vmem:[%s15491_s16 + $0x304] ss:$48 sps:$4 sm:$0xff]  }
 0xa19   : > { %v13482_v5 = vld [vmem:[%s15491_s16 + $0x4e0] ss:$48 sps:$4 sm:$0xff]  }
 0xa1a   : > { %v16254_v39 = vadd.f32 %v14317_v45, %v5732_v24  ;;  %v13478_v45 = vld [vmem:[%s15491_s16 + $0x544] ss:$48 sps:$4 sm:$0xff]  }
 0xa1b   : > { %7716 = vmatpush1.bf16.msra.mxu1 %v13458_v8  ;;  %v13509_v8 = vld [vmem:[%s15491_s16 + $0x600] ss:$48 sps:$4 sm:$0xff]  }
 0xa1c   : > { %v5828_v59 = vadd.f32 %v16254_v39, %v16260_v4  ;;  %7717 = vmatprep.subr.bf16.mxu1 %v13463_v13  ;;  %v13512_v13 = vld [vmem:[%s15491_s16 + $0x300] ss:$48 sps:$4 sm:$0xff]  }
 0xa1f   : > { %7718 = vmatpush1.bf16.msra.mxu1 %v13461_v10  ;;  %v13517_v10 = vld [vmem:[%s15491_s16 + $0x2ac] ss:$48 sps:$4 sm:$0xff]  }
 0xa20   : > { %7719 = vmatprep.subr.bf16.mxu1 %v13466_v11  ;;  %v13520_v11 = vld [vmem:[%s15491_s16 + $0x8ac] ss:$48 sps:$4 sm:$0xff]  }
 0xa23   : > { %7720 = vmatpush1.bf16.msra.mxu1 %v13464_v12 }
 0xa24   : > { %7721 = vmatprep.subr.bf16.mxu1 %v13472_v17 }
 0xa27   : > { %7722 = vmatpush2.bf16.msra.mxu1 %v13470_v42 }
 0xa28   : > { %7723 = vmatprep.subr.bf16.mxu1 %v13478_v45 }
 0xa2b   : > { %v12416_v20 = vpop.f32.mrf.mxu1 }
 0xa2d   : > { %v12417_v27 = vpop.f32.mrf.mxu1 }
 0xa2e   : > { %v12418_v9 = vadd.f32 %v12417_v27, %v12416_v20 }
 0xa2f   : > { %v12419_v34 = vpop.f32.mrf.mxu1  ;;  %v5809_v35 = vpop.f32.mrf.mxu0 }
 0xa30   : > { %v5769_v41 = vadd.f32 %v12418_v9, %v5260_v26 }
 0xa31   : > { %v12420_v43 = vpop.f32.mrf.mxu1  ;;  %v12772_v25 = vpop.f32.mrf.mxu0 }
 0xa32   : > { %v5810_v40 = vadd.f32 %v5809_v35, %v5769_v41  ;;  %v12421_v22 = vadd.f32 %v12420_v43, %v12419_v34 }
 0xa33   : > { %v5812_v52 = vpop.f32.mrf.mxu0 }
 0xa34   : > { %v16256_v32 = vadd.f32 %v14318_v46, %v5810_v40  ;;  %v5772_v30 = vadd.f32 %v12421_v22, %v5260_v26  ;;  %v13475_v22 = vld [vmem:[%s15491_s16 + $0x844] ss:$48 sps:$4 sm:$0xff]   ;;  %v13476_v46 = vld [vmem:[%s15491_s16 + $0x540] ss:$48 sps:$4 sm:$0xff]  }
 0xa35   : > { %v12773_v55 = vpop.f32.mrf.mxu0  ;;  %7750 = vmatprep.subr.bf16.mxu0 %v13475_v22  ;;  %7724 = vmatpush2.bf16.msra.mxu1 %v13476_v46 }
 0xa36   : > { %v5813_v56 = vadd.f32 %v5812_v52, %v5772_v30  ;;  %v5825_v57 = vadd.f32 %v5824_v53, %v16256_v32  ;;  %v13473_v52 = vld [vmem:[%s15491_s16 + $0x840] ss:$48 sps:$4 sm:$0xff]   ;;  %v13481_v30 = vld [vmem:[%s15491_s16 + $0x7e4] ss:$48 sps:$4 sm:$0xff]  }
 0xa37   : > { %7751 = vmatpush1.bf16.msra.mxu0 %v13473_v52  ;;  %v13479_v53 = vld [vmem:[%s15491_s16 + $0x7e0] ss:$48 sps:$4 sm:$0xff]   ;;  %v13484_v55 = vld [vmem:[%s15491_s16 + $0x4e4] ss:$48 sps:$4 sm:$0xff]  }
 0xa38   : > { %v16263_v58 = vadd.f32 %v14320_v48, %v5813_v56  ;;  %5826 = vadd.xlane.f32.xlu1 %v5825_v57  ;;  %7752 = vmatprep.subr.bf16.mxu0 %v13481_v30  ;;  %v13485_v56 = vld [vmem:[%s15491_s16 + $0x780] ss:$48 sps:$4 sm:$0xff]   ;;  %v13487_v57 = vld [vmem:[%s15491_s16 + $0x784] ss:$48 sps:$4 sm:$0xff]  }
 0xa39   : > { %7725 = vmatprep.subr.bf16.mxu1 %v13484_v55  ;;  %v13488_v48 = vld [vmem:[%s15491_s16 + $0x480] ss:$48 sps:$4 sm:$0xff]  }
 0xa3a   : > { %v5829_v51 = vadd.f32 %v5828_v59, %v16263_v58  ;;  %7726 = vmatpush2.bf16.msra.mxu1 %v13482_v5  ;;  %v13490_v59 = vld [vmem:[%s15491_s16 + $0x484] ss:$48 sps:$4 sm:$0xff]  }
 0xa3b   : > { %7753 = vmatpush1.bf16.msra.mxu0 %v13479_v53  ;;  %7727 = vmatprep.subr.bf16.mxu1 %v13490_v59  ;;  %v13515_v59 = vld [vmem:[%s15491_s16 + $0x2a8] ss:$48 sps:$4 sm:$0xff]  }
 0xa3c   : > { %5830 = vadd.xlane.f32.xlu0 %v5829_v51  ;;  %v13493_v51 = vld [vmem:[%s15491_s16 + $0x724] ss:$48 sps:$4 sm:$0xff]   ;;  %7754 = vmatprep.subr.bf16.mxu0 %v13487_v57 }
 0xa3e   : > { %7728 = vmatpush2.bf16.msra.mxu1 %v13488_v48 }
 0xa3f   : > { %7755 = vmatpush1.bf16.msra.mxu0 %v13485_v56  ;;  %7729 = vmatprep.subr.bf16.mxu1 %v13496_v61 }
 0xa40   : > { %7756 = vmatprep.subr.bf16.mxu0 %v13493_v51 }
 0xa42   : > { %7730 = vmatpush2.bf16.msra.mxu1 %v13494_v37 }
 0xa43   : > { %7757 = vmatpush1.bf16.msra.mxu0 %v13491_v50  ;;  %7731 = vmatprep.subr.bf16.mxu1 %v13502_v36  ;;  %v13518_v50 = vld [vmem:[%s15491_s16 + $0x8a8] ss:$48 sps:$4 sm:$0xff]   ;;  %v13526_v36 = vld [vmem:[%s15491_s16 + $0x84c] ss:$48 sps:$4 sm:$0xff]  }
 0xa44   : > { %7758 = vmatprep.subr.bf16.mxu0 %v13499_v54  ;;  %v13523_v54 = vld [vmem:[%s15491_s16 + $0x24c] ss:$48 sps:$4 sm:$0xff]  }
 0xa46   : > { %7732 = vmatpush2.bf16.msra.mxu1 %v13500_v0  ;;  %v13524_v0 = vld [vmem:[%s15491_s16 + $0x848] ss:$48 sps:$4 sm:$0xff]  }
 0xa47   : > { %7759 = vmatpush1.bf16.msra.mxu0 %v13497_v62  ;;  %7733 = vmatprep.subr.bf16.mxu1 %v13508_v1  ;;  %v13521_v62 = vld [vmem:[%s15491_s16 + $0x248] ss:$48 sps:$4 sm:$0xff]   ;;  %v13532_v1 = vld [vmem:[%s15491_s16 + $0x7ec] ss:$48 sps:$4 sm:$0xff]  }
 0xa48   : > { %7760 = vmatprep.subr.bf16.mxu0 %v13505_v47  ;;  %v13529_v47 = vld [vmem:[%s15491_s16 + $0x1ec] ss:$48 sps:$4 sm:$0xff]  }
 0xa4a   : > { %7734 = vmatpush2.bf16.msra.mxu1 %v13506_v3  ;;  %v13530_v3 = vld [vmem:[%s15491_s16 + $0x7e8] ss:$48 sps:$4 sm:$0xff]  }
 0xa4b   : > { %7761 = vmatpush1.bf16.msra.mxu0 %v13503_v31  ;;  %7735 = vmatprep.subr.bf16.mxu1 %v13514_v6  ;;  %v13527_v31 = vld [vmem:[%s15491_s16 + $0x1e8] ss:$48 sps:$4 sm:$0xff]   ;;  %v13538_v6 = vld [vmem:[%s15491_s16 + $0x78c] ss:$48 sps:$4 sm:$0xff]  }
 0xa4c   : > { %7762 = vmatprep.subr.bf16.mxu0 %v13511_v7  ;;  %v13535_v7 = vld [vmem:[%s15491_s16 + $0x18c] ss:$48 sps:$4 sm:$0xff]  }
 0xa4e   : > { %7736 = vmatpush2.bf16.msra.mxu1 %v13512_v13  ;;  %v13536_v13 = vld [vmem:[%s15491_s16 + $0x788] ss:$48 sps:$4 sm:$0xff]  }
 0xa4f   : > { %7763 = vmatpush1.bf16.msra.mxu0 %v13509_v8  ;;  %7834 = vmatprep.subr.bf16.mxu1 %v13520_v11  ;;  %v13533_v8 = vld [vmem:[%s15491_s16 + $0x188] ss:$48 sps:$4 sm:$0xff]   ;;  %v13544_v11 = vld [vmem:[%s15491_s16 + $0x72c] ss:$48 sps:$4 sm:$0xff]  }
 0xa50   : > { %7791 = vmatprep.subr.bf16.mxu0 %v13517_v10  ;;  %v13541_v10 = vld [vmem:[%s15491_s16 + $0x12c] ss:$48 sps:$4 sm:$0xff]  }
 0xac1   : > { %v5827_v2 = vpop.xlane.xlu1 %5826 }
 0xac2   : > { %v5832_v19 = vmul.f32 0.0026041667, %v5827_v2 }
 0xac4   : > { %v16289_v20 = vsub.f32 %v16252_v23, %v5832_v19  ;;  %v16292_v21 = vsub.f32 %v16250_v49, %v5832_v19  ;;  %v16295_v60 = vsub.f32 %v16256_v32, %v5832_v19 }
 0xac5   : > { %v5831_v26 = vpop.xlane.xlu0 %5830 }
 0xac6   : > { %v5833_v27 = vmul.f32 0.0026041667, %v5831_v26  ;;  %v5840_v29 = vmul.f32 %v16289_v20, %v16289_v20  ;;  %v5841_v33 = vmul.f32 %v16292_v21, %v16292_v21  ;;  %v5842_v9 = vmul.f32 %v16295_v60, %v16295_v60 }
 0xac8   : > { %v16304_v34 = vsub.f32 %v16260_v4, %v5833_v27  ;;  %v16307_v35 = vsub.f32 %v16254_v39, %v5833_v27  ;;  %v16310_v38 = vsub.f32 %v16263_v58, %v5833_v27  ;;  %v5846_v24 = vadd.f32 %v5841_v33, %v5840_v29  ;;  %v5822_v27 = vld [vmem:[%s819_s14] sm:$0x7]  ;;  %v5823_v33 = vld [vmem:[%s828_s19] sm:$0x7] }
 0xac9   : > { %v5900_v22 = vrot.slane %v5823_v33, %v15611_v16 }
 0xaca   : > { %v5847_v41 = vadd.f32 %v5846_v24, %v5842_v9  ;;  %v5843_v43 = vmul.f32 %v16304_v34, %v16304_v34  ;;  %v5844_v25 = vmul.f32 %v16307_v35, %v16307_v35  ;;  %v5845_v28 = vmul.f32 %v16310_v38, %v16310_v38 }
 0xacb   : > { %v5874_v24 = vrot.slane %v5822_v27, %v15608_v15 }
 0xacc   : > { %5848 = vadd.xlane.f32.xlu0 %v5847_v41  ;;  %v5850_v44 = vadd.f32 %v5844_v25, %v5843_v43  ;;  %v5878_v43 = vrot.slane %v5822_v27, %v15611_v16 }
 0xace   : > { %v5851_v40 = vadd.f32 %v5850_v44, %v5845_v28  ;;  %v5870_v28 = vrot.slane %v5822_v27, %v15616_v18  ;;  %v13553_v27 = vld [vmem:[%s15491_s16 + $0x6c] ss:$48 sps:$4 sm:$0xff]  }
 0xad0   : > { %5852 = vadd.xlane.f32.xlu0 %v5851_v40  ;;  %v5896_v40 = vrot.slane %v5823_v33, %v15608_v15 }
 0xb55   : > { %v5849_v12 = vpop.xlane.xlu0 %5848 }
 0xb56   : > { %v5854_v17 = vmul.f32 0.0026041667, %v5849_v12  ;;  %v13539_v12 = vld [vmem:[%s15491_s16 + $0x128] ss:$48 sps:$4 sm:$0xff]  }
 0xb58   : > { %v5856_v42 = vadd.f32 1e-05, %v5854_v17  ;;  %v13542_v17 = vld [vmem:[%s15491_s16 + $0x728] ss:$48 sps:$4 sm:$0xff]  }
 0xb59   : > { %v5853_v2 = vpop.xlane.xlu0 %5852 }
 0xb5a   : > { %14311 = vrsqrt.f32 %v5856_v42  ;;  %v5855_v19 = vmul.f32 0.0026041667, %v5853_v2  ;;  %v13547_v42 = vld [vmem:[%s15491_s16 + $0xcc] ss:$48 sps:$4 sm:$0xff]  }
 0xb5b   : > { %v13550_v2 = vld [vmem:[%s15491_s16 + $0x6cc] ss:$48 sps:$4 sm:$0xff]  }
 0xb5c   : > { %v5857_v26 = vadd.f32 1e-05, %v5855_v19  ;;  %v13545_v19 = vld [vmem:[%s15491_s16 + $0xc8] ss:$48 sps:$4 sm:$0xff]  }
 0xb5e   : > { %14313 = vrsqrt.f32 %v5857_v26  ;;  %v13548_v26 = vld [vmem:[%s15491_s16 + $0x6c8] ss:$48 sps:$4 sm:$0xff]  }
 0xb67   : > { %v14312_v29 = vpop.eup %14311 }
 0xb68   : > { %v5861_v9 = vmul.f32 %v14312_v29, %v16292_v21  ;;  %v5862_v41 = vmul.f32 %v14312_v29, %v16295_v60  ;;  %v5860_v25 = vmul.f32 %v14312_v29, %v16289_v20  ;;  %v5892_v20 = vrot.slane %v5823_v33, %v15616_v18  ;;  %v13556_v29 = vld [vmem:[%s15491_s16 + $0x66c] ss:$48 sps:$4 sm:$0xff]   ;;  %v13551_v33 = vld [vmem:[%s15491_s16 + $0x68] ss:$48 sps:$4 sm:$0xff]  }
 0xb6a   : > { %v5883_v45 = vmul.f32 %v5874_v24, %v5861_v9  ;;  %v5884_v46 = vmul.f32 %v5878_v43, %v5862_v41  ;;  %v5882_v30 = vmul.f32 %v5870_v28, %v5860_v25  ;;  %v13554_v9 = vld [vmem:[%s15491_s16 + $0x668] ss:$48 sps:$4 sm:$0xff]   ;;  %v13562_v41 = vld [vmem:[%s15491_s16 + $0x60c] ss:$48 sps:$4 sm:$0xff]  }
 0xb6b   : > { %v14314_v44 = vpop.eup %14313  ;;  %v13560_v25 = vld [vmem:[%s15491_s16 + $0x608] ss:$48 sps:$4 sm:$0xff]  }
 0xb6c   : > { %v5864_v52 = vmul.f32 %v14314_v44, %v16307_v35  ;;  %v5865_v21 = vmul.f32 %v14314_v44, %v16310_v38  ;;  %v5863_v60 = vmul.f32 %v14314_v44, %v16304_v34  ;;  %v5905_v56 = vadd.f32 %v5896_v40, %v5883_v45  ;;  %v13568_v44 = vld [vmem:[%s15491_s16 + $0x2b4] ss:$48 sps:$4 sm:$0xff]  }
 0xb6d   : > { %v5906_v48 = vadd.f32 %v5900_v22, %v5884_v46  ;;  %v5904_v38 = vadd.f32 %v5892_v20, %v5882_v30  ;;  %v13574_v45 = vld [vmem:[%s15491_s16 + $0x254] ss:$48 sps:$4 sm:$0xff]   ;;  %v13572_v46 = vld [vmem:[%s15491_s16 + $0x250] ss:$48 sps:$4 sm:$0xff]  }
 0xb6e   : > { %v5886_v53 = vmul.f32 %v5874_v24, %v5864_v52  ;;  %v5887_v55 = vmul.f32 %v5878_v43, %v5865_v21  ;;  %v5885_v5 = vmul.f32 %v5870_v28, %v5863_v60  ;;  %v13559_v24 = vld [vmem:[%s15491_s16 + $0xc] ss:$48 sps:$4 sm:$0xff]   ;;  %v13557_v43 = vld [vmem:[%s15491_s16 + $0x8] ss:$48 sps:$4 sm:$0xff]   ;;  %v13580_v30 = vld [vmem:[%s15491_s16 + $0x1f4] ss:$48 sps:$4 sm:$0xff]  }
 0xb6f   : > { %v13565_v28 = vld [vmem:[%s15491_s16 + $0x5ac] ss:$48 sps:$4 sm:$0xff]   ;;  %v13569_v21 = vld [vmem:[%s15491_s16 + $0x548] ss:$48 sps:$4 sm:$0xff]  }
 0xb70   : > { %v5908_v57 = vadd.f32 %v5896_v40, %v5886_v53  ;;  %v5909_v35 = vadd.f32 %v5900_v22, %v5887_v55  ;;  %v5907_v51 = vadd.f32 %v5892_v20, %v5885_v5  ;;  %v13563_v40 = vld [vmem:[%s15491_s16 + $0x5a8] ss:$48 sps:$4 sm:$0xff]   ;;  %v13566_v22 = vld [vmem:[%s15491_s16 + $0x2b0] ss:$48 sps:$4 sm:$0xff]   ;;  %v13571_v52 = vld [vmem:[%s15491_s16 + $0x54c] ss:$48 sps:$4 sm:$0xff]  }
 0xb71   : > { %v13577_v60 = vld [vmem:[%s15491_s16 + $0x4ec] ss:$48 sps:$4 sm:$0xff]   ;;  %v13575_v20 = vld [vmem:[%s15491_s16 + $0x4e8] ss:$48 sps:$4 sm:$0xff]   ;;  %v13578_v53 = vld [vmem:[%s15491_s16 + $0x1f0] ss:$48 sps:$4 sm:$0xff]  }
 0xb72   : > { %v16365_v61 = vpack.c.bf16 %v5908_v57, %v5905_v56  ;;  %v16367_v34 = vpack.c.bf16 %v5909_v35, %v5906_v48  ;;  %v16370_v37 = vpack.c.bf16 %v5907_v51, %v5904_v38  ;;  %v13583_v55 = vld [vmem:[%s15491_s16 + $0x48c] ss:$48 sps:$4 sm:$0xff]   ;;  %v13586_v5 = vld [vmem:[%s15491_s16 + $0x194] ss:$48 sps:$4 sm:$0xff]   ;;  %v13581_v56 = vld [vmem:[%s15491_s16 + $0x488] ss:$48 sps:$4 sm:$0xff]  }
 0xb73   : > { %v13584_v57 = vld [vmem:[%s15491_s16 + $0x190] ss:$48 sps:$4 sm:$0xff]   ;;  %v13589_v48 = vld [vmem:[%s15491_s16 + $0x42c] ss:$48 sps:$4 sm:$0xff]   ;;  %v13592_v35 = vld [vmem:[%s15491_s16 + $0x134] ss:$48 sps:$4 sm:$0xff]  }
 0xb74   : > { %7737 = vmatprep.mubr.bf16.mxu1 %v16365_v61  ;;  %7781 = vmatmul.mubr.bf16.vlgmr.msra.gmra.mxu0 %v16367_v34  ;;  %v13590_v38 = vld [vmem:[%s15491_s16 + $0x130] ss:$48 sps:$4 sm:$0xff]   ;;  %v13595_v51 = vld [vmem:[%s15491_s16 + $0x3cc] ss:$48 sps:$4 sm:$0xff]  }
 0xb75   : > { %7792 = vmatpush1.bf16.msra.mxu0 %v13515_v59  ;;  %7738 = vmatmul.mubr.bf16.vlgmr.msra.gmra.mxu1 %v16370_v37  ;;  %v13587_v59 = vld [vmem:[%s15491_s16 + $0x428] ss:$48 sps:$4 sm:$0xff]  }
 0xb76   : > { %7823 = vmatprep.mubr.bf16.mxu0 %v16365_v61  ;;  %7835 = vmatpush1.bf16.msra.mxu1 %v13518_v50  ;;  %v13598_v50 = vld [vmem:[%s15491_s16 + $0xd4] ss:$48 sps:$4 sm:$0xff]  }
 0xb77   : > { %7793 = vmatprep.subr.bf16.mxu0 %v13523_v54  ;;  %7836 = vmatprep.subr.bf16.mxu1 %v13526_v36  ;;  %v13593_v54 = vld [vmem:[%s15491_s16 + $0x3c8] ss:$48 sps:$4 sm:$0xff]   ;;  %v13596_v36 = vld [vmem:[%s15491_s16 + $0xd0] ss:$48 sps:$4 sm:$0xff]  }
 0xb78   : > { %7866 = vmatprep.mubr.bf16.mxu1 %v14911_v63 }
 0xb79   : > { %7794 = vmatpush1.bf16.msra.mxu0 %v13521_v62  ;;  %v13601_v62 = vld [vmem:[%s15491_s16 + $0x36c] ss:$48 sps:$4 sm:$0xff]  }
 0xb7a   : > { %7837 = vmatpush1.bf16.msra.mxu1 %v13524_v0  ;;  %7795 = vmatprep.subr.bf16.mxu0 %v13529_v47  ;;  %v13604_v0 = vld [vmem:[%s15491_s16 + $0x74] ss:$48 sps:$4 sm:$0xff]   ;;  %v13599_v47 = vld [vmem:[%s15491_s16 + $0x368] ss:$48 sps:$4 sm:$0xff]  }
 0xb7b   : > { %7838 = vmatprep.subr.bf16.mxu1 %v13532_v1  ;;  %v13602_v1 = vld [vmem:[%s15491_s16 + $0x70] ss:$48 sps:$4 sm:$0xff]  }
 0xb7d   : > { %7796 = vmatpush1.bf16.msra.mxu0 %v13527_v31  ;;  %v13607_v31 = vld [vmem:[%s15491_s16 + $0x30c] ss:$48 sps:$4 sm:$0xff]  }
 0xb7e   : > { %7839 = vmatpush1.bf16.msra.mxu1 %v13530_v3  ;;  %7797 = vmatprep.subr.bf16.mxu0 %v13535_v7  ;;  %v13610_v3 = vld [vmem:[%s15491_s16 + $0x14] ss:$48 sps:$4 sm:$0xff]   ;;  %v13605_v7 = vld [vmem:[%s15491_s16 + $0x308] ss:$48 sps:$4 sm:$0xff]  }
 0xb7f   : > { %7840 = vmatprep.subr.bf16.mxu1 %v13538_v6  ;;  %v13608_v6 = vld [vmem:[%s15491_s16 + $0x10] ss:$48 sps:$4 sm:$0xff]  }
 0xb81   : > { %7798 = vmatpush1.bf16.msra.mxu0 %v13533_v8  ;;  %v13613_v8 = vld [vmem:[%s15491_s16 + $0x8b4] ss:$48 sps:$4 sm:$0xff]  }
 0xb82   : > { %7841 = vmatpush1.bf16.msra.mxu1 %v13536_v13  ;;  %7799 = vmatprep.subr.bf16.mxu0 %v13541_v10  ;;  %v13616_v13 = vld [vmem:[%s15491_s16 + $0x5b4] ss:$48 sps:$4 sm:$0xff]   ;;  %v13611_v10 = vld [vmem:[%s15491_s16 + $0x8b0] ss:$48 sps:$4 sm:$0xff]  }
 0xb83   : > { %7842 = vmatprep.subr.bf16.mxu1 %v13544_v11  ;;  %v13614_v11 = vld [vmem:[%s15491_s16 + $0x5b0] ss:$48 sps:$4 sm:$0xff]  }
 0xb85   : > { %7800 = vmatpush1.bf16.msra.mxu0 %v13539_v12  ;;  %v13619_v12 = vld [vmem:[%s15491_s16 + $0x854] ss:$48 sps:$4 sm:$0xff]  }
 0xb86   : > { %7843 = vmatpush1.bf16.msra.mxu1 %v13542_v17  ;;  %7801 = vmatprep.subr.bf16.mxu0 %v13547_v42  ;;  %v13622_v17 = vld [vmem:[%s15491_s16 + $0x554] ss:$48 sps:$4 sm:$0xff]   ;;  %v13617_v42 = vld [vmem:[%s15491_s16 + $0x850] ss:$48 sps:$4 sm:$0xff]  }
 0xb87   : > { %7844 = vmatprep.subr.bf16.mxu1 %v13550_v2  ;;  %v13620_v2 = vld [vmem:[%s15491_s16 + $0x550] ss:$48 sps:$4 sm:$0xff]  }
 0xb89   : > { %7802 = vmatpush1.bf16.msra.mxu0 %v13545_v19  ;;  %v13625_v19 = vld [vmem:[%s15491_s16 + $0x7f4] ss:$48 sps:$4 sm:$0xff]  }
 0xb8a   : > { %7845 = vmatpush1.bf16.msra.mxu1 %v13548_v26  ;;  %7803 = vmatprep.subr.bf16.mxu0 %v13553_v27  ;;  %v13628_v26 = vld [vmem:[%s15491_s16 + $0x4f4] ss:$48 sps:$4 sm:$0xff]   ;;  %v13623_v27 = vld [vmem:[%s15491_s16 + $0x7f0] ss:$48 sps:$4 sm:$0xff]  }
 0xb8b   : > { %7846 = vmatprep.subr.bf16.mxu1 %v13556_v29  ;;  %v13626_v29 = vld [vmem:[%s15491_s16 + $0x4f0] ss:$48 sps:$4 sm:$0xff]  }
 0xb8d   : > { %7804 = vmatpush1.bf16.msra.mxu0 %v13551_v33  ;;  %v13631_v33 = vld [vmem:[%s15491_s16 + $0x794] ss:$48 sps:$4 sm:$0xff]  }
 0xb8e   : > { %7847 = vmatpush1.bf16.msra.mxu1 %v13554_v9  ;;  %7805 = vmatprep.subr.bf16.mxu0 %v13559_v24  ;;  %v13634_v9 = vld [vmem:[%s15491_s16 + $0x494] ss:$48 sps:$4 sm:$0xff]   ;;  %v13629_v24 = vld [vmem:[%s15491_s16 + $0x790] ss:$48 sps:$4 sm:$0xff]  }
 0xb8f   : > { %7848 = vmatprep.subr.bf16.mxu1 %v13562_v41  ;;  %v13632_v41 = vld [vmem:[%s15491_s16 + $0x490] ss:$48 sps:$4 sm:$0xff]  }
 0xb91   : > { %7806 = vmatpush1.bf16.msra.mxu0 %v13557_v43  ;;  %v13637_v43 = vld [vmem:[%s15491_s16 + $0x734] ss:$48 sps:$4 sm:$0xff]  }
 0xb92   : > { %7849 = vmatpush1.bf16.msra.mxu1 %v13560_v25  ;;  %7807 = vmatprep.subr.bf16.mxu0 %v13565_v28  ;;  %v13640_v25 = vld [vmem:[%s15491_s16 + $0x434] ss:$48 sps:$4 sm:$0xff]   ;;  %v13635_v28 = vld [vmem:[%s15491_s16 + $0x730] ss:$48 sps:$4 sm:$0xff]  }
 0xb93   : > { %7877 = vmatprep.subr.bf16.mxu1 %v13568_v44  ;;  %v13638_v44 = vld [vmem:[%s15491_s16 + $0x430] ss:$48 sps:$4 sm:$0xff]  }
 0xb95   : > { %7808 = vmatpush2.bf16.msra.mxu0 %v13563_v40  ;;  %7867 = vmatmul.mubr.bf16.vlgmr.msra.gmra.mxu1 %v16367_v34  ;;  %v13643_v40 = vld [vmem:[%s15491_s16 + $0x6d4] ss:$48 sps:$4 sm:$0xff]  }
 0xb96   : > { %7878 = vmatpush1.bf16.msra.mxu1 %v13566_v22  ;;  %7909 = vmatprep.mubr.bf16.mxu1 %v16365_v61  ;;  %v13646_v22 = vld [vmem:[%s15491_s16 + $0x3d4] ss:$48 sps:$4 sm:$0xff]  }
 0xb97   : > { %7809 = vmatprep.subr.bf16.mxu0 %v13571_v52  ;;  %7879 = vmatprep.subr.bf16.mxu1 %v13574_v45  ;;  %v13641_v52 = vld [vmem:[%s15491_s16 + $0x6d0] ss:$48 sps:$4 sm:$0xff]  }
 0xb98   : > { %v13644_v45 = vld [vmem:[%s15491_s16 + $0x3d0] ss:$48 sps:$4 sm:$0xff]  }
 0xb99   : > { %7810 = vmatpush2.bf16.msra.mxu0 %v13569_v21  ;;  %v13649_v21 = vld [vmem:[%s15491_s16 + $0x674] ss:$48 sps:$4 sm:$0xff]  }
 0xb9a   : > { %7880 = vmatpush1.bf16.msra.mxu1 %v13572_v46  ;;  %7811 = vmatprep.subr.bf16.mxu0 %v13577_v60  ;;  %v13652_v46 = vld [vmem:[%s15491_s16 + $0x374] ss:$48 sps:$4 sm:$0xff]   ;;  %v13647_v60 = vld [vmem:[%s15491_s16 + $0x670] ss:$48 sps:$4 sm:$0xff]  }
 0xb9b   : > { %7881 = vmatprep.subr.bf16.mxu1 %v13580_v30  ;;  %v13650_v30 = vld [vmem:[%s15491_s16 + $0x370] ss:$48 sps:$4 sm:$0xff]  }
 0xb9d   : > { %7812 = vmatpush2.bf16.msra.mxu0 %v13575_v20  ;;  %v13655_v20 = vld [vmem:[%s15491_s16 + $0x614] ss:$48 sps:$4 sm:$0xff]  }
 0xb9e   : > { %7882 = vmatpush1.bf16.msra.mxu1 %v13578_v53  ;;  %7813 = vmatprep.subr.bf16.mxu0 %v13583_v55  ;;  %v13658_v53 = vld [vmem:[%s15491_s16 + $0x314] ss:$48 sps:$4 sm:$0xff]   ;;  %v13653_v55 = vld [vmem:[%s15491_s16 + $0x610] ss:$48 sps:$4 sm:$0xff]  }
 0xb9f   : > { %7883 = vmatprep.subr.bf16.mxu1 %v13586_v5  ;;  %v13656_v5 = vld [vmem:[%s15491_s16 + $0x310] ss:$48 sps:$4 sm:$0xff]  }
 0xba1   : > { %7814 = vmatpush2.bf16.msra.mxu0 %v13581_v56  ;;  %v13661_v56 = vld [vmem:[%s15491_s16 + $0x2bc] ss:$48 sps:$4 sm:$0xff]  }
 0xba2   : > { %7884 = vmatpush1.bf16.msra.mxu1 %v13584_v57  ;;  %7815 = vmatprep.subr.bf16.mxu0 %v13589_v48  ;;  %v13664_v57 = vld [vmem:[%s15491_s16 + $0x8bc] ss:$48 sps:$4 sm:$0xff]   ;;  %v13659_v48 = vld [vmem:[%s15491_s16 + $0x2b8] ss:$48 sps:$4 sm:$0xff]  }
 0xba3   : > { %7885 = vmatprep.subr.bf16.mxu1 %v13592_v35  ;;  %v13662_v35 = vld [vmem:[%s15491_s16 + $0x8b8] ss:$48 sps:$4 sm:$0xff]  }
 0xba5   : > { %7816 = vmatpush2.bf16.msra.mxu0 %v13587_v59  ;;  %v13667_v59 = vld [vmem:[%s15491_s16 + $0x25c] ss:$48 sps:$4 sm:$0xff]  }
 0xba6   : > { %7886 = vmatpush1.bf16.msra.mxu1 %v13590_v38  ;;  %7817 = vmatprep.subr.bf16.mxu0 %v13595_v51  ;;  %v13670_v38 = vld [vmem:[%s15491_s16 + $0x85c] ss:$48 sps:$4 sm:$0xff]   ;;  %v13665_v51 = vld [vmem:[%s15491_s16 + $0x258] ss:$48 sps:$4 sm:$0xff]  }
 0xba7   : > { %7887 = vmatprep.subr.bf16.mxu1 %v13598_v50  ;;  %v13668_v50 = vld [vmem:[%s15491_s16 + $0x858] ss:$48 sps:$4 sm:$0xff]  }
 0xba9   : > { %7818 = vmatpush2.bf16.msra.mxu0 %v13593_v54  ;;  %v13673_v54 = vld [vmem:[%s15491_s16 + $0x1fc] ss:$48 sps:$4 sm:$0xff]  }
 0xbaa   : > { %7888 = vmatpush1.bf16.msra.mxu1 %v13596_v36  ;;  %7819 = vmatprep.subr.bf16.mxu0 %v13601_v62  ;;  %v13676_v36 = vld [vmem:[%s15491_s16 + $0x7fc] ss:$48 sps:$4 sm:$0xff]   ;;  %v13671_v62 = vld [vmem:[%s15491_s16 + $0x1f8] ss:$48 sps:$4 sm:$0xff]  }
 0xbab   : > { %7889 = vmatprep.subr.bf16.mxu1 %v13604_v0  ;;  %v13674_v0 = vld [vmem:[%s15491_s16 + $0x7f8] ss:$48 sps:$4 sm:$0xff]  }
 0xbad   : > { %7820 = vmatpush2.bf16.msra.mxu0 %v13599_v47  ;;  %v13679_v47 = vld [vmem:[%s15491_s16 + $0x19c] ss:$48 sps:$4 sm:$0xff]  }
 0xbae   : > { %7890 = vmatpush1.bf16.msra.mxu1 %v13602_v1  ;;  %7821 = vmatprep.subr.bf16.mxu0 %v13607_v31  ;;  %v13682_v1 = vld [vmem:[%s15491_s16 + $0x79c] ss:$48 sps:$4 sm:$0xff]   ;;  %v13677_v31 = vld [vmem:[%s15491_s16 + $0x198] ss:$48 sps:$4 sm:$0xff]  }
 0xbaf   : > { %7891 = vmatprep.subr.bf16.mxu1 %v13610_v3  ;;  %v13680_v3 = vld [vmem:[%s15491_s16 + $0x798] ss:$48 sps:$4 sm:$0xff]  }
 0xbb1   : > { %7822 = vmatpush2.bf16.msra.mxu0 %v13605_v7  ;;  %v13685_v7 = vld [vmem:[%s15491_s16 + $0x13c] ss:$48 sps:$4 sm:$0xff]  }
 0xbb2   : > { %7892 = vmatpush1.bf16.msra.mxu1 %v13608_v6  ;;  %7920 = vmatprep.subr.bf16.mxu0 %v13613_v8  ;;  %v13688_v6 = vld [vmem:[%s15491_s16 + $0x73c] ss:$48 sps:$4 sm:$0xff]   ;;  %v13683_v8 = vld [vmem:[%s15491_s16 + $0x138] ss:$48 sps:$4 sm:$0xff]  }
 0xbb3   : > { %7893 = vmatprep.subr.bf16.mxu1 %v13616_v13  ;;  %v13686_v13 = vld [vmem:[%s15491_s16 + $0x738] ss:$48 sps:$4 sm:$0xff]  }
 0xbb4   : > { %7824 = vmatmul.mubr.bf16.vlgmr.msra.gmra.mxu0 %v16370_v37 }
 0xbb5   : > { %7921 = vmatpush1.bf16.msra.mxu0 %v13611_v10  ;;  %7952 = vmatprep.mubr.bf16.mxu0 %v14911_v63  ;;  %v13691_v10 = vld [vmem:[%s15491_s16 + $0xdc] ss:$48 sps:$4 sm:$0xff]  }
 0xbb6   : > { %7894 = vmatpush2.bf16.msra.mxu1 %v13614_v11  ;;  %7922 = vmatprep.subr.bf16.mxu0 %v13619_v12  ;;  %v13694_v11 = vld [vmem:[%s15491_s16 + $0x6dc] ss:$48 sps:$4 sm:$0xff]   ;;  %v13689_v12 = vld [vmem:[%s15491_s16 + $0xd8] ss:$48 sps:$4 sm:$0xff]  }
 0xbb7   : > { %7895 = vmatprep.subr.bf16.mxu1 %v13622_v17  ;;  %v13692_v17 = vld [vmem:[%s15491_s16 + $0x6d8] ss:$48 sps:$4 sm:$0xff]  }
 0xbb9   : > { %7923 = vmatpush1.bf16.msra.mxu0 %v13617_v42  ;;  %v13697_v42 = vld [vmem:[%s15491_s16 + $0x7c] ss:$48 sps:$4 sm:$0xff]  }
 0xbba   : > { %7896 = vmatpush2.bf16.msra.mxu1 %v13620_v2  ;;  %7924 = vmatprep.subr.bf16.mxu0 %v13625_v19  ;;  %v13700_v2 = vld [vmem:[%s15491_s16 + $0x67c] ss:$48 sps:$4 sm:$0xff]   ;;  %v13695_v19 = vld [vmem:[%s15491_s16 + $0x78] ss:$48 sps:$4 sm:$0xff]  }
 0xbbb   : > { %7897 = vmatprep.subr.bf16.mxu1 %v13628_v26  ;;  %v13698_v26 = vld [vmem:[%s15491_s16 + $0x678] ss:$48 sps:$4 sm:$0xff]  }
 0xbbd   : > { %7925 = vmatpush1.bf16.msra.mxu0 %v13623_v27  ;;  %v13703_v27 = vld [vmem:[%s15491_s16 + $0x1c] ss:$48 sps:$4 sm:$0xff]  }
 0xbbe   : > { %7898 = vmatpush2.bf16.msra.mxu1 %v13626_v29  ;;  %7926 = vmatprep.subr.bf16.mxu0 %v13631_v33  ;;  %v13706_v29 = vld [vmem:[%s15491_s16 + $0x61c] ss:$48 sps:$4 sm:$0xff]   ;;  %v13701_v33 = vld [vmem:[%s15491_s16 + $0x18] ss:$48 sps:$4 sm:$0xff]  }
 0xbbf   : > { %7899 = vmatprep.subr.bf16.mxu1 %v13634_v9  ;;  %v13704_v9 = vld [vmem:[%s15491_s16 + $0x618] ss:$48 sps:$4 sm:$0xff]  }
 0xbc1   : > { %7927 = vmatpush1.bf16.msra.mxu0 %v13629_v24  ;;  %v13709_v24 = vld [vmem:[%s15491_s16 + $0x5bc] ss:$48 sps:$4 sm:$0xff]  }
 0xbc2   : > { %7900 = vmatpush2.bf16.msra.mxu1 %v13632_v41  ;;  %7928 = vmatprep.subr.bf16.mxu0 %v13637_v43  ;;  %v13712_v41 = vld [vmem:[%s15491_s16 + $0x2c4] ss:$48 sps:$4 sm:$0xff]   ;;  %v13707_v43 = vld [vmem:[%s15491_s16 + $0x5b8] ss:$48 sps:$4 sm:$0xff]  }
 0xbc3   : > { %7901 = vmatprep.subr.bf16.mxu1 %v13640_v25  ;;  %v13710_v25 = vld [vmem:[%s15491_s16 + $0x2c0] ss:$48 sps:$4 sm:$0xff]  }
 0xbc5   : > { %7929 = vmatpush1.bf16.msra.mxu0 %v13635_v28  ;;  %v13715_v28 = vld [vmem:[%s15491_s16 + $0x55c] ss:$48 sps:$4 sm:$0xff]  }
 0xbc6   : > { %7902 = vmatpush2.bf16.msra.mxu1 %v13638_v44  ;;  %7930 = vmatprep.subr.bf16.mxu0 %v13643_v40  ;;  %v13718_v44 = vld [vmem:[%s15491_s16 + $0x264] ss:$48 sps:$4 sm:$0xff]   ;;  %v13713_v40 = vld [vmem:[%s15491_s16 + $0x558] ss:$48 sps:$4 sm:$0xff]  }
 0xbc7   : > { %7903 = vmatprep.subr.bf16.mxu1 %v13646_v22  ;;  %v13716_v22 = vld [vmem:[%s15491_s16 + $0x260] ss:$48 sps:$4 sm:$0xff]  }
 0xbc9   : > { %7931 = vmatpush1.bf16.msra.mxu0 %v13641_v52  ;;  %v13721_v52 = vld [vmem:[%s15491_s16 + $0x4fc] ss:$48 sps:$4 sm:$0xff]  }
 0xbca   : > { %7904 = vmatpush2.bf16.msra.mxu1 %v13644_v45  ;;  %7932 = vmatprep.subr.bf16.mxu0 %v13649_v21  ;;  %v13724_v45 = vld [vmem:[%s15491_s16 + $0x204] ss:$48 sps:$4 sm:$0xff]   ;;  %v13719_v21 = vld [vmem:[%s15491_s16 + $0x4f8] ss:$48 sps:$4 sm:$0xff]  }
 0xbcb   : > { %7905 = vmatprep.subr.bf16.mxu1 %v13652_v46  ;;  %v13722_v46 = vld [vmem:[%s15491_s16 + $0x200] ss:$48 sps:$4 sm:$0xff]  }
 0xbcd   : > { %7933 = vmatpush1.bf16.msra.mxu0 %v13647_v60  ;;  %v13727_v60 = vld [vmem:[%s15491_s16 + $0x49c] ss:$48 sps:$4 sm:$0xff]  }
 0xbce   : > { %7906 = vmatpush2.bf16.msra.mxu1 %v13650_v30  ;;  %7934 = vmatprep.subr.bf16.mxu0 %v13655_v20  ;;  %v13730_v30 = vld [vmem:[%s15491_s16 + $0x1a4] ss:$48 sps:$4 sm:$0xff]   ;;  %v13725_v20 = vld [vmem:[%s15491_s16 + $0x498] ss:$48 sps:$4 sm:$0xff]  }
 0xbcf   : > { %7907 = vmatprep.subr.bf16.mxu1 %v13658_v53  ;;  %v13728_v53 = vld [vmem:[%s15491_s16 + $0x1a0] ss:$48 sps:$4 sm:$0xff]  }
 0xbd1   : > { %7935 = vmatpush1.bf16.msra.mxu0 %v13653_v55  ;;  %v13733_v55 = vld [vmem:[%s15491_s16 + $0x43c] ss:$48 sps:$4 sm:$0xff]  }
 0xbd2   : > { %7908 = vmatpush2.bf16.msra.mxu1 %v13656_v5  ;;  %7963 = vmatprep.subr.bf16.mxu0 %v13661_v56  ;;  %v13736_v5 = vld [vmem:[%s15491_s16 + $0x144] ss:$48 sps:$4 sm:$0xff]   ;;  %v13731_v56 = vld [vmem:[%s15491_s16 + $0x438] ss:$48 sps:$4 sm:$0xff]  }
 0xbd3   : > { %8006 = vmatprep.subr.bf16.mxu1 %v13664_v57  ;;  %v13734_v57 = vld [vmem:[%s15491_s16 + $0x140] ss:$48 sps:$4 sm:$0xff]  }
 0xbd4   : > { %7953 = vmatmul.mubr.bf16.vlgmr.msra.gmra.mxu0 %v16367_v34 }
 0xbd5   : > { %7910 = vmatmul.mubr.bf16.vlgmr.msra.gmra.mxu1 %v16370_v37  ;;  %7964 = vmatpush1.bf16.msra.mxu0 %v13659_v48  ;;  %v13739_v48 = vld [vmem:[%s15491_s16 + $0x3dc] ss:$48 sps:$4 sm:$0xff]  }
 0xbd6   : > { %7995 = vmatprep.mubr.bf16.mxu0 %v16365_v61  ;;  %8007 = vmatpush1.bf16.msra.mxu1 %v13662_v35  ;;  %v13742_v35 = vld [vmem:[%s15491_s16 + $0xe4] ss:$48 sps:$4 sm:$0xff]  }
 0xbd7   : > { %7965 = vmatprep.subr.bf16.mxu0 %v13667_v59  ;;  %8008 = vmatprep.subr.bf16.mxu1 %v13670_v38  ;;  %v13737_v59 = vld [vmem:[%s15491_s16 + $0x3d8] ss:$48 sps:$4 sm:$0xff]   ;;  %v13740_v38 = vld [vmem:[%s15491_s16 + $0xe0] ss:$48 sps:$4 sm:$0xff]  }
 0xbd8   : > { %8038 = vmatprep.mubr.bf16.mxu1 %v14911_v63 }
 0xbd9   : > { %7966 = vmatpush1.bf16.msra.mxu0 %v13665_v51  ;;  %v13745_v51 = vld [vmem:[%s15491_s16 + $0x37c] ss:$48 sps:$4 sm:$0xff]  }
 0xbda   : > { %8009 = vmatpush1.bf16.msra.mxu1 %v13668_v50  ;;  %7967 = vmatprep.subr.bf16.mxu0 %v13673_v54  ;;  %v13748_v50 = vld [vmem:[%s15491_s16 + $0x84] ss:$48 sps:$4 sm:$0xff]   ;;  %v13743_v54 = vld [vmem:[%s15491_s16 + $0x378] ss:$48 sps:$4 sm:$0xff]  }
 0xbdb   : > { %8010 = vmatprep.subr.bf16.mxu1 %v13676_v36  ;;  %v13746_v36 = vld [vmem:[%s15491_s16 + $0x80] ss:$48 sps:$4 sm:$0xff]  }
 0xbdd   : > { %7968 = vmatpush1.bf16.msra.mxu0 %v13671_v62  ;;  %v13751_v62 = vld [vmem:[%s15491_s16 + $0x31c] ss:$48 sps:$4 sm:$0xff]  }
 0xbde   : > { %8011 = vmatpush1.bf16.msra.mxu1 %v13674_v0  ;;  %7969 = vmatprep.subr.bf16.mxu0 %v13679_v47  ;;  %v13754_v0 = vld [vmem:[%s15491_s16 + $0x24] ss:$48 sps:$4 sm:$0xff]   ;;  %v13749_v47 = vld [vmem:[%s15491_s16 + $0x318] ss:$48 sps:$4 sm:$0xff]  }
 0xbdf   : > { %8012 = vmatprep.subr.bf16.mxu1 %v13682_v1  ;;  %v13752_v1 = vld [vmem:[%s15491_s16 + $0x20] ss:$48 sps:$4 sm:$0xff]  }
 0xbe1   : > { %7970 = vmatpush1.bf16.msra.mxu0 %v13677_v31  ;;  %v13757_v31 = vld [vmem:[%s15491_s16 + $0x8c4] ss:$48 sps:$4 sm:$0xff]  }
 0xbe2   : > { %8013 = vmatpush1.bf16.msra.mxu1 %v13680_v3  ;;  %7971 = vmatprep.subr.bf16.mxu0 %v13685_v7  ;;  %v13760_v3 = vld [vmem:[%s15491_s16 + $0x5c4] ss:$48 sps:$4 sm:$0xff]   ;;  %v13755_v7 = vld [vmem:[%s15491_s16 + $0x8c0] ss:$48 sps:$4 sm:$0xff]  }
 0xbe3   : > { %8014 = vmatprep.subr.bf16.mxu1 %v13688_v6  ;;  %v13758_v6 = vld [vmem:[%s15491_s16 + $0x5c0] ss:$48 sps:$4 sm:$0xff]  }
 0xbe5   : > { %7972 = vmatpush1.bf16.msra.mxu0 %v13683_v8  ;;  %v13763_v8 = vld [vmem:[%s15491_s16 + $0x864] ss:$48 sps:$4 sm:$0xff]  }
 0xbe6   : > { %8015 = vmatpush1.bf16.msra.mxu1 %v13686_v13  ;;  %7973 = vmatprep.subr.bf16.mxu0 %v13691_v10  ;;  %v13766_v13 = vld [vmem:[%s15491_s16 + $0x564] ss:$48 sps:$4 sm:$0xff]   ;;  %v13761_v10 = vld [vmem:[%s15491_s16 + $0x860] ss:$48 sps:$4 sm:$0xff]  }
 0xbe7   : > { %8016 = vmatprep.subr.bf16.mxu1 %v13694_v11  ;;  %v13764_v11 = vld [vmem:[%s15491_s16 + $0x560] ss:$48 sps:$4 sm:$0xff]  }
 0xbe9   : > { %7974 = vmatpush1.bf16.msra.mxu0 %v13689_v12  ;;  %v13769_v12 = vld [vmem:[%s15491_s16 + $0x804] ss:$48 sps:$4 sm:$0xff]  }
 0xbea   : > { %8017 = vmatpush1.bf16.msra.mxu1 %v13692_v17  ;;  %7975 = vmatprep.subr.bf16.mxu0 %v13697_v42  ;;  %v13772_v17 = vld [vmem:[%s15491_s16 + $0x504] ss:$48 sps:$4 sm:$0xff]   ;;  %v13767_v42 = vld [vmem:[%s15491_s16 + $0x800] ss:$48 sps:$4 sm:$0xff]  }
 0xbeb   : > { %8018 = vmatprep.subr.bf16.mxu1 %v13700_v2  ;;  %v13770_v2 = vld [vmem:[%s15491_s16 + $0x500] ss:$48 sps:$4 sm:$0xff]  }
 0xbed   : > { %7976 = vmatpush1.bf16.msra.mxu0 %v13695_v19  ;;  %v13775_v19 = vld [vmem:[%s15491_s16 + $0x7a4] ss:$48 sps:$4 sm:$0xff]  }
 0xbee   : > { %8019 = vmatpush1.bf16.msra.mxu1 %v13698_v26  ;;  %7977 = vmatprep.subr.bf16.mxu0 %v13703_v27  ;;  %v13778_v26 = vld [vmem:[%s15491_s16 + $0x4a4] ss:$48 sps:$4 sm:$0xff]   ;;  %v13773_v27 = vld [vmem:[%s15491_s16 + $0x7a0] ss:$48 sps:$4 sm:$0xff]  }
 0xbef   : > { %8020 = vmatprep.subr.bf16.mxu1 %v13706_v29  ;;  %v13776_v29 = vld [vmem:[%s15491_s16 + $0x4a0] ss:$48 sps:$4 sm:$0xff]  }
 0xbf1   : > { %7978 = vmatpush1.bf16.msra.mxu0 %v13701_v33  ;;  %v13781_v33 = vld [vmem:[%s15491_s16 + $0x744] ss:$48 sps:$4 sm:$0xff]  }
 0xbf2   : > { %8021 = vmatpush1.bf16.msra.mxu1 %v13704_v9  ;;  %7979 = vmatprep.subr.bf16.mxu0 %v13709_v24  ;;  %v13784_v9 = vld [vmem:[%s15491_s16 + $0x444] ss:$48 sps:$4 sm:$0xff]   ;;  %v13779_v24 = vld [vmem:[%s15491_s16 + $0x740] ss:$48 sps:$4 sm:$0xff]  }
 0xbf3   : > { %8049 = vmatprep.subr.bf16.mxu1 %v13712_v41  ;;  %v13782_v41 = vld [vmem:[%s15491_s16 + $0x440] ss:$48 sps:$4 sm:$0xff]  }
 0xbf5   : > { %7980 = vmatpush2.bf16.msra.mxu0 %v13707_v43  ;;  %8039 = vmatmul.mubr.bf16.vlgmr.msra.gmra.mxu1 %v16367_v34  ;;  %v13787_v43 = vld [vmem:[%s15491_s16 + $0x6e4] ss:$48 sps:$4 sm:$0xff]  }
 0xbf6   : > { %8050 = vmatpush1.bf16.msra.mxu1 %v13710_v25  ;;  %8081 = vmatprep.mubr.bf16.mxu1 %v16365_v61  ;;  %v13790_v25 = vld [vmem:[%s15491_s16 + $0x3e4] ss:$48 sps:$4 sm:$0xff]  }
 0xbf7   : > { %7981 = vmatprep.subr.bf16.mxu0 %v13715_v28  ;;  %8051 = vmatprep.subr.bf16.mxu1 %v13718_v44  ;;  %v13785_v28 = vld [vmem:[%s15491_s16 + $0x6e0] ss:$48 sps:$4 sm:$0xff]  }
 0xbf8   : > { %v13788_v44 = vld [vmem:[%s15491_s16 + $0x3e0] ss:$48 sps:$4 sm:$0xff]  }
 0xbf9   : > { %7982 = vmatpush2.bf16.msra.mxu0 %v13713_v40  ;;  %v13793_v40 = vld [vmem:[%s15491_s16 + $0x684] ss:$48 sps:$4 sm:$0xff]  }
 0xbfa   : > { %8052 = vmatpush1.bf16.msra.mxu1 %v13716_v22  ;;  %7983 = vmatprep.subr.bf16.mxu0 %v13721_v52  ;;  %v13796_v22 = vld [vmem:[%s15491_s16 + $0x384] ss:$48 sps:$4 sm:$0xff]   ;;  %v13791_v52 = vld [vmem:[%s15491_s16 + $0x680] ss:$48 sps:$4 sm:$0xff]  }
 0xbfb   : > { %8053 = vmatprep.subr.bf16.mxu1 %v13724_v45  ;;  %v13794_v45 = vld [vmem:[%s15491_s16 + $0x380] ss:$48 sps:$4 sm:$0xff]  }
 0xbfd   : > { %7984 = vmatpush2.bf16.msra.mxu0 %v13719_v21  ;;  %v13799_v21 = vld [vmem:[%s15491_s16 + $0x624] ss:$48 sps:$4 sm:$0xff]  }
 0xbfe   : > { %8054 = vmatpush1.bf16.msra.mxu1 %v13722_v46  ;;  %7985 = vmatprep.subr.bf16.mxu0 %v13727_v60  ;;  %v13802_v46 = vld [vmem:[%s15491_s16 + $0x324] ss:$48 sps:$4 sm:$0xff]   ;;  %v13797_v60 = vld [vmem:[%s15491_s16 + $0x620] ss:$48 sps:$4 sm:$0xff]  }
 0xbff   : > { %8055 = vmatprep.subr.bf16.mxu1 %v13730_v30  ;;  %v13800_v30 = vld [vmem:[%s15491_s16 + $0x320] ss:$48 sps:$4 sm:$0xff]  }
 0xc01   : > { %7986 = vmatpush2.bf16.msra.mxu0 %v13725_v20  ;;  %v13805_v20 = vld [vmem:[%s15491_s16 + $0x2cc] ss:$48 sps:$4 sm:$0xff]  }
 0xc02   : > { %8056 = vmatpush1.bf16.msra.mxu1 %v13728_v53  ;;  %7987 = vmatprep.subr.bf16.mxu0 %v13733_v55  ;;  %v13808_v53 = vld [vmem:[%s15491_s16 + $0x8cc] ss:$48 sps:$4 sm:$0xff]  }
 0xc03   : > { %8057 = vmatprep.subr.bf16.mxu1 %v13736_v5  ;;  %v16580_v55 = vld [vmem:[%s15494_s7] sm:$0xff]  ;;  %v13803_v5 = vld [vmem:[%s15491_s16 + $0x2c8] ss:$48 sps:$4 sm:$0xff]  }
 0xc05   : > { %7988 = vmatpush2.bf16.msra.mxu0 %v13731_v56  ;;  %v13806_v56 = vld [vmem:[%s15491_s16 + $0x8c8] ss:$48 sps:$4 sm:$0xff]  }
 0xc06   : > { %8058 = vmatpush1.bf16.msra.mxu1 %v13734_v57  ;;  %7989 = vmatprep.subr.bf16.mxu0 %v13739_v48  ;;  %v6208_v57 = vrot.slane %v16580_v55, %v15616_v18  ;;  %v13811_v48 = vld [vmem:[%s15491_s16 + $0x26c] ss:$48 sps:$4 sm:$0xff]  }
 0xc07   : > { %8059 = vmatprep.subr.bf16.mxu1 %v13742_v35  ;;  %v13814_v35 = vld [vmem:[%s15491_s16 + $0x86c] ss:$48 sps:$4 sm:$0xff]  }
 0xc09   : > { %7990 = vmatpush2.bf16.msra.mxu0 %v13737_v59 }
 0xc0a   : > { %8060 = vmatpush1.bf16.msra.mxu1 %v13740_v38  ;;  %7991 = vmatprep.subr.bf16.mxu0 %v13745_v51  ;;  %v13809_v51 = vld [vmem:[%s15491_s16 + $0x268] ss:$48 sps:$4 sm:$0xff]  }
 0xc0b   : > { %8061 = vmatprep.subr.bf16.mxu1 %v13748_v50 }
 0xc0d   : > { %7992 = vmatpush2.bf16.msra.mxu0 %v13743_v54  ;;  %v13812_v54 = vld [vmem:[%s15491_s16 + $0x868] ss:$48 sps:$4 sm:$0xff]  }
 0xc0e   : > { %8062 = vmatpush1.bf16.msra.mxu1 %v13746_v36  ;;  %7993 = vmatprep.subr.bf16.mxu0 %v13751_v62  ;;  %v13817_v36 = vld [vmem:[%s15491_s16 + $0x20c] ss:$48 sps:$4 sm:$0xff]  }
 0xc0f   : > { %8063 = vmatprep.subr.bf16.mxu1 %v13754_v0 }
 0xc11   : > { %7994 = vmatpush2.bf16.msra.mxu0 %v13749_v47  ;;  %v13820_v47 = vld [vmem:[%s15491_s16 + $0x80c] ss:$48 sps:$4 sm:$0xff]  }
 0xc12   : > { %8064 = vmatpush1.bf16.msra.mxu1 %v13752_v1  ;;  %8092 = vmatprep.subr.bf16.mxu0 %v13757_v31 }
 0xc13   : > { %8065 = vmatprep.subr.bf16.mxu1 %v13760_v3  ;;  %v13815_v3 = vld [vmem:[%s15491_s16 + $0x208] ss:$48 sps:$4 sm:$0xff]  }
 0xc14   : > { %7996 = vmatmul.mubr.bf16.vlgmr.msra.gmra.mxu0 %v16370_v37 }
 0xc15   : > { %8093 = vmatpush1.bf16.msra.mxu0 %v13755_v7  ;;  %8124 = vmatprep.mubr.bf16.mxu0 %v14911_v63  ;;  %v13818_v7 = vld [vmem:[%s15491_s16 + $0x808] ss:$48 sps:$4 sm:$0xff]  }
 0xc16   : > { %8066 = vmatpush2.bf16.msra.mxu1 %v13758_v6  ;;  %8094 = vmatprep.subr.bf16.mxu0 %v13763_v8  ;;  %v13823_v6 = vld [vmem:[%s15491_s16 + $0x1ac] ss:$48 sps:$4 sm:$0xff]  }
 0xc17   : > { %8067 = vmatprep.subr.bf16.mxu1 %v13766_v13  ;;  %v13826_v13 = vld [vmem:[%s15491_s16 + $0x7ac] ss:$48 sps:$4 sm:$0xff]  }
 0xc19   : > { %8095 = vmatpush1.bf16.msra.mxu0 %v13761_v10 }
 0xc1a   : > { %8068 = vmatpush2.bf16.msra.mxu1 %v13764_v11  ;;  %8096 = vmatprep.subr.bf16.mxu0 %v13769_v12 }
 0xc1b   : > { %8069 = vmatprep.subr.bf16.mxu1 %v13772_v17  ;;  %v13824_v17 = vld [vmem:[%s15491_s16 + $0x7a8] ss:$48 sps:$4 sm:$0xff]  }
 0xc1d   : > { %8097 = vmatpush1.bf16.msra.mxu0 %v13767_v42  ;;  %v13829_v42 = vld [vmem:[%s15491_s16 + $0x14c] ss:$48 sps:$4 sm:$0xff]  }
 0xc1e   : > { %8070 = vmatpush2.bf16.msra.mxu1 %v13770_v2  ;;  %8098 = vmatprep.subr.bf16.mxu0 %v13775_v19  ;;  %v13832_v2 = vld [vmem:[%s15491_s16 + $0x74c] ss:$48 sps:$4 sm:$0xff]  }
 0xc1f   : > { %8071 = vmatprep.subr.bf16.mxu1 %v13778_v26  ;;  %v13827_v26 = vld [vmem:[%s15491_s16 + $0x148] ss:$48 sps:$4 sm:$0xff]  }
 0xc21   : > { %8099 = vmatpush1.bf16.msra.mxu0 %v13773_v27  ;;  %v13830_v27 = vld [vmem:[%s15491_s16 + $0x748] ss:$48 sps:$4 sm:$0xff]  }
 0xc22   : > { %8072 = vmatpush2.bf16.msra.mxu1 %v13776_v29  ;;  %8100 = vmatprep.subr.bf16.mxu0 %v13781_v33  ;;  %v13835_v29 = vld [vmem:[%s15491_s16 + $0xec] ss:$48 sps:$4 sm:$0xff]  }
 0xc23   : > { %8073 = vmatprep.subr.bf16.mxu1 %v13784_v9  ;;  %v13838_v33 = vld [vmem:[%s15491_s16 + $0x6ec] ss:$48 sps:$4 sm:$0xff]  }
 0xc25   : > { %8101 = vmatpush1.bf16.msra.mxu0 %v13779_v24  ;;  %v13833_v24 = vld [vmem:[%s15491_s16 + $0xe8] ss:$48 sps:$4 sm:$0xff]  }
 0xc26   : > { %8074 = vmatpush2.bf16.msra.mxu1 %v13782_v41  ;;  %8102 = vmatprep.subr.bf16.mxu0 %v13787_v43  ;;  %v6212_v41 = vrot.slane %v16580_v55, %v15608_v15  ;;  %v13836_v43 = vld [vmem:[%s15491_s16 + $0x6e8] ss:$48 sps:$4 sm:$0xff]  }
 0xc27   : > { %8075 = vmatprep.subr.bf16.mxu1 %v13790_v25  ;;  %v13841_v25 = vld [vmem:[%s15491_s16 + $0x8c] ss:$48 sps:$4 sm:$0xff]  }
 0xc29   : > { %8103 = vmatpush1.bf16.msra.mxu0 %v13785_v28  ;;  %v13844_v28 = vld [vmem:[%s15491_s16 + $0x68c] ss:$48 sps:$4 sm:$0xff]  }
 0xc2a   : > { %8076 = vmatpush2.bf16.msra.mxu1 %v13788_v44  ;;  %8104 = vmatprep.subr.bf16.mxu0 %v13793_v40  ;;  %v13839_v40 = vld [vmem:[%s15491_s16 + $0x88] ss:$48 sps:$4 sm:$0xff]  }
 0xc2b   : > { %8077 = vmatprep.subr.bf16.mxu1 %v13796_v22 }
 0xc2d   : > { %8105 = vmatpush1.bf16.msra.mxu0 %v13791_v52  ;;  %v13842_v52 = vld [vmem:[%s15491_s16 + $0x688] ss:$48 sps:$4 sm:$0xff]  }
 0xc2e   : > { %8078 = vmatpush2.bf16.msra.mxu1 %v13794_v45  ;;  %8106 = vmatprep.subr.bf16.mxu0 %v13799_v21  ;;  %v13847_v45 = vld [vmem:[%s15491_s16 + $0x2c] ss:$48 sps:$4 sm:$0xff]  }
 0xc2f   : > { %8079 = vmatprep.subr.bf16.mxu1 %v13802_v46  ;;  %v13850_v46 = vld [vmem:[%s15491_s16 + $0x62c] ss:$48 sps:$4 sm:$0xff]  }
 0xc31   : > { %8107 = vmatpush1.bf16.msra.mxu0 %v13797_v60 }
 0xc32   : > { %8080 = vmatpush2.bf16.msra.mxu1 %v13800_v30  ;;  %8135 = vmatprep.subr.bf16.mxu0 %v13805_v20  ;;  %v13845_v30 = vld [vmem:[%s15491_s16 + $0x28] ss:$48 sps:$4 sm:$0xff]  }
 0xc33   : > { %8178 = vmatprep.subr.bf16.mxu1 %v13808_v53  ;;  %v13848_v53 = vld [vmem:[%s15491_s16 + $0x628] ss:$48 sps:$4 sm:$0xff]  }
 0xc34   : > { %8125 = vmatmul.mubr.bf16.vlgmr.msra.gmra.mxu0 %v16367_v34  ;;  %v7782_v59 = vpop.f32.mrf.mxu0 }
 0xc35   : > { %8082 = vmatmul.mubr.bf16.vlgmr.msra.gmra.mxu1 %v16370_v37  ;;  %8136 = vmatpush1.bf16.msra.mxu0 %v13803_v5  ;;  %v7739_v38 = vpop.f32.mrf.mxu1  ;;  %v13853_v5 = vld [vmem:[%s15491_s16 + $0x5cc] ss:$48 sps:$4 sm:$0xff]  }
 0xc36   : > { %8167 = vmatprep.mubr.bf16.mxu0 %v16365_v61  ;;  %v7740_v50 = vadd.f32 %v7739_v38, %v6208_v57  ;;  %8179 = vmatpush1.bf16.msra.mxu1 %v13806_v56  ;;  %v7784_v62 = vpop.f32.mrf.mxu0  ;;  %v13856_v56 = vld [vmem:[%s15500_s1 + $0xac] ss:$12 sps:$4 sm:$0xff]   ;;  %v13859_v38 = vld [vmem:[%s15491_s16 + $0x56c] ss:$48 sps:$4 sm:$0xff]  }
 0xc37   : > { %v7741_v0 = vpop.f32.mrf.mxu1  ;;  %8137 = vmatprep.subr.bf16.mxu0 %v13811_v48  ;;  %8180 = vmatprep.subr.bf16.mxu1 %v13814_v35  ;;  %v13851_v48 = vld [vmem:[%s15491_s16 + $0x5c8] ss:$48 sps:$4 sm:$0xff]  }
 0xc38   : > { %v7783_v1 = vadd.f32 %v7782_v59, %v7740_v50  ;;  %8210 = vmatprep.mubr.bf16.mxu1 %v14911_v63  ;;  %v7786_v8 = vpop.f32.mrf.mxu0  ;;  %v13821_v63 = vld [vmem:[%s15491_s16 + $0x1a8] ss:$48 sps:$4 sm:$0xff]   ;;  %v7742_v22 = vadd.f32 %v7741_v0, %v6212_v41  ;;  %v13854_v59 = vld [vmem:[%s15500_s1 + $0xa8] ss:$12 sps:$4 sm:$0xff]  }
 0xc39   : > { %8138 = vmatpush1.bf16.msra.mxu0 %v13809_v51  ;;  %v7743_v31 = vpop.f32.mrf.mxu1  ;;  %v13862_v51 = vld [vmem:[%s15500_s1 + $0x94] ss:$12 sps:$4 sm:$0xff]   ;;  %v13868_v0 = vld [vmem:[%s15500_s1 + $0x7c] ss:$12 sps:$4 sm:$0xff]  }
 0xc3a   : > { %v7744_v61 = vadd.f32 %v7743_v31, %v6208_v57  ;;  %8181 = vmatpush1.bf16.msra.mxu1 %v13812_v54  ;;  %8139 = vmatprep.subr.bf16.mxu0 %v13817_v36  ;;  %v8221_v11 = vmax.f32 %v7783_v1, 0.0  ;;  %v7788_v21 = vpop.f32.mrf.mxu0  ;;  %v7785_v20 = vadd.f32 %v7784_v62, %v7742_v22  ;;  %v13857_v54 = vld [vmem:[%s15491_s16 + $0x568] ss:$48 sps:$4 sm:$0xff]   ;;  %v13865_v62 = vld [vmem:[%s15491_s16 + $0x50c] ss:$48 sps:$4 sm:$0xff]  }
 0xc3b   : > { %8182 = vmatprep.subr.bf16.mxu1 %v13820_v47  ;;  %v7745_v9 = vpop.f32.mrf.mxu1  ;;  %v13860_v36 = vld [vmem:[%s15500_s1 + $0x90] ss:$12 sps:$4 sm:$0xff]   ;;  %v13871_v1 = vld [vmem:[%s15491_s16 + $0x4ac] ss:$48 sps:$4 sm:$0xff]  }
 0xc3c   : > { %v7787_v10 = vadd.f32 %v7786_v8, %v7744_v61  ;;  %v7746_v44 = vadd.f32 %v7745_v9, %v6212_v41  ;;  %v8222_v35 = vmax.f32 %v7785_v20, 0.0  ;;  %v13863_v47 = vld [vmem:[%s15491_s16 + $0x508] ss:$48 sps:$4 sm:$0xff]   ;;  %v13904_v41 = vld [vmem:[%s15500_s1 + $0x16c] ss:$12 sps:$4 sm:$0xff]  }
 0xc3d   : > { %8140 = vmatpush1.bf16.msra.mxu0 %v13815_v3  ;;  %v13874_v31 = vld [vmem:[%s15500_s1 + $0x64] ss:$12 sps:$4 sm:$0xff]   ;;  %v13872_v61 = vld [vmem:[%s15500_s1 + $0x60] ss:$12 sps:$4 sm:$0xff]   ;;  %v13913_v20 = vld [vmem:[%s15500_s1 + $0x1fc] ss:$12 sps:$4 sm:$0xff]  }
 0xc3e   : > { %v8233_v12 = vmax.f32 %v7787_v10, 0.0  ;;  %8183 = vmatpush1.bf16.msra.mxu1 %v13818_v7  ;;  %8141 = vmatprep.subr.bf16.mxu0 %v13823_v6  ;;  %v7789_v60 = vadd.f32 %v7788_v21, %v7746_v44  ;;  %v13869_v3 = vld [vmem:[%s15491_s16 + $0x4a8] ss:$48 sps:$4 sm:$0xff]   ;;  %v13877_v7 = vld [vmem:[%s15491_s16 + $0x44c] ss:$48 sps:$4 sm:$0xff]  }
 0xc3f   : > { %8184 = vmatprep.subr.bf16.mxu1 %v13826_v13  ;;  %v13880_v6 = vld [vmem:[%s15500_s1 + $0x4c] ss:$12 sps:$4 sm:$0xff]   ;;  %v13875_v8 = vld [vmem:[%s15491_s16 + $0x448] ss:$48 sps:$4 sm:$0xff]   ;;  %v13878_v13 = vld [vmem:[%s15500_s1 + $0x48] ss:$12 sps:$4 sm:$0xff]  }
 0xc40   : > { %v16604_v19 = vpack.c.bf16 %v8233_v12, %v8221_v11  ;;  %v8234_v57 = vmax.f32 %v7789_v60, 0.0  ;;  %v13883_v10 = vld [vmem:[%s15491_s16 + $0x3ec] ss:$48 sps:$4 sm:$0xff]   ;;  %v13881_v11 = vld [vmem:[%s15491_s16 + $0x3e8] ss:$48 sps:$4 sm:$0xff]  }
 0xc41   : > { %8142 = vmatpush1.bf16.msra.mxu0 %v13821_v63  ;;  %v13886_v63 = vld [vmem:[%s15500_s1 + $0x34] ss:$12 sps:$4 sm:$0xff]   ;;  %v13884_v12 = vld [vmem:[%s15500_s1 + $0x30] ss:$12 sps:$4 sm:$0xff]  }
 0xc42   : > { %8185 = vmatpush1.bf16.msra.mxu1 %v13824_v17  ;;  %8143 = vmatprep.subr.bf16.mxu0 %v13829_v42  ;;  %v16628_v50 = vpack.c.bf16 %v8234_v57, %v8222_v35  ;;  %v13889_v17 = vld [vmem:[%s15491_s16 + $0x38c] ss:$48 sps:$4 sm:$0xff]   ;;  %v13892_v42 = vld [vmem:[%s15500_s1 + $0x1c] ss:$12 sps:$4 sm:$0xff]   ;;  %v13896_v9 = vld [vmem:[%s15500_s1] ss:$12 sps:$4 sm:$0xff]  }
 0xc43   : > { %8186 = vmatprep.subr.bf16.mxu1 %v13832_v2  ;;  %v13887_v2 = vld [vmem:[%s15491_s16 + $0x388] ss:$48 sps:$4 sm:$0xff]   ;;  %v13902_v44 = vld [vmem:[%s15500_s1 + $0x168] ss:$12 sps:$4 sm:$0xff]   ;;  %v13914_v35 = vld [vmem:[%s15500_s1 + $0x138] ss:$12 sps:$4 sm:$0xff]  }
 0xc45   : > { %8144 = vmatpush1.bf16.msra.mxu0 %v13827_v26  ;;  %v13890_v26 = vld [vmem:[%s15500_s1 + $0x18] ss:$12 sps:$4 sm:$0xff]  }
 0xc46   : > { %8187 = vmatpush1.bf16.msra.mxu1 %v13830_v27  ;;  %8145 = vmatprep.subr.bf16.mxu0 %v13835_v29  ;;  %v13895_v27 = vld [vmem:[%s15491_s16 + $0x32c] ss:$48 sps:$4 sm:$0xff]  }
 0xc47   : > { %8188 = vmatprep.subr.bf16.mxu1 %v13838_v33  ;;  %v13898_v29 = vld [vmem:[%s15500_s1 + $0x4] ss:$12 sps:$4 sm:$0xff]  }
 0xc48   : > { %v13893_v33 = vld [vmem:[%s15491_s16 + $0x328] ss:$48 sps:$4 sm:$0xff]  }
 0xc49   : > { %8146 = vmatpush1.bf16.msra.mxu0 %v13833_v24  ;;  %v13901_v24 = vld [vmem:[%s15500_s1 + $0x22c] ss:$12 sps:$4 sm:$0xff]  }
 0xc4a   : > { %8189 = vmatpush1.bf16.msra.mxu1 %v13836_v43  ;;  %8147 = vmatprep.subr.bf16.mxu0 %v13841_v25  ;;  %v6219_v43 = vsub.s32 3, %v15605_v14 }
 0xc4b   : > { %8190 = vmatprep.subr.bf16.mxu1 %v13844_v28  ;;  %v13899_v28 = vld [vmem:[%s15500_s1 + $0x228] ss:$12 sps:$4 sm:$0xff]  }
 0xc4c   : > { %v6220_v22 = vrot.slane %v16580_v55, %v6219_v43 }
 0xc4d   : > { %8148 = vmatpush1.bf16.msra.mxu0 %v13839_v40  ;;  %v13907_v40 = vld [vmem:[%s15500_s1 + $0x214] ss:$12 sps:$4 sm:$0xff]  }
 0xc4e   : > { %8191 = vmatpush1.bf16.msra.mxu1 %v13842_v52  ;;  %8149 = vmatprep.subr.bf16.mxu0 %v13847_v45  ;;  %v13910_v52 = vld [vmem:[%s15500_s1 + $0x154] ss:$12 sps:$4 sm:$0xff]  }
 0xc4f   : > { %8192 = vmatprep.subr.bf16.mxu1 %v13850_v46  ;;  %v13905_v46 = vld [vmem:[%s15500_s1 + $0x210] ss:$12 sps:$4 sm:$0xff]  }
 0xc51   : > { %8150 = vmatpush1.bf16.msra.mxu0 %v13845_v30  ;;  %v13908_v30 = vld [vmem:[%s15500_s1 + $0x150] ss:$12 sps:$4 sm:$0xff]  }
 0xc52   : > { %8193 = vmatpush1.bf16.msra.mxu1 %v13848_v53  ;;  %8151 = vmatprep.subr.bf16.mxu0 %v13853_v5  ;;  %v13916_v5 = vld [vmem:[%s15500_s1 + $0x13c] ss:$12 sps:$4 sm:$0xff]  }
 0xc53   : > { %10194 = vmatprep.subr.bf16.mxu1 %v13856_v56 }
 0xc55   : > { %8152 = vmatpush2.bf16.msra.mxu0 %v13851_v48  ;;  %8211 = vmatmul.mubr.bf16.vlgmr.msra.gmra.mxu1 %v16367_v34  ;;  %v13866_v34 = vld [vmem:[%s15500_s1 + $0x78] ss:$12 sps:$4 sm:$0xff]   ;;  %v16661_v25 = vpop.f32.mrf.mxu1 }
 0xc56   : > { %10195 = vmatpush1.bf16.msra.mxu1 %v13854_v59  ;;  %10226 = vmatprep.mubr.bf16.mxu1 %v16628_v50  ;;  %v13919_v59 = vld [vmem:[%s15500_s1 + $0x1e4] ss:$12 sps:$4 sm:$0xff]  }
 0xc57   : > { %8153 = vmatprep.subr.bf16.mxu0 %v13859_v38  ;;  %10196 = vmatprep.subr.bf16.mxu1 %v13862_v51  ;;  %v7870_v45 = vpop.f32.mrf.mxu1 }
 0xc59   : > { %8154 = vmatpush2.bf16.msra.mxu0 %v13857_v54  ;;  %v16677_v56 = vpop.f32.mrf.mxu1  ;;  %v13922_v54 = vld [vmem:[%s15500_s1 + $0x124] ss:$12 sps:$4 sm:$0xff]  }
 0xc5a   : > { %10197 = vmatpush1.bf16.msra.mxu1 %v13860_v36  ;;  %8155 = vmatprep.subr.bf16.mxu0 %v13865_v62 }
 0xc5b   : > { %10198 = vmatprep.subr.bf16.mxu1 %v13868_v0  ;;  %v7874_v36 = vpop.f32.mrf.mxu1  ;;  %v13917_v0 = vld [vmem:[%s15500_s1 + $0x1e0] ss:$12 sps:$4 sm:$0xff]  }
 0xc5d   : > { %8156 = vmatpush2.bf16.msra.mxu0 %v13863_v47  ;;  %v13920_v47 = vld [vmem:[%s15500_s1 + $0x120] ss:$12 sps:$4 sm:$0xff]  }
 0xc5e   : > { %10199 = vmatpush1.bf16.msra.mxu1 %v13866_v34  ;;  %8157 = vmatprep.subr.bf16.mxu0 %v13871_v1  ;;  %v13925_v34 = vld [vmem:[%s15500_s1 + $0x1cc] ss:$12 sps:$4 sm:$0xff]  }
 0xc5f   : > { %10200 = vmatprep.subr.bf16.mxu1 %v13874_v31 }
 0xc61   : > { %8158 = vmatpush2.bf16.msra.mxu0 %v13869_v3  ;;  %v13928_v3 = vld [vmem:[%s15500_s1 + $0x10c] ss:$12 sps:$4 sm:$0xff]  }
 0xc62   : > { %10201 = vmatpush1.bf16.msra.mxu1 %v13872_v61  ;;  %8159 = vmatprep.subr.bf16.mxu0 %v13877_v7  ;;  %v13923_v7 = vld [vmem:[%s15500_s1 + $0x1c8] ss:$12 sps:$4 sm:$0xff]  }
 0xc63   : > { %10202 = vmatprep.subr.bf16.mxu1 %v13880_v6  ;;  %v13926_v6 = vld [vmem:[%s15500_s1 + $0x108] ss:$12 sps:$4 sm:$0xff]  }
 0xc65   : > { %8160 = vmatpush2.bf16.msra.mxu0 %v13875_v8  ;;  %v13931_v8 = vld [vmem:[%s15500_s1 + $0x1b4] ss:$12 sps:$4 sm:$0xff]  }
 0xc66   : > { %10203 = vmatpush1.bf16.msra.mxu1 %v13878_v13  ;;  %8161 = vmatprep.subr.bf16.mxu0 %v13883_v10  ;;  %v13934_v13 = vld [vmem:[%s15500_s1 + $0xf4] ss:$12 sps:$4 sm:$0xff]   ;;  %v13929_v10 = vld [vmem:[%s15500_s1 + $0x1b0] ss:$12 sps:$4 sm:$0xff]  }
 0xc67   : > { %10204 = vmatprep.subr.bf16.mxu1 %v13886_v63  ;;  %v13932_v63 = vld [vmem:[%s15500_s1 + $0xf0] ss:$12 sps:$4 sm:$0xff]  }
 0xc69   : > { %8162 = vmatpush2.bf16.msra.mxu0 %v13881_v11  ;;  %v13937_v11 = vld [vmem:[%s15500_s1 + $0x19c] ss:$12 sps:$4 sm:$0xff]  }
 0xc6a   : > { %10205 = vmatpush1.bf16.msra.mxu1 %v13884_v12  ;;  %8163 = vmatprep.subr.bf16.mxu0 %v13889_v17  ;;  %v13940_v12 = vld [vmem:[%s15500_s1 + $0xdc] ss:$12 sps:$4 sm:$0xff]   ;;  %v13935_v17 = vld [vmem:[%s15500_s1 + $0x198] ss:$12 sps:$4 sm:$0xff]  }
 0xc6b   : > { %10206 = vmatprep.subr.bf16.mxu1 %v13892_v42  ;;  %v13938_v42 = vld [vmem:[%s15500_s1 + $0xd8] ss:$12 sps:$4 sm:$0xff]  }
 0xc6d   : > { %8164 = vmatpush2.bf16.msra.mxu0 %v13887_v2  ;;  %v13943_v2 = vld [vmem:[%s15500_s1 + $0x184] ss:$12 sps:$4 sm:$0xff]  }
 0xc6e   : > { %10207 = vmatpush1.bf16.msra.mxu1 %v13890_v26  ;;  %8165 = vmatprep.subr.bf16.mxu0 %v13895_v27  ;;  %v13946_v26 = vld [vmem:[%s15500_s1 + $0xc4] ss:$12 sps:$4 sm:$0xff]   ;;  %v13941_v27 = vld [vmem:[%s15500_s1 + $0x180] ss:$12 sps:$4 sm:$0xff]  }
 0xc6f   : > { %10208 = vmatprep.subr.bf16.mxu1 %v13898_v29  ;;  %v13944_v29 = vld [vmem:[%s15500_s1 + $0xc0] ss:$12 sps:$4 sm:$0xff]  }
 0xc71   : > { %8166 = vmatpush2.bf16.msra.mxu0 %v13893_v33  ;;  %v13949_v33 = vld [vmem:[%s15500_s1 + $0x2ec] ss:$12 sps:$4 sm:$0xff]  }
 0xc72   : > { %10209 = vmatpush1.bf16.msra.mxu1 %v13896_v9  ;;  %10237 = vmatprep.subr.bf16.mxu0 %v13901_v24  ;;  %v13952_v9 = vld [vmem:[%s15500_s1 + $0x3ac] ss:$12 sps:$4 sm:$0xff]   ;;  %v6227_v24 = vsub.s32 5, %v15605_v14 }
 0xc73   : > { %10210 = vmatprep.subr.bf16.mxu1 %v13904_v41  ;;  %v13947_v41 = vld [vmem:[%s15500_s1 + $0x2e8] ss:$12 sps:$4 sm:$0xff]  }
 0xc74   : > { %v16670_v21 = vpop.f32.mrf.mxu0  ;;  %8168 = vmatmul.mubr.bf16.vlgmr.msra.gmra.mxu0 %v16370_v37  ;;  %v13911_v37 = vld [vmem:[%s15500_s1 + $0x1f8] ss:$12 sps:$4 sm:$0xff]  }
 0xc75   : > { %10238 = vmatpush1.bf16.msra.mxu0 %v13899_v28  ;;  %v13950_v28 = vld [vmem:[%s15500_s1 + $0x3a8] ss:$12 sps:$4 sm:$0xff]  }
 0xc76   : > { %v7827_v60 = vpop.f32.mrf.mxu0  ;;  %10211 = vmatpush2.bf16.msra.mxu1 %v13902_v44  ;;  %10239 = vmatprep.subr.bf16.mxu0 %v13907_v40  ;;  %v13955_v44 = vld [vmem:[%s15500_s1 + $0x2d4] ss:$12 sps:$4 sm:$0xff]  }
 0xc77   : > { %v7828_v53 = vadd.f32 %v7827_v60, %v6220_v22  ;;  %10212 = vmatprep.subr.bf16.mxu1 %v13910_v52  ;;  %v13958_v40 = vld [vmem:[%s15500_s1 + $0x394] ss:$12 sps:$4 sm:$0xff]   ;;  %v6228_v52 = vrot.slane %v16580_v55, %v6227_v24 }
 0xc78   : > { %v16679_v57 = vpop.f32.mrf.mxu0 }
 0xc79   : > { %10240 = vmatpush1.bf16.msra.mxu0 %v13905_v46  ;;  %v7871_v38 = vadd.f32 %v7870_v45, %v7828_v53  ;;  %v13953_v46 = vld [vmem:[%s15500_s1 + $0x2d0] ss:$12 sps:$4 sm:$0xff]  }
 0xc7a   : > { %v7831_v48 = vpop.f32.mrf.mxu0  ;;  %10213 = vmatpush2.bf16.msra.mxu1 %v13908_v30  ;;  %10241 = vmatprep.subr.bf16.mxu0 %v13913_v20  ;;  %v13956_v30 = vld [vmem:[%s15500_s1 + $0x390] ss:$12 sps:$4 sm:$0xff]  }
 0xc7b   : > { %v7832_v51 = vadd.f32 %v7831_v48, %v6220_v22  ;;  %10214 = vmatprep.subr.bf16.mxu1 %v13916_v5  ;;  %v8224_v1 = vmax.f32 %v7871_v38, 0.0  ;;  %v13961_v20 = vld [vmem:[%s15500_s1 + $0x2bc] ss:$12 sps:$4 sm:$0xff]   ;;  %v13962_v38 = vld [vmem:[%s15500_s1 + $0x378] ss:$12 sps:$4 sm:$0xff]  }
 0xc7c   : > { %v13964_v5 = vld [vmem:[%s15500_s1 + $0x37c] ss:$12 sps:$4 sm:$0xff]  }
 0xc7d   : > { %v7875_v62 = vadd.f32 %v7874_v36, %v7832_v51  ;;  %10242 = vmatpush1.bf16.msra.mxu0 %v13911_v37  ;;  %v13967_v51 = vld [vmem:[%s15500_s1 + $0x2a4] ss:$12 sps:$4 sm:$0xff]  }
 0xc7e   : > { %10215 = vmatpush2.bf16.msra.mxu1 %v13914_v35  ;;  %10243 = vmatprep.subr.bf16.mxu0 %v13919_v59  ;;  %v13959_v59 = vld [vmem:[%s15500_s1 + $0x2b8] ss:$12 sps:$4 sm:$0xff]  }
 0xc7f   : > { %v8236_v31 = vmax.f32 %v7875_v62, 0.0  ;;  %10216 = vmatprep.subr.bf16.mxu1 %v13922_v54  ;;  %v13970_v36 = vld [vmem:[%s15500_s1 + $0x364] ss:$12 sps:$4 sm:$0xff]  }
 0xc81   : > { %10244 = vmatpush1.bf16.msra.mxu0 %v13917_v0  ;;  %v16689_v61 = vpack.c.bf16 %v8236_v31, %v8224_v1  ;;  %v13968_v31 = vld [vmem:[%s15500_s1 + $0x360] ss:$12 sps:$4 sm:$0xff]  }
 0xc82   : > { %10217 = vmatpush2.bf16.msra.mxu1 %v13920_v47  ;;  %10245 = vmatprep.subr.bf16.mxu0 %v13925_v34  ;;  %v13965_v34 = vld [vmem:[%s15500_s1 + $0x2a0] ss:$12 sps:$4 sm:$0xff]  }
 0xc83   : > { %10269 = vmatprep.mubr.bf16.mxu0 %v16689_v61  ;;  %10218 = vmatprep.subr.bf16.mxu1 %v13928_v3  ;;  %v13973_v3 = vld [vmem:[%s15500_s1 + $0x28c] ss:$12 sps:$4 sm:$0xff]  }
 0xc85   : > { %10246 = vmatpush1.bf16.msra.mxu0 %v13923_v7  ;;  %v13976_v7 = vld [vmem:[%s15500_s1 + $0x34c] ss:$12 sps:$4 sm:$0xff]  }
 0xc86   : > { %10219 = vmatpush2.bf16.msra.mxu1 %v13926_v6  ;;  %10247 = vmatprep.subr.bf16.mxu0 %v13931_v8 }
 0xc87   : > { %10220 = vmatprep.subr.bf16.mxu1 %v13934_v13  ;;  %v13971_v13 = vld [vmem:[%s15500_s1 + $0x288] ss:$12 sps:$4 sm:$0xff]  }
 0xc89   : > { %10248 = vmatpush1.bf16.msra.mxu0 %v13929_v10 }
 0xc8a   : > { %10221 = vmatpush2.bf16.msra.mxu1 %v13932_v63  ;;  %10249 = vmatprep.subr.bf16.mxu0 %v13937_v11  ;;  %v13974_v63 = vld [vmem:[%s15500_s1 + $0x348] ss:$12 sps:$4 sm:$0xff]  }
 0xc8b   : > { %10222 = vmatprep.subr.bf16.mxu1 %v13940_v12  ;;  %v13979_v11 = vld [vmem:[%s15500_s1 + $0x274] ss:$12 sps:$4 sm:$0xff]  }
 0xc8c   : > { %v13982_v12 = vld [vmem:[%s15500_s1 + $0x334] ss:$12 sps:$4 sm:$0xff]  }
 0xc8d   : > { %10250 = vmatpush1.bf16.msra.mxu0 %v13935_v17  ;;  %v6216_v17 = vrot.slane %v16580_v55, %v15611_v16 }
 0xc8e   : > { %10223 = vmatpush2.bf16.msra.mxu1 %v13938_v42  ;;  %10251 = vmatprep.subr.bf16.mxu0 %v13943_v2  ;;  %v13977_v42 = vld [vmem:[%s15500_s1 + $0x270] ss:$12 sps:$4 sm:$0xff]  }
 0xc8f   : > { %10224 = vmatprep.subr.bf16.mxu1 %v13946_v26  ;;  %v7830_v2 = vadd.f32 %v16679_v57, %v6216_v17  ;;  %v13980_v26 = vld [vmem:[%s15500_s1 + $0x330] ss:$12 sps:$4 sm:$0xff]   ;;  %v13986_v57 = vld [vmem:[%s15500_s1 + $0x318] ss:$12 sps:$4 sm:$0xff]  }
 0xc91   : > { %10252 = vmatpush1.bf16.msra.mxu0 %v13941_v27  ;;  %v13985_v27 = vld [vmem:[%s15500_s1 + $0x25c] ss:$12 sps:$4 sm:$0xff]   ;;  %v7873_v24 = vadd.f32 %v16677_v56, %v7830_v2  ;;  %v13997_v56 = vld [vmem:[%s15500_s1 + $0x52c] ss:$12 sps:$4 sm:$0xff]  }
 0xc92   : > { %10225 = vmatpush2.bf16.msra.mxu1 %v13944_v29  ;;  %10253 = vmatprep.subr.bf16.mxu0 %v13949_v33  ;;  %v13988_v29 = vld [vmem:[%s15500_s1 + $0x31c] ss:$12 sps:$4 sm:$0xff]   ;;  %v7826_v33 = vadd.f32 %v16670_v21, %v6216_v17  ;;  %v13989_v21 = vld [vmem:[%s15500_s1 + $0x240] ss:$12 sps:$4 sm:$0xff]  }
 0xc93   : > { %10280 = vmatprep.subr.bf16.mxu1 %v13952_v9  ;;  %v13983_v9 = vld [vmem:[%s15500_s1 + $0x258] ss:$12 sps:$4 sm:$0xff]   ;;  %v14033_v17 = vld [vmem:[%s15500_s1 + $0x49c] ss:$12 sps:$4 sm:$0xff]  }
 0xc94   : > { %v16713_v22 = vpop.f32.mrf.mxu0  ;;  %v14036_v2 = vld [vmem:[%s15500_s1 + $0x3dc] ss:$12 sps:$4 sm:$0xff]  }
 0xc95   : > { %v16716_v45 = vpop.f32.mrf.mxu1  ;;  %10227 = vmatmul.mubr.bf16.vlgmr.msra.gmra.mxu1 %v16604_v19  ;;  %10254 = vmatpush2.bf16.msra.mxu0 %v13947_v41  ;;  %v13991_v41 = vld [vmem:[%s15500_s1 + $0x244] ss:$12 sps:$4 sm:$0xff]  }
 0xc96   : > { %v7956_v60 = vpop.f32.mrf.mxu0  ;;  %10281 = vmatpush1.bf16.msra.mxu1 %v13950_v28  ;;  %10255 = vmatprep.subr.bf16.mxu0 %v13955_v44  ;;  %v13994_v28 = vld [vmem:[%s15500_s1 + $0x304] ss:$12 sps:$4 sm:$0xff]   ;;  %v7869_v44 = vadd.f32 %v16661_v25, %v7826_v33 }
 0xc97   : > { %v7913_v53 = vpop.f32.mrf.mxu1  ;;  %10282 = vmatprep.subr.bf16.mxu1 %v13958_v40  ;;  %v8235_v40 = vmax.f32 %v7873_v24, 0.0  ;;  %v14039_v33 = vld [vmem:[%s15500_s1 + $0x484] ss:$12 sps:$4 sm:$0xff]  }
 0xc98   : > { %v7914_v37 = vadd.f32 %v7913_v53, %v6228_v52  ;;  %v16723_v48 = vpop.f32.mrf.mxu0  ;;  %v14003_v53 = vld [vmem:[%s15500_s1 + $0x514] ss:$12 sps:$4 sm:$0xff]   ;;  %v14042_v24 = vld [vmem:[%s15500_s1 + $0x3c4] ss:$12 sps:$4 sm:$0xff]  }
 0xc99   : > { %v16725_v35 = vpop.f32.mrf.mxu1  ;;  %10256 = vmatpush2.bf16.msra.mxu0 %v13953_v46  ;;  %v14000_v46 = vld [vmem:[%s15500_s1 + $0x46c] ss:$12 sps:$4 sm:$0xff]  }
 0xc9a   : > { %10283 = vmatpush1.bf16.msra.mxu1 %v13956_v30  ;;  %10257 = vmatprep.subr.bf16.mxu0 %v13961_v20  ;;  %v7957_v62 = vadd.f32 %v7956_v60, %v7914_v37  ;;  %v7960_v47 = vpop.f32.mrf.mxu0  ;;  %v8223_v60 = vmax.f32 %v7869_v44, 0.0  ;;  %v13995_v30 = vld [vmem:[%s15500_s1 + $0x528] ss:$12 sps:$4 sm:$0xff]   ;;  %v14001_v37 = vld [vmem:[%s15500_s1 + $0x510] ss:$12 sps:$4 sm:$0xff]  }
 0xc9b   : > { %v7917_v54 = vpop.f32.mrf.mxu1  ;;  %10284 = vmatprep.subr.bf16.mxu1 %v13964_v5  ;;  %v13998_v20 = vld [vmem:[%s15500_s1 + $0x468] ss:$12 sps:$4 sm:$0xff]   ;;  %v14048_v44 = vld [vmem:[%s15500_s1 + $0x6ac] ss:$12 sps:$4 sm:$0xff]  }
 0xc9c   : > { %v7918_v0 = vadd.f32 %v7917_v54, %v6228_v52  ;;  %v8226_v6 = vmax.f32 %v7957_v62, 0.0  ;;  %v13992_v52 = vld [vmem:[%s15500_s1 + $0x300] ss:$12 sps:$4 sm:$0xff]   ;;  %v16761_v25 = vpack.c.bf16 %v8235_v40, %v8223_v60  ;;  %v14007_v54 = vld [vmem:[%s15500_s1 + $0x4f8] ss:$12 sps:$4 sm:$0xff]  }
 0xc9d   : > { %10258 = vmatpush2.bf16.msra.mxu0 %v13959_v59  ;;  %v14006_v5 = vld [vmem:[%s15500_s1 + $0x454] ss:$12 sps:$4 sm:$0xff]   ;;  %v14004_v59 = vld [vmem:[%s15500_s1 + $0x450] ss:$12 sps:$4 sm:$0xff]  }
 0xc9e   : > { %v7961_v1 = vadd.f32 %v7960_v47, %v7918_v0  ;;  %10285 = vmatpush1.bf16.msra.mxu1 %v13962_v38  ;;  %10259 = vmatprep.subr.bf16.mxu0 %v13967_v51  ;;  %v14009_v38 = vld [vmem:[%s15500_s1 + $0x4fc] ss:$12 sps:$4 sm:$0xff]   ;;  %v14015_v62 = vld [vmem:[%s15500_s1 + $0x4e4] ss:$12 sps:$4 sm:$0xff]   ;;  %v14013_v47 = vld [vmem:[%s15500_s1 + $0x4e0] ss:$12 sps:$4 sm:$0xff]  }
 0xc9f   : > { %10286 = vmatprep.subr.bf16.mxu1 %v13970_v36  ;;  %v14012_v51 = vld [vmem:[%s15500_s1 + $0x43c] ss:$12 sps:$4 sm:$0xff]   ;;  %v14010_v36 = vld [vmem:[%s15500_s1 + $0x438] ss:$12 sps:$4 sm:$0xff]  }
 0xca0   : > { %v8238_v8 = vmax.f32 %v7961_v1, 0.0  ;;  %v14018_v0 = vld [vmem:[%s15500_s1 + $0x424] ss:$12 sps:$4 sm:$0xff]   ;;  %v14021_v1 = vld [vmem:[%s15500_s1 + $0x4cc] ss:$12 sps:$4 sm:$0xff]  }
 0xca1   : > { %10260 = vmatpush2.bf16.msra.mxu0 %v13965_v34  ;;  %v14016_v34 = vld [vmem:[%s15500_s1 + $0x420] ss:$12 sps:$4 sm:$0xff]  }
 0xca2   : > { %10287 = vmatpush1.bf16.msra.mxu1 %v13968_v31  ;;  %10261 = vmatprep.subr.bf16.mxu0 %v13973_v3  ;;  %v16736_v10 = vpack.c.bf16 %v8238_v8, %v8226_v6  ;;  %v14024_v31 = vld [vmem:[%s15500_s1 + $0x40c] ss:$12 sps:$4 sm:$0xff]   ;;  %v6223_v3 = vsub.s32 4, %v15605_v14  ;;  %v14022_v6 = vld [vmem:[%s15500_s1 + $0x408] ss:$12 sps:$4 sm:$0xff]  }
 0xca3   : > { %10288 = vmatprep.subr.bf16.mxu1 %v13976_v7  ;;  %v14019_v7 = vld [vmem:[%s15500_s1 + $0x4c8] ss:$12 sps:$4 sm:$0xff]  }
 0xca4   : > { %10312 = vmatprep.mubr.bf16.mxu1 %v16736_v10  ;;  %v14027_v8 = vld [vmem:[%s15500_s1 + $0x4b4] ss:$12 sps:$4 sm:$0xff]  }
 0xca5   : > { %10262 = vmatpush2.bf16.msra.mxu0 %v13971_v13  ;;  %v14030_v13 = vld [vmem:[%s15500_s1 + $0x3f4] ss:$12 sps:$4 sm:$0xff]  }
 0xca6   : > { %10289 = vmatpush1.bf16.msra.mxu1 %v13974_v63  ;;  %10263 = vmatprep.subr.bf16.mxu0 %v13979_v11  ;;  %v6224_v63 = vrot.slane %v16580_v55, %v6223_v3  ;;  %v14025_v11 = vld [vmem:[%s15500_s1 + $0x4b0] ss:$12 sps:$4 sm:$0xff]  }
 0xca7   : > { %10290 = vmatprep.subr.bf16.mxu1 %v13982_v12  ;;  %v14028_v12 = vld [vmem:[%s15500_s1 + $0x3f0] ss:$12 sps:$4 sm:$0xff]  }
 0xca9   : > { %10264 = vmatpush2.bf16.msra.mxu0 %v13977_v42  ;;  %v7916_v42 = vadd.f32 %v16725_v35, %v6224_v63 }
 0xcaa   : > { %10291 = vmatpush1.bf16.msra.mxu1 %v13980_v26  ;;  %10265 = vmatprep.subr.bf16.mxu0 %v13985_v27  ;;  %v7912_v26 = vadd.f32 %v16716_v45, %v6224_v63  ;;  %v14031_v27 = vld [vmem:[%s15500_s1 + $0x498] ss:$12 sps:$4 sm:$0xff]   ;;  %v14040_v45 = vld [vmem:[%s15500_s1 + $0x3c0] ss:$12 sps:$4 sm:$0xff]  }
 0xcab   : > { %10292 = vmatprep.subr.bf16.mxu1 %v13988_v29  ;;  %v14034_v29 = vld [vmem:[%s15500_s1 + $0x3d8] ss:$12 sps:$4 sm:$0xff]   ;;  %v14064_v63 = vld [vmem:[%s15500_s1 + $0x660] ss:$12 sps:$4 sm:$0xff]  }
 0xcac   : > { %v7955_v35 = vadd.f32 %v16713_v22, %v7912_v26  ;;  %v14043_v22 = vld [vmem:[%s15500_s1 + $0x5e8] ss:$12 sps:$4 sm:$0xff]  }
 0xcad   : > { %10266 = vmatpush2.bf16.msra.mxu0 %v13983_v9  ;;  %v7959_v9 = vadd.f32 %v16723_v48, %v7916_v42  ;;  %v14072_v42 = vld [vmem:[%s15500_s1 + $0x64c] ss:$12 sps:$4 sm:$0xff]  }
 0xcae   : > { %10293 = vmatpush1.bf16.msra.mxu1 %v13986_v57  ;;  %10267 = vmatprep.subr.bf16.mxu0 %v13991_v41  ;;  %v14037_v57 = vld [vmem:[%s15500_s1 + $0x480] ss:$12 sps:$4 sm:$0xff]   ;;  %v8225_v40 = vmax.f32 %v7955_v35, 0.0  ;;  %v14073_v35 = vld [vmem:[%s15500_s1 + $0x570] ss:$12 sps:$4 sm:$0xff]  }
 0xcaf   : > { %10294 = vmatprep.subr.bf16.mxu1 %v13994_v28  ;;  %v14045_v41 = vld [vmem:[%s15500_s1 + $0x5ec] ss:$12 sps:$4 sm:$0xff]   ;;  %v8237_v28 = vmax.f32 %v7959_v9, 0.0  ;;  %v14078_v9 = vld [vmem:[%s15500_s1 + $0x634] ss:$12 sps:$4 sm:$0xff]  }
 0xcb1   : > { %10268 = vmatpush2.bf16.msra.mxu0 %v13989_v21  ;;  %v6235_v21 = vsub.s32 7, %v15605_v14 }
 0xcb2   : > { %10295 = vmatpush1.bf16.msra.mxu1 %v13992_v52  ;;  %10323 = vmatprep.subr.bf16.mxu0 %v13997_v56  ;;  %v14046_v52 = vld [vmem:[%s15500_s1 + $0x6a8] ss:$12 sps:$4 sm:$0xff]  }
 0xcb3   : > { %10296 = vmatprep.subr.bf16.mxu1 %v14000_v46  ;;  %v14051_v56 = vld [vmem:[%s15500_s1 + $0x5d4] ss:$12 sps:$4 sm:$0xff]   ;;  %v16807_v46 = vpack.c.bf16 %v8237_v28, %v8225_v40  ;;  %v6236_v60 = vrot.slane %v16580_v55, %v6235_v21  ;;  %v14084_v28 = vld [vmem:[%s15500_s1 + $0x61c] ss:$12 sps:$4 sm:$0xff]   ;;  %v14079_v21 = vld [vmem:[%s15500_s1 + $0x558] ss:$12 sps:$4 sm:$0xff]  }
 0xcb4   : > { %10270 = vmatmul.mubr.bf16.vlgmr.msra.gmra.mxu0 %v16761_v25 }
 0xcb5   : > { %10324 = vmatpush1.bf16.msra.mxu0 %v13995_v30  ;;  %v16802_v48 = vpop.f32.mrf.mxu1  ;;  %v14054_v30 = vld [vmem:[%s15500_s1 + $0x694] ss:$12 sps:$4 sm:$0xff]  }
 0xcb6   : > { %10297 = vmatpush2.bf16.msra.mxu1 %v13998_v20  ;;  %10325 = vmatprep.subr.bf16.mxu0 %v14003_v53 }
 0xcb7   : > { %10298 = vmatprep.subr.bf16.mxu1 %v14006_v5  ;;  %v8042_v20 = vpop.f32.mrf.mxu1  ;;  %v14049_v5 = vld [vmem:[%s15500_s1 + $0x5d0] ss:$12 sps:$4 sm:$0xff]  }
 0xcb9   : > { %10326 = vmatpush1.bf16.msra.mxu0 %v14001_v37 }
 0xcba   : > { %10299 = vmatpush2.bf16.msra.mxu1 %v14004_v59  ;;  %10327 = vmatprep.subr.bf16.mxu0 %v14009_v38  ;;  %v14052_v59 = vld [vmem:[%s15500_s1 + $0x690] ss:$12 sps:$4 sm:$0xff]  }
 0xcbb   : > { %10300 = vmatprep.subr.bf16.mxu1 %v14012_v51  ;;  %v14057_v38 = vld [vmem:[%s15500_s1 + $0x5bc] ss:$12 sps:$4 sm:$0xff]  }
 0xcbd   : > { %10328 = vmatpush1.bf16.msra.mxu0 %v14007_v54  ;;  %v14060_v54 = vld [vmem:[%s15500_s1 + $0x67c] ss:$12 sps:$4 sm:$0xff]  }
 0xcbe   : > { %10301 = vmatpush2.bf16.msra.mxu1 %v14010_v36  ;;  %10329 = vmatprep.subr.bf16.mxu0 %v14015_v62  ;;  %v8044_v36 = vpop.f32.mrf.mxu1 }
 0xcbf   : > { %10302 = vmatprep.subr.bf16.mxu1 %v14018_v0  ;;  %v14055_v0 = vld [vmem:[%s15500_s1 + $0x5b8] ss:$12 sps:$4 sm:$0xff]  }
 0xcc1   : > { %10330 = vmatpush1.bf16.msra.mxu0 %v14013_v47 }
 0xcc2   : > { %10303 = vmatpush2.bf16.msra.mxu1 %v14016_v34  ;;  %10331 = vmatprep.subr.bf16.mxu0 %v14021_v1  ;;  %v14058_v34 = vld [vmem:[%s15500_s1 + $0x678] ss:$12 sps:$4 sm:$0xff]  }
 0xcc3   : > { %10304 = vmatprep.subr.bf16.mxu1 %v14024_v31  ;;  %v14063_v1 = vld [vmem:[%s15500_s1 + $0x5a4] ss:$12 sps:$4 sm:$0xff]  }
 0xcc5   : > { %10332 = vmatpush1.bf16.msra.mxu0 %v14019_v7  ;;  %v14066_v7 = vld [vmem:[%s15500_s1 + $0x664] ss:$12 sps:$4 sm:$0xff]  }
 0xcc6   : > { %10305 = vmatpush2.bf16.msra.mxu1 %v14022_v6  ;;  %10333 = vmatprep.subr.bf16.mxu0 %v14027_v8  ;;  %v8046_v6 = vpop.f32.mrf.mxu1 }
 0xcc7   : > { %10306 = vmatprep.subr.bf16.mxu1 %v14030_v13  ;;  %v14061_v13 = vld [vmem:[%s15500_s1 + $0x5a0] ss:$12 sps:$4 sm:$0xff]  }
 0xcc9   : > { %10334 = vmatpush1.bf16.msra.mxu0 %v14025_v11  ;;  %v14069_v11 = vld [vmem:[%s15500_s1 + $0x58c] ss:$12 sps:$4 sm:$0xff]  }
 0xcca   : > { %10307 = vmatpush2.bf16.msra.mxu1 %v14028_v12  ;;  %10335 = vmatprep.subr.bf16.mxu0 %v14033_v17 }
 0xccb   : > { %10308 = vmatprep.subr.bf16.mxu1 %v14036_v2  ;;  %v6231_v2 = vsub.s32 6, %v15605_v14  ;;  %v14180_v14 = vld [vmem:[%s15500_s1 + $0x440] ss:$12 sps:$4 sm:$0xff]  }
 0xccd   : > { %10336 = vmatpush1.bf16.msra.mxu0 %v14031_v27  ;;  %v14067_v27 = vld [vmem:[%s15500_s1 + $0x588] ss:$12 sps:$4 sm:$0xff]  }
 0xcce   : > { %10309 = vmatpush2.bf16.msra.mxu1 %v14034_v29  ;;  %10337 = vmatprep.subr.bf16.mxu0 %v14039_v33  ;;  %v14070_v29 = vld [vmem:[%s15500_s1 + $0x648] ss:$12 sps:$4 sm:$0xff]  }
 0xccf   : > { %10310 = vmatprep.subr.bf16.mxu1 %v14042_v24  ;;  %v14075_v33 = vld [vmem:[%s15500_s1 + $0x574] ss:$12 sps:$4 sm:$0xff]   ;;  %v6232_v24 = vrot.slane %v16580_v55, %v6231_v2  ;;  %v14082_v55 = vld [vmem:[%s15500_s1 + $0x618] ss:$12 sps:$4 sm:$0xff]  }
 0xcd0   : > { %v14102_v2 = vld [vmem:[%s15500_s1 + $0x724] ss:$12 sps:$4 sm:$0xff]  }
 0xcd1   : > { %10338 = vmatpush1.bf16.msra.mxu0 %v14037_v57 }
 0xcd2   : > { %10311 = vmatpush2.bf16.msra.mxu1 %v14040_v45  ;;  %10339 = vmatprep.subr.bf16.mxu0 %v14045_v41  ;;  %v14076_v45 = vld [vmem:[%s15500_s1 + $0x630] ss:$12 sps:$4 sm:$0xff]  }
 0xcd3   : > { %10366 = vmatprep.subr.bf16.mxu1 %v14048_v44  ;;  %v14081_v41 = vld [vmem:[%s15500_s1 + $0x55c] ss:$12 sps:$4 sm:$0xff]  }
 0xcd4   : > { %v7997_v53 = vpop.f32.mrf.mxu0 }
 0xcd5   : > { %10313 = vmatmul.mubr.bf16.vlgmr.msra.gmra.mxu1 %v16807_v46  ;;  %10340 = vmatpush2.bf16.msra.mxu0 %v14043_v22  ;;  %v7998_v44 = vadd.f32 %v7997_v53, %v6232_v24  ;;  %v14087_v22 = vld [vmem:[%s15500_s1 + $0x544] ss:$12 sps:$4 sm:$0xff]   ;;  %v14105_v53 = vld [vmem:[%s15500_s1 + $0x82c] ss:$12 sps:$4 sm:$0xff]  }
 0xcd6   : > { %v7999_v37 = vpop.f32.mrf.mxu0  ;;  %10367 = vmatpush1.bf16.msra.mxu1 %v14046_v52  ;;  %10341 = vmatprep.subr.bf16.mxu0 %v14051_v56  ;;  %v14090_v52 = vld [vmem:[%s15500_s1 + $0x604] ss:$12 sps:$4 sm:$0xff]  }
 0xcd7   : > { %v8000_v51 = vadd.f32 %v7999_v37, %v6236_v60  ;;  %10368 = vmatprep.subr.bf16.mxu1 %v14054_v30  ;;  %v8041_v56 = vadd.f32 %v16802_v48, %v7998_v44  ;;  %v14091_v48 = vld [vmem:[%s15500_s1 + $0x768] ss:$12 sps:$4 sm:$0xff]  }
 0xcd8   : > { %v8001_v62 = vpop.f32.mrf.mxu0  ;;  %v14127_v44 = vld [vmem:[%s15500_s1 + $0x7c8] ss:$12 sps:$4 sm:$0xff]  }
 0xcd9   : > { %10342 = vmatpush2.bf16.msra.mxu0 %v14049_v5  ;;  %v8043_v31 = vadd.f32 %v8042_v20, %v8000_v51  ;;  %v8002_v57 = vadd.f32 %v8001_v62, %v6232_v24  ;;  %v14088_v20 = vld [vmem:[%s15500_s1 + $0x600] ss:$12 sps:$4 sm:$0xff]   ;;  %v8227_v37 = vmax.f32 %v8041_v56, 0.0  ;;  %v14132_v56 = vld [vmem:[%s15500_s1 + $0x7b0] ss:$12 sps:$4 sm:$0xff]  }
 0xcda   : > { %v8003_v47 = vpop.f32.mrf.mxu0  ;;  %10369 = vmatpush1.bf16.msra.mxu1 %v14052_v59  ;;  %10343 = vmatprep.subr.bf16.mxu0 %v14057_v38  ;;  %v14093_v5 = vld [vmem:[%s15500_s1 + $0x76c] ss:$12 sps:$4 sm:$0xff]   ;;  %v14103_v59 = vld [vmem:[%s15500_s1 + $0x828] ss:$12 sps:$4 sm:$0xff]  }
 0xcdb   : > { %v8004_v3 = vadd.f32 %v8003_v47, %v6236_v60  ;;  %10370 = vmatprep.subr.bf16.mxu1 %v14060_v54  ;;  %v8228_v12 = vmax.f32 %v8043_v31, 0.0  ;;  %v8045_v40 = vadd.f32 %v8044_v36, %v8002_v57  ;;  %v14085_v60 = vld [vmem:[%s15500_s1 + $0x540] ss:$12 sps:$4 sm:$0xff]   ;;  %v16852_v54 = vld [vmem:[%s15494_s7 + $0x8] sm:$0xf] }
 0xcdc   : > { %v14111_v51 = vld [vmem:[%s15500_s1 + $0x814] ss:$12 sps:$4 sm:$0xff]   ;;  %v14094_v31 = vld [vmem:[%s15500_s1 + $0x750] ss:$12 sps:$4 sm:$0xff]   ;;  %v14129_v57 = vld [vmem:[%s15500_s1 + $0x7cc] ss:$12 sps:$4 sm:$0xff]  }
 0xcdd   : > { %v8047_v8 = vadd.f32 %v8046_v6, %v8004_v3  ;;  %10344 = vmatpush2.bf16.msra.mxu0 %v14055_v0  ;;  %v8239_v30 = vmax.f32 %v8045_v40, 0.0  ;;  %v14096_v36 = vld [vmem:[%s15500_s1 + $0x754] ss:$12 sps:$4 sm:$0xff]   ;;  %v6244_v0 = vrot.slane %v16852_v54, %v15608_v15  ;;  %v14117_v3 = vld [vmem:[%s15500_s1 + $0x7fc] ss:$12 sps:$4 sm:$0xff]  }
 0xcde   : > { %10371 = vmatpush1.bf16.msra.mxu1 %v14058_v34  ;;  %10345 = vmatprep.subr.bf16.mxu0 %v14063_v1  ;;  %v14109_v34 = vld [vmem:[%s15500_s1 + $0x810] ss:$12 sps:$4 sm:$0xff]   ;;  %v14106_v40 = vld [vmem:[%s15500_s1 + $0x708] ss:$12 sps:$4 sm:$0xff]  }
 0xcdf   : > { %v8240_v17 = vmax.f32 %v8047_v8, 0.0  ;;  %10372 = vmatprep.subr.bf16.mxu1 %v14066_v7  ;;  %v16847_v38 = vpack.c.bf16 %v8239_v30, %v8227_v37  ;;  %v14099_v6 = vld [vmem:[%s15500_s1 + $0x73c] ss:$12 sps:$4 sm:$0xff]   ;;  %v14137_v37 = vld [vmem:[%s15500_s1 + $0x798] ss:$12 sps:$4 sm:$0xff]  }
 0xce0   : > { %v14139_v30 = vld [vmem:[%s15500_s1 + $0x79c] ss:$12 sps:$4 sm:$0xff]  }
 0xce1   : > { %10346 = vmatpush2.bf16.msra.mxu0 %v14061_v13  ;;  %v16825_v26 = vpack.c.bf16 %v8240_v17, %v8228_v12  ;;  %v14097_v12 = vld [vmem:[%s15500_s1 + $0x738] ss:$12 sps:$4 sm:$0xff]  }
 0xce2   : > { %10373 = vmatpush1.bf16.msra.mxu1 %v14064_v63  ;;  %10347 = vmatprep.subr.bf16.mxu0 %v14069_v11  ;;  %v14115_v11 = vld [vmem:[%s15500_s1 + $0x7f8] ss:$12 sps:$4 sm:$0xff]  }
 0xce3   : > { %10355 = vmatprep.mubr.bf16.mxu0 %v16825_v26  ;;  %10374 = vmatprep.subr.bf16.mxu1 %v14072_v42  ;;  %v14123_v17 = vld [vmem:[%s15500_s1 + $0x7e4] ss:$12 sps:$4 sm:$0xff]  }
 0xce5   : > { %10348 = vmatpush2.bf16.msra.mxu0 %v14067_v27 }
 0xce6   : > { %10375 = vmatpush1.bf16.msra.mxu1 %v14070_v29  ;;  %10349 = vmatprep.subr.bf16.mxu0 %v14075_v33 }
 0xce7   : > { %10376 = vmatprep.subr.bf16.mxu1 %v14078_v9  ;;  %v14121_v9 = vld [vmem:[%s15500_s1 + $0x7e0] ss:$12 sps:$4 sm:$0xff]  }
 0xce9   : > { %10350 = vmatpush2.bf16.msra.mxu0 %v14073_v35  ;;  %v14100_v35 = vld [vmem:[%s15500_s1 + $0x720] ss:$12 sps:$4 sm:$0xff]  }
 0xcea   : > { %10377 = vmatpush1.bf16.msra.mxu1 %v14076_v45  ;;  %10351 = vmatprep.subr.bf16.mxu0 %v14081_v41  ;;  %v14108_v45 = vld [vmem:[%s15500_s1 + $0x70c] ss:$12 sps:$4 sm:$0xff]  }
 0xceb   : > { %10378 = vmatprep.subr.bf16.mxu1 %v14084_v28 }
 0xced   : > { %10352 = vmatpush2.bf16.msra.mxu0 %v14079_v21 }
 0xcee   : > { %10379 = vmatpush1.bf16.msra.mxu1 %v14082_v55  ;;  %10353 = vmatprep.subr.bf16.mxu0 %v14087_v22  ;;  %v14134_v55 = vld [vmem:[%s15500_s1 + $0x7b4] ss:$12 sps:$4 sm:$0xff]  }
 0xcef   : > { %10380 = vmatprep.subr.bf16.mxu1 %v14090_v52  ;;  %v14114_v22 = vld [vmem:[%s15500_s1 + $0x6f4] ss:$12 sps:$4 sm:$0xff]   ;;  %v6240_v52 = vrot.slane %v16852_v54, %v15616_v18 }
 0xcf1   : > { %10354 = vmatpush2.bf16.msra.mxu0 %v14085_v60  ;;  %v14112_v60 = vld [vmem:[%s15500_s1 + $0x6f0] ss:$12 sps:$4 sm:$0xff]  }
 0xcf2   : > { %10381 = vmatpush1.bf16.msra.mxu1 %v14088_v20  ;;  %10409 = vmatprep.subr.bf16.mxu0 %v14105_v53  ;;  %v14120_v53 = vld [vmem:[%s15500_s1 + $0x6dc] ss:$12 sps:$4 sm:$0xff]  }
 0xcf3   : > { %10382 = vmatprep.subr.bf16.mxu1 %v14093_v5 }
 0xcf4   : > { %v16855_v62 = vpop.f32.mrf.mxu0  ;;  %10356 = vmatmul.mubr.bf16.vlgmr.msra.gmra.mxu0 %v16847_v38 }
 0xcf5   : > { %v8083_v47 = vpop.f32.mrf.mxu1  ;;  %10410 = vmatpush1.bf16.msra.mxu0 %v14103_v59  ;;  %v14118_v59 = vld [vmem:[%s15500_s1 + $0x6d8] ss:$12 sps:$4 sm:$0xff]  }
 0xcf6   : > { %v8128_v1 = vpop.f32.mrf.mxu0  ;;  %10383 = vmatpush2.bf16.msra.mxu1 %v14091_v48  ;;  %10411 = vmatprep.subr.bf16.mxu0 %v14111_v51  ;;  %v8084_v5 = vadd.f32 %v8083_v47, %v6240_v52  ;;  %v14144_v48 = vld [vmem:[%s15500_s1 + $0x784] ss:$12 sps:$4 sm:$0xff]   ;;  %v14124_v47 = vld [vmem:[%s15500_s1 + $0x6c0] ss:$12 sps:$4 sm:$0xff]  }
 0xcf7   : > { %v8085_v7 = vpop.f32.mrf.mxu1  ;;  %10384 = vmatprep.subr.bf16.mxu1 %v14096_v36  ;;  %v14126_v36 = vld [vmem:[%s15500_s1 + $0x6c4] ss:$12 sps:$4 sm:$0xff]  }
 0xcf8   : > { %v8086_v8 = vadd.f32 %v8085_v7, %v6244_v0  ;;  %v8130_v13 = vpop.f32.mrf.mxu0 }
 0xcf9   : > { %v8087_v63 = vpop.f32.mrf.mxu1  ;;  %10412 = vmatpush1.bf16.msra.mxu0 %v14109_v34  ;;  %v14142_v34 = vld [vmem:[%s15500_s1 + $0x780] ss:$12 sps:$4 sm:$0xff]  }
 0xcfa   : > { %10385 = vmatpush2.bf16.msra.mxu1 %v14094_v31  ;;  %10413 = vmatprep.subr.bf16.mxu0 %v14117_v3  ;;  %v8129_v27 = vadd.f32 %v8128_v1, %v8086_v8  ;;  %v8132_v33 = vpop.f32.mrf.mxu0  ;;  %v8088_v20 = vadd.f32 %v8087_v63, %v6240_v52  ;;  %v14149_v1 = vld [vmem:[%s15500_s1 + $0x8ec] ss:$12 sps:$4 sm:$0xff]   ;;  %v14130_v3 = vld [vmem:[%s15500_s1 + $0x170] ss:$12 sps:$4 sm:$0xff]   ;;  %v14154_v63 = vld [vmem:[%s15500_s1 + $0x8d4] ss:$12 sps:$4 sm:$0xff]  }
 0xcfb   : > { %v8089_v42 = vpop.f32.mrf.mxu1  ;;  %10386 = vmatprep.subr.bf16.mxu1 %v14099_v6  ;;  %v14147_v6 = vld [vmem:[%s15500_s1 + $0x8e8] ss:$12 sps:$4 sm:$0xff]   ;;  %v14177_v52 = vld [vmem:[%s15500_s1 + $0x858] ss:$12 sps:$4 sm:$0xff]  }
 0xcfc   : > { %v8090_v29 = vadd.f32 %v8089_v42, %v6244_v0  ;;  %v8230_v41 = vmax.f32 %v8129_v27, 0.0  ;;  %v8131_v51 = vadd.f32 %v8130_v13, %v8088_v20  ;;  %v8127_v0 = vadd.f32 %v16855_v62, %v8084_v5  ;;  %v14131_v62 = vld [vmem:[%s15500_s1 + $0xb0] ss:$12 sps:$4 sm:$0xff]   ;;  %v14135_v13 = vld [vmem:[%s15500_s1 + $0x158] ss:$12 sps:$4 sm:$0xff]  }
 0xcfd   : > { %10414 = vmatpush1.bf16.msra.mxu0 %v14115_v11  ;;  %v14152_v11 = vld [vmem:[%s15500_s1 + $0x8d0] ss:$12 sps:$4 sm:$0xff]   ;;  %v14140_v42 = vld [vmem:[%s15500_s1 + $0x140] ss:$12 sps:$4 sm:$0xff]  }
 0xcfe   : > { %v8133_v24 = vadd.f32 %v8132_v33, %v8090_v29  ;;  %10387 = vmatpush2.bf16.msra.mxu1 %v14097_v12  ;;  %10415 = vmatprep.subr.bf16.mxu0 %v14123_v17  ;;  %v8241_v31 = vmax.f32 %v8131_v51, 0.0  ;;  %v8229_v7 = vmax.f32 %v8127_v0, 0.0  ;;  %v14136_v12 = vld [vmem:[%s15500_s1 + $0x98] ss:$12 sps:$4 sm:$0xff]   ;;  %v14159_v17 = vld [vmem:[%s15500_s1 + $0x8bc] ss:$12 sps:$4 sm:$0xff]   ;;  %v6252_v51 = vrot.slane %v16852_v54, %v6219_v43 }
 0xcff   : > { %10388 = vmatprep.subr.bf16.mxu1 %v14102_v2  ;;  %v14157_v2 = vld [vmem:[%s15500_s1 + $0x8b8] ss:$12 sps:$4 sm:$0xff]   ;;  %v14141_v27 = vld [vmem:[%s15500_s1 + $0x80] ss:$12 sps:$4 sm:$0xff]   ;;  %v14145_v33 = vld [vmem:[%s15500_s1 + $0x128] ss:$12 sps:$4 sm:$0xff]  }
 0xd00   : > { %v8242_v28 = vmax.f32 %v8133_v24, 0.0  ;;  %v16896_v8 = vpack.c.bf16 %v8241_v31, %v8229_v7  ;;  %v14164_v29 = vld [vmem:[%s15500_s1 + $0x8a4] ss:$12 sps:$4 sm:$0xff]   ;;  %v14169_v24 = vld [vmem:[%s15500_s1 + $0x88c] ss:$12 sps:$4 sm:$0xff]  }
 0xd01   : > { %10416 = vmatpush1.bf16.msra.mxu0 %v14121_v9  ;;  %v14146_v9 = vld [vmem:[%s15500_s1 + $0x68] ss:$12 sps:$4 sm:$0xff]   ;;  %v14182_v20 = vld [vmem:[%s15500_s1 + $0x840] ss:$12 sps:$4 sm:$0xff]   ;;  %v14187_v5 = vld [vmem:[%s15500_s1 + $0x2f0] ss:$12 sps:$4 sm:$0xff]  }
 0xd02   : > { %10389 = vmatpush2.bf16.msra.mxu1 %v14100_v35  ;;  %v16873_v21 = vpack.c.bf16 %v8242_v28, %v8230_v41  ;;  %10417 = vmatprep.subr.bf16.mxu0 %v14129_v57  ;;  %v14150_v35 = vld [vmem:[%s15500_s1 + $0x110] ss:$12 sps:$4 sm:$0xff]   ;;  %v14167_v57 = vld [vmem:[%s15500_s1 + $0x888] ss:$12 sps:$4 sm:$0xff]   ;;  %v14155_v28 = vld [vmem:[%s15500_s1 + $0xf8] ss:$12 sps:$4 sm:$0xff]  }
 0xd03   : > { %10390 = vmatprep.subr.bf16.mxu1 %v14108_v45  ;;  %v14151_v45 = vld [vmem:[%s15500_s1 + $0x50] ss:$12 sps:$4 sm:$0xff]   ;;  %v14174_v41 = vld [vmem:[%s15500_s1 + $0x874] ss:$12 sps:$4 sm:$0xff]   ;;  %v14176_v31 = vld [vmem:[%s15500_s1 + $0x398] ss:$12 sps:$4 sm:$0xff]  }
 0xd04   : > { %10398 = vmatprep.mubr.bf16.mxu1 %v16873_v21 }
 0xd05   : > { %10418 = vmatpush1.bf16.msra.mxu0 %v14127_v44  ;;  %v14172_v44 = vld [vmem:[%s15500_s1 + $0x870] ss:$12 sps:$4 sm:$0xff]  }
 0xd06   : > { %10391 = vmatpush2.bf16.msra.mxu1 %v14106_v40  ;;  %10419 = vmatprep.subr.bf16.mxu0 %v14134_v55  ;;  %v14156_v40 = vld [vmem:[%s15500_s1 + $0x38] ss:$12 sps:$4 sm:$0xff]   ;;  %v14179_v55 = vld [vmem:[%s15500_s1 + $0x85c] ss:$12 sps:$4 sm:$0xff]  }
 0xd07   : > { %10392 = vmatprep.subr.bf16.mxu1 %v14114_v22  ;;  %v14160_v22 = vld [vmem:[%s15500_s1 + $0xe0] ss:$12 sps:$4 sm:$0xff]  }
 0xd09   : > { %10420 = vmatpush1.bf16.msra.mxu0 %v14132_v56  ;;  %v14161_v56 = vld [vmem:[%s15500_s1 + $0x20] ss:$12 sps:$4 sm:$0xff]  }
 0xd0a   : > { %10393 = vmatpush2.bf16.msra.mxu1 %v14112_v60  ;;  %10421 = vmatprep.subr.bf16.mxu0 %v14139_v30  ;;  %v14184_v60 = vld [vmem:[%s15500_s1 + $0x844] ss:$12 sps:$4 sm:$0xff]   ;;  %v14165_v30 = vld [vmem:[%s15500_s1 + $0xc8] ss:$12 sps:$4 sm:$0xff]  }
 0xd0b   : > { %10394 = vmatprep.subr.bf16.mxu1 %v14120_v53  ;;  %v14166_v53 = vld [vmem:[%s15500_s1 + $0x8] ss:$12 sps:$4 sm:$0xff]  }
 0xd0d   : > { %10422 = vmatpush1.bf16.msra.mxu0 %v14137_v37  ;;  %v14170_v37 = vld [vmem:[%s15500_s1 + $0x470] ss:$12 sps:$4 sm:$0xff]  }
 0xd0e   : > { %10395 = vmatpush2.bf16.msra.mxu1 %v14118_v59  ;;  %10423 = vmatprep.subr.bf16.mxu0 %v14144_v48  ;;  %v14171_v48 = vld [vmem:[%s15500_s1 + $0x3b0] ss:$12 sps:$4 sm:$0xff]  }
 0xd0f   : > { %10396 = vmatprep.subr.bf16.mxu1 %v14126_v36  ;;  %v14175_v36 = vld [vmem:[%s15500_s1 + $0x458] ss:$12 sps:$4 sm:$0xff]  }
 0xd11   : > { %10424 = vmatpush1.bf16.msra.mxu0 %v14142_v34  ;;  %v6248_v34 = vrot.slane %v16852_v54, %v15611_v16  ;;  %v14181_v54 = vld [vmem:[%s15500_s1 + $0x380] ss:$12 sps:$4 sm:$0xff]  }
 0xd12   : > { %10397 = vmatpush2.bf16.msra.mxu1 %v14124_v47  ;;  %10425 = vmatprep.subr.bf16.mxu0 %v14149_v1 }
 0xd13   : > { %12431 = vmatprep.subr.bf16.mxu1 %v14130_v3 }
 0xd15   : > { %10399 = vmatmul.mubr.bf16.vlgmr.msra.gmra.mxu1 %v16896_v8  ;;  %10426 = vmatpush2.bf16.msra.mxu0 %v14147_v6  ;;  %v8212_v59 = vpop.f32.mrf.mxu1 }
 0xd16   : > { %12432 = vmatpush3.bf16.msra.mxu1 %v14131_v62  ;;  %10484 = vmatprep.mubr.bf16.mxu1 %v16628_v50  ;;  %v14162_v50 = vld [vmem:[%s15500_s1 + $0x8a0] ss:$12 sps:$4 sm:$0xff]  }
 0xd17   : > { %12433 = vmatprep.subr.bf16.mxu1 %v14135_v13  ;;  %10427 = vmatprep.subr.bf16.mxu0 %v14154_v63  ;;  %v8214_v0 = vpop.f32.mrf.mxu1 }
 0xd19   : > { %10428 = vmatpush2.bf16.msra.mxu0 %v14152_v11  ;;  %v8216_v7 = vpop.f32.mrf.mxu1 }
 0xd1a   : > { %12434 = vmatpush3.bf16.msra.mxu1 %v14136_v12  ;;  %10429 = vmatprep.subr.bf16.mxu0 %v14159_v17 }
 0xd1b   : > { %12435 = vmatprep.subr.bf16.mxu1 %v14140_v42  ;;  %v8218_v12 = vpop.f32.mrf.mxu1 }
 0xd1d   : > { %10430 = vmatpush2.bf16.msra.mxu0 %v14157_v2 }
 0xd1e   : > { %12436 = vmatpush3.bf16.msra.mxu1 %v14141_v27  ;;  %10431 = vmatprep.subr.bf16.mxu0 %v14164_v29  ;;  %v14186_v27 = vld [vmem:[%s15500_s1 + $0x368] ss:$12 sps:$4 sm:$0xff]  }
 0xd1f   : > { %12437 = vmatprep.subr.bf16.mxu1 %v14145_v33 }
 0xd21   : > { %10432 = vmatpush2.bf16.msra.mxu0 %v14162_v50  ;;  %v14189_v50 = vld [vmem:[%s15500_s1 + $0x410] ss:$12 sps:$4 sm:$0xff]  }
 0xd22   : > { %12438 = vmatpush3.bf16.msra.mxu1 %v14146_v9  ;;  %10433 = vmatprep.subr.bf16.mxu0 %v14169_v24 }
 0xd23   : > { %12439 = vmatprep.subr.bf16.mxu1 %v14150_v35  ;;  %v14188_v35 = vld [vmem:[%s15500_s1 + $0x230] ss:$12 sps:$4 sm:$0xff]  }
 0xd25   : > { %10434 = vmatpush2.bf16.msra.mxu0 %v14167_v57 }
 0xd26   : > { %12440 = vmatpush3.bf16.msra.mxu1 %v14151_v45  ;;  %10435 = vmatprep.subr.bf16.mxu0 %v14174_v41  ;;  %v14190_v45 = vld [vmem:[%s15500_s1 + $0x350] ss:$12 sps:$4 sm:$0xff]   ;;  %v14191_v41 = vld [vmem:[%s15500_s1 + $0x2d8] ss:$12 sps:$4 sm:$0xff]  }
 0xd27   : > { %12441 = vmatprep.subr.bf16.mxu1 %v14155_v28  ;;  %v14193_v28 = vld [vmem:[%s15500_s1 + $0x3f8] ss:$12 sps:$4 sm:$0xff]  }
 0xd29   : > { %10436 = vmatpush2.bf16.msra.mxu0 %v14172_v44  ;;  %v14192_v44 = vld [vmem:[%s15500_s1 + $0x218] ss:$12 sps:$4 sm:$0xff]  }
 0xd2a   : > { %12442 = vmatpush3.bf16.msra.mxu1 %v14156_v40  ;;  %10437 = vmatprep.subr.bf16.mxu0 %v14179_v55  ;;  %v14194_v40 = vld [vmem:[%s15500_s1 + $0x338] ss:$12 sps:$4 sm:$0xff]   ;;  %v14195_v55 = vld [vmem:[%s15500_s1 + $0x2c0] ss:$12 sps:$4 sm:$0xff]  }
 0xd2b   : > { %12443 = vmatprep.subr.bf16.mxu1 %v14160_v22  ;;  %v14197_v22 = vld [vmem:[%s15500_s1 + $0x3e0] ss:$12 sps:$4 sm:$0xff]  }
 0xd2d   : > { %10438 = vmatpush2.bf16.msra.mxu0 %v14177_v52  ;;  %v14196_v52 = vld [vmem:[%s15500_s1 + $0x200] ss:$12 sps:$4 sm:$0xff]  }
 0xd2e   : > { %12444 = vmatpush3.bf16.msra.mxu1 %v14161_v56  ;;  %10439 = vmatprep.subr.bf16.mxu0 %v14184_v60  ;;  %v14198_v56 = vld [vmem:[%s15500_s1 + $0x320] ss:$12 sps:$4 sm:$0xff]   ;;  %v14199_v60 = vld [vmem:[%s15500_s1 + $0x2a8] ss:$12 sps:$4 sm:$0xff]  }
 0xd2f   : > { %12445 = vmatprep.subr.bf16.mxu1 %v14165_v30  ;;  %v14200_v30 = vld [vmem:[%s15500_s1 + $0x1e8] ss:$12 sps:$4 sm:$0xff]  }
 0xd31   : > { %10440 = vmatpush2.bf16.msra.mxu0 %v14182_v20  ;;  %v14202_v20 = vld [vmem:[%s15500_s1 + $0x308] ss:$12 sps:$4 sm:$0xff]  }
 0xd32   : > { %12446 = vmatpush3.bf16.msra.mxu1 %v14166_v53  ;;  %12453 = vmatprep.subr.bf16.mxu0 %v14187_v5  ;;  %v14203_v53 = vld [vmem:[%s15500_s1 + $0x290] ss:$12 sps:$4 sm:$0xff]  }
 0xd33   : > { %12475 = vmatprep.subr.bf16.mxu1 %v14170_v37  ;;  %v14205_v5 = vld [vmem:[%s15500_s1 + $0x770] ss:$12 sps:$4 sm:$0xff]  }
 0xd34   : > { %v8169_v47 = vpop.f32.mrf.mxu0  ;;  %v14204_v37 = vld [vmem:[%s15500_s1 + $0x1d0] ss:$12 sps:$4 sm:$0xff]  }
 0xd35   : > { %10485 = vmatmul.mubr.bf16.vlgmr.msra.gmra.mxu1 %v16604_v19  ;;  %v8170_v43 = vadd.f32 %v8169_v47, %v6248_v34  ;;  %v14213_v47 = vld [vmem:[%s15500_s1 + $0x740] ss:$12 sps:$4 sm:$0xff]  }
 0xd36   : > { %v8171_v1 = vpop.f32.mrf.mxu0  ;;  %12476 = vmatpush3.bf16.msra.mxu1 %v14171_v48  ;;  %10566 = vmatprep.mubr.bf16.mxu1 %v16736_v10  ;;  %v14185_v10 = vld [vmem:[%s15500_s1 + $0x428] ss:$12 sps:$4 sm:$0xff]   ;;  %v14207_v48 = vld [vmem:[%s15500_s1 + $0x278] ss:$12 sps:$4 sm:$0xff]  }
 0xd37   : > { %v8172_v3 = vadd.f32 %v8171_v1, %v6252_v51  ;;  %12477 = vmatprep.subr.bf16.mxu1 %v14175_v36  ;;  %v8213_v17 = vadd.f32 %v8212_v59, %v8170_v43  ;;  %v14206_v59 = vld [vmem:[%s15500_s1 + $0x6b0] ss:$12 sps:$4 sm:$0xff]   ;;  %v14208_v36 = vld [vmem:[%s15500_s1 + $0x1b8] ss:$12 sps:$4 sm:$0xff]   ;;  %v14212_v1 = vld [vmem:[%s15500_s1 + $0x1a0] ss:$12 sps:$4 sm:$0xff]  }
 0xd38   : > { %v8173_v6 = vpop.f32.mrf.mxu0  ;;  %v14221_v43 = vld [vmem:[%s15500_s1 + $0x710] ss:$12 sps:$4 sm:$0xff]  }
 0xd39   : > { %v8174_v62 = vadd.f32 %v8173_v6, %v6248_v34  ;;  %v8215_v63 = vadd.f32 %v8214_v0, %v8172_v3  ;;  %v8231_v9 = vmax.f32 %v8213_v17, 0.0  ;;  %v14210_v0 = vld [vmem:[%s15500_s1 + $0x698] ss:$12 sps:$4 sm:$0xff]   ;;  %v14211_v34 = vld [vmem:[%s15500_s1 + $0x260] ss:$12 sps:$4 sm:$0xff]  }
 0xd3a   : > { %v8175_v13 = vpop.f32.mrf.mxu0  ;;  %12478 = vmatpush3.bf16.msra.mxu1 %v14176_v31  ;;  %v14215_v31 = vld [vmem:[%s15500_s1 + $0x248] ss:$12 sps:$4 sm:$0xff]   ;;  %v14220_v6 = vld [vmem:[%s15500_s1 + $0x530] ss:$12 sps:$4 sm:$0xff]  }
 0xd3b   : > { %v8217_v19 = vadd.f32 %v8216_v7, %v8174_v62  ;;  %v8176_v11 = vadd.f32 %v8175_v13, %v6252_v51  ;;  %12479 = vmatprep.subr.bf16.mxu1 %v14180_v14  ;;  %v8232_v29 = vmax.f32 %v8215_v63, 0.0  ;;  %v14209_v51 = vld [vmem:[%s15500_s1 + $0x758] ss:$12 sps:$4 sm:$0xff]   ;;  %v14217_v3 = vld [vmem:[%s15500_s1 + $0x728] ss:$12 sps:$4 sm:$0xff]  }
 0xd3c   : > { %v14218_v14 = vld [vmem:[%s15500_s1 + $0x668] ss:$12 sps:$4 sm:$0xff]   ;;  %v14219_v7 = vld [vmem:[%s15500_s1 + $0x5f0] ss:$12 sps:$4 sm:$0xff]   ;;  %v14223_v13 = vld [vmem:[%s15500_s1 + $0x5d8] ss:$12 sps:$4 sm:$0xff]  }
 0xd3d   : > { %v8219_v42 = vadd.f32 %v8218_v12, %v8176_v11  ;;  %v8243_v2 = vmax.f32 %v8217_v19, 0.0  ;;  %v14222_v62 = vld [vmem:[%s15500_s1 + $0x650] ss:$12 sps:$4 sm:$0xff]   ;;  %v14224_v63 = vld [vmem:[%s15500_s1 + $0x518] ss:$12 sps:$4 sm:$0xff]  }
 0xd3e   : > { %12480 = vmatpush3.bf16.msra.mxu1 %v14181_v54  ;;  %v14225_v54 = vld [vmem:[%s15500_s1 + $0x6f8] ss:$12 sps:$4 sm:$0xff]   ;;  %v14227_v11 = vld [vmem:[%s15500_s1 + $0x5c0] ss:$12 sps:$4 sm:$0xff]   ;;  %v14231_v17 = vld [vmem:[%s15500_s1 + $0x5a8] ss:$12 sps:$4 sm:$0xff]  }
 0xd3f   : > { %v8244_v33 = vmax.f32 %v8219_v42, 0.0  ;;  %12481 = vmatprep.subr.bf16.mxu1 %v14185_v10  ;;  %v16948_v57 = vpack.c.bf16 %v8243_v2, %v8231_v9  ;;  %v14226_v19 = vld [vmem:[%s15500_s1 + $0x638] ss:$12 sps:$4 sm:$0xff]   ;;  %v14229_v10 = vld [vmem:[%s15500_s1 + $0x6e0] ss:$12 sps:$4 sm:$0xff]  }
 0xd40   : > { %v14228_v12 = vld [vmem:[%s15500_s1 + $0x500] ss:$12 sps:$4 sm:$0xff]   ;;  %v14232_v42 = vld [vmem:[%s15500_s1 + $0x4e8] ss:$12 sps:$4 sm:$0xff]  }
 0xd41   : > { %v16945_v24 = vpack.c.bf16 %v8244_v33, %v8232_v29  ;;  %v14234_v2 = vld [vmem:[%s15500_s1 + $0x608] ss:$12 sps:$4 sm:$0xff]   ;;  %v14236_v29 = vld [vmem:[%s15500_s1 + $0x4d0] ss:$12 sps:$4 sm:$0xff]   ;;  %v14237_v33 = vld [vmem:[%s15500_s1 + $0x578] ss:$12 sps:$4 sm:$0xff]  }
 0xd42   : > { %12482 = vmatpush3.bf16.msra.mxu1 %v14186_v27  ;;  %v14235_v27 = vld [vmem:[%s15500_s1 + $0x590] ss:$12 sps:$4 sm:$0xff]   ;;  %v14239_v9 = vld [vmem:[%s15500_s1 + $0x560] ss:$12 sps:$4 sm:$0xff]  }
 0xd43   : > { %10441 = vmatprep.mubr.bf16.mxu0 %v16945_v24  ;;  %12483 = vmatprep.subr.bf16.mxu1 %v14189_v50  ;;  %v14238_v50 = vld [vmem:[%s15500_s1 + $0x4b8] ss:$12 sps:$4 sm:$0xff]  }
 0xd44   : > { %10442 = vmatmul.mubr.bf16.vlgmr.msra.gmra.mxu0 %v16948_v57 }
 0xd45   : > { %12454 = vmatpush3.bf16.msra.mxu0 %v14188_v35  ;;  %10525 = vmatprep.mubr.bf16.mxu0 %v16689_v61  ;;  %v14201_v61 = vld [vmem:[%s15500_s1 + $0x3c8] ss:$12 sps:$4 sm:$0xff]   ;;  %v14240_v35 = vld [vmem:[%s15500_s1 + $0x4a0] ss:$12 sps:$4 sm:$0xff]  }
 0xd46   : > { %12484 = vmatpush3.bf16.msra.mxu1 %v14190_v45  ;;  %12455 = vmatprep.subr.bf16.mxu0 %v14191_v41  ;;  %v14241_v45 = vld [vmem:[%s15500_s1 + $0x548] ss:$12 sps:$4 sm:$0xff]  }
 0xd47   : > { %12485 = vmatprep.subr.bf16.mxu1 %v14193_v28  ;;  %v14242_v41 = vld [vmem:[%s15500_s1 + $0x488] ss:$12 sps:$4 sm:$0xff]   ;;  %v14243_v28 = vld [vmem:[%s15500_s1 + $0x8f0] ss:$12 sps:$4 sm:$0xff]  }
 0xd49   : > { %12456 = vmatpush3.bf16.msra.mxu0 %v14192_v44  ;;  %v14244_v44 = vld [vmem:[%s15500_s1 + $0x830] ss:$12 sps:$4 sm:$0xff]  }
 0xd4a   : > { %12486 = vmatpush3.bf16.msra.mxu1 %v14194_v40  ;;  %12457 = vmatprep.subr.bf16.mxu0 %v14195_v55  ;;  %v14246_v40 = vld [vmem:[%s15500_s1 + $0x818] ss:$12 sps:$4 sm:$0xff]   ;;  %v14247_v55 = vld [vmem:[%s15500_s1 + $0x8c0] ss:$12 sps:$4 sm:$0xff]  }
 0xd4b   : > { %12487 = vmatprep.subr.bf16.mxu1 %v14197_v22  ;;  %v14248_v22 = vld [vmem:[%s15500_s1 + $0x800] ss:$12 sps:$4 sm:$0xff]  }
 0xd4d   : > { %12458 = vmatpush3.bf16.msra.mxu0 %v14196_v52  ;;  %v14249_v52 = vld [vmem:[%s15500_s1 + $0x8a8] ss:$12 sps:$4 sm:$0xff]  }
 0xd4e   : > { %12488 = vmatpush3.bf16.msra.mxu1 %v14198_v56  ;;  %12459 = vmatprep.subr.bf16.mxu0 %v14199_v60  ;;  %v14250_v56 = vld [vmem:[%s15500_s1 + $0x7e8] ss:$12 sps:$4 sm:$0xff]   ;;  %v14252_v60 = vld [vmem:[%s15500_s1 + $0x7d0] ss:$12 sps:$4 sm:$0xff]  }
 0xd4f   : > { %12489 = vmatprep.subr.bf16.mxu1 %v14201_v61  ;;  %v14254_v61 = vld [vmem:[%s15500_s1 + $0x7b8] ss:$12 sps:$4 sm:$0xff]  }
 0xd51   : > { %12460 = vmatpush3.bf16.msra.mxu0 %v14200_v30  ;;  %v14255_v30 = vld [vmem:[%s15500_s1 + $0x860] ss:$12 sps:$4 sm:$0xff]  }
 0xd52   : > { %12490 = vmatpush3.bf16.msra.mxu1 %v14202_v20  ;;  %12461 = vmatprep.subr.bf16.mxu0 %v14203_v53  ;;  %v14256_v20 = vld [vmem:[%s15500_s1 + $0x7a0] ss:$12 sps:$4 sm:$0xff]   ;;  %v14257_v53 = vld [vmem:[%s15500_s1 + $0x848] ss:$12 sps:$4 sm:$0xff]  }
 0xd53   : > { %12519 = vmatprep.subr.bf16.mxu1 %v14205_v5  ;;  %v14258_v5 = vld [vmem:[%s15500_s1 + $0x788] ss:$12 sps:$4 sm:$0xff]  }
 0xd55   : > { %12462 = vmatpush3.bf16.msra.mxu0 %v14204_v37  ;;  %10567 = vmatmul.mubr.bf16.vlgmr.msra.gmra.mxu1 %v16807_v46  ;;  %v14214_v46 = vld [vmem:[%s15500_s1 + $0x680] ss:$12 sps:$4 sm:$0xff]   ;;  %v10228_v37 = vpop.f32.mrf.mxu1 }
 0xd56   : > { %12520 = vmatpush3.bf16.msra.mxu1 %v14206_v59  ;;  %10648 = vmatprep.mubr.bf16.mxu1 %v16873_v21  ;;  %v14216_v21 = vld [vmem:[%s15500_s1 + $0x188] ss:$12 sps:$4 sm:$0xff]  }
 0xd57   : > { %12463 = vmatprep.subr.bf16.mxu0 %v14207_v48  ;;  %12521 = vmatprep.subr.bf16.mxu1 %v14209_v51  ;;  %v10230_v59 = vpop.f32.mrf.mxu1 }
 0xd59   : > { %12464 = vmatpush3.bf16.msra.mxu0 %v14208_v36  ;;  %v10232_v48 = vpop.f32.mrf.mxu1 }
 0xd5a   : > { %12522 = vmatpush3.bf16.msra.mxu1 %v14210_v0  ;;  %12465 = vmatprep.subr.bf16.mxu0 %v14211_v34 }
 0xd5b   : > { %12523 = vmatprep.subr.bf16.mxu1 %v14213_v47  ;;  %v10234_v36 = vpop.f32.mrf.mxu1 }
 0xd5d   : > { %12466 = vmatpush3.bf16.msra.mxu0 %v14212_v1 }
 0xd5e   : > { %12524 = vmatpush3.bf16.msra.mxu1 %v14214_v46  ;;  %12467 = vmatprep.subr.bf16.mxu0 %v14215_v31  ;;  %v8641_v46 = vld [vmem:[%s864_s20] sm:$0x7] }
 0xd5f   : > { %12525 = vmatprep.subr.bf16.mxu1 %v14217_v3 }
 0xd61   : > { %12468 = vmatpush3.bf16.msra.mxu0 %v14216_v21 }
 0xd62   : > { %12526 = vmatpush3.bf16.msra.mxu1 %v14218_v14  ;;  %12497 = vmatprep.subr.bf16.mxu0 %v14219_v7  ;;  %v8646_v14 = vrot.slane %v8641_v46, %v15616_v18 }
 0xd63   : > { %12527 = vmatprep.subr.bf16.mxu1 %v14221_v43  ;;  %v8650_v43 = vrot.slane %v8641_v46, %v15608_v15 }
 0xd64   : > { %10526 = vmatmul.mubr.bf16.vlgmr.msra.gmra.mxu0 %v16761_v25  ;;  %v14230_v25 = vld [vmem:[%s15500_s1 + $0x620] ss:$12 sps:$4 sm:$0xff]  }
 0xd65   : > { %12498 = vmatpush3.bf16.msra.mxu0 %v14220_v6  ;;  %10607 = vmatprep.mubr.bf16.mxu0 %v16825_v26  ;;  %v14233_v26 = vld [vmem:[%s15500_s1 + $0x6c8] ss:$12 sps:$4 sm:$0xff]  }
 0xd66   : > { %12528 = vmatpush3.bf16.msra.mxu1 %v14222_v62  ;;  %12499 = vmatprep.subr.bf16.mxu0 %v14223_v13  ;;  %v10229_v62 = vadd.f32 %v10228_v37, %v8646_v14  ;;  %v10231_v13 = vadd.f32 %v10230_v59, %v8650_v43 }
 0xd67   : > { %12529 = vmatprep.subr.bf16.mxu1 %v14225_v54 }
 0xd69   : > { %12500 = vmatpush3.bf16.msra.mxu0 %v14224_v63 }
 0xd6a   : > { %12530 = vmatpush3.bf16.msra.mxu1 %v14226_v19  ;;  %12501 = vmatprep.subr.bf16.mxu0 %v14227_v11  ;;  %v10233_v11 = vadd.f32 %v10232_v48, %v8646_v14 }
 0xd6b   : > { %12531 = vmatprep.subr.bf16.mxu1 %v14229_v10 }
 0xd6d   : > { %12502 = vmatpush3.bf16.msra.mxu0 %v14228_v12 }
 0xd6e   : > { %12532 = vmatpush3.bf16.msra.mxu1 %v14230_v25  ;;  %12503 = vmatprep.subr.bf16.mxu0 %v14231_v17  ;;  %v10235_v25 = vadd.f32 %v10234_v36, %v8650_v43 }
 0xd6f   : > { %12533 = vmatprep.subr.bf16.mxu1 %v14233_v26 }
 0xd71   : > { %12504 = vmatpush3.bf16.msra.mxu0 %v14232_v42 }
 0xd72   : > { %12534 = vmatpush3.bf16.msra.mxu1 %v14234_v2  ;;  %12505 = vmatprep.subr.bf16.mxu0 %v14235_v27 }
 0xd74   : > { %v10271_v51 = vpop.f32.mrf.mxu0 }
 0xd75   : > { %12506 = vmatpush3.bf16.msra.mxu0 %v14236_v29  ;;  %10649 = vmatmul.mubr.bf16.vlgmr.msra.gmra.mxu1 %v16896_v8  ;;  %v14245_v8 = vld [vmem:[%s15500_s1 + $0x8d8] ss:$12 sps:$4 sm:$0xff]   ;;  %v10272_v54 = vadd.f32 %v10271_v51, %v10229_v62 }
 0xd76   : > { %12507 = vmatprep.subr.bf16.mxu0 %v14237_v33  ;;  %v10273_v0 = vpop.f32.mrf.mxu0 }
 0xd77   : > { %v10274_v10 = vadd.f32 %v10273_v0, %v10231_v13 }
 0xd78   : > { %v10275_v47 = vpop.f32.mrf.mxu0 }
 0xd79   : > { %12508 = vmatpush3.bf16.msra.mxu0 %v14238_v50  ;;  %v10276_v17 = vadd.f32 %v10275_v47, %v10233_v11  ;;  %v8654_v47 = vrot.slane %v8641_v46, %v15611_v16 }
 0xd7a   : > { %12509 = vmatprep.subr.bf16.mxu0 %v14239_v9  ;;  %v10277_v31 = vpop.f32.mrf.mxu0 }
 0xd7b   : > { %v10278_v18 = vadd.f32 %v10277_v31, %v10235_v25 }
 0xd7d   : > { %12510 = vmatpush3.bf16.msra.mxu0 %v14240_v35 }
 0xd7e   : > { %12511 = vmatprep.subr.bf16.mxu0 %v14241_v45 }
 0xd81   : > { %12512 = vmatpush3.bf16.msra.mxu0 %v14242_v41 }
 0xd82   : > { %12541 = vmatprep.subr.bf16.mxu0 %v14243_v28 }
 0xd84   : > { %10608 = vmatmul.mubr.bf16.vlgmr.msra.gmra.mxu0 %v16847_v38  ;;  %v14251_v38 = vld [vmem:[%s15500_s1 + $0x890] ss:$12 sps:$4 sm:$0xff]  }
 0xd85   : > { %12542 = vmatpush3.bf16.msra.mxu0 %v14244_v44  ;;  %10689 = vmatprep.mubr.bf16.mxu0 %v16945_v24  ;;  %v14253_v24 = vld [vmem:[%s15500_s1 + $0x878] ss:$12 sps:$4 sm:$0xff]  }
 0xd86   : > { %12543 = vmatprep.subr.bf16.mxu0 %v14245_v8 }
 0xd89   : > { %12544 = vmatpush3.bf16.msra.mxu0 %v14246_v40 }
 0xd8a   : > { %12545 = vmatprep.subr.bf16.mxu0 %v14247_v55 }
 0xd8d   : > { %12546 = vmatpush3.bf16.msra.mxu0 %v14248_v22 }
 0xd8e   : > { %12547 = vmatprep.subr.bf16.mxu0 %v14249_v52 }
 0xd91   : > { %12548 = vmatpush3.bf16.msra.mxu0 %v14250_v56 }
 0xd92   : > { %12549 = vmatprep.subr.bf16.mxu0 %v14251_v38 }
 0xd95   : > { %12550 = vmatpush3.bf16.msra.mxu0 %v14252_v60  ;;  %v10314_v34 = vpop.f32.mrf.mxu1 }
 0xd96   : > { %12551 = vmatprep.subr.bf16.mxu0 %v14253_v24  ;;  %v10315_v12 = vadd.f32 %v10314_v34, %v10272_v54 }
 0xd97   : > { %v10316_v1 = vpop.f32.mrf.mxu1 }
 0xd98   : > { %v10317_v26 = vadd.f32 %v10316_v1, %v10274_v10 }
 0xd99   : > { %12552 = vmatpush3.bf16.msra.mxu0 %v14254_v61  ;;  %v10318_v3 = vpop.f32.mrf.mxu1 }
 0xd9a   : > { %12553 = vmatprep.subr.bf16.mxu0 %v14255_v30  ;;  %v10319_v29 = vadd.f32 %v10318_v3, %v10276_v17 }
 0xd9b   : > { %v10320_v7 = vpop.f32.mrf.mxu1 }
 0xd9c   : > { %v10321_v9 = vadd.f32 %v10320_v7, %v10278_v18 }
 0xd9d   : > { %12554 = vmatpush3.bf16.msra.mxu0 %v14256_v20 }
 0xd9e   : > { %12555 = vmatprep.subr.bf16.mxu0 %v14257_v53 }
 0xda1   : > { %12556 = vmatpush3.bf16.msra.mxu0 %v14258_v5 }
 0xda4   : > { %10690 = vmatmul.mubr.bf16.vlgmr.msra.gmra.mxu0 %v16948_v57 }
 0xdb4   : > { %v10357_v21 = vpop.f32.mrf.mxu0 }
 0xdb5   : > { %v10358_v42 = vadd.f32 %v10357_v21, %v10315_v12 }
 0xdb6   : > { %v10359_v57 = vpop.f32.mrf.mxu0 }
 0xdb7   : > { %v10360_v33 = vadd.f32 %v10359_v57, %v10317_v26 }
 0xdb8   : > { %v10361_v63 = vpop.f32.mrf.mxu0 }
 0xdb9   : > { %v10362_v35 = vadd.f32 %v10361_v63, %v10319_v29 }
 0xdba   : > { %v10363_v2 = vpop.f32.mrf.mxu0 }
 0xdbb   : > { %v10364_v8 = vadd.f32 %v10363_v2, %v10321_v9 }
 0xdd5   : > { %v10400_v6 = vpop.f32.mrf.mxu1 }
 0xdd6   : > { %v10401_v15 = vadd.f32 %v10400_v6, %v10358_v42 }
 0xdd7   : > { %v10402_v19 = vpop.f32.mrf.mxu1 }
 0xdd8   : > { %v10403_v45 = vadd.f32 %v10402_v19, %v10360_v33 }
 0xdd9   : > { %v10404_v27 = vpop.f32.mrf.mxu1 }
 0xdda   : > { %v10405_v40 = vadd.f32 %v10404_v27, %v10362_v35 }
 0xddb   : > { %v10406_v28 = vpop.f32.mrf.mxu1 }
 0xddc   : > { %v10407_v56 = vadd.f32 %v10406_v28, %v10364_v8 }
 0xdf5   : > { %v12447_v20 = vpop.f32.mrf.mxu1 }
 0xdf7   : > { %v12448_v53 = vpop.f32.mrf.mxu1 }
 0xdf8   : > { %v12449_v1 = vadd.f32 %v12448_v53, %v12447_v20 }
 0xdf9   : > { %v12450_v5 = vpop.f32.mrf.mxu1 }
 0xdfa   : > { %v10487_v14 = vadd.f32 %v12449_v1, %v8654_v47 }
 0xdfb   : > { %v12451_v37 = vpop.f32.mrf.mxu1 }
 0xdfc   : > { %v12452_v7 = vadd.f32 %v12451_v37, %v12450_v5 }
 0xdfe   : > { %v10490_v13 = vadd.f32 %v12452_v7, %v8654_v47 }
 0xe04   : > { %v10443_v50 = vpop.f32.mrf.mxu0 }
 0xe05   : > { %v10444_v41 = vadd.f32 %v10443_v50, %v10401_v15 }
 0xe06   : > { %v10445_v44 = vpop.f32.mrf.mxu0 }
 0xe07   : > { %v17035_v55 = vadd.f32 %v10444_v41, %v16252_v23  ;;  %v10446_v22 = vadd.f32 %v10445_v44, %v10403_v45 }
 0xe08   : > { %v10447_v52 = vpop.f32.mrf.mxu0 }
 0xe09   : > { %10704 = vst [vmem:[#allocation2 + $0x28] sm:$0xff] %v17035_v55  ;;  %v17039_v38 = vadd.f32 %v10446_v22, %v16250_v49  ;;  %v10448_v60 = vadd.f32 %v10447_v52, %v10405_v40 }
 0xe0a   : > { %v10449_v24 = vpop.f32.mrf.mxu0 }
 0xe0b   : > { %10705 = vst [vmem:[#allocation2 + $0x10] sm:$0xff] %v17039_v38  ;;  %v17043_v61 = vadd.f32 %v10448_v60, %v16260_v4  ;;  %v10450_v30 = vadd.f32 %v10449_v24, %v10407_v56 }
 0xe0d   : > { %10707 = vst [vmem:[#allocation2] sm:$0xff] %v17043_v61  ;;  %v17047_v23 = vadd.f32 %v10450_v30, %v16254_v39 }
 0xe0f   : > { %10708 = vst [vmem:[#allocation2 + $0x18] sm:$0xff] %v17047_v23 }
 0xe15   : > { %v12491_v48 = vpop.f32.mrf.mxu1 }
 0xe17   : > { %v12492_v36 = vpop.f32.mrf.mxu1 }
 0xe18   : > { %v12493_v54 = vadd.f32 %v12492_v36, %v12491_v48 }
 0xe19   : > { %v12494_v4 = vpop.f32.mrf.mxu1 }
 0xe1b   : > { %v12495_v31 = vpop.f32.mrf.mxu1 }
 0xe1c   : > { %v12496_v25 = vadd.f32 %v12495_v31, %v12494_v4 }
 0xe24   : > { %v12469_v49 = vpop.f32.mrf.mxu0 }
 0xe26   : > { %v12470_v59 = vpop.f32.mrf.mxu0 }
 0xe27   : > { %v12471_v3 = vadd.f32 %v12470_v59, %v12469_v49 }
 0xe28   : > { %v12472_v51 = vpop.f32.mrf.mxu0 }
 0xe29   : > { %v10528_v57 = vadd.f32 %v12471_v3, %v10487_v14 }
 0xe2a   : > { %v12473_v0 = vpop.f32.mrf.mxu0 }
 0xe2b   : > { %v12474_v6 = vadd.f32 %v12473_v0, %v12472_v51  ;;  %v10569_v10 = vadd.f32 %v12493_v54, %v10528_v57 }
 0xe2d   : > { %v10531_v11 = vadd.f32 %v12474_v6, %v10490_v13 }
 0xe2f   : > { %v10572_v42 = vadd.f32 %v12496_v25, %v10531_v11 }
 0xe35   : > { %v12535_v21 = vpop.f32.mrf.mxu1 }
 0xe37   : > { %v12536_v62 = vpop.f32.mrf.mxu1 }
 0xe38   : > { %v12537_v26 = vadd.f32 %v12536_v62, %v12535_v21 }
 0xe39   : > { %v12538_v12 = vpop.f32.mrf.mxu1 }
 0xe3b   : > { %v12539_v2 = vpop.f32.mrf.mxu1 }
 0xe3c   : > { %v12540_v50 = vadd.f32 %v12539_v2, %v12538_v12 }
 0xe44   : > { %v12513_v34 = vpop.f32.mrf.mxu0 }
 0xe46   : > { %v12514_v39 = vpop.f32.mrf.mxu0 }
 0xe47   : > { %v12515_v63 = vadd.f32 %v12514_v39, %v12513_v34 }
 0xe48   : > { %v12516_v43 = vpop.f32.mrf.mxu0 }
 0xe49   : > { %v10610_v16 = vadd.f32 %v12515_v63, %v10569_v10 }
 0xe4a   : > { %v12517_v19 = vpop.f32.mrf.mxu0 }
 0xe4b   : > { %v12518_v46 = vadd.f32 %v12517_v19, %v12516_v43  ;;  %v10651_v29 = vadd.f32 %v12537_v26, %v10610_v16 }
 0xe4d   : > { %v10613_v18 = vadd.f32 %v12518_v46, %v10572_v42 }
 0xe4f   : > { %v10654_v41 = vadd.f32 %v12540_v50, %v10613_v18 }
 0xe64   : > { %v12557_v17 = vpop.f32.mrf.mxu0 }
 0xe66   : > { %v12558_v27 = vpop.f32.mrf.mxu0 }
 0xe67   : > { %v12559_v33 = vadd.f32 %v12558_v27, %v12557_v17 }
 0xe68   : > { %v12560_v15 = vpop.f32.mrf.mxu0 }
 0xe69   : > { %v10692_v9 = vadd.f32 %v12559_v33, %v10651_v29 }
 0xe6a   : > { %v12561_v35 = vpop.f32.mrf.mxu0 }
 0xe6b   : > { %v17052_v45 = vadd.f32 %v10692_v9, %v16256_v32  ;;  %v12562_v28 = vadd.f32 %v12561_v35, %v12560_v15 }
 0xe6d   : > { %10706 = vst [vmem:[#allocation2 + $0x8] sm:$0xff] %v17052_v45  ;;  %v10695_v44 = vadd.f32 %v12562_v28, %v10654_v41  ;;  %10713 = sbr.rel (%p12277_p8) target bundleno = 3937 (0xf61), region = 156 }
 0xe6f   : > { %v17056_v8 = vadd.f32 %v10695_v44, %v16263_v58 }
 0xe71   : > { %10709 = vst [vmem:[#allocation2 + $0x20] sm:$0xff] %v17056_v8 }
 0xe72   : > { %v14321_v40 = vld [vmem:[#allocation26 + $0x78] sm:$0xff]   ;;  %v10763_v22 = vpack.c.bf16 %v17047_v23, %v17039_v38  ;;  %v14915_v52 = vmov 0.0   ;;  %v14324_v60 = vld [vmem:[#allocation26 + $0x70] sm:$0xff]   ;;  %vm14916_vm8 = vmmov 0   ;;  %v14327_v30 = vld [vmem:[#allocation26 + $0x68] sm:$0xff]   ;;  %v10762_v39 = vpack.c.bf16 %v17043_v61, %v17035_v55 }
 0xe73   : > { %12774 = vmatprep.subr.bf16.mxu1 %v14915_v52  ;;  %v14322_v32 = vld [vmem:[#allocation26 + $0x38] sm:$0xff]   ;;  %12563 = vmatprep.subr.bf16.mxu0 %v14321_v40  ;;  %v14325_v58 = vld [vmem:[#allocation26 + $0x30] sm:$0xff]   ;;  %v14328_v20 = vld [vmem:[#allocation26 + $0x28] sm:$0xff]   ;;  %v10764_v3 = vpack.c.bf16 %v17056_v8, %v17052_v45 }
 0xe74   : > { %v14323_v56 = vld [vmem:[#allocation26 + $0xb8] sm:$0xff]   ;;  %10948 = vmatprep.mubr.bf16.mxu0 %v10763_v22  ;;  %12564 = vmatpush3.bf16.msra.mxu0 %v14322_v32  ;;  %v14326_v24 = vld [vmem:[#allocation26 + $0xb0] sm:$0xff]   ;;  %v14329_v38 = vld [vmem:[#allocation26 + $0xa8] sm:$0xff]  }
 0xe75   : > { %12790 = vmatprep.mubr.msk.bf16.mxu1 %vm14916_vm8, %v14915_v52  ;;  %12775 = vmatpush3.bf16.msra.mxu1 %v14323_v56  ;;  %v14330_v23 = vld [vmem:[#allocation26 + $0x60] sm:$0xff]   ;;  %v14333_v49 = vld [vmem:[#allocation26 + $0x58] sm:$0xff]   ;;  %v14336_v48 = vld [vmem:[#allocation26 + $0x50] sm:$0xff]  }
 0xe76   : > { %12565 = vmatprep.subr.bf16.mxu0 %v14324_v60  ;;  %12776 = vmatprep.subr.bf16.mxu1 %v14915_v52  ;;  %v14331_v53 = vld [vmem:[#allocation26 + $0x20] sm:$0xff]   ;;  %v14334_v37 = vld [vmem:[#allocation26 + $0x18] sm:$0xff]   ;;  %v14337_v51 = vld [vmem:[#allocation26 + $0x10] sm:$0xff]  }
 0xe77   : > { %v14332_v5 = vld [vmem:[#allocation26 + $0xa0] sm:$0xff]   ;;  %v14335_v59 = vld [vmem:[#allocation26 + $0x98] sm:$0xff]   ;;  %v14338_v36 = vld [vmem:[#allocation26 + $0x90] sm:$0xff]  }
 0xe78   : > { %12566 = vmatpush3.bf16.msra.mxu0 %v14325_v58  ;;  %v14339_v0 = vld [vmem:[#allocation26 + $0x48] sm:$0xff]   ;;  %v14342_v47 = vld [vmem:[#allocation26 + $0x40] sm:$0xff]  }
 0xe79   : > { %12777 = vmatpush3.bf16.msra.mxu1 %v14326_v24  ;;  %12567 = vmatprep.subr.bf16.mxu0 %v14327_v30  ;;  %v14340_v4 = vld [vmem:[#allocation26 + $0x8] sm:$0xff]   ;;  %v14343_v1 = vld [vmem:[#allocation26] sm:$0xff]  }
 0xe7a   : > { %12778 = vmatprep.subr.bf16.mxu1 %v14915_v52  ;;  %v14341_v34 = vld [vmem:[#allocation26 + $0x88] sm:$0xff]   ;;  %v14344_v31 = vld [vmem:[#allocation26 + $0x80] sm:$0xff]  }
 0xe7b   : > { %v12278_v7 = vld [vmem:[#allocation27] ss:$0 sm:$0xff] }
 0xe7c   : > { %12568 = vmatpush3.bf16.msra.mxu0 %v14328_v20 }
 0xe7d   : > { %12779 = vmatpush3.bf16.msra.mxu1 %v14329_v38  ;;  %12569 = vmatprep.subr.bf16.mxu0 %v14330_v23 }
 0xe7e   : > { %12780 = vmatprep.subr.bf16.mxu1 %v14915_v52 }
 0xe80   : > { %12570 = vmatpush3.bf16.msra.mxu0 %v14331_v53 }
 0xe81   : > { %12781 = vmatpush3.bf16.msra.mxu1 %v14332_v5  ;;  %12571 = vmatprep.subr.bf16.mxu0 %v14333_v49 }
 0xe82   : > { %12782 = vmatprep.subr.bf16.mxu1 %v14915_v52 }
 0xe84   : > { %12572 = vmatpush3.bf16.msra.mxu0 %v14334_v37 }
 0xe85   : > { %12783 = vmatpush3.bf16.msra.mxu1 %v14335_v59  ;;  %12573 = vmatprep.subr.bf16.mxu0 %v14336_v48 }
 0xe86   : > { %12784 = vmatprep.subr.bf16.mxu1 %v14915_v52 }
 0xe88   : > { %12574 = vmatpush3.bf16.msra.mxu0 %v14337_v51 }
 0xe89   : > { %12785 = vmatpush3.bf16.msra.mxu1 %v14338_v36  ;;  %12575 = vmatprep.subr.bf16.mxu0 %v14339_v0 }
 0xe8a   : > { %12786 = vmatprep.subr.bf16.mxu1 %v14915_v52 }
 0xe8c   : > { %12576 = vmatpush3.bf16.msra.mxu0 %v14340_v4 }
 0xe8d   : > { %12787 = vmatpush3.bf16.msra.mxu1 %v14341_v34  ;;  %12577 = vmatprep.subr.bf16.mxu0 %v14342_v47 }
 0xe8e   : > { %12788 = vmatprep.subr.bf16.mxu1 %v14915_v52 }
 0xe90   : > { %12578 = vmatpush3.bf16.msra.mxu0 %v14343_v1 }
 0xe91   : > { %12789 = vmatpush3.bf16.msra.mxu1 %v14344_v31 }
 0xe93   : > { %10949 = vmatmul.mubr.bf16.vlgmr.msra.gmra.mxu0 %v10762_v39 }
 0xe94   : > { %12791 = vmatmul.mubr.bf16.vlgmr.msra.gmra.mxu1 %v10764_v3 }
 0xf53   : > { %v12579_v21 = vpop.f32.mrf.mxu0 }
 0xf54   : > { %v10991_v14 = vpop.f32.mrf.mxu1 }
 0xf55   : > { %v12580_v43 = vpop.f32.mrf.mxu0 }
 0xf56   : > { %v12581_v57 = vadd.f32 %v12580_v43, %v12579_v21  ;;  %v12792_v6 = vpop.f32.mrf.mxu1 }
 0xf57   : > { %v12582_v62 = vpop.f32.mrf.mxu0 }
 0xf58   : > { %v10951_v13 = vadd.f32 %v12581_v57, %v12278_v7  ;;  %v10994_v54 = vpop.f32.mrf.mxu1 }
 0xf59   : > { %v12583_v63 = vpop.f32.mrf.mxu0 }
 0xf5a   : > { %v10992_v19 = vadd.f32 %v10991_v14, %v10951_v13  ;;  %v12584_v11 = vadd.f32 %v12583_v63, %v12582_v62  ;;  %v12793_v55 = vpop.f32.mrf.mxu1 }
 0xf5c   : > { %10998 = vst [vmem:[#allocation29] sm:$0xff] %v10992_v19  ;;  %v10954_v61 = vadd.f32 %v12584_v11, %v12278_v7 }
 0xf5e   : > { %v10995_v10 = vadd.f32 %v10994_v54, %v10954_v61 }
 0xf60   : > { %10999 = vst [vmem:[#allocation29 + $0x8] sm:$0xff] %v10995_v10 }
 0xf61 PF: > { %s17204_s0 = sld [smem:[#allocation43_spill]]  ;;  %s14917_s17 = smov [#allocation29]  }
 0xf62   : > { %s11006_s9 = sshll.u32 %s14917_s17, 4  ;;  %s11007_s9 = int_to_ptr.vmem [resolvable:$true] %s11006_s9 }
 0xf63   : > { %s14783_s26 = scalar_lea.vmem %s11007_s9, 256  ;;  %p14790_p5 = scmp.lt.s32.totalorder %s11007_s9, %s11007_s9 }
 0xf64   : > { %p14784_p12 = scmp.ne.s32.totalorder %s11007_s9, %s14783_s26  ;;  %p14791_p2 = scmp.lt.s32.totalorder %s14783_s26, %s14783_s26 }
 0xf66   : > { %p14792_p3 = por %p14791_p2, %p14790_p5 }
 0xf67   : > { %p12928_p10 = scmp.eq.s32.totalorder %s17204_s0, 5 }
 0xf69   : > { %p14785_p1 = pnand %p14784_p12, %p12928_p10 }
 0xf6b   : > { %p14786_p6 = pneg %p14785_p1 }
 0xf6d   : > { %p14793_p13 = pnand %p14792_p3, %p14786_p6 }
 0xf6f   : > { %14796 = shalt.err (!%p14793_p13)
}
 0xf70   : > { %s14918_s28 = smov 128   ;;  %s14919_s27 = smov 8  }
 0xf71   : > { %s17205_s23 = sld [smem:[#allocation58_spill]] }
 0xf77   : > { %12864 = dma.vmem_to_hbm [thread:$0]  (%p12928_p10), %s11007_s9, 256, %s17205_s23, [#allocation5], %s14918_s28, %s14918_s28, %s14919_s27  }
 0xf78   : > { %14864 = dma.done.wait (%p12928_p10), [#allocation5], 256  }
 0xf79   : > { %14866 = vsyncadd (%p12928_p10), [#allocation5], 4294967040 }
 0xf7a PF: > { %s17206_s24 = sld [smem:[#allocation44_spill]] }
 0xf7b   : > { %s17207_s21 = sld [smem:[#allocation41_spill]] }
 0xf7c   : > { %s17208_s22 = sld [smem:[#allocation42_spill]] }
 0xf7d   : > { %s17209_s23 = sld [smem:[#allocation45_spill]] }
 0xf80   : > { %p45_p7 = scmp.ge.s32.totalorder %s17206_s24, 8  }
 0xf82   :  { %47 = sbr.rel (!%p45_p7) target bundleno = 29 (0x1d), region = 270 }
 0xf87   :  { %11022 = vsyncpa [#allocation4], 1 }
 0xf88   :  { %11024 = vsyncpa [#allocation4 + $0x1], 1 }
 0xf89   :  { %11025 = vsyncpa [#allocation7], 1 }
 0xf8a   :  { %11026 = vsyncpa [#allocation10], 1 }
 0xf8b   :  { %11028 = vsyncpa [#allocation10 + $0x1], 1 }
 0xf8c   :  { %11029 = vsyncpa [#allocation13], 1 }
 0xf8d   :  { %11031 = vsyncpa [#allocation13 + $0x1], 1 }
 0xf8e   :  { %11032 = vsyncpa [#allocation16], 1 }
 0xf8f   :  { %11034 = vsyncpa [#allocation16 + $0x1], 1 }
 0xf90   :  { %11035 = vsyncpa [#allocation19], 1 }
 0xf91   :  { %11037 = vsyncpa [#allocation19 + $0x1], 1 }
 0xf92   :  { %11038 = vsyncpa [#allocation22], 1 }
 0xf93   :  { %11040 = vsyncpa [#allocation22 + $0x1], 1 }
 0xf94   :  { %11041 = vsyncpa [#allocation25], 1 }
 0xf95   :  { %11043 = vsyncpa [#allocation25 + $0x1], 1 }
 0xf96   :  { %11044 = vsyncpa [#allocation28], 1 }
 0xf97   :  { %11045 = vsyncpa [#allocation5], 1 }
 0xf98   :  { %11047 = vsyncpa [#allocation5 + $0x1], 1 }

</bundles_post_ra>
